<compile_context>
chip_gen: v6e
topology: v6e:2x2x1
jax: 0.10.0
libtpu: 0.0.40
codegen_flags: <defaults>
</compile_context>

<pallas_src>
import jax
import jax.numpy as jnp
from jax.experimental import pallas as pl
from jax.experimental.pallas import tpu as pltpu

EPS = 1e-5
LANE = 128


def _pick_row_chunk(H, W):
    """Largest divisor of H with chunk rows (hc*W) <= ~64 -> bounded vreg pressure."""
    target = max(1, 64 // max(W, 1))
    hc = 1
    for d in range(1, min(H, target) + 1):
        if H % d == 0:
            hc = d
    return hc


def _make_kernel(HC):
    def kernel(x_ref, w1_ref, w2_ref, g1_ref, b1_ref, g2_ref, b2_ref,
               out_ref, pad_ref):
        N, H, W, C = x_ref.shape          # C already padded to a multiple of 128
        CPI = H // HC                     # row-chunks per image
        MC = HC * W                       # flattened rows per chunk
        M = N * H * W
        inv_m = 1.0 / M
        f32 = jnp.float32
        bf16 = jnp.bfloat16

        # ---- zero ONLY the 1-wide halo ring of the bf16 padded scratch ----
        pad_ref[:, 0:1, :, :] = jnp.zeros((N, 1, W + 2, C), bf16)
        pad_ref[:, H + 1:H + 2, :, :] = jnp.zeros((N, 1, W + 2, C), bf16)
        pad_ref[:, :, 0:1, :] = jnp.zeros((N, H + 2, 1, C), bf16)
        pad_ref[:, :, W + 1:W + 2, :] = jnp.zeros((N, H + 2, 1, C), bf16)

        # ---- interior <- x, cast to bf16 exactly once (chunked) ----
        for n in range(N):
            def fill_body(hb, _, n=n):
                h0 = hb * HC
                pad_ref[n, pl.ds(h0 + 1, HC), 1:W + 1, :] = (
                    x_ref[n, pl.ds(h0, HC), :, :].astype(bf16))
                return 0
            jax.lax.fori_loop(0, CPI, fill_body, 0)

        def conv_pass(w_ref):
            """3x3 conv of pad interior -> out_ref (f32).  Per chunk the 3 dx windows
            are concatenated along K (K=3*C) so each dy is ONE bf16 MXU matmul, with
            register-resident f32 accumulation (no VMEM accumulator RMW).  The BN
            column sum (mean numerator) is fused into the epilogue."""
            colsum = jnp.zeros((1, C), f32)
            for n in range(N):
                def body(hb, cs, n=n):
                    h0 = hb * HC
                    acc = None
                    for dy in range(3):                       # static: 3 dots / chunk
                        win = jnp.concatenate(
                            [pad_ref[n, pl.ds(h0 + dy, HC), dx:dx + W, :]
                             .reshape(MC, C) for dx in range(3)], axis=-1)
                        part = jnp.dot(win, w_ref[dy], preferred_element_type=f32)
                        acc = part if acc is None else acc + part
                    out_ref[n, pl.ds(h0, HC), :, :] = acc.reshape(HC, W, C)
                    return cs + jnp.sum(acc, axis=0, keepdims=True)
                colsum = jax.lax.fori_loop(0, CPI, body, colsum)
            return colsum

        def var_pass(mean):
            """Centered (two-pass) biased variance over (N,H,W), chunked."""
            vsum = jnp.zeros((1, C), f32)
            for n in range(N):
                def body(hb, vs, n=n):
                    h0 = hb * HC
                    d = out_ref[n, pl.ds(h0, HC), :, :].reshape(MC, C) - mean
                    return vs + jnp.sum(d * d, axis=0, keepdims=True)
                vsum = jax.lax.fori_loop(0, CPI, body, vsum)
            return vsum

        def bn1_apply(mean, rstd, gamma, beta):
            """normalize -> relu -> bf16 -> pad interior (conv2 input), chunked."""
            for n in range(N):
                def body(hb, _, n=n):
                    h0 = hb * HC
                    y = out_ref[n, pl.ds(h0, HC), :, :].reshape(MC, C)
                    y = jnp.maximum((y - mean) * rstd * gamma + beta, 0.0)
                    pad_ref[n, pl.ds(h0 + 1, HC), 1:W + 1, :] = (
                        y.reshape(HC, W, C).astype(bf16))
                    return 0
                jax.lax.fori_loop(0, CPI, body, 0)

        def bn2_apply(mean, rstd, gamma, beta):
            """normalize -> + identity residual -> relu -> out_ref in place, chunked."""
            for n in range(N):
                def body(hb, _, n=n):
                    h0 = hb * HC
                    y = out_ref[n, pl.ds(h0, HC), :, :].reshape(MC, C)
                    r = x_ref[n, pl.ds(h0, HC), :, :].reshape(MC, C)
                    y = (y - mean) * rstd * gamma + beta
                    out_ref[n, pl.ds(h0, HC), :, :] = (
                        jnp.maximum(y + r, 0.0).reshape(HC, W, C))
                    return 0
                jax.lax.fori_loop(0, CPI, body, 0)

        # ---- conv1 -> bn1 -> relu (written into pad interior for conv2) ----
        mean1 = conv_pass(w1_ref) * inv_m
        rstd1 = jax.lax.rsqrt(var_pass(mean1) * inv_m + EPS)
        bn1_apply(mean1, rstd1, g1_ref[...], b1_ref[...])

        # ---- conv2 -> bn2 -> + x -> relu (lane-dense final store) ----
        mean2 = conv_pass(w2_ref) * inv_m
        rstd2 = jax.lax.rsqrt(var_pass(mean2) * inv_m + EPS)
        bn2_apply(mean2, rstd2, g2_ref[...], b2_ref[...])

    return kernel


def _pad_channels(a, axis):
    c = a.shape[axis]
    cp = -(-c // LANE) * LANE
    if cp == c:
        return a
    pads = [(0, 0)] * a.ndim
    pads[axis] = (0, cp - c)
    return jnp.pad(a, pads)


def basicblock_forward(x_nchw, params):
    """x_nchw: (N, Cin, H, W) float32, PyTorch layout. Identity-residual BasicBlock."""
    w1, w2, g1, b1, g2, b2 = params
    N, Cin, H, W = x_nchw.shape
    planes = w1.shape[-1]
    assert planes == Cin, "identity residual requires inplanes == planes (stride=1, no downsample)"

    # NCHW -> NHWC at the boundary (layout plumbing for the PyTorch interface).
    x = jnp.transpose(x_nchw, (0, 2, 3, 1))

    # Lane-dense channel padding: padded channels have zero weights / gamma / beta,
    # so they stay exactly zero through both convs, both BNs and the residual add.
    xp = _pad_channels(x, 3)
    Cp = xp.shape[-1]

    def prep_w(w):
        wp = _pad_channels(_pad_channels(w, 2), 3)               # (3, 3, Cp, Cp) HWIO
        return wp.reshape(3, 3 * Cp, Cp).astype(jnp.bfloat16)    # per-dy K = dx*Cp + cin

    w1p, w2p = prep_w(w1), prep_w(w2)
    g1p, b1p = _pad_channels(g1, 1), _pad_channels(b1, 1)
    g2p, b2p = _pad_channels(g2, 1), _pad_channels(b2, 1)

    HC = _pick_row_chunk(H, W)
    M = N * H * W

    # VMEM budget from actual sizes (not a hard 32 MiB), capped below physical VMEM.
    pad_bytes = N * (H + 2) * (W + 2) * Cp * 2
    operand_bytes = ((xp.size + M * Cp) * 4 + (w1p.size + w2p.size) * 2
                     + (g1p.size + b1p.size + g2p.size + b2p.size) * 4)
    phys = 64 * 2**20
    try:
        phys = int(getattr(pltpu.get_tpu_info(), "vmem_capacity_bytes", phys)) or phys
    except Exception:
        pass
    cap = min(int(phys * 3 // 4), 100 * 2**20)
    vmem_limit = int(min(max(4 * (operand_bytes + pad_bytes), 16 * 2**20), cap))

    flops = 2 * 2 * M * 9 * Cp * Cp                      # two 3x3 convs (padded K)
    bytes_accessed = operand_bytes + pad_bytes
    vmem = pl.BlockSpec(memory_space=pltpu.MemorySpace.VMEM)

    out_nhwc = pl.pallas_call(
        _make_kernel(HC),
        out_shape=jax.ShapeDtypeStruct((N, H, W, Cp), jnp.float32),
        in_specs=[vmem] * 7,
        out_specs=vmem,
        scratch_shapes=[pltpu.VMEM((N, H + 2, W + 2, Cp), jnp.bfloat16)],
        compiler_params=pltpu.CompilerParams(vmem_limit_bytes=vmem_limit),
        cost_estimate=pl.CostEstimate(flops=flops, transcendentals=2 * Cp,
                                      bytes_accessed=bytes_accessed),
    )(xp, w1p, w2p, g1p, b1p, g2p, b2p)

    out = out_nhwc[..., :Cin]
    return jnp.transpose(out, (0, 3, 1, 2))   # NHWC -> NCHW


def init_params(key, inplanes, planes):
    """Deterministic synthetic parameters.  Conv weights stored in HWIO:
       PyTorch conv.weight (out, in, 3, 3) -> (3, 3, in, out)."""
    ks = jax.random.split(key, 6)
    w1 = 0.1 * jax.random.normal(ks[0], (3, 3, inplanes, planes), jnp.float32)
    w2 = 0.1 * jax.random.normal(ks[1], (3, 3, planes, planes), jnp.float32)
    g1 = 1.0 + 0.1 * jax.random.normal(ks[2], (1, planes), jnp.float32)
    b1 = 0.1 * jax.random.normal(ks[3], (1, planes), jnp.float32)
    g2 = 1.0 + 0.1 * jax.random.normal(ks[4], (1, planes), jnp.float32)
    b2 = 0.1 * jax.random.normal(ks[5], (1, planes), jnp.float32)
    return (w1, w2, g1, b1, g2, b2)


def reference(x_nchw, params):
    """Pure-JAX reference (lax convs, same bf16 MXU-operand rounding as the kernel)."""
    w1, w2, g1, b1, g2, b2 = params
    x = jnp.transpose(x_nchw, (0, 2, 3, 1))
    dn = ('NHWC', 'HWIO', 'NHWC')

    def conv(y, w):
        return jax.lax.conv_general_dilated(
            y.astype(jnp.bfloat16), w.astype(jnp.bfloat16), (1, 1), 'SAME',
            dimension_numbers=dn, preferred_element_type=jnp.float32)

    def bn(y, g, b):
        mean = jnp.mean(y, axis=(0, 1, 2), keepdims=True)
        c = y - mean
        var = jnp.mean(c * c, axis=(0, 1, 2), keepdims=True)
        return (c * jax.lax.rsqrt(var + EPS) * g.reshape(1, 1, 1, -1)
                + b.reshape(1, 1, 1, -1))

    y = jnp.maximum(bn(conv(x, w1), g1, b1), 0.0)
    y = bn(conv(y, w2), g2, b2)
    y = jnp.maximum(y + x, 0.0)
    return jnp.transpose(y, (0, 3, 1, 2))


if __name__ == "__main__":
    key = jax.random.PRNGKey(0)
    kx, kp = jax.random.split(key)

    # BasicBlock(inplanes=4, planes=4), stride=1, no downsample (identity residual).
    N, planes, H, W = 2, 4, 16, 16
    x = jax.random.normal(kx, (N, planes, H, W), jnp.float32)
    params = init_params(kp, planes, planes)

    out = jax.block_until_ready(basicblock_forward(x, params))
    ref = reference(x, params)

    assert out.shape == (N, planes, H, W)
    assert jnp.allclose(out, ref, atol=5e-3, rtol=5e-3), \
        float(jnp.max(jnp.abs(out - ref)))

    print("KERNEL_OK")
</pallas_src>

<mosaic_0001>
module attributes {stable_mosaic.version = 11 : i64} {
  func.func @kernel(%arg0: memref<2x16x16x128xf32, #tpu.memory_space<vmem>>, %arg1: memref<3x384x128xbf16, #tpu.memory_space<vmem>>, %arg2: memref<3x384x128xbf16, #tpu.memory_space<vmem>>, %arg3: memref<1x128xf32, #tpu.memory_space<vmem>>, %arg4: memref<1x128xf32, #tpu.memory_space<vmem>>, %arg5: memref<1x128xf32, #tpu.memory_space<vmem>>, %arg6: memref<1x128xf32, #tpu.memory_space<vmem>>, %arg7: memref<2x16x16x128xf32, #tpu.memory_space<vmem>>, %arg8: memref<2x18x18x128xbf16, #tpu.memory_space<vmem>>) attributes {dimension_semantics = [], scalar_prefetch = 0 : i64, scratch_operands = 1 : i64, tpu.core_type = #tpu.core_type<tc>} {
    %cst = arith.constant 0.000000e+00 : bf16
    %0 = vector.broadcast %cst : bf16 to vector<2x1x18x128xbf16>
    %c0 = arith.constant 0 : index
    %c0_0 = arith.constant 0 : index
    %c0_1 = arith.constant 0 : index
    %c0_2 = arith.constant 0 : index
    %1 = vector.load %arg8[%c0, %c0_0, %c0_1, %c0_2] : memref<2x18x18x128xbf16, #tpu.memory_space<vmem>>, vector<2x1x18x128xbf16>
    tpu.vector_store %arg8[%c0, %c0_0, %c0_1, %c0_2], %0 {strides = array<i32>} : memref<2x18x18x128xbf16, #tpu.memory_space<vmem>>, vector<2x1x18x128xbf16>,
    %cst_3 = arith.constant 0.000000e+00 : bf16
    %2 = vector.broadcast %cst_3 : bf16 to vector<2x1x18x128xbf16>
    %c0_4 = arith.constant 0 : index
    %c17 = arith.constant 17 : index
    %c0_5 = arith.constant 0 : index
    %c0_6 = arith.constant 0 : index
    %3 = vector.load %arg8[%c0_4, %c17, %c0_5, %c0_6] : memref<2x18x18x128xbf16, #tpu.memory_space<vmem>>, vector<2x1x18x128xbf16>
    tpu.vector_store %arg8[%c0_4, %c17, %c0_5, %c0_6], %2 {strides = array<i32>} : memref<2x18x18x128xbf16, #tpu.memory_space<vmem>>, vector<2x1x18x128xbf16>,
    %cst_7 = arith.constant 0.000000e+00 : bf16
    %4 = vector.broadcast %cst_7 : bf16 to vector<2x18x1x128xbf16>
    %c0_8 = arith.constant 0 : index
    %c0_9 = arith.constant 0 : index
    %c0_10 = arith.constant 0 : index
    %c0_11 = arith.constant 0 : index
    %5 = vector.load %arg8[%c0_8, %c0_9, %c0_10, %c0_11] : memref<2x18x18x128xbf16, #tpu.memory_space<vmem>>, vector<2x18x1x128xbf16>
    tpu.vector_store %arg8[%c0_8, %c0_9, %c0_10, %c0_11], %4 {strides = array<i32>} : memref<2x18x18x128xbf16, #tpu.memory_space<vmem>>, vector<2x18x1x128xbf16>,
    %cst_12 = arith.constant 0.000000e+00 : bf16
    %6 = vector.broadcast %cst_12 : bf16 to vector<2x18x1x128xbf16>
    %c0_13 = arith.constant 0 : index
    %c0_14 = arith.constant 0 : index
    %c17_15 = arith.constant 17 : index
    %c0_16 = arith.constant 0 : index
    %7 = vector.load %arg8[%c0_13, %c0_14, %c17_15, %c0_16] : memref<2x18x18x128xbf16, #tpu.memory_space<vmem>>, vector<2x18x1x128xbf16>
    tpu.vector_store %arg8[%c0_13, %c0_14, %c17_15, %c0_16], %6 {strides = array<i32>} : memref<2x18x18x128xbf16, #tpu.memory_space<vmem>>, vector<2x18x1x128xbf16>,
    %c0_i32 = arith.constant 0 : i32
    %c4_i32 = arith.constant 4 : i32
    %8 = arith.addi %c0_i32, %c4_i32 : i32
    %c1_i32 = arith.constant 1 : i32
    scf.for %arg9 = %c0_i32 to %8 step %c1_i32  : i32 {
      %c4_i32_88 = arith.constant 4 : i32
      %52 = arith.muli %arg9, %c4_i32_88 : i32
      %c0_89 = arith.constant 0 : index
      %53 = arith.index_cast %52 : i32 to index
      %c0_90 = arith.constant 0 : index
      %c0_91 = arith.constant 0 : index
      %54 = vector.load %arg0[%c0_89, %53, %c0_90, %c0_91] : memref<2x16x16x128xf32, #tpu.memory_space<vmem>>, vector<1x4x16x128xf32>
      %55 = vector.shape_cast %54 : vector<1x4x16x128xf32> to vector<4x16x128xf32>
      %56 = arith.truncf %55 : vector<4x16x128xf32> to vector<4x16x128xbf16>
      %c1_i32_92 = arith.constant 1 : i32
      %57 = arith.addi %52, %c1_i32_92 : i32
      %c0_93 = arith.constant 0 : index
      %58 = arith.index_cast %57 : i32 to index
      %c1 = arith.constant 1 : index
      %c0_94 = arith.constant 0 : index
      %59 = vector.load %arg8[%c0_93, %58, %c1, %c0_94] : memref<2x18x18x128xbf16, #tpu.memory_space<vmem>>, vector<1x4x16x128xbf16>
      %60 = vector.shape_cast %59 : vector<1x4x16x128xbf16> to vector<4x16x128xbf16>
      %61 = vector.shape_cast %56 : vector<4x16x128xbf16> to vector<1x4x16x128xbf16>
      tpu.vector_store %arg8[%c0_93, %58, %c1, %c0_94], %61 {strides = array<i32>} : memref<2x18x18x128xbf16, #tpu.memory_space<vmem>>, vector<1x4x16x128xbf16>,
    }
    %c4_i32_17 = arith.constant 4 : i32
    %c0_i32_18 = arith.constant 0 : i32
    %c4_i32_19 = arith.constant 4 : i32
    %9 = arith.addi %c0_i32_18, %c4_i32_19 : i32
    %c1_i32_20 = arith.constant 1 : i32
    scf.for %arg9 = %c0_i32_18 to %9 step %c1_i32_20  : i32 {
      %c4_i32_88 = arith.constant 4 : i32
      %52 = arith.muli %arg9, %c4_i32_88 : i32
      %c1 = arith.constant 1 : index
      %53 = arith.index_cast %52 : i32 to index
      %c0_89 = arith.constant 0 : index
      %c0_90 = arith.constant 0 : index
      %54 = vector.load %arg0[%c1, %53, %c0_89, %c0_90] : memref<2x16x16x128xf32, #tpu.memory_space<vmem>>, vector<1x4x16x128xf32>
      %55 = vector.shape_cast %54 : vector<1x4x16x128xf32> to vector<4x16x128xf32>
      %56 = arith.truncf %55 : vector<4x16x128xf32> to vector<4x16x128xbf16>
      %c1_i32_91 = arith.constant 1 : i32
      %57 = arith.addi %52, %c1_i32_91 : i32
      %c1_92 = arith.constant 1 : index
      %58 = arith.index_cast %57 : i32 to index
      %c1_93 = arith.constant 1 : index
      %c0_94 = arith.constant 0 : index
      %59 = vector.load %arg8[%c1_92, %58, %c1_93, %c0_94] : memref<2x18x18x128xbf16, #tpu.memory_space<vmem>>, vector<1x4x16x128xbf16>
      %60 = vector.shape_cast %59 : vector<1x4x16x128xbf16> to vector<4x16x128xbf16>
      %61 = vector.shape_cast %56 : vector<4x16x128xbf16> to vector<1x4x16x128xbf16>
      tpu.vector_store %arg8[%c1_92, %58, %c1_93, %c0_94], %61 {strides = array<i32>} : memref<2x18x18x128xbf16, #tpu.memory_space<vmem>>, vector<1x4x16x128xbf16>,
    }
    %c4_i32_21 = arith.constant 4 : i32
    %cst_22 = arith.constant 0.000000e+00 : f32
    %10 = vector.broadcast %cst_22 : f32 to vector<1x128xf32>
    %c0_i32_23 = arith.constant 0 : i32
    %c4_i32_24 = arith.constant 4 : i32
    %11 = arith.addi %c0_i32_23, %c4_i32_24 : i32
    %c1_i32_25 = arith.constant 1 : i32
    %12 = scf.for %arg9 = %c0_i32_23 to %11 step %c1_i32_25 iter_args(%arg10 = %10) -> (vector<1x128xf32>)  : i32 {
      %c4_i32_88 = arith.constant 4 : i32
      %52 = arith.muli %arg9, %c4_i32_88 : i32
      %c0_i32_89 = arith.constant 0 : i32
      %53 = arith.addi %52, %c0_i32_89 : i32
      %c0_90 = arith.constant 0 : index
      %54 = arith.index_cast %53 : i32 to index
      %c0_91 = arith.constant 0 : index
      %c0_92 = arith.constant 0 : index
      %55 = vector.load %arg8[%c0_90, %54, %c0_91, %c0_92] : memref<2x18x18x128xbf16, #tpu.memory_space<vmem>>, vector<1x4x16x128xbf16>
      %56 = vector.shape_cast %55 : vector<1x4x16x128xbf16> to vector<4x16x128xbf16>
      %57 = vector.shape_cast %56 : vector<4x16x128xbf16> to vector<64x128xbf16>
      %c0_i32_93 = arith.constant 0 : i32
      %58 = arith.addi %52, %c0_i32_93 : i32
      %c0_94 = arith.constant 0 : index
      %59 = arith.index_cast %58 : i32 to index
      %c1 = arith.constant 1 : index
      %c0_95 = arith.constant 0 : index
      %60 = vector.load %arg8[%c0_94, %59, %c1, %c0_95] : memref<2x18x18x128xbf16, #tpu.memory_space<vmem>>, vector<1x4x16x128xbf16>
      %61 = vector.shape_cast %60 : vector<1x4x16x128xbf16> to vector<4x16x128xbf16>
      %62 = vector.shape_cast %61 : vector<4x16x128xbf16> to vector<64x128xbf16>
      %c0_i32_96 = arith.constant 0 : i32
      %63 = arith.addi %52, %c0_i32_96 : i32
      %c0_97 = arith.constant 0 : index
      %64 = arith.index_cast %63 : i32 to index
      %c2 = arith.constant 2 : index
      %c0_98 = arith.constant 0 : index
      %65 = vector.load %arg8[%c0_97, %64, %c2, %c0_98] : memref<2x18x18x128xbf16, #tpu.memory_space<vmem>>, vector<1x4x16x128xbf16>
      %66 = vector.shape_cast %65 : vector<1x4x16x128xbf16> to vector<4x16x128xbf16>
      %67 = vector.shape_cast %66 : vector<4x16x128xbf16> to vector<64x128xbf16>
      %68 = tpu.concatenate %57, %62, %67 in 1 : vector<64x128xbf16>, vector<64x128xbf16>, vector<64x128xbf16> -> vector<64x384xbf16>
      %c0_99 = arith.constant 0 : index
      %c0_100 = arith.constant 0 : index
      %c0_101 = arith.constant 0 : index
      %69 = vector.load %arg1[%c0_99, %c0_100, %c0_101] : memref<3x384x128xbf16, #tpu.memory_space<vmem>>, vector<1x384x128xbf16>
      %70 = vector.shape_cast %69 : vector<1x384x128xbf16> to vector<384x128xbf16>
      %cst_102 = arith.constant dense<0.000000e+00> : vector<64x128xf32>
      %71 = tpu.matmul %68, %70, %cst_102 {dimension_numbers = #tpu.dot_dimension_numbers<[1], [0], [0], [1], [0, 0, 1, 1], [], []>} : vector<64x384xbf16>, vector<384x128xbf16>, vector<64x128xf32> -> vector<64x128xf32>
      %c1_i32_103 = arith.constant 1 : i32
      %72 = arith.addi %52, %c1_i32_103 : i32
      %c0_104 = arith.constant 0 : index
      %73 = arith.index_cast %72 : i32 to index
      %c0_105 = arith.constant 0 : index
      %c0_106 = arith.constant 0 : index
      %74 = vector.load %arg8[%c0_104, %73, %c0_105, %c0_106] : memref<2x18x18x128xbf16, #tpu.memory_space<vmem>>, vector<1x4x16x128xbf16>
      %75 = vector.shape_cast %74 : vector<1x4x16x128xbf16> to vector<4x16x128xbf16>
      %76 = vector.shape_cast %75 : vector<4x16x128xbf16> to vector<64x128xbf16>
      %c1_i32_107 = arith.constant 1 : i32
      %77 = arith.addi %52, %c1_i32_107 : i32
      %c0_108 = arith.constant 0 : index
      %78 = arith.index_cast %77 : i32 to index
      %c1_109 = arith.constant 1 : index
      %c0_110 = arith.constant 0 : index
      %79 = vector.load %arg8[%c0_108, %78, %c1_109, %c0_110] : memref<2x18x18x128xbf16, #tpu.memory_space<vmem>>, vector<1x4x16x128xbf16>
      %80 = vector.shape_cast %79 : vector<1x4x16x128xbf16> to vector<4x16x128xbf16>
      %81 = vector.shape_cast %80 : vector<4x16x128xbf16> to vector<64x128xbf16>
      %c1_i32_111 = arith.constant 1 : i32
      %82 = arith.addi %52, %c1_i32_111 : i32
      %c0_112 = arith.constant 0 : index
      %83 = arith.index_cast %82 : i32 to index
      %c2_113 = arith.constant 2 : index
      %c0_114 = arith.constant 0 : index
      %84 = vector.load %arg8[%c0_112, %83, %c2_113, %c0_114] : memref<2x18x18x128xbf16, #tpu.memory_space<vmem>>, vector<1x4x16x128xbf16>
      %85 = vector.shape_cast %84 : vector<1x4x16x128xbf16> to vector<4x16x128xbf16>
      %86 = vector.shape_cast %85 : vector<4x16x128xbf16> to vector<64x128xbf16>
      %87 = tpu.concatenate %76, %81, %86 in 1 : vector<64x128xbf16>, vector<64x128xbf16>, vector<64x128xbf16> -> vector<64x384xbf16>
      %c1_115 = arith.constant 1 : index
      %c0_116 = arith.constant 0 : index
      %c0_117 = arith.constant 0 : index
      %88 = vector.load %arg1[%c1_115, %c0_116, %c0_117] : memref<3x384x128xbf16, #tpu.memory_space<vmem>>, vector<1x384x128xbf16>
      %89 = vector.shape_cast %88 : vector<1x384x128xbf16> to vector<384x128xbf16>
      %cst_118 = arith.constant dense<0.000000e+00> : vector<64x128xf32>
      %90 = tpu.matmul %87, %89, %cst_118 {dimension_numbers = #tpu.dot_dimension_numbers<[1], [0], [0], [1], [0, 0, 1, 1], [], []>} : vector<64x384xbf16>, vector<384x128xbf16>, vector<64x128xf32> -> vector<64x128xf32>
      %91 = arith.addf %71, %90 : vector<64x128xf32>
      %c2_i32 = arith.constant 2 : i32
      %92 = arith.addi %52, %c2_i32 : i32
      %c0_119 = arith.constant 0 : index
      %93 = arith.index_cast %92 : i32 to index
      %c0_120 = arith.constant 0 : index
      %c0_121 = arith.constant 0 : index
      %94 = vector.load %arg8[%c0_119, %93, %c0_120, %c0_121] : memref<2x18x18x128xbf16, #tpu.memory_space<vmem>>, vector<1x4x16x128xbf16>
      %95 = vector.shape_cast %94 : vector<1x4x16x128xbf16> to vector<4x16x128xbf16>
      %96 = vector.shape_cast %95 : vector<4x16x128xbf16> to vector<64x128xbf16>
      %c2_i32_122 = arith.constant 2 : i32
      %97 = arith.addi %52, %c2_i32_122 : i32
      %c0_123 = arith.constant 0 : index
      %98 = arith.index_cast %97 : i32 to index
      %c1_124 = arith.constant 1 : index
      %c0_125 = arith.constant 0 : index
      %99 = vector.load %arg8[%c0_123, %98, %c1_124, %c0_125] : memref<2x18x18x128xbf16, #tpu.memory_space<vmem>>, vector<1x4x16x128xbf16>
      %100 = vector.shape_cast %99 : vector<1x4x16x128xbf16> to vector<4x16x128xbf16>
      %101 = vector.shape_cast %100 : vector<4x16x128xbf16> to vector<64x128xbf16>
      %c2_i32_126 = arith.constant 2 : i32
      %102 = arith.addi %52, %c2_i32_126 : i32
      %c0_127 = arith.constant 0 : index
      %103 = arith.index_cast %102 : i32 to index
      %c2_128 = arith.constant 2 : index
      %c0_129 = arith.constant 0 : index
      %104 = vector.load %arg8[%c0_127, %103, %c2_128, %c0_129] : memref<2x18x18x128xbf16, #tpu.memory_space<vmem>>, vector<1x4x16x128xbf16>
      %105 = vector.shape_cast %104 : vector<1x4x16x128xbf16> to vector<4x16x128xbf16>
      %106 = vector.shape_cast %105 : vector<4x16x128xbf16> to vector<64x128xbf16>
      %107 = tpu.concatenate %96, %101, %106 in 1 : vector<64x128xbf16>, vector<64x128xbf16>, vector<64x128xbf16> -> vector<64x384xbf16>
      %c2_130 = arith.constant 2 : index
      %c0_131 = arith.constant 0 : index
      %c0_132 = arith.constant 0 : index
      %108 = vector.load %arg1[%c2_130, %c0_131, %c0_132] : memref<3x384x128xbf16, #tpu.memory_space<vmem>>, vector<1x384x128xbf16>
      %109 = vector.shape_cast %108 : vector<1x384x128xbf16> to vector<384x128xbf16>
      %cst_133 = arith.constant dense<0.000000e+00> : vector<64x128xf32>
      %110 = tpu.matmul %107, %109, %cst_133 {dimension_numbers = #tpu.dot_dimension_numbers<[1], [0], [0], [1], [0, 0, 1, 1], [], []>} : vector<64x384xbf16>, vector<384x128xbf16>, vector<64x128xf32> -> vector<64x128xf32>
      %111 = arith.addf %91, %110 : vector<64x128xf32>
      %112 = vector.shape_cast %111 : vector<64x128xf32> to vector<4x16x128xf32>
      %c0_134 = arith.constant 0 : index
      %113 = arith.index_cast %52 : i32 to index
      %c0_135 = arith.constant 0 : index
      %c0_136 = arith.constant 0 : index
      %114 = vector.load %arg7[%c0_134, %113, %c0_135, %c0_136] : memref<2x16x16x128xf32, #tpu.memory_space<vmem>>, vector<1x4x16x128xf32>
      %115 = vector.shape_cast %114 : vector<1x4x16x128xf32> to vector<4x16x128xf32>
      %116 = vector.shape_cast %112 : vector<4x16x128xf32> to vector<1x4x16x128xf32>
      tpu.vector_store %arg7[%c0_134, %113, %c0_135, %c0_136], %116 {strides = array<i32>} : memref<2x16x16x128xf32, #tpu.memory_space<vmem>>, vector<1x4x16x128xf32>,
      %cst_137 = arith.constant dense<0.000000e+00> : vector<128xf32>
      %117 = vector.multi_reduction <add>, %111, %cst_137 [0] : vector<64x128xf32> to vector<128xf32>
      %118 = vector.shape_cast %117 : vector<128xf32> to vector<1x128xf32>
      %119 = arith.addf %arg10, %118 : vector<1x128xf32>
      scf.yield %119 : vector<1x128xf32>
    }
    %c4_i32_26 = arith.constant 4 : i32
    %c0_i32_27 = arith.constant 0 : i32
    %c4_i32_28 = arith.constant 4 : i32
    %13 = arith.addi %c0_i32_27, %c4_i32_28 : i32
    %c1_i32_29 = arith.constant 1 : i32
    %14 = scf.for %arg9 = %c0_i32_27 to %13 step %c1_i32_29 iter_args(%arg10 = %12) -> (vector<1x128xf32>)  : i32 {
      %c4_i32_88 = arith.constant 4 : i32
      %52 = arith.muli %arg9, %c4_i32_88 : i32
      %c0_i32_89 = arith.constant 0 : i32
      %53 = arith.addi %52, %c0_i32_89 : i32
      %c1 = arith.constant 1 : index
      %54 = arith.index_cast %53 : i32 to index
      %c0_90 = arith.constant 0 : index
      %c0_91 = arith.constant 0 : index
      %55 = vector.load %arg8[%c1, %54, %c0_90, %c0_91] : memref<2x18x18x128xbf16, #tpu.memory_space<vmem>>, vector<1x4x16x128xbf16>
      %56 = vector.shape_cast %55 : vector<1x4x16x128xbf16> to vector<4x16x128xbf16>
      %57 = vector.shape_cast %56 : vector<4x16x128xbf16> to vector<64x128xbf16>
      %c0_i32_92 = arith.constant 0 : i32
      %58 = arith.addi %52, %c0_i32_92 : i32
      %c1_93 = arith.constant 1 : index
      %59 = arith.index_cast %58 : i32 to index
      %c1_94 = arith.constant 1 : index
      %c0_95 = arith.constant 0 : index
      %60 = vector.load %arg8[%c1_93, %59, %c1_94, %c0_95] : memref<2x18x18x128xbf16, #tpu.memory_space<vmem>>, vector<1x4x16x128xbf16>
      %61 = vector.shape_cast %60 : vector<1x4x16x128xbf16> to vector<4x16x128xbf16>
      %62 = vector.shape_cast %61 : vector<4x16x128xbf16> to vector<64x128xbf16>
      %c0_i32_96 = arith.constant 0 : i32
      %63 = arith.addi %52, %c0_i32_96 : i32
      %c1_97 = arith.constant 1 : index
      %64 = arith.index_cast %63 : i32 to index
      %c2 = arith.constant 2 : index
      %c0_98 = arith.constant 0 : index
      %65 = vector.load %arg8[%c1_97, %64, %c2, %c0_98] : memref<2x18x18x128xbf16, #tpu.memory_space<vmem>>, vector<1x4x16x128xbf16>
      %66 = vector.shape_cast %65 : vector<1x4x16x128xbf16> to vector<4x16x128xbf16>
      %67 = vector.shape_cast %66 : vector<4x16x128xbf16> to vector<64x128xbf16>
      %68 = tpu.concatenate %57, %62, %67 in 1 : vector<64x128xbf16>, vector<64x128xbf16>, vector<64x128xbf16> -> vector<64x384xbf16>
      %c0_99 = arith.constant 0 : index
      %c0_100 = arith.constant 0 : index
      %c0_101 = arith.constant 0 : index
      %69 = vector.load %arg1[%c0_99, %c0_100, %c0_101] : memref<3x384x128xbf16, #tpu.memory_space<vmem>>, vector<1x384x128xbf16>
      %70 = vector.shape_cast %69 : vector<1x384x128xbf16> to vector<384x128xbf16>
      %cst_102 = arith.constant dense<0.000000e+00> : vector<64x128xf32>
      %71 = tpu.matmul %68, %70, %cst_102 {dimension_numbers = #tpu.dot_dimension_numbers<[1], [0], [0], [1], [0, 0, 1, 1], [], []>} : vector<64x384xbf16>, vector<384x128xbf16>, vector<64x128xf32> -> vector<64x128xf32>
      %c1_i32_103 = arith.constant 1 : i32
      %72 = arith.addi %52, %c1_i32_103 : i32
      %c1_104 = arith.constant 1 : index
      %73 = arith.index_cast %72 : i32 to index
      %c0_105 = arith.constant 0 : index
      %c0_106 = arith.constant 0 : index
      %74 = vector.load %arg8[%c1_104, %73, %c0_105, %c0_106] : memref<2x18x18x128xbf16, #tpu.memory_space<vmem>>, vector<1x4x16x128xbf16>
      %75 = vector.shape_cast %74 : vector<1x4x16x128xbf16> to vector<4x16x128xbf16>
      %76 = vector.shape_cast %75 : vector<4x16x128xbf16> to vector<64x128xbf16>
      %c1_i32_107 = arith.constant 1 : i32
      %77 = arith.addi %52, %c1_i32_107 : i32
      %c1_108 = arith.constant 1 : index
      %78 = arith.index_cast %77 : i32 to index
      %c1_109 = arith.constant 1 : index
      %c0_110 = arith.constant 0 : index
      %79 = vector.load %arg8[%c1_108, %78, %c1_109, %c0_110] : memref<2x18x18x128xbf16, #tpu.memory_space<vmem>>, vector<1x4x16x128xbf16>
      %80 = vector.shape_cast %79 : vector<1x4x16x128xbf16> to vector<4x16x128xbf16>
      %81 = vector.shape_cast %80 : vector<4x16x128xbf16> to vector<64x128xbf16>
      %c1_i32_111 = arith.constant 1 : i32
      %82 = arith.addi %52, %c1_i32_111 : i32
      %c1_112 = arith.constant 1 : index
      %83 = arith.index_cast %82 : i32 to index
      %c2_113 = arith.constant 2 : index
      %c0_114 = arith.constant 0 : index
      %84 = vector.load %arg8[%c1_112, %83, %c2_113, %c0_114] : memref<2x18x18x128xbf16, #tpu.memory_space<vmem>>, vector<1x4x16x128xbf16>
      %85 = vector.shape_cast %84 : vector<1x4x16x128xbf16> to vector<4x16x128xbf16>
      %86 = vector.shape_cast %85 : vector<4x16x128xbf16> to vector<64x128xbf16>
      %87 = tpu.concatenate %76, %81, %86 in 1 : vector<64x128xbf16>, vector<64x128xbf16>, vector<64x128xbf16> -> vector<64x384xbf16>
      %c1_115 = arith.constant 1 : index
      %c0_116 = arith.constant 0 : index
      %c0_117 = arith.constant 0 : index
      %88 = vector.load %arg1[%c1_115, %c0_116, %c0_117] : memref<3x384x128xbf16, #tpu.memory_space<vmem>>, vector<1x384x128xbf16>
      %89 = vector.shape_cast %88 : vector<1x384x128xbf16> to vector<384x128xbf16>
      %cst_118 = arith.constant dense<0.000000e+00> : vector<64x128xf32>
      %90 = tpu.matmul %87, %89, %cst_118 {dimension_numbers = #tpu.dot_dimension_numbers<[1], [0], [0], [1], [0, 0, 1, 1], [], []>} : vector<64x384xbf16>, vector<384x128xbf16>, vector<64x128xf32> -> vector<64x128xf32>
      %91 = arith.addf %71, %90 : vector<64x128xf32>
      %c2_i32 = arith.constant 2 : i32
      %92 = arith.addi %52, %c2_i32 : i32
      %c1_119 = arith.constant 1 : index
      %93 = arith.index_cast %92 : i32 to index
      %c0_120 = arith.constant 0 : index
      %c0_121 = arith.constant 0 : index
      %94 = vector.load %arg8[%c1_119, %93, %c0_120, %c0_121] : memref<2x18x18x128xbf16, #tpu.memory_space<vmem>>, vector<1x4x16x128xbf16>
      %95 = vector.shape_cast %94 : vector<1x4x16x128xbf16> to vector<4x16x128xbf16>
      %96 = vector.shape_cast %95 : vector<4x16x128xbf16> to vector<64x128xbf16>
      %c2_i32_122 = arith.constant 2 : i32
      %97 = arith.addi %52, %c2_i32_122 : i32
      %c1_123 = arith.constant 1 : index
      %98 = arith.index_cast %97 : i32 to index
      %c1_124 = arith.constant 1 : index
      %c0_125 = arith.constant 0 : index
      %99 = vector.load %arg8[%c1_123, %98, %c1_124, %c0_125] : memref<2x18x18x128xbf16, #tpu.memory_space<vmem>>, vector<1x4x16x128xbf16>
      %100 = vector.shape_cast %99 : vector<1x4x16x128xbf16> to vector<4x16x128xbf16>
      %101 = vector.shape_cast %100 : vector<4x16x128xbf16> to vector<64x128xbf16>
      %c2_i32_126 = arith.constant 2 : i32
      %102 = arith.addi %52, %c2_i32_126 : i32
      %c1_127 = arith.constant 1 : index
      %103 = arith.index_cast %102 : i32 to index
      %c2_128 = arith.constant 2 : index
      %c0_129 = arith.constant 0 : index
      %104 = vector.load %arg8[%c1_127, %103, %c2_128, %c0_129] : memref<2x18x18x128xbf16, #tpu.memory_space<vmem>>, vector<1x4x16x128xbf16>
      %105 = vector.shape_cast %104 : vector<1x4x16x128xbf16> to vector<4x16x128xbf16>
      %106 = vector.shape_cast %105 : vector<4x16x128xbf16> to vector<64x128xbf16>
      %107 = tpu.concatenate %96, %101, %106 in 1 : vector<64x128xbf16>, vector<64x128xbf16>, vector<64x128xbf16> -> vector<64x384xbf16>
      %c2_130 = arith.constant 2 : index
      %c0_131 = arith.constant 0 : index
      %c0_132 = arith.constant 0 : index
      %108 = vector.load %arg1[%c2_130, %c0_131, %c0_132] : memref<3x384x128xbf16, #tpu.memory_space<vmem>>, vector<1x384x128xbf16>
      %109 = vector.shape_cast %108 : vector<1x384x128xbf16> to vector<384x128xbf16>
      %cst_133 = arith.constant dense<0.000000e+00> : vector<64x128xf32>
      %110 = tpu.matmul %107, %109, %cst_133 {dimension_numbers = #tpu.dot_dimension_numbers<[1], [0], [0], [1], [0, 0, 1, 1], [], []>} : vector<64x384xbf16>, vector<384x128xbf16>, vector<64x128xf32> -> vector<64x128xf32>
      %111 = arith.addf %91, %110 : vector<64x128xf32>
      %112 = vector.shape_cast %111 : vector<64x128xf32> to vector<4x16x128xf32>
      %c1_134 = arith.constant 1 : index
      %113 = arith.index_cast %52 : i32 to index
      %c0_135 = arith.constant 0 : index
      %c0_136 = arith.constant 0 : index
      %114 = vector.load %arg7[%c1_134, %113, %c0_135, %c0_136] : memref<2x16x16x128xf32, #tpu.memory_space<vmem>>, vector<1x4x16x128xf32>
      %115 = vector.shape_cast %114 : vector<1x4x16x128xf32> to vector<4x16x128xf32>
      %116 = vector.shape_cast %112 : vector<4x16x128xf32> to vector<1x4x16x128xf32>
      tpu.vector_store %arg7[%c1_134, %113, %c0_135, %c0_136], %116 {strides = array<i32>} : memref<2x16x16x128xf32, #tpu.memory_space<vmem>>, vector<1x4x16x128xf32>,
      %cst_137 = arith.constant dense<0.000000e+00> : vector<128xf32>
      %117 = vector.multi_reduction <add>, %111, %cst_137 [0] : vector<64x128xf32> to vector<128xf32>
      %118 = vector.shape_cast %117 : vector<128xf32> to vector<1x128xf32>
      %119 = arith.addf %arg10, %118 : vector<1x128xf32>
      scf.yield %119 : vector<1x128xf32>
    }
    %c4_i32_30 = arith.constant 4 : i32
    %cst_31 = arith.constant 0.001953125 : f32
    %15 = vector.broadcast %cst_31 : f32 to vector<1x128xf32>
    %16 = arith.mulf %14, %15 : vector<1x128xf32>
    %cst_32 = arith.constant 0.000000e+00 : f32
    %17 = vector.broadcast %cst_32 : f32 to vector<1x128xf32>
    %c0_i32_33 = arith.constant 0 : i32
    %c4_i32_34 = arith.constant 4 : i32
    %18 = arith.addi %c0_i32_33, %c4_i32_34 : i32
    %c1_i32_35 = arith.constant 1 : i32
    %19 = scf.for %arg9 = %c0_i32_33 to %18 step %c1_i32_35 iter_args(%arg10 = %17) -> (vector<1x128xf32>)  : i32 {
      %c4_i32_88 = arith.constant 4 : i32
      %52 = arith.muli %arg9, %c4_i32_88 : i32
      %c0_89 = arith.constant 0 : index
      %53 = arith.index_cast %52 : i32 to index
      %c0_90 = arith.constant 0 : index
      %c0_91 = arith.constant 0 : index
      %54 = vector.load %arg7[%c0_89, %53, %c0_90, %c0_91] : memref<2x16x16x128xf32, #tpu.memory_space<vmem>>, vector<1x4x16x128xf32>
      %55 = vector.shape_cast %54 : vector<1x4x16x128xf32> to vector<4x16x128xf32>
      %56 = vector.shape_cast %55 : vector<4x16x128xf32> to vector<64x128xf32>
      %57 = vector.broadcast %16 : vector<1x128xf32> to vector<64x128xf32>
      %58 = arith.subf %56, %57 : vector<64x128xf32>
      %59 = arith.mulf %58, %58 : vector<64x128xf32>
      %cst_92 = arith.constant dense<0.000000e+00> : vector<128xf32>
      %60 = vector.multi_reduction <add>, %59, %cst_92 [0] : vector<64x128xf32> to vector<128xf32>
      %61 = vector.shape_cast %60 : vector<128xf32> to vector<1x128xf32>
      %62 = arith.addf %arg10, %61 : vector<1x128xf32>
      scf.yield %62 : vector<1x128xf32>
    }
    %c4_i32_36 = arith.constant 4 : i32
    %c0_i32_37 = arith.constant 0 : i32
    %c4_i32_38 = arith.constant 4 : i32
    %20 = arith.addi %c0_i32_37, %c4_i32_38 : i32
    %c1_i32_39 = arith.constant 1 : i32
    %21 = scf.for %arg9 = %c0_i32_37 to %20 step %c1_i32_39 iter_args(%arg10 = %19) -> (vector<1x128xf32>)  : i32 {
      %c4_i32_88 = arith.constant 4 : i32
      %52 = arith.muli %arg9, %c4_i32_88 : i32
      %c1 = arith.constant 1 : index
      %53 = arith.index_cast %52 : i32 to index
      %c0_89 = arith.constant 0 : index
      %c0_90 = arith.constant 0 : index
      %54 = vector.load %arg7[%c1, %53, %c0_89, %c0_90] : memref<2x16x16x128xf32, #tpu.memory_space<vmem>>, vector<1x4x16x128xf32>
      %55 = vector.shape_cast %54 : vector<1x4x16x128xf32> to vector<4x16x128xf32>
      %56 = vector.shape_cast %55 : vector<4x16x128xf32> to vector<64x128xf32>
      %57 = vector.broadcast %16 : vector<1x128xf32> to vector<64x128xf32>
      %58 = arith.subf %56, %57 : vector<64x128xf32>
      %59 = arith.mulf %58, %58 : vector<64x128xf32>
      %cst_91 = arith.constant dense<0.000000e+00> : vector<128xf32>
      %60 = vector.multi_reduction <add>, %59, %cst_91 [0] : vector<64x128xf32> to vector<128xf32>
      %61 = vector.shape_cast %60 : vector<128xf32> to vector<1x128xf32>
      %62 = arith.addf %arg10, %61 : vector<1x128xf32>
      scf.yield %62 : vector<1x128xf32>
    }
    %c4_i32_40 = arith.constant 4 : i32
    %cst_41 = arith.constant 0.001953125 : f32
    %22 = vector.broadcast %cst_41 : f32 to vector<1x128xf32>
    %23 = arith.mulf %21, %22 : vector<1x128xf32>
    %cst_42 = arith.constant 9.99999974E-6 : f32
    %24 = vector.broadcast %cst_42 : f32 to vector<1x128xf32>
    %25 = arith.addf %23, %24 : vector<1x128xf32>
    %26 = math.rsqrt %25 : vector<1x128xf32>
    %c0_43 = arith.constant 0 : index
    %c0_44 = arith.constant 0 : index
    %27 = vector.load %arg3[%c0_43, %c0_44] : memref<1x128xf32, #tpu.memory_space<vmem>>, vector<1x128xf32>
    %c0_45 = arith.constant 0 : index
    %c0_46 = arith.constant 0 : index
    %28 = vector.load %arg4[%c0_45, %c0_46] : memref<1x128xf32, #tpu.memory_space<vmem>>, vector<1x128xf32>
    %c0_i32_47 = arith.constant 0 : i32
    %c4_i32_48 = arith.constant 4 : i32
    %29 = arith.addi %c0_i32_47, %c4_i32_48 : i32
    %c1_i32_49 = arith.constant 1 : i32
    scf.for %arg9 = %c0_i32_47 to %29 step %c1_i32_49  : i32 {
      %c4_i32_88 = arith.constant 4 : i32
      %52 = arith.muli %arg9, %c4_i32_88 : i32
      %c0_89 = arith.constant 0 : index
      %53 = arith.index_cast %52 : i32 to index
      %c0_90 = arith.constant 0 : index
      %c0_91 = arith.constant 0 : index
      %54 = vector.load %arg7[%c0_89, %53, %c0_90, %c0_91] : memref<2x16x16x128xf32, #tpu.memory_space<vmem>>, vector<1x4x16x128xf32>
      %55 = vector.shape_cast %54 : vector<1x4x16x128xf32> to vector<4x16x128xf32>
      %56 = vector.shape_cast %55 : vector<4x16x128xf32> to vector<64x128xf32>
      %57 = vector.broadcast %16 : vector<1x128xf32> to vector<64x128xf32>
      %58 = arith.subf %56, %57 : vector<64x128xf32>
      %59 = vector.broadcast %26 : vector<1x128xf32> to vector<64x128xf32>
      %60 = arith.mulf %58, %59 : vector<64x128xf32>
      %61 = vector.broadcast %27 : vector<1x128xf32> to vector<64x128xf32>
      %62 = arith.mulf %60, %61 : vector<64x128xf32>
      %63 = vector.broadcast %28 : vector<1x128xf32> to vector<64x128xf32>
      %64 = arith.addf %62, %63 : vector<64x128xf32>
      %cst_92 = arith.constant 0.000000e+00 : f32
      %65 = vector.broadcast %cst_92 : f32 to vector<64x128xf32>
      %66 = arith.maximumf %64, %65 : vector<64x128xf32>
      %67 = vector.shape_cast %66 : vector<64x128xf32> to vector<4x16x128xf32>
      %68 = arith.truncf %67 : vector<4x16x128xf32> to vector<4x16x128xbf16>
      %c1_i32_93 = arith.constant 1 : i32
      %69 = arith.addi %52, %c1_i32_93 : i32
      %c0_94 = arith.constant 0 : index
      %70 = arith.index_cast %69 : i32 to index
      %c1 = arith.constant 1 : index
      %c0_95 = arith.constant 0 : index
      %71 = vector.load %arg8[%c0_94, %70, %c1, %c0_95] : memref<2x18x18x128xbf16, #tpu.memory_space<vmem>>, vector<1x4x16x128xbf16>
      %72 = vector.shape_cast %71 : vector<1x4x16x128xbf16> to vector<4x16x128xbf16>
      %73 = vector.shape_cast %68 : vector<4x16x128xbf16> to vector<1x4x16x128xbf16>
      tpu.vector_store %arg8[%c0_94, %70, %c1, %c0_95], %73 {strides = array<i32>} : memref<2x18x18x128xbf16, #tpu.memory_space<vmem>>, vector<1x4x16x128xbf16>,
    }
    %c4_i32_50 = arith.constant 4 : i32
    %c0_i32_51 = arith.constant 0 : i32
    %c4_i32_52 = arith.constant 4 : i32
    %30 = arith.addi %c0_i32_51, %c4_i32_52 : i32
    %c1_i32_53 = arith.constant 1 : i32
    scf.for %arg9 = %c0_i32_51 to %30 step %c1_i32_53  : i32 {
      %c4_i32_88 = arith.constant 4 : i32
      %52 = arith.muli %arg9, %c4_i32_88 : i32
      %c1 = arith.constant 1 : index
      %53 = arith.index_cast %52 : i32 to index
      %c0_89 = arith.constant 0 : index
      %c0_90 = arith.constant 0 : index
      %54 = vector.load %arg7[%c1, %53, %c0_89, %c0_90] : memref<2x16x16x128xf32, #tpu.memory_space<vmem>>, vector<1x4x16x128xf32>
      %55 = vector.shape_cast %54 : vector<1x4x16x128xf32> to vector<4x16x128xf32>
      %56 = vector.shape_cast %55 : vector<4x16x128xf32> to vector<64x128xf32>
      %57 = vector.broadcast %16 : vector<1x128xf32> to vector<64x128xf32>
      %58 = arith.subf %56, %57 : vector<64x128xf32>
      %59 = vector.broadcast %26 : vector<1x128xf32> to vector<64x128xf32>
      %60 = arith.mulf %58, %59 : vector<64x128xf32>
      %61 = vector.broadcast %27 : vector<1x128xf32> to vector<64x128xf32>
      %62 = arith.mulf %60, %61 : vector<64x128xf32>
      %63 = vector.broadcast %28 : vector<1x128xf32> to vector<64x128xf32>
      %64 = arith.addf %62, %63 : vector<64x128xf32>
      %cst_91 = arith.constant 0.000000e+00 : f32
      %65 = vector.broadcast %cst_91 : f32 to vector<64x128xf32>
      %66 = arith.maximumf %64, %65 : vector<64x128xf32>
      %67 = vector.shape_cast %66 : vector<64x128xf32> to vector<4x16x128xf32>
      %68 = arith.truncf %67 : vector<4x16x128xf32> to vector<4x16x128xbf16>
      %c1_i32_92 = arith.constant 1 : i32
      %69 = arith.addi %52, %c1_i32_92 : i32
      %c1_93 = arith.constant 1 : index
      %70 = arith.index_cast %69 : i32 to index
      %c1_94 = arith.constant 1 : index
      %c0_95 = arith.constant 0 : index
      %71 = vector.load %arg8[%c1_93, %70, %c1_94, %c0_95] : memref<2x18x18x128xbf16, #tpu.memory_space<vmem>>, vector<1x4x16x128xbf16>
      %72 = vector.shape_cast %71 : vector<1x4x16x128xbf16> to vector<4x16x128xbf16>
      %73 = vector.shape_cast %68 : vector<4x16x128xbf16> to vector<1x4x16x128xbf16>
      tpu.vector_store %arg8[%c1_93, %70, %c1_94, %c0_95], %73 {strides = array<i32>} : memref<2x18x18x128xbf16, #tpu.memory_space<vmem>>, vector<1x4x16x128xbf16>,
    }
    %c4_i32_54 = arith.constant 4 : i32
    %cst_55 = arith.constant 0.000000e+00 : f32
    %31 = vector.broadcast %cst_55 : f32 to vector<1x128xf32>
    %c0_i32_56 = arith.constant 0 : i32
    %c4_i32_57 = arith.constant 4 : i32
    %32 = arith.addi %c0_i32_56, %c4_i32_57 : i32
    %c1_i32_58 = arith.constant 1 : i32
    %33 = scf.for %arg9 = %c0_i32_56 to %32 step %c1_i32_58 iter_args(%arg10 = %31) -> (vector<1x128xf32>)  : i32 {
      %c4_i32_88 = arith.constant 4 : i32
      %52 = arith.muli %arg9, %c4_i32_88 : i32
      %c0_i32_89 = arith.constant 0 : i32
      %53 = arith.addi %52, %c0_i32_89 : i32
      %c0_90 = arith.constant 0 : index
      %54 = arith.index_cast %53 : i32 to index
      %c0_91 = arith.constant 0 : index
      %c0_92 = arith.constant 0 : index
      %55 = vector.load %arg8[%c0_90, %54, %c0_91, %c0_92] : memref<2x18x18x128xbf16, #tpu.memory_space<vmem>>, vector<1x4x16x128xbf16>
      %56 = vector.shape_cast %55 : vector<1x4x16x128xbf16> to vector<4x16x128xbf16>
      %57 = vector.shape_cast %56 : vector<4x16x128xbf16> to vector<64x128xbf16>
      %c0_i32_93 = arith.constant 0 : i32
      %58 = arith.addi %52, %c0_i32_93 : i32
      %c0_94 = arith.constant 0 : index
      %59 = arith.index_cast %58 : i32 to index
      %c1 = arith.constant 1 : index
      %c0_95 = arith.constant 0 : index
      %60 = vector.load %arg8[%c0_94, %59, %c1, %c0_95] : memref<2x18x18x128xbf16, #tpu.memory_space<vmem>>, vector<1x4x16x128xbf16>
      %61 = vector.shape_cast %60 : vector<1x4x16x128xbf16> to vector<4x16x128xbf16>
      %62 = vector.shape_cast %61 : vector<4x16x128xbf16> to vector<64x128xbf16>
      %c0_i32_96 = arith.constant 0 : i32
      %63 = arith.addi %52, %c0_i32_96 : i32
      %c0_97 = arith.constant 0 : index
      %64 = arith.index_cast %63 : i32 to index
      %c2 = arith.constant 2 : index
      %c0_98 = arith.constant 0 : index
      %65 = vector.load %arg8[%c0_97, %64, %c2, %c0_98] : memref<2x18x18x128xbf16, #tpu.memory_space<vmem>>, vector<1x4x16x128xbf16>
      %66 = vector.shape_cast %65 : vector<1x4x16x128xbf16> to vector<4x16x128xbf16>
      %67 = vector.shape_cast %66 : vector<4x16x128xbf16> to vector<64x128xbf16>
      %68 = tpu.concatenate %57, %62, %67 in 1 : vector<64x128xbf16>, vector<64x128xbf16>, vector<64x128xbf16> -> vector<64x384xbf16>
      %c0_99 = arith.constant 0 : index
      %c0_100 = arith.constant 0 : index
      %c0_101 = arith.constant 0 : index
      %69 = vector.load %arg2[%c0_99, %c0_100, %c0_101] : memref<3x384x128xbf16, #tpu.memory_space<vmem>>, vector<1x384x128xbf16>
      %70 = vector.shape_cast %69 : vector<1x384x128xbf16> to vector<384x128xbf16>
      %cst_102 = arith.constant dense<0.000000e+00> : vector<64x128xf32>
      %71 = tpu.matmul %68, %70, %cst_102 {dimension_numbers = #tpu.dot_dimension_numbers<[1], [0], [0], [1], [0, 0, 1, 1], [], []>} : vector<64x384xbf16>, vector<384x128xbf16>, vector<64x128xf32> -> vector<64x128xf32>
      %c1_i32_103 = arith.constant 1 : i32
      %72 = arith.addi %52, %c1_i32_103 : i32
      %c0_104 = arith.constant 0 : index
      %73 = arith.index_cast %72 : i32 to index
      %c0_105 = arith.constant 0 : index
      %c0_106 = arith.constant 0 : index
      %74 = vector.load %arg8[%c0_104, %73, %c0_105, %c0_106] : memref<2x18x18x128xbf16, #tpu.memory_space<vmem>>, vector<1x4x16x128xbf16>
      %75 = vector.shape_cast %74 : vector<1x4x16x128xbf16> to vector<4x16x128xbf16>
      %76 = vector.shape_cast %75 : vector<4x16x128xbf16> to vector<64x128xbf16>
      %c1_i32_107 = arith.constant 1 : i32
      %77 = arith.addi %52, %c1_i32_107 : i32
      %c0_108 = arith.constant 0 : index
      %78 = arith.index_cast %77 : i32 to index
      %c1_109 = arith.constant 1 : index
      %c0_110 = arith.constant 0 : index
      %79 = vector.load %arg8[%c0_108, %78, %c1_109, %c0_110] : memref<2x18x18x128xbf16, #tpu.memory_space<vmem>>, vector<1x4x16x128xbf16>
      %80 = vector.shape_cast %79 : vector<1x4x16x128xbf16> to vector<4x16x128xbf16>
      %81 = vector.shape_cast %80 : vector<4x16x128xbf16> to vector<64x128xbf16>
      %c1_i32_111 = arith.constant 1 : i32
      %82 = arith.addi %52, %c1_i32_111 : i32
      %c0_112 = arith.constant 0 : index
      %83 = arith.index_cast %82 : i32 to index
      %c2_113 = arith.constant 2 : index
      %c0_114 = arith.constant 0 : index
      %84 = vector.load %arg8[%c0_112, %83, %c2_113, %c0_114] : memref<2x18x18x128xbf16, #tpu.memory_space<vmem>>, vector<1x4x16x128xbf16>
      %85 = vector.shape_cast %84 : vector<1x4x16x128xbf16> to vector<4x16x128xbf16>
      %86 = vector.shape_cast %85 : vector<4x16x128xbf16> to vector<64x128xbf16>
      %87 = tpu.concatenate %76, %81, %86 in 1 : vector<64x128xbf16>, vector<64x128xbf16>, vector<64x128xbf16> -> vector<64x384xbf16>
      %c1_115 = arith.constant 1 : index
      %c0_116 = arith.constant 0 : index
      %c0_117 = arith.constant 0 : index
      %88 = vector.load %arg2[%c1_115, %c0_116, %c0_117] : memref<3x384x128xbf16, #tpu.memory_space<vmem>>, vector<1x384x128xbf16>
      %89 = vector.shape_cast %88 : vector<1x384x128xbf16> to vector<384x128xbf16>
      %cst_118 = arith.constant dense<0.000000e+00> : vector<64x128xf32>
      %90 = tpu.matmul %87, %89, %cst_118 {dimension_numbers = #tpu.dot_dimension_numbers<[1], [0], [0], [1], [0, 0, 1, 1], [], []>} : vector<64x384xbf16>, vector<384x128xbf16>, vector<64x128xf32> -> vector<64x128xf32>
      %91 = arith.addf %71, %90 : vector<64x128xf32>
      %c2_i32 = arith.constant 2 : i32
      %92 = arith.addi %52, %c2_i32 : i32
      %c0_119 = arith.constant 0 : index
      %93 = arith.index_cast %92 : i32 to index
      %c0_120 = arith.constant 0 : index
      %c0_121 = arith.constant 0 : index
      %94 = vector.load %arg8[%c0_119, %93, %c0_120, %c0_121] : memref<2x18x18x128xbf16, #tpu.memory_space<vmem>>, vector<1x4x16x128xbf16>
      %95 = vector.shape_cast %94 : vector<1x4x16x128xbf16> to vector<4x16x128xbf16>
      %96 = vector.shape_cast %95 : vector<4x16x128xbf16> to vector<64x128xbf16>
      %c2_i32_122 = arith.constant 2 : i32
      %97 = arith.addi %52, %c2_i32_122 : i32
      %c0_123 = arith.constant 0 : index
      %98 = arith.index_cast %97 : i32 to index
      %c1_124 = arith.constant 1 : index
      %c0_125 = arith.constant 0 : index
      %99 = vector.load %arg8[%c0_123, %98, %c1_124, %c0_125] : memref<2x18x18x128xbf16, #tpu.memory_space<vmem>>, vector<1x4x16x128xbf16>
      %100 = vector.shape_cast %99 : vector<1x4x16x128xbf16> to vector<4x16x128xbf16>
      %101 = vector.shape_cast %100 : vector<4x16x128xbf16> to vector<64x128xbf16>
      %c2_i32_126 = arith.constant 2 : i32
      %102 = arith.addi %52, %c2_i32_126 : i32
      %c0_127 = arith.constant 0 : index
      %103 = arith.index_cast %102 : i32 to index
      %c2_128 = arith.constant 2 : index
      %c0_129 = arith.constant 0 : index
      %104 = vector.load %arg8[%c0_127, %103, %c2_128, %c0_129] : memref<2x18x18x128xbf16, #tpu.memory_space<vmem>>, vector<1x4x16x128xbf16>
      %105 = vector.shape_cast %104 : vector<1x4x16x128xbf16> to vector<4x16x128xbf16>
      %106 = vector.shape_cast %105 : vector<4x16x128xbf16> to vector<64x128xbf16>
      %107 = tpu.concatenate %96, %101, %106 in 1 : vector<64x128xbf16>, vector<64x128xbf16>, vector<64x128xbf16> -> vector<64x384xbf16>
      %c2_130 = arith.constant 2 : index
      %c0_131 = arith.constant 0 : index
      %c0_132 = arith.constant 0 : index
      %108 = vector.load %arg2[%c2_130, %c0_131, %c0_132] : memref<3x384x128xbf16, #tpu.memory_space<vmem>>, vector<1x384x128xbf16>
      %109 = vector.shape_cast %108 : vector<1x384x128xbf16> to vector<384x128xbf16>
      %cst_133 = arith.constant dense<0.000000e+00> : vector<64x128xf32>
      %110 = tpu.matmul %107, %109, %cst_133 {dimension_numbers = #tpu.dot_dimension_numbers<[1], [0], [0], [1], [0, 0, 1, 1], [], []>} : vector<64x384xbf16>, vector<384x128xbf16>, vector<64x128xf32> -> vector<64x128xf32>
      %111 = arith.addf %91, %110 : vector<64x128xf32>
      %112 = vector.shape_cast %111 : vector<64x128xf32> to vector<4x16x128xf32>
      %c0_134 = arith.constant 0 : index
      %113 = arith.index_cast %52 : i32 to index
      %c0_135 = arith.constant 0 : index
      %c0_136 = arith.constant 0 : index
      %114 = vector.load %arg7[%c0_134, %113, %c0_135, %c0_136] : memref<2x16x16x128xf32, #tpu.memory_space<vmem>>, vector<1x4x16x128xf32>
      %115 = vector.shape_cast %114 : vector<1x4x16x128xf32> to vector<4x16x128xf32>
      %116 = vector.shape_cast %112 : vector<4x16x128xf32> to vector<1x4x16x128xf32>
      tpu.vector_store %arg7[%c0_134, %113, %c0_135, %c0_136], %116 {strides = array<i32>} : memref<2x16x16x128xf32, #tpu.memory_space<vmem>>, vector<1x4x16x128xf32>,
      %cst_137 = arith.constant dense<0.000000e+00> : vector<128xf32>
      %117 = vector.multi_reduction <add>, %111, %cst_137 [0] : vector<64x128xf32> to vector<128xf32>
      %118 = vector.shape_cast %117 : vector<128xf32> to vector<1x128xf32>
      %119 = arith.addf %arg10, %118 : vector<1x128xf32>
      scf.yield %119 : vector<1x128xf32>
    }
    %c4_i32_59 = arith.constant 4 : i32
    %c0_i32_60 = arith.constant 0 : i32
    %c4_i32_61 = arith.constant 4 : i32
    %34 = arith.addi %c0_i32_60, %c4_i32_61 : i32
    %c1_i32_62 = arith.constant 1 : i32
    %35 = scf.for %arg9 = %c0_i32_60 to %34 step %c1_i32_62 iter_args(%arg10 = %33) -> (vector<1x128xf32>)  : i32 {
      %c4_i32_88 = arith.constant 4 : i32
      %52 = arith.muli %arg9, %c4_i32_88 : i32
      %c0_i32_89 = arith.constant 0 : i32
      %53 = arith.addi %52, %c0_i32_89 : i32
      %c1 = arith.constant 1 : index
      %54 = arith.index_cast %53 : i32 to index
      %c0_90 = arith.constant 0 : index
      %c0_91 = arith.constant 0 : index
      %55 = vector.load %arg8[%c1, %54, %c0_90, %c0_91] : memref<2x18x18x128xbf16, #tpu.memory_space<vmem>>, vector<1x4x16x128xbf16>
      %56 = vector.shape_cast %55 : vector<1x4x16x128xbf16> to vector<4x16x128xbf16>
      %57 = vector.shape_cast %56 : vector<4x16x128xbf16> to vector<64x128xbf16>
      %c0_i32_92 = arith.constant 0 : i32
      %58 = arith.addi %52, %c0_i32_92 : i32
      %c1_93 = arith.constant 1 : index
      %59 = arith.index_cast %58 : i32 to index
      %c1_94 = arith.constant 1 : index
      %c0_95 = arith.constant 0 : index
      %60 = vector.load %arg8[%c1_93, %59, %c1_94, %c0_95] : memref<2x18x18x128xbf16, #tpu.memory_space<vmem>>, vector<1x4x16x128xbf16>
      %61 = vector.shape_cast %60 : vector<1x4x16x128xbf16> to vector<4x16x128xbf16>
      %62 = vector.shape_cast %61 : vector<4x16x128xbf16> to vector<64x128xbf16>
      %c0_i32_96 = arith.constant 0 : i32
      %63 = arith.addi %52, %c0_i32_96 : i32
      %c1_97 = arith.constant 1 : index
      %64 = arith.index_cast %63 : i32 to index
      %c2 = arith.constant 2 : index
      %c0_98 = arith.constant 0 : index
      %65 = vector.load %arg8[%c1_97, %64, %c2, %c0_98] : memref<2x18x18x128xbf16, #tpu.memory_space<vmem>>, vector<1x4x16x128xbf16>
      %66 = vector.shape_cast %65 : vector<1x4x16x128xbf16> to vector<4x16x128xbf16>
      %67 = vector.shape_cast %66 : vector<4x16x128xbf16> to vector<64x128xbf16>
      %68 = tpu.concatenate %57, %62, %67 in 1 : vector<64x128xbf16>, vector<64x128xbf16>, vector<64x128xbf16> -> vector<64x384xbf16>
      %c0_99 = arith.constant 0 : index
      %c0_100 = arith.constant 0 : index
      %c0_101 = arith.constant 0 : index
      %69 = vector.load %arg2[%c0_99, %c0_100, %c0_101] : memref<3x384x128xbf16, #tpu.memory_space<vmem>>, vector<1x384x128xbf16>
      %70 = vector.shape_cast %69 : vector<1x384x128xbf16> to vector<384x128xbf16>
      %cst_102 = arith.constant dense<0.000000e+00> : vector<64x128xf32>
      %71 = tpu.matmul %68, %70, %cst_102 {dimension_numbers = #tpu.dot_dimension_numbers<[1], [0], [0], [1], [0, 0, 1, 1], [], []>} : vector<64x384xbf16>, vector<384x128xbf16>, vector<64x128xf32> -> vector<64x128xf32>
      %c1_i32_103 = arith.constant 1 : i32
      %72 = arith.addi %52, %c1_i32_103 : i32
      %c1_104 = arith.constant 1 : index
      %73 = arith.index_cast %72 : i32 to index
      %c0_105 = arith.constant 0 : index
      %c0_106 = arith.constant 0 : index
      %74 = vector.load %arg8[%c1_104, %73, %c0_105, %c0_106] : memref<2x18x18x128xbf16, #tpu.memory_space<vmem>>, vector<1x4x16x128xbf16>
      %75 = vector.shape_cast %74 : vector<1x4x16x128xbf16> to vector<4x16x128xbf16>
      %76 = vector.shape_cast %75 : vector<4x16x128xbf16> to vector<64x128xbf16>
      %c1_i32_107 = arith.constant 1 : i32
      %77 = arith.addi %52, %c1_i32_107 : i32
      %c1_108 = arith.constant 1 : index
      %78 = arith.index_cast %77 : i32 to index
      %c1_109 = arith.constant 1 : index
      %c0_110 = arith.constant 0 : index
      %79 = vector.load %arg8[%c1_108, %78, %c1_109, %c0_110] : memref<2x18x18x128xbf16, #tpu.memory_space<vmem>>, vector<1x4x16x128xbf16>
      %80 = vector.shape_cast %79 : vector<1x4x16x128xbf16> to vector<4x16x128xbf16>
      %81 = vector.shape_cast %80 : vector<4x16x128xbf16> to vector<64x128xbf16>
      %c1_i32_111 = arith.constant 1 : i32
      %82 = arith.addi %52, %c1_i32_111 : i32
      %c1_112 = arith.constant 1 : index
      %83 = arith.index_cast %82 : i32 to index
      %c2_113 = arith.constant 2 : index
      %c0_114 = arith.constant 0 : index
      %84 = vector.load %arg8[%c1_112, %83, %c2_113, %c0_114] : memref<2x18x18x128xbf16, #tpu.memory_space<vmem>>, vector<1x4x16x128xbf16>
      %85 = vector.shape_cast %84 : vector<1x4x16x128xbf16> to vector<4x16x128xbf16>
      %86 = vector.shape_cast %85 : vector<4x16x128xbf16> to vector<64x128xbf16>
      %87 = tpu.concatenate %76, %81, %86 in 1 : vector<64x128xbf16>, vector<64x128xbf16>, vector<64x128xbf16> -> vector<64x384xbf16>
      %c1_115 = arith.constant 1 : index
      %c0_116 = arith.constant 0 : index
      %c0_117 = arith.constant 0 : index
      %88 = vector.load %arg2[%c1_115, %c0_116, %c0_117] : memref<3x384x128xbf16, #tpu.memory_space<vmem>>, vector<1x384x128xbf16>
      %89 = vector.shape_cast %88 : vector<1x384x128xbf16> to vector<384x128xbf16>
      %cst_118 = arith.constant dense<0.000000e+00> : vector<64x128xf32>
      %90 = tpu.matmul %87, %89, %cst_118 {dimension_numbers = #tpu.dot_dimension_numbers<[1], [0], [0], [1], [0, 0, 1, 1], [], []>} : vector<64x384xbf16>, vector<384x128xbf16>, vector<64x128xf32> -> vector<64x128xf32>
      %91 = arith.addf %71, %90 : vector<64x128xf32>
      %c2_i32 = arith.constant 2 : i32
      %92 = arith.addi %52, %c2_i32 : i32
      %c1_119 = arith.constant 1 : index
      %93 = arith.index_cast %92 : i32 to index
      %c0_120 = arith.constant 0 : index
      %c0_121 = arith.constant 0 : index
      %94 = vector.load %arg8[%c1_119, %93, %c0_120, %c0_121] : memref<2x18x18x128xbf16, #tpu.memory_space<vmem>>, vector<1x4x16x128xbf16>
      %95 = vector.shape_cast %94 : vector<1x4x16x128xbf16> to vector<4x16x128xbf16>
      %96 = vector.shape_cast %95 : vector<4x16x128xbf16> to vector<64x128xbf16>
      %c2_i32_122 = arith.constant 2 : i32
      %97 = arith.addi %52, %c2_i32_122 : i32
      %c1_123 = arith.constant 1 : index
      %98 = arith.index_cast %97 : i32 to index
      %c1_124 = arith.constant 1 : index
      %c0_125 = arith.constant 0 : index
      %99 = vector.load %arg8[%c1_123, %98, %c1_124, %c0_125] : memref<2x18x18x128xbf16, #tpu.memory_space<vmem>>, vector<1x4x16x128xbf16>
      %100 = vector.shape_cast %99 : vector<1x4x16x128xbf16> to vector<4x16x128xbf16>
      %101 = vector.shape_cast %100 : vector<4x16x128xbf16> to vector<64x128xbf16>
      %c2_i32_126 = arith.constant 2 : i32
      %102 = arith.addi %52, %c2_i32_126 : i32
      %c1_127 = arith.constant 1 : index
      %103 = arith.index_cast %102 : i32 to index
      %c2_128 = arith.constant 2 : index
      %c0_129 = arith.constant 0 : index
      %104 = vector.load %arg8[%c1_127, %103, %c2_128, %c0_129] : memref<2x18x18x128xbf16, #tpu.memory_space<vmem>>, vector<1x4x16x128xbf16>
      %105 = vector.shape_cast %104 : vector<1x4x16x128xbf16> to vector<4x16x128xbf16>
      %106 = vector.shape_cast %105 : vector<4x16x128xbf16> to vector<64x128xbf16>
      %107 = tpu.concatenate %96, %101, %106 in 1 : vector<64x128xbf16>, vector<64x128xbf16>, vector<64x128xbf16> -> vector<64x384xbf16>
      %c2_130 = arith.constant 2 : index
      %c0_131 = arith.constant 0 : index
      %c0_132 = arith.constant 0 : index
      %108 = vector.load %arg2[%c2_130, %c0_131, %c0_132] : memref<3x384x128xbf16, #tpu.memory_space<vmem>>, vector<1x384x128xbf16>
      %109 = vector.shape_cast %108 : vector<1x384x128xbf16> to vector<384x128xbf16>
      %cst_133 = arith.constant dense<0.000000e+00> : vector<64x128xf32>
      %110 = tpu.matmul %107, %109, %cst_133 {dimension_numbers = #tpu.dot_dimension_numbers<[1], [0], [0], [1], [0, 0, 1, 1], [], []>} : vector<64x384xbf16>, vector<384x128xbf16>, vector<64x128xf32> -> vector<64x128xf32>
      %111 = arith.addf %91, %110 : vector<64x128xf32>
      %112 = vector.shape_cast %111 : vector<64x128xf32> to vector<4x16x128xf32>
      %c1_134 = arith.constant 1 : index
      %113 = arith.index_cast %52 : i32 to index
      %c0_135 = arith.constant 0 : index
      %c0_136 = arith.constant 0 : index
      %114 = vector.load %arg7[%c1_134, %113, %c0_135, %c0_136] : memref<2x16x16x128xf32, #tpu.memory_space<vmem>>, vector<1x4x16x128xf32>
      %115 = vector.shape_cast %114 : vector<1x4x16x128xf32> to vector<4x16x128xf32>
      %116 = vector.shape_cast %112 : vector<4x16x128xf32> to vector<1x4x16x128xf32>
      tpu.vector_store %arg7[%c1_134, %113, %c0_135, %c0_136], %116 {strides = array<i32>} : memref<2x16x16x128xf32, #tpu.memory_space<vmem>>, vector<1x4x16x128xf32>,
      %cst_137 = arith.constant dense<0.000000e+00> : vector<128xf32>
      %117 = vector.multi_reduction <add>, %111, %cst_137 [0] : vector<64x128xf32> to vector<128xf32>
      %118 = vector.shape_cast %117 : vector<128xf32> to vector<1x128xf32>
      %119 = arith.addf %arg10, %118 : vector<1x128xf32>
      scf.yield %119 : vector<1x128xf32>
    }
    %c4_i32_63 = arith.constant 4 : i32
    %cst_64 = arith.constant 0.001953125 : f32
    %36 = vector.broadcast %cst_64 : f32 to vector<1x128xf32>
    %37 = arith.mulf %35, %36 : vector<1x128xf32>
    %cst_65 = arith.constant 0.000000e+00 : f32
    %38 = vector.broadcast %cst_65 : f32 to vector<1x128xf32>
    %c0_i32_66 = arith.constant 0 : i32
    %c4_i32_67 = arith.constant 4 : i32
    %39 = arith.addi %c0_i32_66, %c4_i32_67 : i32
    %c1_i32_68 = arith.constant 1 : i32
    %40 = scf.for %arg9 = %c0_i32_66 to %39 step %c1_i32_68 iter_args(%arg10 = %38) -> (vector<1x128xf32>)  : i32 {
      %c4_i32_88 = arith.constant 4 : i32
      %52 = arith.muli %arg9, %c4_i32_88 : i32
      %c0_89 = arith.constant 0 : index
      %53 = arith.index_cast %52 : i32 to index
      %c0_90 = arith.constant 0 : index
      %c0_91 = arith.constant 0 : index
      %54 = vector.load %arg7[%c0_89, %53, %c0_90, %c0_91] : memref<2x16x16x128xf32, #tpu.memory_space<vmem>>, vector<1x4x16x128xf32>
      %55 = vector.shape_cast %54 : vector<1x4x16x128xf32> to vector<4x16x128xf32>
      %56 = vector.shape_cast %55 : vector<4x16x128xf32> to vector<64x128xf32>
      %57 = vector.broadcast %37 : vector<1x128xf32> to vector<64x128xf32>
      %58 = arith.subf %56, %57 : vector<64x128xf32>
      %59 = arith.mulf %58, %58 : vector<64x128xf32>
      %cst_92 = arith.constant dense<0.000000e+00> : vector<128xf32>
      %60 = vector.multi_reduction <add>, %59, %cst_92 [0] : vector<64x128xf32> to vector<128xf32>
      %61 = vector.shape_cast %60 : vector<128xf32> to vector<1x128xf32>
      %62 = arith.addf %arg10, %61 : vector<1x128xf32>
      scf.yield %62 : vector<1x128xf32>
    }
    %c4_i32_69 = arith.constant 4 : i32
    %c0_i32_70 = arith.constant 0 : i32
    %c4_i32_71 = arith.constant 4 : i32
    %41 = arith.addi %c0_i32_70, %c4_i32_71 : i32
    %c1_i32_72 = arith.constant 1 : i32
    %42 = scf.for %arg9 = %c0_i32_70 to %41 step %c1_i32_72 iter_args(%arg10 = %40) -> (vector<1x128xf32>)  : i32 {
      %c4_i32_88 = arith.constant 4 : i32
      %52 = arith.muli %arg9, %c4_i32_88 : i32
      %c1 = arith.constant 1 : index
      %53 = arith.index_cast %52 : i32 to index
      %c0_89 = arith.constant 0 : index
      %c0_90 = arith.constant 0 : index
      %54 = vector.load %arg7[%c1, %53, %c0_89, %c0_90] : memref<2x16x16x128xf32, #tpu.memory_space<vmem>>, vector<1x4x16x128xf32>
      %55 = vector.shape_cast %54 : vector<1x4x16x128xf32> to vector<4x16x128xf32>
      %56 = vector.shape_cast %55 : vector<4x16x128xf32> to vector<64x128xf32>
      %57 = vector.broadcast %37 : vector<1x128xf32> to vector<64x128xf32>
      %58 = arith.subf %56, %57 : vector<64x128xf32>
      %59 = arith.mulf %58, %58 : vector<64x128xf32>
      %cst_91 = arith.constant dense<0.000000e+00> : vector<128xf32>
      %60 = vector.multi_reduction <add>, %59, %cst_91 [0] : vector<64x128xf32> to vector<128xf32>
      %61 = vector.shape_cast %60 : vector<128xf32> to vector<1x128xf32>
      %62 = arith.addf %arg10, %61 : vector<1x128xf32>
      scf.yield %62 : vector<1x128xf32>
    }
    %c4_i32_73 = arith.constant 4 : i32
    %cst_74 = arith.constant 0.001953125 : f32
    %43 = vector.broadcast %cst_74 : f32 to vector<1x128xf32>
    %44 = arith.mulf %42, %43 : vector<1x128xf32>
    %cst_75 = arith.constant 9.99999974E-6 : f32
    %45 = vector.broadcast %cst_75 : f32 to vector<1x128xf32>
    %46 = arith.addf %44, %45 : vector<1x128xf32>
    %47 = math.rsqrt %46 : vector<1x128xf32>
    %c0_76 = arith.constant 0 : index
    %c0_77 = arith.constant 0 : index
    %48 = vector.load %arg5[%c0_76, %c0_77] : memref<1x128xf32, #tpu.memory_space<vmem>>, vector<1x128xf32>
    %c0_78 = arith.constant 0 : index
    %c0_79 = arith.constant 0 : index
    %49 = vector.load %arg6[%c0_78, %c0_79] : memref<1x128xf32, #tpu.memory_space<vmem>>, vector<1x128xf32>
    %c0_i32_80 = arith.constant 0 : i32
    %c4_i32_81 = arith.constant 4 : i32
    %50 = arith.addi %c0_i32_80, %c4_i32_81 : i32
    %c1_i32_82 = arith.constant 1 : i32
    scf.for %arg9 = %c0_i32_80 to %50 step %c1_i32_82  : i32 {
      %c4_i32_88 = arith.constant 4 : i32
      %52 = arith.muli %arg9, %c4_i32_88 : i32
      %c0_89 = arith.constant 0 : index
      %53 = arith.index_cast %52 : i32 to index
      %c0_90 = arith.constant 0 : index
      %c0_91 = arith.constant 0 : index
      %54 = vector.load %arg7[%c0_89, %53, %c0_90, %c0_91] : memref<2x16x16x128xf32, #tpu.memory_space<vmem>>, vector<1x4x16x128xf32>
      %55 = vector.shape_cast %54 : vector<1x4x16x128xf32> to vector<4x16x128xf32>
      %56 = vector.shape_cast %55 : vector<4x16x128xf32> to vector<64x128xf32>
      %c0_92 = arith.constant 0 : index
      %57 = arith.index_cast %52 : i32 to index
      %c0_93 = arith.constant 0 : index
      %c0_94 = arith.constant 0 : index
      %58 = vector.load %arg0[%c0_92, %57, %c0_93, %c0_94] : memref<2x16x16x128xf32, #tpu.memory_space<vmem>>, vector<1x4x16x128xf32>
      %59 = vector.shape_cast %58 : vector<1x4x16x128xf32> to vector<4x16x128xf32>
      %60 = vector.shape_cast %59 : vector<4x16x128xf32> to vector<64x128xf32>
      %61 = vector.broadcast %37 : vector<1x128xf32> to vector<64x128xf32>
      %62 = arith.subf %56, %61 : vector<64x128xf32>
      %63 = vector.broadcast %47 : vector<1x128xf32> to vector<64x128xf32>
      %64 = arith.mulf %62, %63 : vector<64x128xf32>
      %65 = vector.broadcast %48 : vector<1x128xf32> to vector<64x128xf32>
      %66 = arith.mulf %64, %65 : vector<64x128xf32>
      %67 = vector.broadcast %49 : vector<1x128xf32> to vector<64x128xf32>
      %68 = arith.addf %66, %67 : vector<64x128xf32>
      %69 = arith.addf %68, %60 : vector<64x128xf32>
      %cst_95 = arith.constant 0.000000e+00 : f32
      %70 = vector.broadcast %cst_95 : f32 to vector<64x128xf32>
      %71 = arith.maximumf %69, %70 : vector<64x128xf32>
      %72 = vector.shape_cast %71 : vector<64x128xf32> to vector<4x16x128xf32>
      %c0_96 = arith.constant 0 : index
      %73 = arith.index_cast %52 : i32 to index
      %c0_97 = arith.constant 0 : index
      %c0_98 = arith.constant 0 : index
      %74 = vector.load %arg7[%c0_96, %73, %c0_97, %c0_98] : memref<2x16x16x128xf32, #tpu.memory_space<vmem>>, vector<1x4x16x128xf32>
      %75 = vector.shape_cast %74 : vector<1x4x16x128xf32> to vector<4x16x128xf32>
      %76 = vector.shape_cast %72 : vector<4x16x128xf32> to vector<1x4x16x128xf32>
      tpu.vector_store %arg7[%c0_96, %73, %c0_97, %c0_98], %76 {strides = array<i32>} : memref<2x16x16x128xf32, #tpu.memory_space<vmem>>, vector<1x4x16x128xf32>,
    }
    %c4_i32_83 = arith.constant 4 : i32
    %c0_i32_84 = arith.constant 0 : i32
    %c4_i32_85 = arith.constant 4 : i32
    %51 = arith.addi %c0_i32_84, %c4_i32_85 : i32
    %c1_i32_86 = arith.constant 1 : i32
    scf.for %arg9 = %c0_i32_84 to %51 step %c1_i32_86  : i32 {
      %c4_i32_88 = arith.constant 4 : i32
      %52 = arith.muli %arg9, %c4_i32_88 : i32
      %c1 = arith.constant 1 : index
      %53 = arith.index_cast %52 : i32 to index
      %c0_89 = arith.constant 0 : index
      %c0_90 = arith.constant 0 : index
      %54 = vector.load %arg7[%c1, %53, %c0_89, %c0_90] : memref<2x16x16x128xf32, #tpu.memory_space<vmem>>, vector<1x4x16x128xf32>
      %55 = vector.shape_cast %54 : vector<1x4x16x128xf32> to vector<4x16x128xf32>
      %56 = vector.shape_cast %55 : vector<4x16x128xf32> to vector<64x128xf32>
      %c1_91 = arith.constant 1 : index
      %57 = arith.index_cast %52 : i32 to index
      %c0_92 = arith.constant 0 : index
      %c0_93 = arith.constant 0 : index
      %58 = vector.load %arg0[%c1_91, %57, %c0_92, %c0_93] : memref<2x16x16x128xf32, #tpu.memory_space<vmem>>, vector<1x4x16x128xf32>
      %59 = vector.shape_cast %58 : vector<1x4x16x128xf32> to vector<4x16x128xf32>
      %60 = vector.shape_cast %59 : vector<4x16x128xf32> to vector<64x128xf32>
      %61 = vector.broadcast %37 : vector<1x128xf32> to vector<64x128xf32>
      %62 = arith.subf %56, %61 : vector<64x128xf32>
      %63 = vector.broadcast %47 : vector<1x128xf32> to vector<64x128xf32>
      %64 = arith.mulf %62, %63 : vector<64x128xf32>
      %65 = vector.broadcast %48 : vector<1x128xf32> to vector<64x128xf32>
      %66 = arith.mulf %64, %65 : vector<64x128xf32>
      %67 = vector.broadcast %49 : vector<1x128xf32> to vector<64x128xf32>
      %68 = arith.addf %66, %67 : vector<64x128xf32>
      %69 = arith.addf %68, %60 : vector<64x128xf32>
      %cst_94 = arith.constant 0.000000e+00 : f32
      %70 = vector.broadcast %cst_94 : f32 to vector<64x128xf32>
      %71 = arith.maximumf %69, %70 : vector<64x128xf32>
      %72 = vector.shape_cast %71 : vector<64x128xf32> to vector<4x16x128xf32>
      %c1_95 = arith.constant 1 : index
      %73 = arith.index_cast %52 : i32 to index
      %c0_96 = arith.constant 0 : index
      %c0_97 = arith.constant 0 : index
      %74 = vector.load %arg7[%c1_95, %73, %c0_96, %c0_97] : memref<2x16x16x128xf32, #tpu.memory_space<vmem>>, vector<1x4x16x128xf32>
      %75 = vector.shape_cast %74 : vector<1x4x16x128xf32> to vector<4x16x128xf32>
      %76 = vector.shape_cast %72 : vector<4x16x128xf32> to vector<1x4x16x128xf32>
      tpu.vector_store %arg7[%c1_95, %73, %c0_96, %c0_97], %76 {strides = array<i32>} : memref<2x16x16x128xf32, #tpu.memory_space<vmem>>, vector<1x4x16x128xf32>,
    }
    %c4_i32_87 = arith.constant 4 : i32
    return
  }
}

</mosaic_0001>

<bundles_post_ra>
// kernel: tpu_custom_call.1
= control target key start
LH: loop header
LB: loop body
LE: loop exit
PB: predicated region body
PF: predicated region fallthrough
CT: control target
= control target key end

     0   :  { %12 = vsyncpa [#allocation4], 0  ;;  %s13049_s0 = inlined_call_operand.hbm [shape: f32[2,16,16,128], index: 0, kind: input, shape index: {}]   ;;  %s13050_s1 = inlined_call_operand.hbm [shape: bf16[3,384,128], index: 1, kind: input, shape index: {}]   ;;  %s13051_s2 = inlined_call_operand.hbm [shape: bf16[3,384,128], index: 2, kind: input, shape index: {}]   ;;  %s13052_s3 = inlined_call_operand.vmem [shape: f32[1,128], index: 3, kind: input, shape index: {}]   ;;  %s13053_s4 = inlined_call_operand.vmem [shape: f32[1,128], index: 4, kind: input, shape index: {}]   ;;  %s13054_s5 = inlined_call_operand.vmem [shape: f32[1,128], index: 5, kind: input, shape index: {}]   ;;  %s13055_s6 = inlined_call_operand.vmem [shape: f32[1,128], index: 6, kind: input, shape index: {}]   ;;  %s13056_s7 = inlined_call_operand.hbm [shape: f32[2,16,16,128], index: 7, kind: output, shape index: {}]  }
   0x1   :  { %13 = vsyncpa [#allocation7], 0 }
   0x2   :  { %14 = vsyncpa [#allocation5], 0  ;;  %s10834_s24 = smov [#allocation6]  }
   0x3   :  { %s32_s25 = sshll.u32 %s10834_s24, 4  ;;  %s33_s25 = int_to_ptr.vmem [resolvable:$true] %s32_s25 }
   0x4   :  { %s10580_s26 = scalar_lea.vmem %s33_s25, 9216  ;;  %p10585_p1 = scmp.lt.s32.totalorder %s33_s25, %s33_s25 }
   0x5   :  { %p10581_p0 = scmp.ne.s32.totalorder %s33_s25, %s10580_s26  ;;  %p10586_p2 = scmp.lt.s32.totalorder %s10580_s26, %s10580_s26 }
   0x7   :  { %p10587_p3 = por %p10586_p2, %p10585_p1 }
   0x9   :  { %p10588_p4 = pnand %p10587_p3, %p10581_p0 }
   0xb   :  { %10591 = shalt.err (!%p10588_p4)
}
   0xc   :  { %s10835_s27 = smov 64   ;;  %s10836_s28 = smov 4  }
   0xd   :  { %38 = dma.hbm_to_vmem [thread:$0]  %s13050_s1, 9216, %s33_s25, [#allocation7], %s10835_s27, %s10835_s27, %s10836_s28  }
   0xe   :  { %s10837_s8 = smov [#allocation3]  }
   0xf   :  { %s20_s9 = sshll.u32 %s10837_s8, 4  ;;  %s21_s9 = int_to_ptr.vmem [resolvable:$true] %s20_s9 }
  0x10   :  { %s10600_s10 = scalar_lea.vmem %s21_s9, 8192  ;;  %p10605_p6 = scmp.lt.s32.totalorder %s21_s9, %s21_s9 }
  0x11   :  { %p10601_p5 = scmp.ne.s32.totalorder %s21_s9, %s10600_s10  ;;  %p10606_p7 = scmp.lt.s32.totalorder %s10600_s10, %s10600_s10 }
  0x13   :  { %p10607_p8 = por %p10606_p7, %p10605_p6 }
  0x15   :  { %p10608_p9 = pnand %p10607_p8, %p10601_p5 }
  0x17   :  { %10611 = shalt.err (!%p10608_p9)
}
  0x18   :  { %s10838_s11 = smov 128   ;;  %s10839_s12 = smov 8  }
  0x19   :  { %26 = dma.hbm_to_vmem [thread:$0]  %s13049_s0, 8192, %s21_s9, [#allocation4], %s10838_s11, %s10838_s11, %s10839_s12  }
  0x1a   :  { %s10840_s1 = smov [#allocation8]  }
  0x1b   :  { %s44_s15 = sshll.u32 %s10840_s1, 4  ;;  %s45_s15 = int_to_ptr.vmem [resolvable:$true] %s44_s15 }
  0x1c   :  { %s10620_s16 = scalar_lea.vmem %s45_s15, 9216  ;;  %p10625_p11 = scmp.lt.s32.totalorder %s45_s15, %s45_s15 }
  0x1d   :  { %p10621_p10 = scmp.ne.s32.totalorder %s45_s15, %s10620_s16  ;;  %p10626_p12 = scmp.lt.s32.totalorder %s10620_s16, %s10620_s16 }
  0x1f   :  { %p10627_p13 = por %p10626_p12, %p10625_p11 }
  0x21   :  { %p10628_p0 = pnand %p10627_p13, %p10621_p10 }
  0x23   :  { %10631 = shalt.err (!%p10628_p0)
}
  0x24   :  { %50 = dma.hbm_to_vmem [thread:$0]  %s13051_s2, 9216, %s45_s15, [#allocation7], %s10835_s27, %s10835_s27, %s10836_s28  }
  0x25   :  { %10740 = dma.done.wait [#allocation4], 8192  }
  0x26   :  { %10741 = vsyncadd [#allocation4], 4294959104 }
  0x27   :  { %10742 = dma.done.wait [#allocation7], 18432  }
  0x28   :  { %10743 = vsyncadd [#allocation7], 4294948864  ;;  %v10841_v0 = vmov 0   ;;  %vm82_vm0 = vcmask 1040384   ;;  %vm83_vm1 = vsmask.f32 256 }
  0x29   :  { %69 = vst [vmem:[#allocation2] sm:$0xf] %v10841_v0  ;;  %70 = vst [vmem:[#allocation2 + $0x4] sm:$0xf] %v10841_v0  ;;  %v13074_v1 = vmov 0  ;;  %s11051_s0 = smov 0  }
  0x2a   :  { %71 = vst [vmem:[#allocation2 + $0x8] sm:$0x1] %v10841_v0  ;;  %72 = vst [vmem:[#allocation2 + $0xd8] sm:$0xf] %v10841_v0  ;;  %v88_v2 = vld [vmem:[#allocation2 + $0xc] sm:$0x1] }
  0x2b   :  { %73 = vst [vmem:[#allocation2 + $0xdc] sm:$0xf] %v10841_v0  ;;  %74 = vst [vmem:[#allocation2 + $0xe0] sm:$0x1] %v10841_v0  ;;  %v91_v3 = vld [vmem:[#allocation2 + $0x18] sm:$0x1] }
  0x2c   :  { %76 = vst [vmem:[#allocation2 + $0xcc] sm:$0xf] %v10841_v0  ;;  %77 = vst [vmem:[#allocation2 + $0xd0] sm:$0xf] %v10841_v0  ;;  %v94_v4 = vld [vmem:[#allocation2 + $0x24] sm:$0x1] }
  0x2d   :  { %78 = vst [vmem:[#allocation2 + $0xd4] sm:$0x1] %v10841_v0  ;;  %79 = vst [vmem:[#allocation2 + $0x1a4] sm:$0xf] %v10841_v0  ;;  %v97_v10 = vld [vmem:[#allocation2 + $0x30] sm:$0x1] }
  0x2e   :  { %80 = vst [vmem:[#allocation2 + $0x1a8] sm:$0xf] %v10841_v0  ;;  %81 = vst [vmem:[#allocation2 + $0x1ac] sm:$0x1] %v10841_v0  ;;  %v100_v11 = vld [vmem:[#allocation2 + $0x3c] sm:$0x1] }
  0x2f   :  { %vm10897_vm2 = vmand %vm82_vm0, %vm83_vm1  ;;  %v103_v14 = vld [vmem:[#allocation2 + $0x48] sm:$0x1]  ;;  %v106_v15 = vld [vmem:[#allocation2 + $0x54] sm:$0x1]  ;;  %vm193_vm3 = vsmask.f32 7938 }
  0x30   :  { %v13075_v1 = vsel %vm10897_vm2, 4294967295, %v13074_v1  ;;  %v85_v5 = vld [vmem:[#allocation2] sm:$0x1]  ;;  %v89_v6 = vsel %vm10897_vm2, 0, %v88_v2  ;;  %v92_v7 = vsel %vm10897_vm2, 0, %v91_v3  ;;  %v95_v8 = vsel %vm10897_vm2, 0, %v94_v4  ;;  %vm10967_vm4 = vmand %vm82_vm0, %vm193_vm3 }
  0x31   :  { %13076 = vst [vmem:[#allocation13_spill] sm:$0xff] %v13075_v1  ;;  %v86_v9 = vsel %vm10897_vm2, 0, %v85_v5  ;;  %90 = vst [vmem:[#allocation2 + $0xc] sm:$0x1] %v89_v6  ;;  %v98_v12 = vsel %vm10897_vm2, 0, %v97_v10  ;;  %v101_v13 = vsel %vm10897_vm2, 0, %v100_v11 }
  0x32   :  { %93 = vst [vmem:[#allocation2 + $0x18] sm:$0x1] %v92_v7  ;;  %96 = vst [vmem:[#allocation2 + $0x24] sm:$0x1] %v95_v8  ;;  %v104_v16 = vsel %vm10897_vm2, 0, %v103_v14  ;;  %v107_v17 = vsel %vm10897_vm2, 0, %v106_v15 }
  0x33   :  { %87 = vst [vmem:[#allocation2] sm:$0x1] %v86_v9  ;;  %99 = vst [vmem:[#allocation2 + $0x30] sm:$0x1] %v98_v12  ;;  %v109_v18 = vld [vmem:[#allocation2 + $0x60] sm:$0x1] }
  0x34   :  { %102 = vst [vmem:[#allocation2 + $0x3c] sm:$0x1] %v101_v13  ;;  %v112_v19 = vld [vmem:[#allocation2 + $0x6c] sm:$0x1]  ;;  %105 = vst [vmem:[#allocation2 + $0x48] sm:$0x1] %v104_v16 }
  0x35   :  { %108 = vst [vmem:[#allocation2 + $0x54] sm:$0x1] %v107_v17  ;;  %v110_v20 = vsel %vm10897_vm2, 0, %v109_v18  ;;  %v113_v21 = vsel %vm10897_vm2, 0, %v112_v19  ;;  %v115_v22 = vld [vmem:[#allocation2 + $0x78] sm:$0x1] }
  0x36   :  { %v118_v23 = vld [vmem:[#allocation2 + $0x84] sm:$0x1]  ;;  %111 = vst [vmem:[#allocation2 + $0x60] sm:$0x1] %v110_v20  ;;  %114 = vst [vmem:[#allocation2 + $0x6c] sm:$0x1] %v113_v21 }
  0x37   :  { %v116_v24 = vsel %vm10897_vm2, 0, %v115_v22  ;;  %v119_v25 = vsel %vm10897_vm2, 0, %v118_v23  ;;  %v121_v26 = vld [vmem:[#allocation2 + $0x90] sm:$0x1]  ;;  %v124_v27 = vld [vmem:[#allocation2 + $0x9c] sm:$0x1] }
  0x38   :  { %117 = vst [vmem:[#allocation2 + $0x78] sm:$0x1] %v116_v24  ;;  %120 = vst [vmem:[#allocation2 + $0x84] sm:$0x1] %v119_v25  ;;  %v122_v28 = vsel %vm10897_vm2, 0, %v121_v26  ;;  %v125_v29 = vsel %vm10897_vm2, 0, %v124_v27 }
  0x39   :  { %v127_v30 = vld [vmem:[#allocation2 + $0xa8] sm:$0x1]  ;;  %v130_v31 = vld [vmem:[#allocation2 + $0xb4] sm:$0x1]  ;;  %123 = vst [vmem:[#allocation2 + $0x90] sm:$0x1] %v122_v28 }
  0x3a   :  { %126 = vst [vmem:[#allocation2 + $0x9c] sm:$0x1] %v125_v29  ;;  %v128_v32 = vsel %vm10897_vm2, 0, %v127_v30  ;;  %v131_v33 = vsel %vm10897_vm2, 0, %v130_v31  ;;  %v133_v34 = vld [vmem:[#allocation2 + $0xc0] sm:$0x1] }
  0x3b   :  { %v136_v35 = vld [vmem:[#allocation2 + $0xcc] sm:$0x1]  ;;  %129 = vst [vmem:[#allocation2 + $0xa8] sm:$0x1] %v128_v32  ;;  %132 = vst [vmem:[#allocation2 + $0xb4] sm:$0x1] %v131_v33 }
  0x3c   :  { %v134_v36 = vsel %vm10897_vm2, 0, %v133_v34  ;;  %v137_v37 = vsel %vm10897_vm2, 0, %v136_v35  ;;  %v139_v38 = vld [vmem:[#allocation2 + $0xd8] sm:$0x1]  ;;  %v142_v39 = vld [vmem:[#allocation2 + $0xe4] sm:$0x1] }
  0x3d   :  { %135 = vst [vmem:[#allocation2 + $0xc0] sm:$0x1] %v134_v36  ;;  %138 = vst [vmem:[#allocation2 + $0xcc] sm:$0x1] %v137_v37  ;;  %v140_v40 = vsel %vm10897_vm2, 0, %v139_v38  ;;  %v143_v41 = vsel %vm10897_vm2, 0, %v142_v39 }
  0x3e   :  { %v145_v42 = vld [vmem:[#allocation2 + $0xf0] sm:$0x1]  ;;  %v148_v43 = vld [vmem:[#allocation2 + $0xfc] sm:$0x1]  ;;  %141 = vst [vmem:[#allocation2 + $0xd8] sm:$0x1] %v140_v40 }
  0x3f   :  { %144 = vst [vmem:[#allocation2 + $0xe4] sm:$0x1] %v143_v41  ;;  %v146_v44 = vsel %vm10897_vm2, 0, %v145_v42  ;;  %v149_v45 = vsel %vm10897_vm2, 0, %v148_v43  ;;  %v151_v46 = vld [vmem:[#allocation2 + $0x108] sm:$0x1] }
  0x40   :  { %v154_v47 = vld [vmem:[#allocation2 + $0x114] sm:$0x1]  ;;  %147 = vst [vmem:[#allocation2 + $0xf0] sm:$0x1] %v146_v44  ;;  %150 = vst [vmem:[#allocation2 + $0xfc] sm:$0x1] %v149_v45 }
  0x41   :  { %v152_v48 = vsel %vm10897_vm2, 0, %v151_v46  ;;  %v155_v49 = vsel %vm10897_vm2, 0, %v154_v47  ;;  %v157_v50 = vld [vmem:[#allocation2 + $0x120] sm:$0x1]  ;;  %v160_v51 = vld [vmem:[#allocation2 + $0x12c] sm:$0x1] }
  0x42   :  { %153 = vst [vmem:[#allocation2 + $0x108] sm:$0x1] %v152_v48  ;;  %156 = vst [vmem:[#allocation2 + $0x114] sm:$0x1] %v155_v49  ;;  %v158_v52 = vsel %vm10897_vm2, 0, %v157_v50  ;;  %v161_v53 = vsel %vm10897_vm2, 0, %v160_v51 }
  0x43   :  { %v163_v54 = vld [vmem:[#allocation2 + $0x138] sm:$0x1]  ;;  %v166_v55 = vld [vmem:[#allocation2 + $0x144] sm:$0x1]  ;;  %159 = vst [vmem:[#allocation2 + $0x120] sm:$0x1] %v158_v52 }
  0x44   :  { %162 = vst [vmem:[#allocation2 + $0x12c] sm:$0x1] %v161_v53  ;;  %v164_v56 = vsel %vm10897_vm2, 0, %v163_v54  ;;  %v167_v57 = vsel %vm10897_vm2, 0, %v166_v55  ;;  %v169_v58 = vld [vmem:[#allocation2 + $0x150] sm:$0x1] }
  0x45   :  { %v172_v59 = vld [vmem:[#allocation2 + $0x15c] sm:$0x1]  ;;  %165 = vst [vmem:[#allocation2 + $0x138] sm:$0x1] %v164_v56  ;;  %168 = vst [vmem:[#allocation2 + $0x144] sm:$0x1] %v167_v57 }
  0x46   :  { %v170_v60 = vsel %vm10897_vm2, 0, %v169_v58  ;;  %v173_v61 = vsel %vm10897_vm2, 0, %v172_v59  ;;  %v175_v62 = vld [vmem:[#allocation2 + $0x168] sm:$0x1]  ;;  %v178_v63 = vld [vmem:[#allocation2 + $0x174] sm:$0x1] }
  0x47   :  { %171 = vst [vmem:[#allocation2 + $0x150] sm:$0x1] %v170_v60  ;;  %174 = vst [vmem:[#allocation2 + $0x15c] sm:$0x1] %v173_v61  ;;  %v176_v0 = vsel %vm10897_vm2, 0, %v175_v62  ;;  %v179_v2 = vsel %vm10897_vm2, 0, %v178_v63 }
  0x48   :  { %v181_v3 = vld [vmem:[#allocation2 + $0x180] sm:$0x1]  ;;  %v184_v4 = vld [vmem:[#allocation2 + $0x18c] sm:$0x1]  ;;  %177 = vst [vmem:[#allocation2 + $0x168] sm:$0x1] %v176_v0 }
  0x49   :  { %180 = vst [vmem:[#allocation2 + $0x174] sm:$0x1] %v179_v2  ;;  %v182_v6 = vsel %vm10897_vm2, 0, %v181_v3  ;;  %v185_v7 = vsel %vm10897_vm2, 0, %v184_v4  ;;  %v187_v8 = vld [vmem:[#allocation2 + $0x198] sm:$0x1] }
  0x4a   :  { %v190_v9 = vld [vmem:[#allocation2 + $0x1a4] sm:$0x1]  ;;  %183 = vst [vmem:[#allocation2 + $0x180] sm:$0x1] %v182_v6  ;;  %186 = vst [vmem:[#allocation2 + $0x18c] sm:$0x1] %v185_v7 }
  0x4b   :  { %v188_v10 = vsel %vm10897_vm2, 0, %v187_v8  ;;  %v191_v11 = vsel %vm10897_vm2, 0, %v190_v9  ;;  %v195_v12 = vld [vmem:[#allocation2 + $0x8] sm:$0x1]  ;;  %v198_v13 = vld [vmem:[#allocation2 + $0x14] sm:$0x1] }
  0x4c   :  { %189 = vst [vmem:[#allocation2 + $0x198] sm:$0x1] %v188_v10  ;;  %192 = vst [vmem:[#allocation2 + $0x1a4] sm:$0x1] %v191_v11  ;;  %v196_v14 = vsel %vm10967_vm4, 0, %v195_v12  ;;  %v199_v15 = vsel %vm10967_vm4, 0, %v198_v13 }
  0x4d   :  { %v201_v16 = vld [vmem:[#allocation2 + $0x20] sm:$0x1]  ;;  %v204_v17 = vld [vmem:[#allocation2 + $0x2c] sm:$0x1]  ;;  %197 = vst [vmem:[#allocation2 + $0x8] sm:$0x1] %v196_v14 }
  0x4e   :  { %200 = vst [vmem:[#allocation2 + $0x14] sm:$0x1] %v199_v15  ;;  %v202_v18 = vsel %vm10967_vm4, 0, %v201_v16  ;;  %v205_v19 = vsel %vm10967_vm4, 0, %v204_v17  ;;  %v207_v20 = vld [vmem:[#allocation2 + $0x38] sm:$0x1] }
  0x4f   :  { %v210_v21 = vld [vmem:[#allocation2 + $0x44] sm:$0x1]  ;;  %203 = vst [vmem:[#allocation2 + $0x20] sm:$0x1] %v202_v18  ;;  %206 = vst [vmem:[#allocation2 + $0x2c] sm:$0x1] %v205_v19 }
  0x50   :  { %v208_v22 = vsel %vm10967_vm4, 0, %v207_v20  ;;  %v211_v23 = vsel %vm10967_vm4, 0, %v210_v21  ;;  %v213_v24 = vld [vmem:[#allocation2 + $0x50] sm:$0x1]  ;;  %v216_v25 = vld [vmem:[#allocation2 + $0x5c] sm:$0x1] }
  0x51   :  { %209 = vst [vmem:[#allocation2 + $0x38] sm:$0x1] %v208_v22  ;;  %212 = vst [vmem:[#allocation2 + $0x44] sm:$0x1] %v211_v23  ;;  %v214_v26 = vsel %vm10967_vm4, 0, %v213_v24  ;;  %v217_v27 = vsel %vm10967_vm4, 0, %v216_v25 }
  0x52   :  { %v219_v28 = vld [vmem:[#allocation2 + $0x68] sm:$0x1]  ;;  %v222_v29 = vld [vmem:[#allocation2 + $0x74] sm:$0x1]  ;;  %215 = vst [vmem:[#allocation2 + $0x50] sm:$0x1] %v214_v26 }
  0x53   :  { %218 = vst [vmem:[#allocation2 + $0x5c] sm:$0x1] %v217_v27  ;;  %v220_v30 = vsel %vm10967_vm4, 0, %v219_v28  ;;  %v223_v31 = vsel %vm10967_vm4, 0, %v222_v29  ;;  %v225_v32 = vld [vmem:[#allocation2 + $0x80] sm:$0x1] }
  0x54   :  { %v228_v33 = vld [vmem:[#allocation2 + $0x8c] sm:$0x1]  ;;  %221 = vst [vmem:[#allocation2 + $0x68] sm:$0x1] %v220_v30  ;;  %224 = vst [vmem:[#allocation2 + $0x74] sm:$0x1] %v223_v31 }
  0x55   :  { %v226_v34 = vsel %vm10967_vm4, 0, %v225_v32  ;;  %v229_v35 = vsel %vm10967_vm4, 0, %v228_v33  ;;  %v231_v36 = vld [vmem:[#allocation2 + $0x98] sm:$0x1]  ;;  %v234_v37 = vld [vmem:[#allocation2 + $0xa4] sm:$0x1] }
  0x56   :  { %227 = vst [vmem:[#allocation2 + $0x80] sm:$0x1] %v226_v34  ;;  %230 = vst [vmem:[#allocation2 + $0x8c] sm:$0x1] %v229_v35  ;;  %v232_v38 = vsel %vm10967_vm4, 0, %v231_v36  ;;  %v235_v39 = vsel %vm10967_vm4, 0, %v234_v37 }
  0x57   :  { %v237_v40 = vld [vmem:[#allocation2 + $0xb0] sm:$0x1]  ;;  %v240_v41 = vld [vmem:[#allocation2 + $0xbc] sm:$0x1]  ;;  %233 = vst [vmem:[#allocation2 + $0x98] sm:$0x1] %v232_v38 }
  0x58   :  { %236 = vst [vmem:[#allocation2 + $0xa4] sm:$0x1] %v235_v39  ;;  %v238_v42 = vsel %vm10967_vm4, 0, %v237_v40  ;;  %v241_v43 = vsel %vm10967_vm4, 0, %v240_v41  ;;  %v243_v44 = vld [vmem:[#allocation2 + $0xc8] sm:$0x1] }
  0x59   :  { %v246_v45 = vld [vmem:[#allocation2 + $0xd4] sm:$0x1]  ;;  %239 = vst [vmem:[#allocation2 + $0xb0] sm:$0x1] %v238_v42  ;;  %242 = vst [vmem:[#allocation2 + $0xbc] sm:$0x1] %v241_v43 }
  0x5a   :  { %v244_v46 = vsel %vm10967_vm4, 0, %v243_v44  ;;  %v247_v47 = vsel %vm10967_vm4, 0, %v246_v45  ;;  %v249_v48 = vld [vmem:[#allocation2 + $0xe0] sm:$0x1]  ;;  %v252_v49 = vld [vmem:[#allocation2 + $0xec] sm:$0x1] }
  0x5b   :  { %245 = vst [vmem:[#allocation2 + $0xc8] sm:$0x1] %v244_v46  ;;  %248 = vst [vmem:[#allocation2 + $0xd4] sm:$0x1] %v247_v47  ;;  %v250_v50 = vsel %vm10967_vm4, 0, %v249_v48  ;;  %v253_v51 = vsel %vm10967_vm4, 0, %v252_v49 }
  0x5c   :  { %v255_v52 = vld [vmem:[#allocation2 + $0xf8] sm:$0x1]  ;;  %v258_v53 = vld [vmem:[#allocation2 + $0x104] sm:$0x1]  ;;  %251 = vst [vmem:[#allocation2 + $0xe0] sm:$0x1] %v250_v50 }
  0x5d   :  { %254 = vst [vmem:[#allocation2 + $0xec] sm:$0x1] %v253_v51  ;;  %v256_v54 = vsel %vm10967_vm4, 0, %v255_v52  ;;  %v259_v55 = vsel %vm10967_vm4, 0, %v258_v53  ;;  %v261_v56 = vld [vmem:[#allocation2 + $0x110] sm:$0x1] }
  0x5e   :  { %v264_v57 = vld [vmem:[#allocation2 + $0x11c] sm:$0x1]  ;;  %257 = vst [vmem:[#allocation2 + $0xf8] sm:$0x1] %v256_v54  ;;  %260 = vst [vmem:[#allocation2 + $0x104] sm:$0x1] %v259_v55 }
  0x5f   :  { %v262_v58 = vsel %vm10967_vm4, 0, %v261_v56  ;;  %v265_v59 = vsel %vm10967_vm4, 0, %v264_v57  ;;  %v267_v60 = vld [vmem:[#allocation2 + $0x128] sm:$0x1]  ;;  %v270_v61 = vld [vmem:[#allocation2 + $0x134] sm:$0x1] }
  0x60   :  { %263 = vst [vmem:[#allocation2 + $0x110] sm:$0x1] %v262_v58  ;;  %266 = vst [vmem:[#allocation2 + $0x11c] sm:$0x1] %v265_v59  ;;  %v268_v62 = vsel %vm10967_vm4, 0, %v267_v60  ;;  %v271_v63 = vsel %vm10967_vm4, 0, %v270_v61 }
  0x61   :  { %v273_v0 = vld [vmem:[#allocation2 + $0x140] sm:$0x1]  ;;  %v276_v2 = vld [vmem:[#allocation2 + $0x14c] sm:$0x1]  ;;  %269 = vst [vmem:[#allocation2 + $0x128] sm:$0x1] %v268_v62 }
  0x62   :  { %272 = vst [vmem:[#allocation2 + $0x134] sm:$0x1] %v271_v63  ;;  %v274_v3 = vsel %vm10967_vm4, 0, %v273_v0  ;;  %v277_v4 = vsel %vm10967_vm4, 0, %v276_v2  ;;  %v279_v6 = vld [vmem:[#allocation2 + $0x158] sm:$0x1] }
  0x63   :  { %v282_v7 = vld [vmem:[#allocation2 + $0x164] sm:$0x1]  ;;  %275 = vst [vmem:[#allocation2 + $0x140] sm:$0x1] %v274_v3  ;;  %278 = vst [vmem:[#allocation2 + $0x14c] sm:$0x1] %v277_v4 }
  0x64   :  { %v280_v8 = vsel %vm10967_vm4, 0, %v279_v6  ;;  %v283_v9 = vsel %vm10967_vm4, 0, %v282_v7  ;;  %v285_v10 = vld [vmem:[#allocation2 + $0x170] sm:$0x1]  ;;  %v288_v11 = vld [vmem:[#allocation2 + $0x17c] sm:$0x1] }
  0x65   :  { %281 = vst [vmem:[#allocation2 + $0x158] sm:$0x1] %v280_v8  ;;  %284 = vst [vmem:[#allocation2 + $0x164] sm:$0x1] %v283_v9  ;;  %v286_v12 = vsel %vm10967_vm4, 0, %v285_v10  ;;  %v289_v13 = vsel %vm10967_vm4, 0, %v288_v11 }
  0x66   :  { %v291_v14 = vld [vmem:[#allocation2 + $0x188] sm:$0x1]  ;;  %v294_v15 = vld [vmem:[#allocation2 + $0x194] sm:$0x1]  ;;  %287 = vst [vmem:[#allocation2 + $0x170] sm:$0x1] %v286_v12 }
  0x67   :  { %290 = vst [vmem:[#allocation2 + $0x17c] sm:$0x1] %v289_v13  ;;  %v292_v16 = vsel %vm10967_vm4, 0, %v291_v14  ;;  %v295_v17 = vsel %vm10967_vm4, 0, %v294_v15  ;;  %v297_v18 = vld [vmem:[#allocation2 + $0x1a0] sm:$0x1] }
  0x68   :  { %v300_v19 = vld [vmem:[#allocation2 + $0x1ac] sm:$0x1]  ;;  %293 = vst [vmem:[#allocation2 + $0x188] sm:$0x1] %v292_v16  ;;  %296 = vst [vmem:[#allocation2 + $0x194] sm:$0x1] %v295_v17 }
  0x69   :  { %v298_v20 = vsel %vm10967_vm4, 0, %v297_v18  ;;  %v301_v21 = vsel %vm10967_vm4, 0, %v300_v19 }
  0x6a   :  { %299 = vst [vmem:[#allocation2 + $0x1a0] sm:$0x1] %v298_v20  ;;  %302 = vst [vmem:[#allocation2 + $0x1ac] sm:$0x1] %v301_v21 }
  0x6b LB: > { %s9090_s2 = sshll.u32 %s10748_s0, 6  ;;  %s8219_s19 = smul.u32 48, %s10748_s0  ;;  %vm430_vm5 = vcmask 1043456   ;;  %vm345_vm6 = vsmask.f32 4368  ;;  %v13079_v40 = vmov 0  ;;  %s10748_s0 = sphi %s11051_s0, %s308_s0  }
  0x6c   : > { %s11058_s20 = scalar_lea.vmem [#allocation3], %s9090_s2  ;;  %vm11069_vm7 = vmand %vm430_vm5, %vm193_vm3  ;;  %v13082_v45 = vmov 0  ;;  %s308_s0 = sadd.s32 1, %s10748_s0  }
  0x6d   : > { %v312_v5 = vld [vmem:[%s11058_s20] sm:$0xff]  ;;  %v313_v22 = vld [vmem:[%s11058_s20 + $0x8] sm:$0xff]  ;;  %v314_v23 = vld [vmem:[%s11058_s20 + $0x10] sm:$0xff]  ;;  %v13080_v40 = vsel %vm11069_vm7, 4294967295, %v13079_v40  ;;  %s11073_s21 = scalar_lea.vmem [#allocation2], %s8219_s19  ;;  %p305_p1 = scmp.ge.s32.totalorder %s308_s0, 4  }
  0x6e   : > { %v9091_v24 = vpack.c.bf16 %v312_v5, %v312_v5  ;;  %v9092_v25 = vpack.c.bf16 %v313_v22, %v313_v22  ;;  %v9093_v26 = vpack.c.bf16 %v314_v23, %v314_v23  ;;  %v315_v27 = vld [vmem:[%s11058_s20 + $0x18] sm:$0xff]  ;;  %v316_v28 = vld [vmem:[%s11058_s20 + $0x20] sm:$0xff]  ;;  %v317_v37 = vld [vmem:[%s11058_s20 + $0x28] sm:$0xff]  ;;  %13081 = vst [vmem:[#allocation14_spill] sm:$0xff] %v13080_v40  ;;  %s11129_s22 = smov (%p305_p1), 0  }
  0x6f   : > { %v9094_v35 = vpack.c.bf16 %v315_v27, %v315_v27  ;;  %v9095_v36 = vpack.c.bf16 %v316_v28, %v316_v28  ;;  %v318_v38 = vld [vmem:[%s11058_s20 + $0x30] sm:$0xff]  ;;  %v9096_v43 = vpack.c.bf16 %v317_v37, %v317_v37  ;;  %vm11078_vm8 = vmor %vm83_vm1, %vm345_vm6  ;;  %v319_v2 = vld [vmem:[%s11058_s20 + $0x38] sm:$0xff] }
  0x70   : > { %v348_v29 = vshrl.u32 %v9091_v24, 16  ;;  %v351_v30 = vshll.u32 %v9091_v24, 16  ;;  %v356_v31 = vshrl.u32 %v9092_v25, 16  ;;  %v359_v32 = vshll.u32 %v9092_v25, 16 }
  0x71   : > { %v365_v33 = vshrl.u32 %v9093_v26, 16  ;;  %v368_v34 = vshll.u32 %v9093_v26, 16  ;;  %v8220_v41 = vld [vmem:[%s11073_s21 + $0xc] sm:$0xf]  ;;  %v9097_v44 = vpack.c.bf16 %v318_v38, %v318_v38  ;;  %v13083_v45 = vsel %vm11078_vm8, 4294967295, %v13082_v45 }
  0x72   : > { %v350_v39 = vrot.slane %v348_v29, 7  ;;  %v358_v42 = vrot.slane %v356_v31, 7  ;;  %13084 = vst [vmem:[#allocation15_spill] sm:$0xff] %v13083_v45  ;;  %v8223_v46 = vld [vmem:[%s11073_s21 + $0x14] sm:$0x1]  ;;  %v373_v48 = vshrl.u32 %v9094_v35, 16  ;;  %v9098_v15 = vpack.c.bf16 %v319_v2, %v319_v2 }
  0x73   : > { %v367_v47 = vrot.slane %v365_v33, 7  ;;  %v376_v49 = vshll.u32 %v9094_v35, 16  ;;  %v382_v50 = vshrl.u32 %v9095_v36, 16  ;;  %v8225_v55 = vld [vmem:[%s11073_s21 + $0x18] sm:$0xf]  ;;  %v385_v0 = vshll.u32 %v9095_v36, 16 }
  0x74   : > { %v353_v51 = vor.u32 %v351_v30, %v350_v39  ;;  %v354_v52 = vrot.slane %v350_v39, 4  ;;  %v361_v53 = vor.u32 %v359_v32, %v358_v42  ;;  %v363_v54 = vrot.slane %v358_v42, 4  ;;  %v8228_v63 = vld [vmem:[%s11073_s21 + $0x20] sm:$0x1]  ;;  %v8230_v7 = vld [vmem:[%s11073_s21 + $0x24] sm:$0xf] }
  0x75   : > { %v370_v56 = vor.u32 %v368_v34, %v367_v47  ;;  %v371_v57 = vrot.slane %v367_v47, 4  ;;  %v375_v58 = vrot.slane %v373_v48, 7  ;;  %v384_v59 = vrot.slane %v382_v50, 7  ;;  %v8233_v20 = vld [vmem:[%s11073_s21 + $0x2c] sm:$0x1] }
  0x76   : > { %v433_v60 = vsel %vm11069_vm7, %v353_v51, %v8220_v41  ;;  %v362_v61 = vsel %vm11078_vm8, %v354_v52, %v361_v53  ;;  %v437_v62 = vsel %vm10897_vm2, %v363_v54, %v8223_v46  ;;  %v390_v9 = vshrl.u32 %v9096_v43, 16  ;;  %v8235_v21 = vld [vmem:[%s11073_s21 + $0x30] sm:$0xf]  ;;  %v8238_v31 = vld [vmem:[%s11073_s21 + $0x38] sm:$0x1] }
  0x77   : > { %8221 = vst [vmem:[%s11073_s21 + $0xc] sm:$0xf] %v433_v60  ;;  %8222 = vst [vmem:[%s11073_s21 + $0x10] sm:$0xf] %v362_v61  ;;  %v440_v3 = vsel %vm11069_vm7, %v370_v56, %v8225_v55  ;;  %v378_v4 = vor.u32 %v376_v49, %v375_v58  ;;  %v380_v6 = vrot.slane %v375_v58, 4  ;;  %v387_v8 = vor.u32 %v385_v0, %v384_v59 }
  0x78   : > { %8224 = vst [vmem:[%s11073_s21 + $0x14] sm:$0x1] %v437_v62  ;;  %8226 = vst [vmem:[%s11073_s21 + $0x18] sm:$0xf] %v440_v3  ;;  %v393_v10 = vshll.u32 %v9096_v43, 16  ;;  %v399_v11 = vshrl.u32 %v9097_v44, 16 }
  0x79   : > { %v379_v12 = vsel %vm11078_vm8, %v371_v57, %v378_v4  ;;  %v444_v13 = vsel %vm10897_vm2, %v380_v6, %v8228_v63  ;;  %v402_v14 = vshll.u32 %v9097_v44, 16  ;;  %v447_v16 = vsel %vm11069_vm7, %v387_v8, %v8230_v7 }
  0x7a   : > { %8227 = vst [vmem:[%s11073_s21 + $0x1c] sm:$0xf] %v379_v12  ;;  %8229 = vst [vmem:[%s11073_s21 + $0x20] sm:$0x1] %v444_v13  ;;  %v388_v17 = vrot.slane %v384_v59, 4  ;;  %v392_v18 = vrot.slane %v390_v9, 7 }
  0x7b   : > { %v401_v19 = vrot.slane %v399_v11, 7  ;;  %8231 = vst [vmem:[%s11073_s21 + $0x24] sm:$0xf] %v447_v16  ;;  %v407_v5 = vshrl.u32 %v9098_v15, 16  ;;  %v410_v22 = vshll.u32 %v9098_v15, 16 }
  0x7c   : > { %v395_v23 = vor.u32 %v393_v10, %v392_v18  ;;  %v397_v24 = vrot.slane %v392_v18, 4 }
  0x7d   : > { %v404_v25 = vor.u32 %v402_v14, %v401_v19  ;;  %v405_v26 = vrot.slane %v401_v19, 4  ;;  %v409_v27 = vrot.slane %v407_v5, 7 }
  0x7e   : > { %v396_v28 = vsel %vm11078_vm8, %v388_v17, %v395_v23  ;;  %v451_v29 = vsel %vm10897_vm2, %v397_v24, %v8233_v20  ;;  %307 = sbr.rel (!%p305_p1) target bundleno = 107 (0x6b), region = 199 }
  0x7f   : > { %v454_v30 = vsel %vm11069_vm7, %v404_v25, %v8235_v21  ;;  %8232 = vst [vmem:[%s11073_s21 + $0x28] sm:$0xf] %v396_v28  ;;  %8234 = vst [vmem:[%s11073_s21 + $0x2c] sm:$0x1] %v451_v29  ;;  %v412_v32 = vor.u32 %v410_v22, %v409_v27  ;;  %v414_v33 = vrot.slane %v409_v27, 4 }
  0x80   : > { %8236 = vst [vmem:[%s11073_s21 + $0x30] sm:$0xf] %v454_v30 }
  0x81   : > { %v413_v34 = vsel %vm11078_vm8, %v405_v26, %v412_v32  ;;  %v458_v35 = vsel %vm10897_vm2, %v414_v33, %v8238_v31 }
  0x82   : > { %8237 = vst [vmem:[%s11073_s21 + $0x34] sm:$0xf] %v413_v34  ;;  %8239 = vst [vmem:[%s11073_s21 + $0x38] sm:$0x1] %v458_v35 }
  0x83 LB: > { %s8240_s23 = sshll.u32 %s10752_s22, 6  ;;  %s8259_s24 = smul.u32 48, %s10752_s22  ;;  %s10752_s22 = sphi %s11129_s22, %s465_s22  }
  0x84   : > { %s11136_s25 = scalar_lea.vmem [#allocation3], %s8240_s23  ;;  %s465_s22 = sadd.s32 1, %s10752_s22  }
  0x85   : > { %v8241_v36 = vld [vmem:[%s11136_s25 + $0x100] sm:$0xff]  ;;  %v8242_v37 = vld [vmem:[%s11136_s25 + $0x108] sm:$0xff]  ;;  %v8243_v38 = vld [vmem:[%s11136_s25 + $0x110] sm:$0xff]  ;;  %s11145_s26 = scalar_lea.vmem [#allocation2], %s8259_s24  ;;  %p462_p2 = scmp.ge.s32.totalorder %s465_s22, 4  }
  0x86   : > { %v9099_v39 = vpack.c.bf16 %v8241_v36, %v8241_v36  ;;  %v9100_v41 = vpack.c.bf16 %v8242_v37, %v8242_v37  ;;  %v9101_v42 = vpack.c.bf16 %v8243_v38, %v8243_v38  ;;  %v8244_v43 = vld [vmem:[%s11136_s25 + $0x118] sm:$0xff]  ;;  %v8245_v44 = vld [vmem:[%s11136_s25 + $0x120] sm:$0xff]  ;;  %v8246_v54 = vld [vmem:[%s11136_s25 + $0x128] sm:$0xff]  ;;  %s11197_s27 = smov (%p462_p2), 0  }
  0x87   : > { %v9102_v52 = vpack.c.bf16 %v8244_v43, %v8244_v43  ;;  %v9103_v53 = vpack.c.bf16 %v8245_v44, %v8245_v44  ;;  %v8247_v55 = vld [vmem:[%s11136_s25 + $0x130] sm:$0xff]  ;;  %v9104_v59 = vpack.c.bf16 %v8246_v54, %v8246_v54  ;;  %v8248_v18 = vld [vmem:[%s11136_s25 + $0x138] sm:$0xff] }
  0x88   : > { %v506_v46 = vshrl.u32 %v9099_v39, 16  ;;  %v509_v47 = vshll.u32 %v9099_v39, 16  ;;  %v514_v48 = vshrl.u32 %v9100_v41, 16  ;;  %v517_v49 = vshll.u32 %v9100_v41, 16 }
  0x89   : > { %v523_v50 = vshrl.u32 %v9101_v42, 16  ;;  %v526_v51 = vshll.u32 %v9101_v42, 16  ;;  %v8260_v57 = vld [vmem:[%s11145_s26 + $0xe4] sm:$0xf]  ;;  %v9105_v60 = vpack.c.bf16 %v8247_v55, %v8247_v55  ;;  %v8263_v61 = vld [vmem:[%s11145_s26 + $0xec] sm:$0x1]  ;;  %v9106_v29 = vpack.c.bf16 %v8248_v18, %v8248_v18 }
  0x8a   : > { %v508_v56 = vrot.slane %v506_v46, 7  ;;  %v516_v58 = vrot.slane %v514_v48, 7  ;;  %v531_v63 = vshrl.u32 %v9102_v52, 16  ;;  %v534_v0 = vshll.u32 %v9102_v52, 16  ;;  %v8265_v8 = vld [vmem:[%s11145_s26 + $0xf0] sm:$0xf] }
  0x8b   : > { %v525_v62 = vrot.slane %v523_v50, 7  ;;  %v540_v2 = vshrl.u32 %v9103_v53, 16  ;;  %v8268_v16 = vld [vmem:[%s11145_s26 + $0xf8] sm:$0x1]  ;;  %v543_v17 = vshll.u32 %v9103_v53, 16  ;;  %v548_v23 = vshrl.u32 %v9104_v59, 16 }
  0x8c   : > { %v511_v3 = vor.u32 %v509_v47, %v508_v56  ;;  %v512_v4 = vrot.slane %v508_v56, 4  ;;  %v519_v6 = vor.u32 %v517_v49, %v516_v58  ;;  %v521_v7 = vrot.slane %v516_v58, 4  ;;  %v8270_v5 = vld [vmem:[%s11145_s26 + $0xfc] sm:$0xf]  ;;  %v8273_v34 = vld [vmem:[%s11145_s26 + $0x104] sm:$0x1] }
  0x8d   : > { %v528_v9 = vor.u32 %v526_v51, %v525_v62  ;;  %v529_v10 = vrot.slane %v525_v62, 4  ;;  %v533_v11 = vrot.slane %v531_v63, 7  ;;  %v542_v12 = vrot.slane %v540_v2, 7  ;;  %v8275_v35 = vld [vmem:[%s11145_s26 + $0x108] sm:$0xf] }
  0x8e   : > { %v592_v13 = vsel %vm11069_vm7, %v511_v3, %v8260_v57  ;;  %v520_v14 = vsel %vm11078_vm8, %v512_v4, %v519_v6  ;;  %v596_v15 = vsel %vm10897_vm2, %v521_v7, %v8263_v61  ;;  %v551_v24 = vshll.u32 %v9104_v59, 16  ;;  %v8278_v48 = vld [vmem:[%s11145_s26 + $0x110] sm:$0x1] }
  0x8f   : > { %8261 = vst [vmem:[%s11145_s26 + $0xe4] sm:$0xf] %v592_v13  ;;  %8262 = vst [vmem:[%s11145_s26 + $0xe8] sm:$0xf] %v520_v14  ;;  %v599_v19 = vsel %vm11069_vm7, %v528_v9, %v8265_v8  ;;  %v536_v20 = vor.u32 %v534_v0, %v533_v11  ;;  %v538_v21 = vrot.slane %v533_v11, 4  ;;  %v545_v22 = vor.u32 %v543_v17, %v542_v12 }
  0x90   : > { %8264 = vst [vmem:[%s11145_s26 + $0xec] sm:$0x1] %v596_v15  ;;  %8266 = vst [vmem:[%s11145_s26 + $0xf0] sm:$0xf] %v599_v19  ;;  %v557_v25 = vshrl.u32 %v9105_v60, 16  ;;  %v560_v28 = vshll.u32 %v9105_v60, 16 }
  0x91   : > { %v537_v26 = vsel %vm11078_vm8, %v529_v10, %v536_v20  ;;  %v603_v27 = vsel %vm10897_vm2, %v538_v21, %v8268_v16  ;;  %v606_v30 = vsel %vm11069_vm7, %v545_v22, %v8270_v5  ;;  %v546_v31 = vrot.slane %v542_v12, 4 }
  0x92   : > { %8267 = vst [vmem:[%s11145_s26 + $0xf4] sm:$0xf] %v537_v26  ;;  %8269 = vst [vmem:[%s11145_s26 + $0xf8] sm:$0x1] %v603_v27  ;;  %v550_v32 = vrot.slane %v548_v23, 7  ;;  %v559_v33 = vrot.slane %v557_v25, 7 }
  0x93   : > { %8271 = vst [vmem:[%s11145_s26 + $0xfc] sm:$0xf] %v606_v30  ;;  %v565_v36 = vshrl.u32 %v9106_v29, 16  ;;  %v568_v37 = vshll.u32 %v9106_v29, 16  ;;  %v11195_v53 = vmov (%p462_p2), 0.0  }
  0x94   : > { %v553_v38 = vor.u32 %v551_v24, %v550_v32  ;;  %v555_v39 = vrot.slane %v550_v32, 4  ;;  %v562_v41 = vor.u32 %v560_v28, %v559_v33  ;;  %v563_v42 = vrot.slane %v559_v33, 4 }
  0x95   : > { %v567_v43 = vrot.slane %v565_v36, 7 }
  0x96   : > { %v554_v44 = vsel %vm11078_vm8, %v546_v31, %v553_v38  ;;  %v610_v46 = vsel %vm10897_vm2, %v555_v39, %v8273_v34  ;;  %v613_v47 = vsel %vm11069_vm7, %v562_v41, %v8275_v35  ;;  %464 = sbr.rel (!%p462_p2) target bundleno = 131 (0x83), region = 210 }
  0x97   : > { %8272 = vst [vmem:[%s11145_s26 + $0x100] sm:$0xf] %v554_v44  ;;  %8274 = vst [vmem:[%s11145_s26 + $0x104] sm:$0x1] %v610_v46  ;;  %v570_v49 = vor.u32 %v568_v37, %v567_v43  ;;  %v572_v50 = vrot.slane %v567_v43, 4 }
  0x98   : > { %8276 = vst [vmem:[%s11145_s26 + $0x108] sm:$0xf] %v613_v47 }
  0x99   : > { %v571_v51 = vsel %vm11078_vm8, %v563_v42, %v570_v49  ;;  %v617_v52 = vsel %vm10897_vm2, %v572_v50, %v8278_v48 }
  0x9a   : > { %8277 = vst [vmem:[%s11145_s26 + $0x10c] sm:$0xf] %v571_v51  ;;  %8279 = vst [vmem:[%s11145_s26 + $0x110] sm:$0x1] %v617_v52 }
  0x9b LB: > { %13085 = vst [vmem:[#allocation16_spill] sm:$0xff] %v10756_v53  ;;  %v10232_v54 = vld [vmem:[#allocation6 + $0x138] sm:$0xff]   ;;  %v10235_v57 = vld [vmem:[#allocation6 + $0x130] sm:$0xff]   ;;  %v10238_v60 = vld [vmem:[#allocation6 + $0x128] sm:$0xff]   ;;  %s9107_s28 = smul.u32 48, %s10760_s27  ;;  %vm757_vm9 = vcmask 1042432   ;;  %s10760_s27 = sphi %s11197_s27, %s624_s27   ;;  %v10756_v53 = vphi %v11195_v53, %v13095_v53  }
  0x9c   : > { %v10233_v55 = vld [vmem:[#allocation6 + $0xf8] sm:$0xff]   ;;  %9135 = vmatprep.subr.bf16.mxu0 %v10232_v54  ;;  %v10236_v58 = vld [vmem:[#allocation6 + $0xf0] sm:$0xff]   ;;  %v10239_v61 = vld [vmem:[#allocation6 + $0xe8] sm:$0xff]   ;;  %vm758_vm10 = vcmask 1046532   ;;  %vm642_vm11 = vsmask.f32 3328 }
  0x9d   : > { %v10234_v56 = vld [vmem:[#allocation6 + $0x178] sm:$0xff]   ;;  %9136 = vmatpush3.bf16.msra.mxu0 %v10233_v55  ;;  %v10237_v59 = vld [vmem:[#allocation6 + $0x170] sm:$0xff]   ;;  %v10240_v62 = vld [vmem:[#allocation6 + $0x168] sm:$0xff]   ;;  %vm643_vm12 = vsmask.f32 7440  ;;  %s11206_s29 = scalar_lea.vmem [#allocation2], %s9107_s28 }
  0x9e   : > { %9759 = vmatprep.subr.bf16.mxu1 %v10234_v56  ;;  %9137 = vmatprep.subr.bf16.mxu0 %v10235_v57  ;;  %v10241_v63 = vld [vmem:[#allocation6 + $0x120] sm:$0xff]   ;;  %v10244_v3 = vld [vmem:[#allocation6 + $0x118] sm:$0xff]   ;;  %v10247_v7 = vld [vmem:[#allocation6 + $0x110] sm:$0xff]   ;;  %v13086_v29 = vmov 0  ;;  %v13089_v31 = vmov 0  ;;  %s9108_s30 = sshll.u32 %s10760_s27, 6 }
  0x9f   : > { %9760 = vmatpush3.bf16.msra.mxu1 %v10234_v56  ;;  %v10242_v0 = vld [vmem:[#allocation6 + $0xe0] sm:$0xff]   ;;  %v10246_v4 = vld [vmem:[#allocation6 + $0x158] sm:$0xff]   ;;  %v10249_v8 = vld [vmem:[#allocation6 + $0x150] sm:$0xff]   ;;  %s11530_s8 = scalar_lea.vmem [#allocation9], %s9108_s30  ;;  %s624_s27 = sadd.s32 1, %s10760_s27  }
  0xa0   : > { %9761 = vmatprep.subr.bf16.mxu1 %v10237_v59  ;;  %v10243_v2 = vld [vmem:[#allocation6 + $0x160] sm:$0xff]   ;;  %v10245_v6 = vld [vmem:[#allocation6 + $0xd8] sm:$0xff]   ;;  %v10248_v9 = vld [vmem:[#allocation6 + $0xd0] sm:$0xff]   ;;  %p621_p3 = scmp.ge.s32.totalorder %s624_s27, 4  }
  0xa1   : > { %9138 = vmatpush3.bf16.msra.mxu0 %v10236_v58  ;;  %v10250_v10 = vld [vmem:[#allocation6 + $0x108] sm:$0xff]   ;;  %v10253_v13 = vld [vmem:[#allocation6 + $0x100] sm:$0xff]   ;;  %v11209_v14 = vld [vmem:[%s11206_s29 + $0xc] sm:$0xf]  ;;  %s11570_s9 = smov (%p621_p3), 0  }
  0xa2   : > { %9139 = vmatprep.subr.bf16.mxu0 %v10238_v60  ;;  %v10251_v11 = vld [vmem:[#allocation6 + $0xc8] sm:$0xff]   ;;  %v10254_v15 = vld [vmem:[#allocation6 + $0xc0] sm:$0xff]   ;;  %v905_v18 = vshrl.u32 %v11209_v14, 16  ;;  %v908_v19 = vshll.u32 %v11209_v14, 16  ;;  %v8313_v25 = vld [vmem:[%s11206_s29 + $0xc] sm:$0xe] }
  0xa3   : > { %9762 = vmatpush3.bf16.msra.mxu1 %v10237_v59  ;;  %v10252_v12 = vld [vmem:[#allocation6 + $0x148] sm:$0xff]   ;;  %v11212_v16 = vld [vmem:[%s11206_s29 + $0x10] sm:$0xf]  ;;  %v8309_v17 = vld [vmem:[%s11206_s29 + $0x14] sm:$0x1]  ;;  %v8317_v30 = vrot.slane %v8313_v25, 9 }
  0xa4   : > { %9763 = vmatprep.subr.bf16.mxu1 %v10240_v62  ;;  %v10255_v20 = vld [vmem:[#allocation6 + $0x140] sm:$0xff]   ;;  %v914_v21 = vshll.u32 %v11212_v16, 16  ;;  %v918_v5 = vshrl.u32 %v11212_v16, 16  ;;  %v924_v22 = vshll.u32 %v8309_v17, 16  ;;  %v907_v23 = vrot.slane %v905_v18, 4  ;;  %v10257_v28 = vld [vmem:[#allocation6 + $0x78] sm:$0xff]   ;;  %vm11222_vm13 = vmor %vm757_vm9, %vm758_vm10 }
  0xa5   : > { %9140 = vmatpush3.bf16.msra.mxu0 %v10239_v61  ;;  %v910_v24 = vrot.slane %v908_v19, 5  ;;  %v13087_v29 = vsel %vm11222_vm13, 4294967295, %v13086_v29  ;;  %vm11228_vm14 = vmor %vm642_vm11, %vm643_vm12  ;;  %v1018_v34 = vrot.slane %v11212_v16, 5  ;;  %v1021_v35 = vrot.slane %v8309_v17, 5  ;;  %v10259_v36 = vld [vmem:[#allocation6 + $0xb8] sm:$0xff]   ;;  %v10260_v59 = vld [vmem:[#allocation6 + $0x70] sm:$0xff]  }
  0xa6   : > { %9141 = vmatprep.subr.bf16.mxu0 %v10241_v63  ;;  %v916_v26 = vrot.slane %v914_v21, 5  ;;  %v920_v27 = vrot.slane %v918_v5, 4  ;;  %13088 = vst [vmem:[#allocation17_spill] sm:$0xff] %v13087_v29  ;;  %v13090_v31 = vsel %vm11228_vm14, 4294967295, %v13089_v31  ;;  %v926_v33 = vrot.slane %v924_v22, 5  ;;  %v10258_v54 = vld [vmem:[#allocation6 + $0x38] sm:$0xff]  }
  0xa7   : > { %9764 = vmatpush3.bf16.msra.mxu1 %v10240_v62  ;;  %13091 = vst [vmem:[#allocation18_spill] sm:$0xff] %v13090_v31  ;;  %v911_v32 = vor.u32 %v910_v24, %v907_v23  ;;  %v11234_v38 = vld [vmem:[%s11206_s29 + $0x1c] sm:$0xf]  ;;  %v8310_v39 = vld [vmem:[%s11206_s29 + $0x20] sm:$0x1]  ;;  %v1019_v43 = vsel %vm11222_vm13, %v8317_v30, %v1018_v34  ;;  %v1020_v44 = vrot.slane %v1018_v34, 4  ;;  %v8321_v51 = vcombine.low %v11209_v14, %v11212_v16 }
  0xa8   : > { %9765 = vmatprep.subr.bf16.mxu1 %v10243_v2  ;;  %v921_v37 = vor.u32 %v920_v27, %v916_v26  ;;  %v8314_v41 = vld [vmem:[%s11206_s29 + $0x18] sm:$0xe]  ;;  %v1025_v48 = vrot.slane %v11234_v38, 5  ;;  %v1028_v49 = vrot.slane %v8310_v39, 5  ;;  %v938_v62 = vshll.u32 %v11234_v38, 16  ;;  %v10267_v22 = vld [vmem:[#allocation6 + $0x60] sm:$0xff]  }
  0xa9   : > { %9142 = vmatpush3.bf16.msra.mxu0 %v10242_v0  ;;  %v912_v42 = vrot.slane %v911_v32, 4  ;;  %v8318_v46 = vrot.slane %v8314_v41, 9  ;;  %v1022_v52 = vsel %vm11222_vm13, %v1020_v44, %v1021_v35  ;;  %v8303_v61 = vld [vmem:[%s11206_s29 + $0x18] sm:$0xf]  ;;  %v942_v63 = vshrl.u32 %v11234_v38, 16  ;;  %v10269_v27 = vld [vmem:[#allocation6 + $0xa0] sm:$0xff]  }
  0xaa   : > { %9143 = vmatprep.subr.bf16.mxu0 %v10244_v3  ;;  %v922_v47 = vrot.slane %v921_v37, 4  ;;  %v8329_v56 = vcombine.low %v1019_v43, %v1022_v52  ;;  %v1027_v58 = vrot.slane %v1025_v48, 4  ;;  %v929_v3 = vshrl.u32 %v8303_v61, 16  ;;  %v10264_v16 = vld [vmem:[#allocation6 + $0x68] sm:$0xff]   ;;  %v11260_v23 = vld [vmem:[%s11206_s29 + $0x24] sm:$0xf] }
  0xab   : > { %9766 = vmatpush3.bf16.msra.mxu1 %v10243_v2  ;;  %v917_v50 = vsel %vm11228_vm14, %v912_v42, %v916_v26  ;;  %v1026_v57 = vsel %vm11222_vm13, %v8318_v46, %v1025_v48  ;;  %v10262_v2 = vld [vmem:[#allocation6 + $0xb0] sm:$0xff]   ;;  %v10266_v18 = vld [vmem:[#allocation6 + $0xa8] sm:$0xff]   ;;  %v8322_v5 = vcombine.low %v8303_v61, %v11234_v38  ;;  %v11263_v24 = vld [vmem:[%s11206_s29 + $0x28] sm:$0xf]  ;;  %v956_v30 = vshll.u32 %v11260_v23, 16 }
  0xac   : > { %9767 = vmatprep.subr.bf16.mxu1 %v10246_v4  ;;  %v927_v55 = vsel %vm11228_vm14, %v922_v47, %v926_v33  ;;  %9775 = vmatprep.mubr.bf16.mxu1 %v8329_v56  ;;  %v1029_v0 = vsel %vm11222_vm13, %v1027_v58, %v1028_v49  ;;  %v8311_v25 = vld [vmem:[%s11206_s29 + $0x2c] sm:$0x1]  ;;  %v962_v32 = vshll.u32 %v11263_v24, 16  ;;  %v966_v34 = vshrl.u32 %v11263_v24, 16  ;;  %v10268_v42 = vld [vmem:[#allocation6 + $0x20] sm:$0xff]  }
  0xad   : > { %9144 = vmatpush3.bf16.msra.mxu0 %v10245_v6  ;;  %v8325_v60 = vcombine.low %v917_v50, %v927_v55  ;;  %v948_v6 = vshll.u32 %v8310_v39, 16  ;;  %v972_v35 = vshll.u32 %v8311_v25, 16  ;;  %v958_v38 = vrot.slane %v956_v30, 5  ;;  %v10271_v49 = vld [vmem:[#allocation6 + $0x58] sm:$0xff]   ;;  %v11275_v50 = vld [vmem:[%s11206_s29 + $0x34] sm:$0xf] }
  0xae   : > { %9145 = vmatprep.subr.bf16.mxu0 %v10247_v7  ;;  %v8330_v7 = vcombine.low %v1026_v57, %v1029_v0  ;;  %v964_v39 = vrot.slane %v962_v32, 5  ;;  %v968_v43 = vrot.slane %v966_v34, 4  ;;  %v1032_v44 = vrot.slane %v11263_v24, 5  ;;  %v10272_v56 = vld [vmem:[#allocation6 + $0x18] sm:$0xff]   ;;  %v8316_v57 = vld [vmem:[%s11206_s29 + $0x30] sm:$0xe] }
  0xaf   : > { %9768 = vmatpush3.bf16.msra.mxu1 %v10246_v4  ;;  %v932_v4 = vshll.u32 %v8303_v61, 16  ;;  %1321 = vmatprep.mubr.bf16.mxu0 %v8325_v60  ;;  %v950_v14 = vrot.slane %v948_v6, 5  ;;  %v1035_v46 = vrot.slane %v8311_v25, 5  ;;  %v974_v48 = vrot.slane %v972_v35, 5  ;;  %v10279_v32 = vld [vmem:[#allocation6 + $0x8] sm:$0xff]  }
  0xb0   : > { %9769 = vmatprep.subr.bf16.mxu1 %v10249_v8  ;;  %v969_v52 = vor.u32 %v968_v43, %v964_v39  ;;  %v1034_v55 = vrot.slane %v1032_v44, 4  ;;  %v1039_v58 = vrot.slane %v11275_v50, 5  ;;  %v8320_v60 = vrot.slane %v8316_v57, 9 }
  0xb1   : > { %9146 = vmatpush3.bf16.msra.mxu0 %v10248_v9  ;;  %v944_v9 = vrot.slane %v942_v63, 4 }
  0xb2   : > { %9147 = vmatprep.subr.bf16.mxu0 %v10250_v10  ;;  %v931_v10 = vrot.slane %v929_v3, 4  ;;  %v970_v63 = vrot.slane %v969_v52, 4  ;;  %v1036_v0 = vsel %vm11222_vm13, %v1034_v55, %v1035_v46  ;;  %v1040_v6 = vsel %vm11222_vm13, %v8320_v60, %v1039_v58 }
  0xb3   : > { %9770 = vmatpush3.bf16.msra.mxu1 %v10249_v8  ;;  %v940_v8 = vrot.slane %v938_v62, 5  ;;  %v10273_v62 = vld [vmem:[#allocation6 + $0x98] sm:$0xff]  }
  0xb4   : > { %9771 = vmatprep.subr.bf16.mxu1 %v10252_v12 }
  0xb5   : > { %9148 = vmatpush3.bf16.msra.mxu0 %v10251_v11  ;;  %v934_v11 = vrot.slane %v932_v4, 5 }
  0xb6   : > { %9149 = vmatprep.subr.bf16.mxu0 %v10253_v13  ;;  %v945_v13 = vor.u32 %v944_v9, %v940_v8  ;;  %v8323_v9 = vcombine.low %v11260_v23, %v11263_v24  ;;  %v10280_v24 = vld [vmem:[#allocation6 + $0x88] sm:$0xff]  }
  0xb7   : > { %9772 = vmatpush3.bf16.msra.mxu1 %v10252_v12  ;;  %v10261_v12 = vld [vmem:[#allocation6 + $0x30] sm:$0xff]  }
  0xb8   : > { %9773 = vmatprep.subr.bf16.mxu1 %v10255_v20  ;;  %v946_v17 = vrot.slane %v945_v13, 4 }
  0xb9   : > { %9150 = vmatpush3.bf16.msra.mxu0 %v10254_v15  ;;  %v935_v15 = vor.u32 %v934_v11, %v931_v10  ;;  %v10274_v11 = vld [vmem:[#allocation6 + $0x50] sm:$0xff]  }
  0xba   : > { %9187 = vmatprep.subr.bf16.mxu0 %v10257_v28  ;;  %v951_v21 = vsel %vm11228_vm14, %v946_v17, %v950_v14  ;;  %v953_v28 = vshrl.u32 %v11260_v23, 16  ;;  %v8307_v17 = vld [vmem:[%s11206_s29 + $0x30] sm:$0xf] }
  0xbb   : > { %9774 = vmatpush3.bf16.msra.mxu1 %v10255_v20  ;;  %v936_v19 = vrot.slane %v935_v15, 4  ;;  %v10265_v20 = vld [vmem:[#allocation6 + $0x28] sm:$0xff]   ;;  %v10275_v15 = vld [vmem:[#allocation6 + $0x10] sm:$0xff]  }
  0xbc   : > { %9783 = vmatprep.subr.bf16.mxu1 %v10259_v36  ;;  %1322 = vmatmul.mubr.bf16.vlgmr.msra.gmra.mxu0 %v8321_v51  ;;  %v955_v37 = vrot.slane %v953_v28, 4  ;;  %v8312_v51 = vld [vmem:[%s11206_s29 + $0x38] sm:$0x1] }
  0xbd   : > { %9188 = vmatpush3.bf16.msra.mxu0 %v10258_v54  ;;  %v941_v26 = vsel %vm11228_vm14, %v936_v19, %v940_v8  ;;  %v1042_v61 = vrot.slane %v8312_v51, 5  ;;  %v975_v8 = vsel %vm11228_vm14, %v970_v63, %v974_v48  ;;  %v996_v19 = vshll.u32 %v8312_v51, 16  ;;  %v10282_v48 = vld [vmem:[#allocation6] sm:$0xff]   ;;  %v10287_v63 = vld [vmem:[#allocation6 + $0x238] sm:$0xff]  }
  0xbe   : > { %9776 = vmatmul.mubr.bf16.vlgmr.msra.gmra.mxu1 %v8330_v7  ;;  %9189 = vmatprep.subr.bf16.mxu0 %v10260_v59  ;;  %v8326_v33 = vcombine.low %v941_v26, %v951_v21  ;;  %v959_v47 = vor.u32 %v958_v38, %v955_v37  ;;  %v986_v7 = vshll.u32 %v11275_v50, 16  ;;  %v980_v21 = vshll.u32 %v8307_v17, 16  ;;  %v11300_v37 = vld [vmem:[%s11206_s29] sm:$0xf]  ;;  %v11303_v38 = vld [vmem:[%s11206_s29 + $0x4] sm:$0xf] }
  0xbf   : > { %9784 = vmatpush3.bf16.msra.mxu1 %v10259_v36  ;;  %v8315_v36 = vld [vmem:[%s11206_s29 + $0x24] sm:$0xe]  ;;  %v998_v23 = vrot.slane %v996_v19, 5  ;;  %v655_v43 = vshll.u32 %v11303_v38, 16 }
  0xc0   : > { %9785 = vmatprep.subr.bf16.mxu1 %v10262_v2  ;;  %v8319_v41 = vrot.slane %v8315_v36, 9  ;;  %1329 = vmatprep.mubr.bf16.mxu0 %v8326_v33  ;;  %v960_v59 = vrot.slane %v959_v47, 4  ;;  %v982_v26 = vrot.slane %v980_v21, 5  ;;  %v10281_v33 = vld [vmem:[#allocation6 + $0x40] sm:$0xff]   ;;  %v8324_v47 = vcombine.low %v8307_v17, %v11275_v50  ;;  %v10288_v21 = vld [vmem:[#allocation6 + $0x1f0] sm:$0xff]  }
  0xc1   : > { %9190 = vmatpush3.bf16.msra.mxu0 %v10261_v12  ;;  %v990_v12 = vshrl.u32 %v11275_v50, 16  ;;  %v10283_v36 = vld [vmem:[#allocation6 + $0x80] sm:$0xff]   ;;  %v657_v55 = vrot.slane %v655_v43, 5  ;;  %v10294_v43 = vld [vmem:[#allocation6 + $0x228] sm:$0xff]  }
  0xc2   : > { %9191 = vmatprep.subr.bf16.mxu0 %v10264_v16  ;;  %v1033_v54 = vsel %vm11222_vm13, %v8319_v41, %v1032_v44  ;;  %v965_v3 = vsel %vm11228_vm14, %v960_v59, %v964_v39  ;;  %v10276_v16 = vld [vmem:[#allocation6 + $0x90] sm:$0xff]   ;;  %v638_v39 = vld [vmem:[%s11206_s29 + $0x8] sm:$0x1]  ;;  %v646_v41 = vshrl.u32 %v11300_v37, 16  ;;  %v659_v44 = vshrl.u32 %v11303_v38, 16 }
  0xc3   : > { %9786 = vmatpush3.bf16.msra.mxu1 %v10262_v2  ;;  %v1041_v2 = vrot.slane %v1039_v58, 4  ;;  %v8331_v4 = vcombine.low %v1033_v54, %v1036_v0  ;;  %v8327_v13 = vcombine.low %v965_v3, %v975_v8  ;;  %v741_v59 = vld [vmem:[%s11206_s29] sm:$0xe]  ;;  %v639_v3 = vld [vmem:[%s11206_s29 + $0x14] sm:$0x1] }
  0xc4   : > { %9787 = vmatprep.subr.bf16.mxu1 %v10266_v18  ;;  %1330 = vmatmul.mubr.bf16.gmra.mxu0 %v8322_v5  ;;  %v992_v5 = vrot.slane %v990_v12, 4  ;;  %v648_v52 = vrot.slane %v646_v41, 4  ;;  %v661_v57 = vrot.slane %v659_v44, 4  ;;  %v8283_v50 = vrot.slane %v741_v59, 9  ;;  %v742_v8 = vld [vmem:[%s11206_s29 + $0xc] sm:$0xe] }
  0xc5   : > { %9192 = vmatpush3.bf16.msra.mxu0 %v10265_v20  ;;  %v1043_v10 = vsel %vm11222_vm13, %v1041_v2, %v1042_v61  ;;  %9779 = vmatprep.mubr.bf16.mxu1 %v8331_v4  ;;  %v977_v20 = vshrl.u32 %v8307_v17, 16  ;;  %v762_v61 = vrot.slane %v11303_v38, 5  ;;  %v11316_v2 = vld [vmem:[%s11206_s29 + $0x10] sm:$0xf]  ;;  %v772_v12 = vrot.slane %v639_v3, 5  ;;  %v10292_v41 = vld [vmem:[#allocation6 + $0x1e8] sm:$0xff]  }
  0xc6   : > { %9193 = vmatprep.subr.bf16.mxu0 %v10267_v22  ;;  %v8332_v14 = vcombine.low %v1040_v6, %v1043_v10  ;;  %v10278_v22 = vld [vmem:[#allocation6 + $0x48] sm:$0xff]   ;;  %1337 = vmatprep.mubr.bf16.mxu0 %v8327_v13  ;;  %v662_v0 = vor.u32 %v661_v57, %v657_v55  ;;  %v10297_v59 = vld [vmem:[#allocation6 + $0x220] sm:$0xff]  }
  0xc7   : > { %9788 = vmatpush3.bf16.msra.mxu1 %v10266_v18  ;;  %v988_v18 = vrot.slane %v986_v7, 5  ;;  %v979_v25 = vrot.slane %v977_v20, 4  ;;  %v763_v6 = vsel %vm11222_vm13, %v8283_v50, %v762_v61  ;;  %v764_v7 = vrot.slane %v762_v61, 4 }
  0xc8   : > { %9789 = vmatprep.subr.bf16.mxu1 %v10269_v27  ;;  %9780 = vmatmul.mubr.bf16.gmra.mxu1 %v8332_v14  ;;  %v663_v10 = vrot.slane %v662_v0, 4  ;;  %v10286_v14 = vld [vmem:[#allocation6 + $0x1b8] sm:$0xff]  }
  0xc9   : > { %9194 = vmatpush3.bf16.msra.mxu0 %v10268_v42  ;;  %v983_v28 = vor.u32 %v982_v26, %v979_v25  ;;  %v649_v42 = vshll.u32 %v11300_v37, 16  ;;  %v683_v25 = vshrl.u32 %v11316_v2, 16 }
  0xca   : > { %9195 = vmatprep.subr.bf16.mxu0 %v10271_v49  ;;  %v665_v49 = vshll.u32 %v638_v39, 16 }
  0xcb   : > { %9790 = vmatpush3.bf16.msra.mxu1 %v10269_v27  ;;  %v993_v27 = vor.u32 %v992_v5, %v988_v18  ;;  %v984_v34 = vrot.slane %v983_v28, 4  ;;  %v651_v54 = vrot.slane %v649_v42, 5 }
  0xcc   : > { %9791 = vmatprep.subr.bf16.mxu1 %v10273_v62  ;;  %1338 = vmatmul.mubr.bf16.gmra.mxu0 %v8323_v9  ;;  %v667_v58 = vrot.slane %v665_v49, 5  ;;  %v769_v9 = vrot.slane %v11316_v2, 5 }
  0xcd   : > { %9196 = vmatpush3.bf16.msra.mxu0 %v10272_v56  ;;  %v994_v30 = vrot.slane %v993_v27, 4  ;;  %v989_v46 = vsel %vm11228_vm14, %v984_v34, %v988_v18  ;;  %v10285_v56 = vld [vmem:[#allocation6 + $0x1f8] sm:$0xff]   ;;  %v652_v60 = vor.u32 %v651_v54, %v648_v52  ;;  %v8287_v18 = vcombine.low %v11300_v37, %v11303_v38  ;;  %v10290_v27 = vld [vmem:[#allocation6 + $0x230] sm:$0xff]   ;;  %v10295_v52 = vld [vmem:[#allocation6 + $0x1e0] sm:$0xff]  }
  0xce   : > { %9197 = vmatprep.subr.bf16.mxu0 %v10274_v11  ;;  %v8284_v11 = vrot.slane %v742_v8, 9  ;;  %v668_v17 = vsel %vm11228_vm14, %v663_v10, %v667_v58  ;;  %v685_v34 = vrot.slane %v683_v25, 4  ;;  %v11345_v54 = vld [vmem:[%s11206_s29 + $0x1c] sm:$0xf] }
  0xcf   : > { %9792 = vmatpush3.bf16.msra.mxu1 %v10273_v62  ;;  %v999_v35 = vsel %vm11228_vm14, %v994_v30, %v998_v23  ;;  %v765_v62 = vrot.slane %v638_v39, 5  ;;  %v653_v4 = vrot.slane %v652_v60, 4  ;;  %v632_v23 = vld [vmem:[%s11206_s29 + $0xc] sm:$0xf]  ;;  %v703_v60 = vshll.u32 %v11345_v54, 16 }
  0xd0   : > { %9793 = vmatprep.subr.bf16.mxu1 %v10276_v16  ;;  %v8328_v51 = vcombine.low %v989_v46, %v999_v35  ;;  %v770_v20 = vsel %vm11222_vm13, %v8284_v11, %v769_v9  ;;  %v670_v28 = vshrl.u32 %v632_v23, 16  ;;  %v673_v30 = vshll.u32 %v632_v23, 16  ;;  %v10289_v35 = vld [vmem:[#allocation6 + $0x1b0] sm:$0xff]   ;;  %v10301_v11 = vld [vmem:[#allocation6 + $0x218] sm:$0xff]  }
  0xd1   : > { %9198 = vmatpush3.bf16.msra.mxu0 %v10275_v15  ;;  %v658_v13 = vsel %vm11228_vm14, %v653_v4, %v657_v55  ;;  %v766_v15 = vsel %vm11222_vm13, %v764_v7, %v765_v62  ;;  %v640_v55 = vld [vmem:[%s11206_s29 + $0x20] sm:$0x1]  ;;  %v707_v50 = vshrl.u32 %v11345_v54, 16 }
  0xd2   : > { %9199 = vmatprep.subr.bf16.mxu0 %v10278_v22  ;;  %1345 = vmatprep.mubr.bf16.mxu0 %v8328_v51  ;;  %v8295_v19 = vcombine.low %v763_v6, %v766_v15  ;;  %v8291_v5 = vcombine.low %v658_v13, %v668_v17  ;;  %v675_v37 = vrot.slane %v673_v30, 5  ;;  %v8288_v51 = vcombine.low %v632_v23, %v11316_v2  ;;  %v10299_v6 = vld [vmem:[#allocation6 + $0x1d8] sm:$0xff]  }
  0xd3   : > { %9794 = vmatpush3.bf16.msra.mxu1 %v10276_v16  ;;  %v771_v16 = vrot.slane %v769_v9, 4  ;;  %v713_v61 = vshll.u32 %v640_v55, 16  ;;  %v709_v4 = vrot.slane %v707_v50, 4  ;;  %v776_v9 = vrot.slane %v11345_v54, 5  ;;  %v10300_v23 = vld [vmem:[#allocation6 + $0x198] sm:$0xff]   ;;  %v10309_v50 = vld [vmem:[#allocation6 + $0x1c0] sm:$0xff]  }
  0xd4   : > { %9795 = vmatprep.subr.bf16.mxu1 %v10280_v24  ;;  %1346 = vmatmul.mubr.bf16.gmra.mxu0 %v8324_v47  ;;  %v10293_v47 = vld [vmem:[#allocation6 + $0x1a8] sm:$0xff]   ;;  %v779_v13 = vrot.slane %v640_v55, 5 }
  0xd5   : > { %9200 = vmatpush3.bf16.msra.mxu0 %v10279_v32  ;;  %v773_v22 = vsel %vm11222_vm13, %v771_v16, %v772_v12  ;;  %9799 = vmatprep.mubr.bf16.mxu1 %v8295_v19  ;;  %v689_v32 = vshll.u32 %v639_v3, 16  ;;  %v705_v3 = vrot.slane %v703_v60, 5  ;;  %v715_v8 = vrot.slane %v713_v61, 5  ;;  %v743_v12 = vld [vmem:[%s11206_s29 + $0x18] sm:$0xe] }
  0xd6   : > { %9201 = vmatprep.subr.bf16.mxu0 %v10281_v33  ;;  %v8296_v26 = vcombine.low %v770_v20, %v773_v22  ;;  %1595 = vmatprep.mubr.bf16.mxu0 %v8291_v5  ;;  %v8285_v16 = vrot.slane %v743_v12, 9  ;;  %v778_v17 = vrot.slane %v776_v9, 4 }
  0xd7   : > { %9796 = vmatpush3.bf16.msra.mxu1 %v10280_v24  ;;  %v679_v24 = vshll.u32 %v11316_v2, 16  ;;  %v691_v39 = vrot.slane %v689_v32, 5  ;;  %v10296_v2 = vld [vmem:[#allocation6 + $0x1a0] sm:$0xff]   ;;  %v710_v10 = vor.u32 %v709_v4, %v705_v3  ;;  %v8391_v4 = vld [vmem:[%s11206_s29 + $0x20] sm:$0x1] }
  0xd8   : > { %9797 = vmatprep.subr.bf16.mxu1 %v10283_v36  ;;  %v780_v25 = vsel %vm11222_vm13, %v778_v17, %v779_v13  ;;  %v8392_v17 = vld [vmem:[%s11206_s29 + $0x2c] sm:$0x1] }
  0xd9   : > { %9202 = vmatpush3.bf16.msra.mxu0 %v10282_v48  ;;  %v681_v33 = vrot.slane %v679_v24, 5  ;;  %v11339_v48 = vld [vmem:[%s11206_s29 + $0x18] sm:$0xf]  ;;  %v711_v20 = vrot.slane %v710_v10, 4  ;;  %v777_v24 = vsel %vm11222_vm13, %v8285_v16, %v776_v9  ;;  %v11404_v16 = vld [vmem:[%s11206_s29 + $0x28] sm:$0xf] }
  0xda   : > { %9239 = vmatprep.subr.bf16.mxu0 %v10285_v56  ;;  %v694_v56 = vshrl.u32 %v11339_v48, 16  ;;  %v697_v57 = vshll.u32 %v11339_v48, 16  ;;  %v8297_v30 = vcombine.low %v777_v24, %v780_v25  ;;  %v1826_v25 = vrot.slane %v8391_v4, 5 }
  0xdb   : > { %9798 = vmatpush3.bf16.msra.mxu1 %v10283_v36  ;;  %v672_v36 = vrot.slane %v670_v28, 4  ;;  %v686_v38 = vor.u32 %v685_v34, %v681_v33  ;;  %v8289_v28 = vcombine.low %v11339_v48, %v11345_v54  ;;  %v10306_v54 = vld [vmem:[#allocation6 + $0x1c8] sm:$0xff]  }
  0xdc   : > { %9807 = vmatprep.subr.bf16.mxu1 %v10287_v63  ;;  %1596 = vmatmul.mubr.bf16.vlgmr.msra.gmra.mxu0 %v8287_v18  ;;  %v699_v0 = vrot.slane %v697_v57, 5  ;;  %v641_v18 = vld [vmem:[%s11206_s29 + $0x2c] sm:$0x1]  ;;  %v10308_v57 = vld [vmem:[#allocation6 + $0x208] sm:$0xff]  }
  0xdd   : > { %9240 = vmatpush3.bf16.msra.mxu0 %v10286_v14  ;;  %v676_v42 = vor.u32 %v675_v37, %v672_v36  ;;  %v687_v44 = vrot.slane %v686_v38, 4  ;;  %v11357_v14 = vld [vmem:[%s11206_s29 + $0x28] sm:$0xf]  ;;  %v786_v5 = vrot.slane %v641_v18, 5  ;;  %v10303_v36 = vld [vmem:[#allocation6 + $0x190] sm:$0xff]  }
  0xde   : > { %9800 = vmatmul.mubr.bf16.vlgmr.msra.gmra.mxu1 %v8296_v26  ;;  %9241 = vmatprep.subr.bf16.mxu0 %v10288_v21  ;;  %v783_v19 = vrot.slane %v11357_v14, 5  ;;  %v744_v21 = vld [vmem:[%s11206_s29 + $0x24] sm:$0xe]  ;;  %v727_v38 = vshll.u32 %v11357_v14, 16 }
  0xdf   : > { %9808 = vmatpush3.bf16.msra.mxu1 %v10287_v63  ;;  %v677_v46 = vrot.slane %v676_v42, 4  ;;  %v692_v49 = vsel %vm11228_vm14, %v687_v44, %v691_v39  ;;  %v696_v63 = vrot.slane %v694_v56, 4  ;;  %v8286_v26 = vrot.slane %v744_v21, 9  ;;  %v11375_v37 = vld [vmem:[%s11206_s29 + $0x24] sm:$0xf]  ;;  %9803 = vmatprep.mubr.bf16.mxu1 %v8297_v30 }
  0xe0   : > { %9809 = vmatprep.subr.bf16.mxu1 %v10290_v27  ;;  %v785_v32 = vrot.slane %v783_v19, 4  ;;  %v731_v39 = vshrl.u32 %v11357_v14, 16  ;;  %v10304_v42 = vld [vmem:[#allocation6 + $0x210] sm:$0xff]   ;;  %v721_v44 = vshll.u32 %v11375_v37, 16  ;;  %v729_v48 = vrot.slane %v727_v38, 5 }
  0xe1   : > { %9242 = vmatpush3.bf16.msra.mxu0 %v10289_v35  ;;  %v682_v58 = vsel %vm11228_vm14, %v677_v46, %v681_v33  ;;  %v700_v7 = vor.u32 %v699_v0, %v696_v63  ;;  %v10302_v33 = vld [vmem:[#allocation6 + $0x1d0] sm:$0xff]   ;;  %v784_v35 = vsel %vm11222_vm13, %v8286_v26, %v783_v19  ;;  %v737_v46 = vshll.u32 %v641_v18, 16 }
  0xe2   : > { %9243 = vmatprep.subr.bf16.mxu0 %v10292_v41  ;;  %v8292_v62 = vcombine.low %v682_v58, %v692_v49  ;;  %v787_v41 = vsel %vm11222_vm13, %v785_v32, %v786_v5  ;;  %v733_v49 = vrot.slane %v731_v39, 4  ;;  %v8290_v0 = vcombine.low %v11375_v37, %v11357_v14  ;;  %v8396_v5 = vld [vmem:[%s11206_s29 + $0x24] sm:$0xe] }
  0xe3   : > { %9810 = vmatpush3.bf16.msra.mxu1 %v10290_v27  ;;  %v701_v15 = vrot.slane %v700_v7, 4  ;;  %v716_v27 = vsel %vm11228_vm14, %v711_v20, %v715_v8  ;;  %v739_v56 = vrot.slane %v737_v46, 5  ;;  %v10310_v7 = vld [vmem:[#allocation6 + $0x180] sm:$0xff]   ;;  %v1729_v14 = vshll.u32 %v8391_v4, 16  ;;  %v11410_v26 = vld [vmem:[%s11206_s29 + $0x24] sm:$0xf] }
  0xe4   : > { %9811 = vmatprep.subr.bf16.mxu1 %v10294_v43  ;;  %1603 = vmatprep.mubr.bf16.mxu0 %v8292_v62  ;;  %v734_v55 = vor.u32 %v733_v49, %v729_v48  ;;  %v10311_v62 = vld [vmem:[#allocation6 + $0x200] sm:$0xff]   ;;  %v1830_v30 = vrot.slane %v11404_v16, 5  ;;  %v1833_v32 = vrot.slane %v8392_v17, 5  ;;  %v1743_v46 = vshll.u32 %v11404_v16, 16 }
  0xe5   : > { %9244 = vmatpush3.bf16.msra.mxu0 %v10293_v47  ;;  %v706_v22 = vsel %vm11228_vm14, %v701_v15, %v705_v3  ;;  %v8298_v47 = vcombine.low %v784_v35, %v787_v41  ;;  %v11391_v3 = vld [vmem:[%s11206_s29 + $0x1c] sm:$0xf]  ;;  %v1737_v41 = vshll.u32 %v11410_v26, 16 }
  0xe6   : > { %1604 = vmatmul.mubr.bf16.gmra.mxu0 %v8288_v51  ;;  %9245 = vmatprep.subr.bf16.mxu0 %v10295_v52  ;;  %v8293_v34 = vcombine.low %v706_v22, %v716_v27  ;;  %v723_v52 = vrot.slane %v721_v44, 5  ;;  %v735_v60 = vrot.slane %v734_v55, 4  ;;  %v1719_v10 = vshll.u32 %v11391_v3, 16 }
  0xe7   : > { %9812 = vmatpush3.bf16.msra.mxu1 %v10294_v43  ;;  %v718_v43 = vshrl.u32 %v11375_v37, 16  ;;  %v1723_v13 = vshrl.u32 %v11391_v3, 16  ;;  %v1823_v24 = vrot.slane %v11391_v3, 5  ;;  %v1832_v39 = vrot.slane %v1830_v30, 4 }
  0xe8   : > { %9813 = vmatprep.subr.bf16.mxu1 %v10297_v59  ;;  %1611 = vmatprep.mubr.bf16.mxu0 %v8293_v34  ;;  %v740_v63 = vsel %vm11228_vm14, %v735_v60, %v739_v56  ;;  %v1721_v20 = vrot.slane %v1719_v10, 5 }
  0xe9   : > { %9246 = vmatpush3.bf16.msra.mxu0 %v10296_v2  ;;  %v720_v51 = vrot.slane %v718_v43, 4  ;;  %9804 = vmatmul.mubr.bf16.gmra.mxu1 %v8298_v47  ;;  %v11388_v2 = vld [vmem:[%s11206_s29 + $0x18] sm:$0xf]  ;;  %v1725_v22 = vrot.slane %v1723_v13, 4  ;;  %v1825_v35 = vrot.slane %v1823_v24, 4  ;;  %v1834_v49 = vsel %vm11222_vm13, %v1832_v39, %v1833_v32 }
  0xea   : > { %9247 = vmatprep.subr.bf16.mxu0 %v10299_v6  ;;  %v1710_v8 = vshrl.u32 %v11388_v2, 16  ;;  %v1713_v9 = vshll.u32 %v11388_v2, 16  ;;  %v8403_v15 = vcombine.low %v11388_v2, %v11391_v3  ;;  %v8397_v3 = vld [vmem:[%s11206_s29 + $0x30] sm:$0xe] }
  0xeb   : > { %9814 = vmatpush3.bf16.msra.mxu1 %v10297_v59  ;;  %v724_v58 = vor.u32 %v723_v52, %v720_v51  ;;  %v10307_v59 = vld [vmem:[#allocation6 + $0x188] sm:$0xff]   ;;  %v1827_v43 = vsel %vm11222_vm13, %v1825_v35, %v1826_v25  ;;  %v1739_v51 = vrot.slane %v1737_v41, 5  ;;  %v11427_v52 = vld [vmem:[%s11206_s29 + $0x30] sm:$0xf] }
  0xec   : > { %9815 = vmatprep.subr.bf16.mxu1 %v10301_v11  ;;  %v1712_v18 = vrot.slane %v1710_v8, 4  ;;  %v1715_v19 = vrot.slane %v1713_v9, 5  ;;  %v11442_v9 = vld [vmem:[%s11206_s29 + $0x40] sm:$0xf] }
  0xed   : > { %9248 = vmatpush3.bf16.msra.mxu0 %v10300_v23  ;;  %v725_v61 = vrot.slane %v724_v58, 4  ;;  %v1731_v23 = vrot.slane %v1729_v14, 5  ;;  %v1747_v58 = vshrl.u32 %v11404_v16, 16  ;;  %v8398_v14 = vld [vmem:[%s11206_s29 + $0x3c] sm:$0xe] }
  0xee   : > { %1612 = vmatmul.mubr.bf16.gmra.mxu0 %v8289_v28  ;;  %9249 = vmatprep.subr.bf16.mxu0 %v10302_v33  ;;  %v1716_v27 = vor.u32 %v1715_v19, %v1712_v18  ;;  %v8400_v28 = vrot.slane %v8396_v5, 9  ;;  %v1726_v33 = vor.u32 %v1725_v22, %v1721_v20  ;;  %v8404_v18 = vcombine.low %v11410_v26, %v11404_v16 }
  0xef   : > { %9816 = vmatpush3.bf16.msra.mxu1 %v10301_v11  ;;  %v730_v6 = vsel %vm11228_vm14, %v725_v61, %v729_v48  ;;  %v8395_v11 = vld [vmem:[%s11206_s29 + $0x18] sm:$0xe]  ;;  %v1753_v61 = vshll.u32 %v8392_v17, 16  ;;  %v8401_v22 = vrot.slane %v8397_v3, 9 }
  0xf0   : > { %9817 = vmatprep.subr.bf16.mxu1 %v10304_v42  ;;  %v8294_v12 = vcombine.low %v730_v6, %v740_v63  ;;  %v8399_v21 = vrot.slane %v8395_v11, 9  ;;  %v1717_v37 = vrot.slane %v1716_v27, 4  ;;  %v1831_v38 = vsel %vm11222_vm13, %v8400_v28, %v1830_v30  ;;  %v8389_v30 = vld [vmem:[%s11206_s29 + $0x3c] sm:$0xf] }
  0xf1   : > { %9250 = vmatpush3.bf16.msra.mxu0 %v10303_v36  ;;  %v1734_v36 = vshrl.u32 %v11410_v26, 16  ;;  %v8412_v56 = vcombine.low %v1831_v38, %v1834_v49  ;;  %v1758_v63 = vshrl.u32 %v11427_v52, 16  ;;  %v1755_v6 = vrot.slane %v1753_v61, 5 }
  0xf2   : > { %9251 = vmatprep.subr.bf16.mxu0 %v10306_v54  ;;  %1619 = vmatprep.mubr.bf16.mxu0 %v8294_v12  ;;  %v1824_v34 = vsel %vm11222_vm13, %v8399_v21, %v1823_v24  ;;  %v1722_v47 = vsel %vm11228_vm14, %v1717_v37, %v1721_v20  ;;  %v11430_v54 = vld [vmem:[%s11206_s29 + $0x34] sm:$0xf]  ;;  %v8402_v27 = vrot.slane %v8398_v14, 9  ;;  %v1844_v28 = vrot.slane %v11442_v9, 5 }
  0xf3   : > { %9818 = vmatpush3.bf16.msra.mxu1 %v10304_v42  ;;  %v1727_v42 = vrot.slane %v1726_v33, 4  ;;  %v1736_v44 = vrot.slane %v1734_v36, 4  ;;  %v8411_v48 = vcombine.low %v1824_v34, %v1827_v43  ;;  %v1767_v2 = vshll.u32 %v11430_v54, 16 }
  0xf4   : > { %9819 = vmatprep.subr.bf16.mxu1 %v10308_v57  ;;  %v1760_v11 = vrot.slane %v1758_v63, 4  ;;  %v1845_v36 = vsel %vm11222_vm13, %v8402_v27, %v1844_v28  ;;  %v1846_v37 = vrot.slane %v1844_v28, 4  ;;  %v8405_v61 = vcombine.low %v11427_v52, %v11430_v54 }
  0xf5   : > { %9252 = vmatpush3.bf16.msra.mxu0 %v10307_v59  ;;  %v1732_v55 = vsel %vm11228_vm14, %v1727_v42, %v1731_v23  ;;  %v8393_v59 = vld [vmem:[%s11206_s29 + $0x38] sm:$0x1]  ;;  %9823 = vmatprep.mubr.bf16.mxu1 %v8411_v48  ;;  %v1769_v13 = vrot.slane %v1767_v2, 5  ;;  %v1837_v23 = vrot.slane %v11430_v54, 5  ;;  %v1782_v42 = vshrl.u32 %v8389_v30, 16 }
  0xf6   : > { %9253 = vmatprep.subr.bf16.mxu0 %v10309_v50  ;;  %1620 = vmatmul.mubr.bf16.gmra.mxu0 %v8290_v0  ;;  %v8407_v60 = vcombine.low %v1722_v47, %v1732_v55  ;;  %v1740_v50 = vor.u32 %v1739_v51, %v1736_v44  ;;  %v1761_v0 = vshll.u32 %v11427_v52, 16  ;;  %v1777_v8 = vshll.u32 %v8393_v59, 16 }
  0xf7   : > { %9820 = vmatpush3.bf16.msra.mxu1 %v10308_v57  ;;  %v1745_v57 = vrot.slane %v1743_v46, 5  ;;  %v1840_v25 = vrot.slane %v8393_v59, 5  ;;  %v1838_v16 = vsel %vm11222_vm13, %v8401_v22, %v1837_v23  ;;  %v1839_v26 = vrot.slane %v1837_v23, 4 }
  0xf8   : > { %9821 = vmatprep.subr.bf16.mxu1 %v10311_v62  ;;  %2126 = vmatprep.mubr.bf16.mxu0 %v8407_v60  ;;  %v1741_v4 = vrot.slane %v1740_v50, 4  ;;  %v1763_v12 = vrot.slane %v1761_v0, 5  ;;  %v1779_v20 = vrot.slane %v1777_v8, 5  ;;  %v1785_v46 = vshll.u32 %v8389_v30, 16 }
  0xf9   : > { %9254 = vmatpush3.bf16.msra.mxu0 %v10310_v7  ;;  %v1771_v7 = vshrl.u32 %v11430_v54, 16  ;;  %v1841_v39 = vsel %vm11222_vm13, %v1839_v26, %v1840_v25  ;;  %v1791_v47 = vshll.u32 %v11442_v9, 16  ;;  %v1784_v51 = vrot.slane %v1782_v42, 4 }
  0xfa   : > { %v1746_v17 = vsel %vm11228_vm14, %v1741_v4, %v1745_v57  ;;  %v1764_v5 = vor.u32 %v1763_v12, %v1760_v11  ;;  %v8413_v44 = vcombine.low %v1838_v16, %v1841_v39  ;;  %v1795_v55 = vshrl.u32 %v11442_v9, 16 }
  0xfb   : > { %9822 = vmatpush3.bf16.msra.mxu1 %v10311_v62  ;;  %v1749_v62 = vrot.slane %v1747_v58, 4  ;;  %v1773_v19 = vrot.slane %v1771_v7, 4  ;;  %v1793_v58 = vrot.slane %v1791_v47, 5  ;;  %v8406_v7 = vcombine.low %v8389_v30, %v11442_v9 }
  0xfc   : > { %v1765_v33 = vrot.slane %v1764_v5, 4  ;;  %v1797_v60 = vrot.slane %v1795_v55, 4 }
  0xfd   : > { %v1750_v10 = vor.u32 %v1749_v62, %v1745_v57  ;;  %v1774_v24 = vor.u32 %v1773_v19, %v1769_v13  ;;  %v1787_v57 = vrot.slane %v1785_v46, 5 }
  0xfe   : > { %9824 = vmatmul.mubr.bf16.vlgmr.msra.gmra.mxu1 %v8412_v56  ;;  %2127 = vmatmul.mubr.bf16.vlgmr.msra.gmra.mxu0 %v8403_v15  ;;  %v8394_v15 = vld [vmem:[%s11206_s29 + $0x44] sm:$0x1]  ;;  %v1770_v38 = vsel %vm11228_vm14, %v1765_v33, %v1769_v13  ;;  %v1798_v62 = vor.u32 %v1797_v60, %v1793_v58 }
  0xff   : > { %v1751_v21 = vrot.slane %v1750_v10, 4  ;;  %v1775_v35 = vrot.slane %v1774_v24, 4  ;;  %v1847_v41 = vrot.slane %v8394_v15, 5  ;;  %9827 = vmatprep.mubr.bf16.mxu1 %v8413_v44  ;;  %v1801_v59 = vshll.u32 %v8394_v15, 16 }
 0x100   : > { %v1788_v50 = vor.u32 %v1787_v57, %v1784_v51  ;;  %v1799_v2 = vrot.slane %v1798_v62, 4 }
 0x101   : > { %v1756_v32 = vsel %vm11228_vm14, %v1751_v21, %v1755_v6  ;;  %v1780_v43 = vsel %vm11228_vm14, %v1775_v35, %v1779_v20  ;;  %v1848_v49 = vsel %vm11222_vm13, %v1846_v37, %v1847_v41  ;;  %v1803_v63 = vrot.slane %v1801_v59, 5 }
 0x102   : > { %v8408_v34 = vcombine.low %v1746_v17, %v1756_v32  ;;  %v8409_v48 = vcombine.low %v1770_v38, %v1780_v43  ;;  %v8414_v56 = vcombine.low %v1845_v36, %v1848_v49  ;;  %v1789_v0 = vrot.slane %v1788_v50, 4 }
 0x103   : > { %v1804_v4 = vsel %vm11228_vm14, %v1799_v2, %v1803_v63 }
 0x104   : > { %2134 = vmatprep.mubr.bf16.mxu0 %v8408_v34  ;;  %v1794_v3 = vsel %vm11228_vm14, %v1789_v0, %v1793_v58 }
 0x105   : > { %v8410_v6 = vcombine.low %v1794_v3, %v1804_v4 }
 0x106   : > { %2135 = vmatmul.mubr.bf16.gmra.mxu0 %v8404_v18  ;;  %9828 = vmatmul.mubr.bf16.gmra.mxu1 %v8414_v56 }
 0x107   : > { %2142 = vmatprep.mubr.bf16.mxu0 %v8409_v48 }
 0x10e   : > { %2143 = vmatmul.mubr.bf16.gmra.mxu0 %v8405_v61 }
 0x10f   : > { %2150 = vmatprep.mubr.bf16.mxu0 %v8410_v6 }
 0x116   : > { %2151 = vmatmul.mubr.bf16.gmra.mxu0 %v8406_v7 }
 0x17c   : > { %v9151_v8 = vpop.f32.mrf.mxu0 }
 0x17e   : > { %v9152_v10 = vpop.f32.mrf.mxu0  ;;  %v11478_v14 = vpop.f32.mrf.mxu1 }
 0x17f   : > { %v9153_v58 = vadd.f32 %v9152_v10, %v9151_v8 }
 0x180   : > { %v9154_v11 = vpop.f32.mrf.mxu0  ;;  %v1388_v19 = vpop.f32.mrf.mxu1 }
 0x181   : > { %v1389_v63 = vadd.f32 %v9153_v58, %v1388_v19 }
 0x182   : > { %v9155_v52 = vpop.f32.mrf.mxu0  ;;  %v11488_v9 = vpop.f32.mrf.mxu1 }
 0x183   : > { %v9156_v0 = vadd.f32 %v9155_v52, %v9154_v11 }
 0x184   : > { %v9157_v54 = vpop.f32.mrf.mxu0  ;;  %v1391_v22 = vpop.f32.mrf.mxu1 }
 0x185   : > { %v1392_v45 = vadd.f32 %v9156_v0, %v1391_v22 }
 0x186   : > { %v9158_v12 = vpop.f32.mrf.mxu0 }
 0x187   : > { %v9159_v40 = vadd.f32 %v9158_v12, %v9157_v54 }
 0x188   : > { %v11476_v13 = vpop.f32.mrf.mxu0  ;;  %v11494_v15 = vpop.f32.mrf.mxu1 }
 0x189   : > { %v1397_v19 = vadd.f32 %v11478_v14, %v9159_v40 }
 0x18a   : > { %v11480_v17 = vpop.f32.mrf.mxu0  ;;  %v11500_v27 = vpop.f32.mrf.mxu1 }
 0x18b   : > { %v9162_v11 = vadd.f32 %v11480_v17, %v11476_v13 }
 0x18c   : > { %v11482_v18 = vpop.f32.mrf.mxu0  ;;  %v11504_v32 = vpop.f32.mrf.mxu1 }
 0x18e   : > { %v11484_v20 = vpop.f32.mrf.mxu0  ;;  %v11506_v26 = vpop.f32.mrf.mxu1 }
 0x18f   : > { %v9165_v40 = vadd.f32 %v11484_v20, %v11482_v18 }
 0x190   : > { %v11486_v21 = vpop.f32.mrf.mxu0 }
 0x192   : > { %v11490_v5 = vpop.f32.mrf.mxu0 }
 0x194   : > { %v11492_v23 = vpop.f32.mrf.mxu0 }
 0x196   : > { %v11496_v24 = vpop.f32.mrf.mxu0 }
 0x198   : > { %v11498_v25 = vpop.f32.mrf.mxu0 }
 0x19a   : > { %v11502_v28 = vpop.f32.mrf.mxu0 }
 0x19c   : > { %v9203_v30 = vpop.f32.mrf.mxu0 }
 0x19e   : > { %v9204_v33 = vpop.f32.mrf.mxu0  ;;  %v9801_v35 = vpop.f32.mrf.mxu1 }
 0x19f   : > { %v9205_v50 = vadd.f32 %v9204_v33, %v9203_v30 }
 0x1a0   : > { %v9206_v16 = vpop.f32.mrf.mxu0  ;;  %v1662_v37 = vpop.f32.mrf.mxu1 }
 0x1a1   : > { %v1598_v6 = vadd.f32 %v9205_v50, %v1389_v63 }
 0x1a2   : > { %v9207_v34 = vpop.f32.mrf.mxu0  ;;  %v11508_v41 = vpop.f32.mrf.mxu1 }
 0x1a3   : > { %v9208_v4 = vadd.f32 %v9207_v34, %v9206_v16  ;;  %v1663_v31 = vadd.f32 %v1662_v37, %v1598_v6 }
 0x1a4   : > { %v1665_v44 = vpop.f32.mrf.mxu1 }
 0x1a5   : > { %v1601_v53 = vadd.f32 %v9208_v4, %v1392_v45  ;;  %v9174_v4 = vadd.f32 %v11502_v28, %v11498_v25 }
 0x1a6   : > { %v9209_v36 = vpop.f32.mrf.mxu0 }
 0x1a7   : > { %v1666_v22 = vadd.f32 %v1665_v44, %v1601_v53  ;;  %v1405_v44 = vadd.f32 %v9165_v40, %v11500_v27 }
 0x1a8   : > { %v9210_v38 = vpop.f32.mrf.mxu0 }
 0x1a9   : > { %v11510_v47 = vpop.f32.mrf.mxu1  ;;  %v9211_v29 = vadd.f32 %v9210_v38, %v9209_v36  ;;  %v1400_v36 = vadd.f32 %v11488_v9, %v9162_v11 }
 0x1aa   : > { %v9212_v39 = vpop.f32.mrf.mxu0 }
 0x1ab   : > { %v11512_v51 = vpop.f32.mrf.mxu1  ;;  %v1606_v58 = vadd.f32 %v9211_v29, %v1397_v19 }
 0x1ac   : > { %v9213_v42 = vpop.f32.mrf.mxu0 }
 0x1ad   : > { %v11516_v56 = vpop.f32.mrf.mxu1  ;;  %v9214_v54 = vadd.f32 %v9213_v42, %v9212_v39  ;;  %v1671_v29 = vadd.f32 %v9801_v35, %v1606_v58  ;;  %v9168_v39 = vadd.f32 %v11490_v5, %v11486_v21  ;;  %v9171_v21 = vadd.f32 %v11496_v24, %v11492_v23 }
 0x1ae   : > { %v9215_v43 = vpop.f32.mrf.mxu0  ;;  %13092 = vst [vmem:[#allocation19_spill] sm:$0xff] %v11516_v56 }
 0x1af   : > { %v11522_v60 = vpop.f32.mrf.mxu1  ;;  %v1609_v53 = vadd.f32 %v9214_v54, %v1400_v36 }
 0x1b0   : > { %v9216_v46 = vpop.f32.mrf.mxu0 }
 0x1b1   : > { %v9217_v37 = vadd.f32 %v9216_v46, %v9215_v43  ;;  %v1674_v63 = vadd.f32 %v11508_v41, %v1609_v53  ;;  %v1408_v43 = vadd.f32 %v9168_v39, %v11506_v26  ;;  %v1413_v26 = vadd.f32 %v11494_v15, %v9171_v21 }
 0x1b2   : > { %v9218_v48 = vpop.f32.mrf.mxu0  ;;  %v1416_v15 = vadd.f32 %v11504_v32, %v9174_v4 }
 0x1b3   : > { %v1614_v0 = vadd.f32 %v9217_v37, %v1405_v44 }
 0x1b4   : > { %v9219_v49 = vpop.f32.mrf.mxu0 }
 0x1b5   : > { %v9220_v50 = vadd.f32 %v9219_v49, %v9218_v48  ;;  %v1679_v48 = vadd.f32 %v11512_v51, %v1614_v0 }
 0x1b6   : > { %v11514_v55 = vpop.f32.mrf.mxu0 }
 0x1b7   : > { %v1617_v27 = vadd.f32 %v9220_v50, %v1408_v43 }
 0x1b8   : > { %v11518_v57 = vpop.f32.mrf.mxu0 }
 0x1b9   : > { %v9223_v41 = vadd.f32 %v11518_v57, %v11514_v55  ;;  %v1682_v6 = vadd.f32 %v11522_v60, %v1617_v27 }
 0x1ba   : > { %v11520_v59 = vpop.f32.mrf.mxu0 }
 0x1bc   : > { %v11524_v61 = vpop.f32.mrf.mxu0 }
 0x1bd   : > { %v9226_v51 = vadd.f32 %v11524_v61, %v11520_v59 }
 0x1be   : > { %v9825_v62 = vpop.f32.mrf.mxu1  ;;  %v9255_v2 = vpop.f32.mrf.mxu0 }
 0x1bf   : > { %v1625_v11 = vadd.f32 %v9226_v51, %v1416_v15 }
 0x1c0   : > { %v2193_v3 = vpop.f32.mrf.mxu1  ;;  %v9256_v7 = vpop.f32.mrf.mxu0 }
 0x1c1   : > { %v9257_v8 = vadd.f32 %v9256_v7, %v9255_v2 }
 0x1c2   : > { %v9826_v1 = vpop.f32.mrf.mxu1  ;;  %v9258_v10 = vpop.f32.mrf.mxu0 }
 0x1c3   : > { %v2194_v30 = vadd.f32 %v9257_v8, %v2193_v3 }
 0x1c4   : > { %v9259_v33 = vpop.f32.mrf.mxu0  ;;  %v2196_v56 = vpop.f32.mrf.mxu1 }
 0x1c5   : > { %v2224_v52 = vadd.f32 %v2194_v30, %v1663_v31  ;;  %v9260_v16 = vadd.f32 %v9259_v33, %v9258_v10  ;;  %v1622_v10 = vadd.f32 %v9223_v41, %v1413_v26 }
 0x1c6   : > { %v9261_v34 = vpop.f32.mrf.mxu0  ;;  %v9829_v17 = vpop.f32.mrf.mxu1 }
 0x1c7   : > { %2234 = vst [vmem:[%s11530_s8] sm:$0xff] %v2224_v52  ;;  %v2197_v45 = vadd.f32 %v9260_v16, %v2196_v56  ;;  %v1687_v60 = vadd.f32 %v11510_v47, %v1622_v10 }
 0x1c8   : > { %v9262_v12 = vpop.f32.mrf.mxu0  ;;  %v2209_v20 = vpop.f32.mrf.mxu1 }
 0x1c9   : > { %v2225_v14 = vadd.f32 %v2197_v45, %v1666_v22  ;;  %v9263_v13 = vadd.f32 %v9262_v12, %v9261_v34  ;;  %v13093_v22 = vld [vmem:[#allocation19_spill] sm:$0xff] }
 0x1ca   : > { %v9264_v31 = vpop.f32.mrf.mxu0  ;;  %v9830_v3 = vpop.f32.mrf.mxu1  ;;  %v1690_v54 = vadd.f32 %v13093_v22, %v1625_v11 }
 0x1cb   : > { %2235 = vst [vmem:[%s11530_s8 + $0x8] sm:$0xff] %v2225_v14  ;;  %v2202_v38 = vadd.f32 %v9825_v62, %v9263_v13  ;;  %v2242_v55 = vadd.f32 %v2225_v14, %v2224_v52 }
 0x1cc   : > { %v9265_v42 = vpop.f32.mrf.mxu0  ;;  %v2212_v7 = vpop.f32.mrf.mxu1 }
 0x1cd   : > { %v2226_v9 = vadd.f32 %v2202_v38, %v1671_v29  ;;  %v9266_v56 = vadd.f32 %v9265_v42, %v9264_v31 }
 0x1ce   : > { %v9267_v18 = vpop.f32.mrf.mxu0 }
 0x1cf   : > { %2236 = vst [vmem:[%s11530_s8 + $0x10] sm:$0xff] %v2226_v9  ;;  %v2205_v35 = vadd.f32 %v9826_v1, %v9266_v56  ;;  %v2243_v33 = vadd.f32 %v2242_v55, %v2226_v9 }
 0x1d0   : > { %v9268_v46 = vpop.f32.mrf.mxu0 }
 0x1d1   : > { %v2227_v5 = vadd.f32 %v2205_v35, %v1674_v63  ;;  %v9269_v62 = vadd.f32 %v9268_v46, %v9267_v18 }
 0x1d2   : > { %v9270_v2 = vpop.f32.mrf.mxu0 }
 0x1d3   : > { %2237 = vst [vmem:[%s11530_s8 + $0x18] sm:$0xff] %v2227_v5  ;;  %v2210_v49 = vadd.f32 %v9269_v62, %v2209_v20  ;;  %v2244_v16 = vadd.f32 %v2243_v33, %v2227_v5 }
 0x1d4   : > { %v9271_v1 = vpop.f32.mrf.mxu0 }
 0x1d5   : > { %v2228_v23 = vadd.f32 %v2210_v49, %v1679_v48  ;;  %v9272_v24 = vadd.f32 %v9271_v1, %v9270_v2 }
 0x1d6   : > { %v9273_v8 = vpop.f32.mrf.mxu0 }
 0x1d7   : > { %2238 = vst [vmem:[%s11530_s8 + $0x20] sm:$0xff] %v2228_v23  ;;  %v2213_v57 = vadd.f32 %v9272_v24, %v2212_v7  ;;  %v2245_v59 = vadd.f32 %v2244_v16, %v2228_v23 }
 0x1d8   : > { %v9274_v30 = vpop.f32.mrf.mxu0 }
 0x1d9   : > { %v2229_v25 = vadd.f32 %v2213_v57, %v1682_v6  ;;  %v9275_v28 = vadd.f32 %v9274_v30, %v9273_v8 }
 0x1da   : > { %v9276_v19 = vpop.f32.mrf.mxu0 }
 0x1db   : > { %2239 = vst [vmem:[%s11530_s8 + $0x28] sm:$0xff] %v2229_v25  ;;  %v2218_v34 = vadd.f32 %v9829_v17, %v9275_v28  ;;  %v2246_v45 = vadd.f32 %v2245_v59, %v2229_v25  ;;  %v13094_v17 = vld [vmem:[#allocation16_spill] sm:$0xff] }
 0x1dc   : > { %v9277_v58 = vpop.f32.mrf.mxu0 }
 0x1dd   : > { %v2230_v61 = vadd.f32 %v2218_v34, %v1687_v60  ;;  %v9278_v52 = vadd.f32 %v9277_v58, %v9276_v19 }
 0x1df   : > { %2240 = vst [vmem:[%s11530_s8 + $0x30] sm:$0xff] %v2230_v61  ;;  %v2221_v32 = vadd.f32 %v9830_v3, %v9278_v52  ;;  %v2247_v12 = vadd.f32 %v2246_v45, %v2230_v61 }
 0x1e1   : > { %v2231_v36 = vadd.f32 %v2221_v32, %v1690_v54 }
 0x1e3   : > { %2241 = vst [vmem:[%s11530_s8 + $0x38] sm:$0xff] %v2231_v36  ;;  %v2248_v40 = vadd.f32 %v2247_v12, %v2231_v36 }
 0x1e5   : > { %v2249_v14 = vrot.slane %v2248_v40, 4 }
 0x1e7   : > { %v2250_v13 = vadd.f32 %v2249_v14, %v2248_v40 }
 0x1e9   : > { %v2251_v47 = vrot.slane %v2250_v13, 2 }
 0x1eb   : > { %v2252_v31 = vadd.f32 %v2251_v47, %v2250_v13 }
 0x1ed   : > { %v2253_v29 = vrot.slane %v2252_v31, 1 }
 0x1ef   : > { %v2254_v53 = vadd.f32 %v2253_v29, %v2252_v31  ;;  %623 = sbr.rel (!%p621_p3) target bundleno = 155 (0x9b), region = 221 }
 0x1f1   : > { %v2255_v37 = vadd.f32 %v13094_v17, %v2254_v53  }
 0x1f3   : > { %v13095_v53 = vmov %v2255_v37 }
 0x1f4 LB: > { %13096 = vst [vmem:[#allocation20_spill] sm:$0xff] %v10764_v37  ;;  %v10316_v38 = vld [vmem:[#allocation6 + $0x138] sm:$0xff]   ;;  %v10319_v44 = vld [vmem:[#allocation6 + $0x130] sm:$0xff]   ;;  %v10322_v50 = vld [vmem:[#allocation6 + $0x128] sm:$0xff]   ;;  %s8440_s10 = smul.u32 48, %s10768_s9  ;;  %s8615_s14 = sshll.u32 %s10768_s9, 6  ;;  %s10768_s9 = sphi %s11570_s9, %s2261_s9   ;;  %v10764_v37 = vphi %v2255_v37, %v13104_v37  }
 0x1f5   : > { %v10317_v39 = vld [vmem:[#allocation6 + $0xf8] sm:$0xff]   ;;  %9291 = vmatprep.subr.bf16.mxu0 %v10316_v38  ;;  %v10320_v9 = vld [vmem:[#allocation6 + $0xf0] sm:$0xff]   ;;  %v10323_v18 = vld [vmem:[#allocation6 + $0xe8] sm:$0xff]   ;;  %s11885_s1 = scalar_lea.vmem [#allocation9], %s8615_s14  ;;  %s2261_s9 = sadd.s32 1, %s10768_s9  }
 0x1f6   : > { %v10318_v42 = vld [vmem:[#allocation6 + $0x178] sm:$0xff]   ;;  %9292 = vmatpush3.bf16.msra.mxu0 %v10317_v39  ;;  %v10321_v56 = vld [vmem:[#allocation6 + $0x170] sm:$0xff]   ;;  %v10324_v20 = vld [vmem:[#allocation6 + $0x168] sm:$0xff]   ;;  %s11579_s13 = scalar_lea.vmem [#allocation2], %s8440_s10  ;;  %p2258_p4 = scmp.ge.s32.totalorder %s2261_s9, 4  }
 0x1f7   : > { %9831 = vmatprep.subr.bf16.mxu1 %v10318_v42  ;;  %9293 = vmatprep.subr.bf16.mxu0 %v10319_v44  ;;  %v10325_v63 = vld [vmem:[#allocation6 + $0x120] sm:$0xff]   ;;  %v10328_v43 = vld [vmem:[#allocation6 + $0x118] sm:$0xff]   ;;  %v10331_v5 = vld [vmem:[#allocation6 + $0x110] sm:$0xff]   ;;  %s11925_s15 = smov (%p2258_p4), 0  }
 0x1f8   : > { %9832 = vmatpush3.bf16.msra.mxu1 %v10318_v42  ;;  %v10326_v0 = vld [vmem:[#allocation6 + $0xe0] sm:$0xff]   ;;  %v10330_v46 = vld [vmem:[#allocation6 + $0x158] sm:$0xff]   ;;  %v10333_v62 = vld [vmem:[#allocation6 + $0x150] sm:$0xff]  }
 0x1f9   : > { %9833 = vmatprep.subr.bf16.mxu1 %v10321_v56  ;;  %v10327_v35 = vld [vmem:[#allocation6 + $0x160] sm:$0xff]   ;;  %v10329_v21 = vld [vmem:[#allocation6 + $0xd8] sm:$0xff]   ;;  %v10332_v27 = vld [vmem:[#allocation6 + $0xd0] sm:$0xff]  }
 0x1fa   : > { %9294 = vmatpush3.bf16.msra.mxu0 %v10320_v9  ;;  %v10334_v2 = vld [vmem:[#allocation6 + $0x108] sm:$0xff]   ;;  %v10337_v41 = vld [vmem:[#allocation6 + $0x100] sm:$0xff]   ;;  %v11582_v49 = vld [vmem:[%s11579_s13 + $0xe4] sm:$0xf] }
 0x1fb   : > { %9295 = vmatprep.subr.bf16.mxu0 %v10322_v50  ;;  %v10335_v3 = vld [vmem:[#allocation6 + $0xc8] sm:$0xff]   ;;  %v11585_v1 = vld [vmem:[%s11579_s13 + $0xe8] sm:$0xf]  ;;  %v8484_v26 = vld [vmem:[%s11579_s13 + $0xec] sm:$0x1]  ;;  %v2544_v23 = vshrl.u32 %v11582_v49, 16 }
 0x1fc   : > { %9834 = vmatpush3.bf16.msra.mxu1 %v10321_v56  ;;  %v10336_v48 = vld [vmem:[#allocation6 + $0x148] sm:$0xff]   ;;  %v10338_v4 = vld [vmem:[#allocation6 + $0xc0] sm:$0xff]   ;;  %v2547_v24 = vshll.u32 %v11582_v49, 16  ;;  %v2553_v6 = vshll.u32 %v11585_v1, 16  ;;  %v2557_v7 = vshrl.u32 %v11585_v1, 16  ;;  %v2563_v10 = vshll.u32 %v8484_v26, 16 }
 0x1fd   : > { %9835 = vmatprep.subr.bf16.mxu1 %v10324_v20  ;;  %v10339_v8 = vld [vmem:[#allocation6 + $0x140] sm:$0xff]   ;;  %v8488_v51 = vld [vmem:[%s11579_s13 + $0xe4] sm:$0xe]  ;;  %v2546_v55 = vrot.slane %v2544_v23, 4  ;;  %v10341_v33 = vld [vmem:[#allocation6 + $0x78] sm:$0xff]   ;;  %v2657_v28 = vrot.slane %v11585_v1, 5  ;;  %v8496_v14 = vcombine.low %v11582_v49, %v11585_v1 }
 0x1fe   : > { %9296 = vmatpush3.bf16.msra.mxu0 %v10323_v18  ;;  %v2549_v57 = vrot.slane %v2547_v24, 5  ;;  %v2555_v30 = vrot.slane %v2553_v6, 5  ;;  %v2559_v15 = vrot.slane %v2557_v7, 4  ;;  %v8492_v25 = vrot.slane %v8488_v51, 9  ;;  %v11595_v34 = vld [vmem:[%s11579_s13 + $0xf4] sm:$0xf] }
 0x1ff   : > { %9297 = vmatprep.subr.bf16.mxu0 %v10325_v63  ;;  %v2660_v19 = vrot.slane %v8484_v26, 5  ;;  %v2565_v16 = vrot.slane %v2563_v10, 5  ;;  %v8485_v58 = vld [vmem:[%s11579_s13 + $0xf8] sm:$0x1]  ;;  %v2659_v52 = vrot.slane %v2657_v28, 4  ;;  %v2664_v54 = vrot.slane %v11595_v34, 5 }
 0x200   : > { %9836 = vmatpush3.bf16.msra.mxu1 %v10324_v20  ;;  %v2550_v60 = vor.u32 %v2549_v57, %v2546_v55  ;;  %v2560_v11 = vor.u32 %v2559_v15, %v2555_v30  ;;  %v2658_v61 = vsel %vm11222_vm13, %v8492_v25, %v2657_v28  ;;  %v8489_v22 = vld [vmem:[%s11579_s13 + $0xf0] sm:$0xe]  ;;  %v2667_v45 = vrot.slane %v8485_v58, 5  ;;  %v10343_v32 = vld [vmem:[#allocation6 + $0xb8] sm:$0xff]   ;;  %v10344_v42 = vld [vmem:[#allocation6 + $0x70] sm:$0xff]  }
 0x201   : > { %9837 = vmatprep.subr.bf16.mxu1 %v10327_v35  ;;  %v8493_v40 = vrot.slane %v8489_v22, 9  ;;  %v2661_v13 = vsel %vm11222_vm13, %v2659_v52, %v2660_v19  ;;  %v10342_v47 = vld [vmem:[#allocation6 + $0x38] sm:$0xff]   ;;  %v2666_v31 = vrot.slane %v2664_v54, 4  ;;  %v10346_v56 = vld [vmem:[#allocation6 + $0xb0] sm:$0xff]   ;;  %v2577_v50 = vshll.u32 %v11595_v34, 16  ;;  %v10349_v26 = vld [vmem:[#allocation6 + $0x28] sm:$0xff]  }
 0x202   : > { %9298 = vmatpush3.bf16.msra.mxu0 %v10326_v0  ;;  %v2551_v12 = vrot.slane %v2550_v60, 4  ;;  %v2561_v36 = vrot.slane %v2560_v11, 4  ;;  %v8504_v38 = vcombine.low %v2658_v61, %v2661_v13  ;;  %v8478_v20 = vld [vmem:[%s11579_s13 + $0xf0] sm:$0xf]  ;;  %v2581_v63 = vshrl.u32 %v11595_v34, 16 }
 0x203   : > { %9299 = vmatprep.subr.bf16.mxu0 %v10328_v43  ;;  %v2665_v39 = vsel %vm11222_vm13, %v8493_v40, %v2664_v54  ;;  %v2668_v9 = vsel %vm11222_vm13, %v2666_v31, %v2667_v45  ;;  %v2587_v0 = vshll.u32 %v8485_v58, 16  ;;  %v2568_v43 = vshrl.u32 %v8478_v20, 16  ;;  %v10351_v23 = vld [vmem:[#allocation6 + $0x60] sm:$0xff]   ;;  %v11618_v24 = vld [vmem:[%s11579_s13 + $0xfc] sm:$0xf]  ;;  %v10355_v58 = vld [vmem:[#allocation6 + $0x58] sm:$0xff]  }
 0x204   : > { %9838 = vmatpush3.bf16.msra.mxu1 %v10327_v35  ;;  %v2556_v53 = vsel %vm11228_vm14, %v2551_v12, %v2555_v30  ;;  %v2566_v17 = vsel %vm11228_vm14, %v2561_v36, %v2565_v16  ;;  %9847 = vmatprep.mubr.bf16.mxu1 %v8504_v38  ;;  %v8505_v18 = vcombine.low %v2665_v39, %v2668_v9  ;;  %v10345_v35 = vld [vmem:[#allocation6 + $0x30] sm:$0xff]   ;;  %v2592_v51 = vshrl.u32 %v11618_v24, 16  ;;  %v8490_v61 = vld [vmem:[%s11579_s13 + $0xfc] sm:$0xe]  ;;  %v11636_v12 = vld [vmem:[%s11579_s13 + $0x10c] sm:$0xf] }
 0x205   : > { %9839 = vmatprep.subr.bf16.mxu1 %v10330_v46  ;;  %v8500_v44 = vcombine.low %v2556_v53, %v2566_v17  ;;  %v11621_v6 = vld [vmem:[%s11579_s13 + $0x100] sm:$0xf]  ;;  %v8486_v10 = vld [vmem:[%s11579_s13 + $0x104] sm:$0x1]  ;;  %v2595_v55 = vshll.u32 %v11618_v24, 16  ;;  %v8497_v15 = vcombine.low %v8478_v20, %v11595_v34  ;;  %v8494_v54 = vrot.slane %v8490_v61, 9 }
 0x206   : > { %9300 = vmatpush3.bf16.msra.mxu0 %v10329_v21  ;;  %v2579_v21 = vrot.slane %v2577_v50, 5  ;;  %v2601_v57 = vshll.u32 %v11621_v6, 16  ;;  %v2605_v25 = vshrl.u32 %v11621_v6, 16  ;;  %v2611_v28 = vshll.u32 %v8486_v10, 16  ;;  %v10357_v36 = vld [vmem:[#allocation6 + $0x98] sm:$0xff]   ;;  %v10366_v61 = vld [vmem:[#allocation6] sm:$0xff]  }
 0x207   : > { %9301 = vmatprep.subr.bf16.mxu0 %v10331_v5  ;;  %2960 = vmatprep.mubr.bf16.mxu0 %v8500_v44  ;;  %v2583_v5 = vrot.slane %v2581_v63, 4  ;;  %v2594_v60 = vrot.slane %v2592_v51, 4  ;;  %v2597_v11 = vrot.slane %v2595_v55, 5  ;;  %v2671_v34 = vrot.slane %v11621_v6, 5  ;;  %v8491_v31 = vld [vmem:[%s11579_s13 + $0x108] sm:$0xe] }
 0x208   : > { %9840 = vmatpush3.bf16.msra.mxu1 %v10330_v46  ;;  %v2571_v46 = vshll.u32 %v8478_v20, 16  ;;  %v2603_v16 = vrot.slane %v2601_v57, 5  ;;  %v2607_v52 = vrot.slane %v2605_v25, 4  ;;  %v2613_v22 = vrot.slane %v2611_v28, 5  ;;  %v10356_v38 = vld [vmem:[#allocation6 + $0x18] sm:$0xff]   ;;  %v10363_v51 = vld [vmem:[#allocation6 + $0x8] sm:$0xff]  }
 0x209   : > { %9841 = vmatprep.subr.bf16.mxu1 %v10333_v62  ;;  %v2598_v45 = vor.u32 %v2597_v11, %v2594_v60  ;;  %v2673_v13 = vrot.slane %v2671_v34, 4  ;;  %v2678_v53 = vrot.slane %v11636_v12, 5  ;;  %v8495_v39 = vrot.slane %v8491_v31, 9  ;;  %v10365_v57 = vld [vmem:[#allocation6 + $0x40] sm:$0xff]   ;;  %v8449_v60 = vld [vmem:[%s11579_s13 + $0xe0] sm:$0x1] }
 0x20a   : > { %9302 = vmatpush3.bf16.msra.mxu0 %v10332_v27  ;;  %v2570_v27 = vrot.slane %v2568_v43, 4  ;;  %v2608_v40 = vor.u32 %v2607_v52, %v2603_v16  ;;  %v10358_v43 = vld [vmem:[#allocation6 + $0x50] sm:$0xff]  }
 0x20b   : > { %9303 = vmatprep.subr.bf16.mxu0 %v10334_v2  ;;  %v2573_v2 = vrot.slane %v2571_v46, 5  ;;  %v2599_v17 = vrot.slane %v2598_v45, 4  ;;  %v2679_v20 = vsel %vm11222_vm13, %v8495_v39, %v2678_v53  ;;  %v2625_v46 = vshll.u32 %v11636_v12, 16  ;;  %v10371_v39 = vld [vmem:[#allocation6 + $0x238] sm:$0xff]  }
 0x20c   : > { %9842 = vmatpush3.bf16.msra.mxu1 %v10333_v62  ;;  %v10348_v62 = vld [vmem:[#allocation6 + $0x68] sm:$0xff]   ;;  %v2609_v44 = vrot.slane %v2608_v40, 4 }
 0x20d   : > { %9843 = vmatprep.subr.bf16.mxu1 %v10336_v48  ;;  %v2574_v49 = vor.u32 %v2573_v2, %v2570_v27  ;;  %v2604_v50 = vsel %vm11228_vm14, %v2599_v17, %v2603_v16  ;;  %v8482_v27 = vld [vmem:[%s11579_s13 + $0x108] sm:$0xf]  ;;  %v2629_v2 = vshrl.u32 %v11636_v12, 16 }
 0x20e   : > { %9304 = vmatpush3.bf16.msra.mxu0 %v10335_v3  ;;  %v2589_v3 = vrot.slane %v2587_v0, 5  ;;  %v2614_v63 = vsel %vm11228_vm14, %v2609_v44, %v2613_v22  ;;  %v8498_v0 = vcombine.low %v11618_v24, %v11621_v6  ;;  %v8499_v28 = vcombine.low %v8482_v27, %v11636_v12 }
 0x20f   : > { %9305 = vmatprep.subr.bf16.mxu0 %v10337_v41  ;;  %v2584_v41 = vor.u32 %v2583_v5, %v2579_v21 }
 0x210   : > { %9844 = vmatpush3.bf16.msra.mxu1 %v10336_v48  ;;  %v10350_v48 = vld [vmem:[#allocation6 + $0xa8] sm:$0xff]  }
 0x211   : > { %9845 = vmatprep.subr.bf16.mxu1 %v10339_v8  ;;  %v2585_v1 = vrot.slane %v2584_v41, 4  ;;  %v2616_v41 = vshrl.u32 %v8482_v27, 16 }
 0x212   : > { %9306 = vmatpush3.bf16.msra.mxu0 %v10338_v4  ;;  %v2575_v4 = vrot.slane %v2574_v49, 4  ;;  %v2619_v49 = vshll.u32 %v8482_v27, 16 }
 0x213   : > { %9343 = vmatprep.subr.bf16.mxu0 %v10341_v33  ;;  %v2590_v7 = vsel %vm11228_vm14, %v2585_v1, %v2589_v3  ;;  %v10352_v33 = vld [vmem:[#allocation6 + $0x20] sm:$0xff]   ;;  %v2627_v1 = vrot.slane %v2625_v46, 5  ;;  %v10370_v46 = vld [vmem:[#allocation6 + $0x1b8] sm:$0xff]  }
 0x214   : > { %9846 = vmatpush3.bf16.msra.mxu1 %v10339_v8  ;;  %v10353_v8 = vld [vmem:[#allocation6 + $0xa0] sm:$0xff]   ;;  %v2580_v30 = vsel %vm11228_vm14, %v2575_v4, %v2579_v21  ;;  %v8502_v21 = vcombine.low %v2604_v50, %v2614_v63  ;;  %v10362_v4 = vld [vmem:[#allocation6 + $0x48] sm:$0xff]   ;;  %v2621_v24 = vrot.slane %v2619_v49, 5  ;;  %v8454_v50 = vld [vmem:[%s11579_s13 + $0xe4] sm:$0xe] }
 0x215   : > { %9855 = vmatprep.subr.bf16.mxu1 %v10343_v32  ;;  %2961 = vmatmul.mubr.bf16.vlgmr.msra.gmra.mxu0 %v8496_v14  ;;  %v8501_v19 = vcombine.low %v2580_v30, %v2590_v7  ;;  %v2672_v14 = vsel %vm11222_vm13, %v8494_v54, %v2671_v34  ;;  %v2303_v54 = vshll.u32 %v8449_v60, 16  ;;  %v8458_v63 = vrot.slane %v8454_v50, 9  ;;  %v8443_v49 = vld [vmem:[%s11579_s13 + $0xe4] sm:$0xf] }
 0x216   : > { %9344 = vmatpush3.bf16.msra.mxu0 %v10342_v47  ;;  %v8487_v47 = vld [vmem:[%s11579_s13 + $0x110] sm:$0x1] }
 0x217   : > { %9848 = vmatmul.mubr.bf16.vlgmr.msra.gmra.mxu1 %v8505_v18  ;;  %9345 = vmatprep.subr.bf16.mxu0 %v10344_v42  ;;  %v2681_v42 = vrot.slane %v8487_v47, 5  ;;  %v2635_v3 = vshll.u32 %v8487_v47, 16  ;;  %v2305_v40 = vrot.slane %v2303_v54, 5  ;;  %v8453_v47 = vld [vmem:[%s11579_s13 + $0xd8] sm:$0xe] }
 0x218   : > { %9856 = vmatpush3.bf16.msra.mxu1 %v10343_v32  ;;  %2968 = vmatprep.mubr.bf16.mxu0 %v8501_v19  ;;  %v2674_v32 = vrot.slane %v8486_v10, 5  ;;  %v11665_v19 = vld [vmem:[%s11579_s13 + $0xdc] sm:$0xf]  ;;  %v11706_v54 = vld [vmem:[%s11579_s13 + $0xf4] sm:$0xf] }
 0x219   : > { %9857 = vmatprep.subr.bf16.mxu1 %v10346_v56  ;;  %v2637_v7 = vrot.slane %v2635_v3, 5  ;;  %v2293_v52 = vshll.u32 %v11665_v19, 16  ;;  %v2297_v22 = vshrl.u32 %v11665_v19, 16  ;;  %v2400_v31 = vrot.slane %v11665_v19, 5 }
 0x21a   : > { %9346 = vmatpush3.bf16.msra.mxu0 %v10345_v35  ;;  %v2675_v9 = vsel %vm11222_vm13, %v2673_v13, %v2674_v32  ;;  %v2414_v50 = vrot.slane %v11706_v54, 5 }
 0x21b   : > { %9347 = vmatprep.subr.bf16.mxu0 %v10348_v62  ;;  %v8506_v18 = vcombine.low %v2672_v14, %v2675_v9  ;;  %v10360_v62 = vld [vmem:[#allocation6 + $0x90] sm:$0xff]   ;;  %v2295_v12 = vrot.slane %v2293_v52, 5  ;;  %v10369_v14 = vld [vmem:[#allocation6 + $0x1f8] sm:$0xff]   ;;  %v2402_v9 = vrot.slane %v2400_v31, 4  ;;  %v10379_v52 = vld [vmem:[#allocation6 + $0x1e0] sm:$0xff]  }
 0x21c   : > { %9858 = vmatpush3.bf16.msra.mxu1 %v10346_v56  ;;  %v2680_v56 = vrot.slane %v2678_v53, 4  ;;  %v2403_v53 = vrot.slane %v8449_v60, 5  ;;  %v10378_v60 = vld [vmem:[#allocation6 + $0x228] sm:$0xff]  }
 0x21d   : > { %9859 = vmatprep.subr.bf16.mxu1 %v10350_v48  ;;  %2969 = vmatmul.mubr.bf16.gmra.mxu0 %v8497_v15  ;;  %v10367_v15 = vld [vmem:[#allocation6 + $0x80] sm:$0xff]  }
 0x21e   : > { %9348 = vmatpush3.bf16.msra.mxu0 %v10349_v26  ;;  %v2682_v35 = vsel %vm11222_vm13, %v2680_v56, %v2681_v42  ;;  %9851 = vmatprep.mubr.bf16.mxu1 %v8506_v18  ;;  %v2631_v26 = vrot.slane %v2629_v2, 4  ;;  %v11677_v42 = vld [vmem:[%s11579_s13 + $0xe8] sm:$0xf]  ;;  %v8450_v56 = vld [vmem:[%s11579_s13 + $0xec] sm:$0x1] }
 0x21f   : > { %9349 = vmatprep.subr.bf16.mxu0 %v10351_v23  ;;  %v8507_v5 = vcombine.low %v2679_v20, %v2682_v35  ;;  %2976 = vmatprep.mubr.bf16.mxu0 %v8502_v21  ;;  %v2618_v23 = vrot.slane %v2616_v41, 4  ;;  %v2404_v21 = vsel %vm11222_vm13, %v2402_v9, %v2403_v53  ;;  %v10383_v9 = vld [vmem:[#allocation6 + $0x1d8] sm:$0xff]  }
 0x220   : > { %9860 = vmatpush3.bf16.msra.mxu1 %v10350_v48  ;;  %v10359_v48 = vld [vmem:[#allocation6 + $0x10] sm:$0xff]   ;;  %v2632_v6 = vor.u32 %v2631_v26, %v2627_v1  ;;  %v2321_v26 = vshrl.u32 %v11677_v42, 16 }
 0x221   : > { %9861 = vmatprep.subr.bf16.mxu1 %v10353_v8  ;;  %9852 = vmatmul.mubr.bf16.gmra.mxu1 %v8507_v5  ;;  %v2622_v10 = vor.u32 %v2621_v24, %v2618_v23  ;;  %v2410_v5 = vrot.slane %v8450_v56, 5  ;;  %v10374_v23 = vld [vmem:[#allocation6 + $0x230] sm:$0xff]   ;;  %v2308_v24 = vshrl.u32 %v8443_v49, 16 }
 0x222   : > { %9350 = vmatpush3.bf16.msra.mxu0 %v10352_v33  ;;  %v2633_v55 = vrot.slane %v2632_v6, 4  ;;  %v11659_v33 = vld [vmem:[%s11579_s13 + $0xd8] sm:$0xf]  ;;  %v2311_v6 = vshll.u32 %v8443_v49, 16 }
 0x223   : > { %9351 = vmatprep.subr.bf16.mxu0 %v10355_v58  ;;  %v2623_v30 = vrot.slane %v2622_v10, 4  ;;  %v2284_v11 = vshrl.u32 %v11659_v33, 16  ;;  %v2287_v16 = vshll.u32 %v11659_v33, 16 }
 0x224   : > { %9862 = vmatpush3.bf16.msra.mxu1 %v10353_v8  ;;  %v10364_v8 = vld [vmem:[#allocation6 + $0x88] sm:$0xff]   ;;  %v2638_v25 = vsel %vm11228_vm14, %v2633_v55, %v2637_v7  ;;  %v2327_v7 = vshll.u32 %v8450_v56, 16  ;;  %v2310_v55 = vrot.slane %v2308_v24, 4  ;;  %v8455_v56 = vld [vmem:[%s11579_s13 + $0xf0] sm:$0xe] }
 0x225   : > { %9863 = vmatprep.subr.bf16.mxu1 %v10357_v36  ;;  %2977 = vmatmul.mubr.bf16.gmra.mxu0 %v8498_v0  ;;  %v2628_v58 = vsel %vm11228_vm14, %v2623_v30, %v2627_v1  ;;  %v2286_v45 = vrot.slane %v2284_v11, 4  ;;  %v2289_v32 = vrot.slane %v2287_v16, 5  ;;  %v2407_v0 = vrot.slane %v11677_v42, 5  ;;  %v10373_v30 = vld [vmem:[#allocation6 + $0x1b0] sm:$0xff]   ;;  %v10377_v16 = vld [vmem:[#allocation6 + $0x1a8] sm:$0xff]  }
 0x226   : > { %9352 = vmatpush3.bf16.msra.mxu0 %v10356_v38  ;;  %v8503_v34 = vcombine.low %v2628_v58, %v2638_v25  ;;  %v8457_v38 = vrot.slane %v8453_v47, 9  ;;  %v2317_v1 = vshll.u32 %v11677_v42, 16 }
 0x227   : > { %9353 = vmatprep.subr.bf16.mxu0 %v10358_v43  ;;  %v2290_v13 = vor.u32 %v2289_v32, %v2286_v45  ;;  %v8461_v43 = vcombine.low %v11659_v33, %v11665_v19  ;;  %v2408_v2 = vsel %vm11222_vm13, %v8458_v63, %v2407_v0  ;;  %v2409_v3 = vrot.slane %v2407_v0, 4  ;;  %v10381_v32 = vld [vmem:[#allocation6 + $0x220] sm:$0xff]   ;;  %v10384_v63 = vld [vmem:[#allocation6 + $0x198] sm:$0xff]  }
 0x228   : > { %9864 = vmatpush3.bf16.msra.mxu1 %v10357_v36  ;;  %v2299_v36 = vrot.slane %v2297_v22, 4  ;;  %2984 = vmatprep.mubr.bf16.mxu0 %v8503_v34  ;;  %v2401_v20 = vsel %vm11222_vm13, %v8457_v38, %v2400_v31  ;;  %v2319_v10 = vrot.slane %v2317_v1, 5  ;;  %v2329_v33 = vrot.slane %v2327_v7, 5  ;;  %v11703_v22 = vld [vmem:[%s11579_s13 + $0xf0] sm:$0xf]  ;;  %v10385_v0 = vld [vmem:[#allocation6 + $0x218] sm:$0xff]  }
 0x229   : > { %9865 = vmatprep.subr.bf16.mxu1 %v10360_v62  ;;  %v2291_v44 = vrot.slane %v2290_v13, 4  ;;  %v8469_v27 = vcombine.low %v2401_v20, %v2404_v21  ;;  %v8451_v34 = vld [vmem:[%s11579_s13 + $0xf8] sm:$0x1]  ;;  %v2345_v13 = vshrl.u32 %v11706_v54, 16  ;;  %v10380_v38 = vld [vmem:[#allocation6 + $0x1a0] sm:$0xff]  }
 0x22a   : > { %9354 = vmatpush3.bf16.msra.mxu0 %v10359_v48  ;;  %v2300_v17 = vor.u32 %v2299_v36, %v2295_v12  ;;  %v10372_v48 = vld [vmem:[#allocation6 + $0x1f0] sm:$0xff]   ;;  %v2335_v36 = vshll.u32 %v11703_v22, 16  ;;  %v2351_v47 = vshll.u32 %v8451_v34, 16 }
 0x22b   : > { %9355 = vmatprep.subr.bf16.mxu0 %v10362_v4  ;;  %v2296_v35 = vsel %vm11228_vm14, %v2291_v44, %v2295_v12  ;;  %9871 = vmatprep.mubr.bf16.mxu1 %v8469_v27  ;;  %v2411_v4 = vsel %vm11222_vm13, %v2409_v3, %v2410_v5  ;;  %v2332_v12 = vshrl.u32 %v11703_v22, 16  ;;  %v2416_v5 = vrot.slane %v2414_v50, 4 }
 0x22c   : > { %9866 = vmatpush3.bf16.msra.mxu1 %v10360_v62  ;;  %v2301_v18 = vrot.slane %v2300_v17, 4  ;;  %v2337_v53 = vrot.slane %v2335_v36, 5  ;;  %v2353_v44 = vrot.slane %v2351_v47, 5 }
 0x22d   : > { %9867 = vmatprep.subr.bf16.mxu1 %v10364_v8  ;;  %2985 = vmatmul.mubr.bf16.gmra.mxu0 %v8499_v28  ;;  %v10376_v28 = vld [vmem:[#allocation6 + $0x1e8] sm:$0xff]   ;;  %v2334_v31 = vrot.slane %v2332_v12, 4  ;;  %v10393_v12 = vld [vmem:[#allocation6 + $0x1c0] sm:$0xff]  }
 0x22e   : > { %9356 = vmatpush3.bf16.msra.mxu0 %v10363_v51  ;;  %v2306_v62 = vsel %vm11228_vm14, %v2301_v18, %v2305_v40  ;;  %v2323_v51 = vrot.slane %v2321_v26, 4  ;;  %v2341_v40 = vshll.u32 %v11706_v54, 16  ;;  %v2417_v18 = vrot.slane %v8451_v34, 5 }
 0x22f   : > { %9357 = vmatprep.subr.bf16.mxu0 %v10365_v57  ;;  %v8465_v41 = vcombine.low %v2296_v35, %v2306_v62  ;;  %v2313_v57 = vrot.slane %v2311_v6, 5  ;;  %v8459_v35 = vrot.slane %v8455_v56, 9  ;;  %v8456_v62 = vld [vmem:[%s11579_s13 + $0xfc] sm:$0xe]  ;;  %v8463_v6 = vcombine.low %v11703_v22, %v11706_v54  ;;  %v8571_v56 = vld [vmem:[%s11579_s13 + $0xf0] sm:$0xe] }
 0x230   : > { %9868 = vmatpush3.bf16.msra.mxu1 %v10364_v8  ;;  %v8470_v8 = vcombine.low %v2408_v2, %v2411_v4  ;;  %v2343_v17 = vrot.slane %v2341_v40, 5  ;;  %v2418_v1 = vsel %vm11222_vm13, %v2416_v5, %v2417_v18  ;;  %v10386_v4 = vld [vmem:[#allocation6 + $0x1d0] sm:$0xff]   ;;  %v10395_v40 = vld [vmem:[#allocation6 + $0x200] sm:$0xff]   ;;  %v8575_v5 = vrot.slane %v8571_v56, 9 }
 0x231   : > { %9869 = vmatprep.subr.bf16.mxu1 %v10367_v15  ;;  %3234 = vmatprep.mubr.bf16.mxu0 %v8465_v41  ;;  %v2314_v25 = vor.u32 %v2313_v57, %v2310_v55  ;;  %v8460_v41 = vrot.slane %v8456_v62, 9 }
 0x232   : > { %9358 = vmatpush3.bf16.msra.mxu0 %v10366_v61  ;;  %v8462_v61 = vcombine.low %v8443_v49, %v11677_v42  ;;  %v2338_v42 = vor.u32 %v2337_v53, %v2334_v31  ;;  %v8567_v31 = vld [vmem:[%s11579_s13 + $0xf8] sm:$0x1] }
 0x233   : > { %9395 = vmatprep.subr.bf16.mxu0 %v10369_v14  ;;  %v2315_v11 = vrot.slane %v2314_v25, 4 }
 0x234   : > { %9870 = vmatpush3.bf16.msra.mxu1 %v10367_v15  ;;  %v2324_v15 = vor.u32 %v2323_v51, %v2319_v10  ;;  %v2339_v21 = vrot.slane %v2338_v42, 4 }
 0x235   : > { %9879 = vmatprep.subr.bf16.mxu1 %v10371_v39  ;;  %3235 = vmatmul.mubr.bf16.vlgmr.msra.gmra.mxu0 %v8461_v43  ;;  %v2320_v45 = vsel %vm11228_vm14, %v2315_v11, %v2319_v10  ;;  %v11718_v43 = vld [vmem:[%s11579_s13 + $0x100] sm:$0xf]  ;;  %v11736_v10 = vld [vmem:[%s11579_s13 + $0xfc] sm:$0xf] }
 0x236   : > { %9396 = vmatpush3.bf16.msra.mxu0 %v10370_v46  ;;  %v2325_v19 = vrot.slane %v2324_v15, 4  ;;  %v8452_v46 = vld [vmem:[%s11579_s13 + $0x104] sm:$0x1]  ;;  %v2421_v27 = vrot.slane %v11718_v43, 5  ;;  %v2344_v49 = vsel %vm11228_vm14, %v2339_v21, %v2343_v17  ;;  %v2356_v57 = vshrl.u32 %v11736_v10, 16 }
 0x237   : > { %9872 = vmatmul.mubr.bf16.vlgmr.msra.gmra.mxu1 %v8470_v8  ;;  %9397 = vmatprep.subr.bf16.mxu0 %v10372_v48  ;;  %v2424_v2 = vrot.slane %v8452_v46, 5  ;;  %v2415_v48 = vsel %vm11222_vm13, %v8459_v35, %v2414_v50  ;;  %v2365_v25 = vshll.u32 %v11718_v43, 16  ;;  %v8464_v42 = vcombine.low %v11736_v10, %v11718_v43  ;;  %v11763_v50 = vld [vmem:[%s11579_s13 + $0x100] sm:$0xf] }
 0x238   : > { %9880 = vmatpush3.bf16.msra.mxu1 %v10371_v39  ;;  %v2330_v58 = vsel %vm11228_vm14, %v2325_v19, %v2329_v33  ;;  %v2347_v39 = vrot.slane %v2345_v13, 4  ;;  %v2423_v26 = vrot.slane %v2421_v27, 4  ;;  %v8471_v7 = vcombine.low %v2415_v48, %v2418_v1  ;;  %v10387_v33 = vld [vmem:[#allocation6 + $0x190] sm:$0xff]   ;;  %v11748_v13 = vld [vmem:[%s11579_s13 + $0xf4] sm:$0xf] }
 0x239   : > { %9881 = vmatprep.subr.bf16.mxu1 %v10374_v23  ;;  %v8466_v14 = vcombine.low %v2320_v45, %v2330_v58  ;;  %v2422_v8 = vsel %vm11222_vm13, %v8460_v41, %v2421_v27  ;;  %v2375_v19 = vshll.u32 %v8452_v46, 16  ;;  %v2367_v58 = vrot.slane %v2365_v25, 5  ;;  %v10391_v45 = vld [vmem:[#allocation6 + $0x188] sm:$0xff]   ;;  %v8568_v46 = vld [vmem:[%s11579_s13 + $0x104] sm:$0x1] }
 0x23a   : > { %9398 = vmatpush3.bf16.msra.mxu0 %v10373_v30  ;;  %v2348_v20 = vor.u32 %v2347_v39, %v2343_v17  ;;  %v2425_v55 = vsel %vm11222_vm13, %v2423_v26, %v2424_v2  ;;  %v2359_v30 = vshll.u32 %v11736_v10, 16  ;;  %9875 = vmatprep.mubr.bf16.mxu1 %v8471_v7  ;;  %v3463_v62 = vrot.slane %v11748_v13, 5  ;;  %v8572_v27 = vld [vmem:[%s11579_s13 + $0xfc] sm:$0xe] }
 0x23b   : > { %9399 = vmatprep.subr.bf16.mxu0 %v10376_v28  ;;  %3242 = vmatprep.mubr.bf16.mxu0 %v8466_v14  ;;  %v8472_v15 = vcombine.low %v2422_v8, %v2425_v55  ;;  %v2369_v28 = vshrl.u32 %v11718_v43, 16  ;;  %v2377_v34 = vrot.slane %v2375_v19, 5  ;;  %v11745_v14 = vld [vmem:[%s11579_s13 + $0xf0] sm:$0xf]  ;;  %v8576_v48 = vrot.slane %v8572_v27, 9 }
 0x23c   : > { %9882 = vmatpush3.bf16.msra.mxu1 %v10374_v23  ;;  %v2349_v3 = vrot.slane %v2348_v20, 4  ;;  %v10388_v23 = vld [vmem:[#allocation6 + $0x210] sm:$0xff]   ;;  %v2361_v11 = vrot.slane %v2359_v30, 5  ;;  %v3350_v53 = vshrl.u32 %v11745_v14, 16  ;;  %v3353_v17 = vshll.u32 %v11745_v14, 16  ;;  %v10394_v20 = vld [vmem:[#allocation6 + $0x180] sm:$0xff]  }
 0x23d   : > { %9883 = vmatprep.subr.bf16.mxu1 %v10378_v60  ;;  %3243 = vmatmul.mubr.bf16.gmra.mxu0 %v8462_v61  ;;  %v2371_v61 = vrot.slane %v2369_v28, 4  ;;  %v3470_v41 = vrot.slane %v11763_v50, 5  ;;  %v3464_v26 = vsel %vm11222_vm13, %v8575_v5, %v3463_v62  ;;  %v11786_v28 = vld [vmem:[%s11579_s13 + $0x108] sm:$0xf]  ;;  %v11789_v19 = vld [vmem:[%s11579_s13 + $0x10c] sm:$0xf] }
 0x23e   : > { %9400 = vmatpush3.bf16.msra.mxu0 %v10377_v16  ;;  %v2354_v24 = vsel %vm11228_vm14, %v2349_v3, %v2353_v44  ;;  %v10390_v16 = vld [vmem:[#allocation6 + $0x1c8] sm:$0xff]   ;;  %v3363_v44 = vshrl.u32 %v11748_v13, 16  ;;  %v3466_v3 = vrot.slane %v8567_v31, 5 }
 0x23f   : > { %9401 = vmatprep.subr.bf16.mxu0 %v10379_v52  ;;  %v8467_v51 = vcombine.low %v2344_v49, %v2354_v24  ;;  %9876 = vmatmul.mubr.bf16.gmra.mxu1 %v8472_v15  ;;  %v10392_v52 = vld [vmem:[#allocation6 + $0x208] sm:$0xff]   ;;  %v2372_v54 = vor.u32 %v2371_v61, %v2367_v58  ;;  %v3472_v7 = vrot.slane %v3470_v41, 4  ;;  %v8569_v61 = vld [vmem:[%s11579_s13 + $0x110] sm:$0x1] }
 0x240   : > { %9884 = vmatpush3.bf16.msra.mxu1 %v10378_v60  ;;  %v2358_v60 = vrot.slane %v2356_v57, 4  ;;  %v3365_v21 = vrot.slane %v3363_v44, 4  ;;  %v11770_v49 = vld [vmem:[%s11579_s13 + $0xfc] sm:$0xf]  ;;  %v3383_v57 = vshll.u32 %v11763_v50, 16 }
 0x241   : > { %9885 = vmatprep.subr.bf16.mxu1 %v10381_v32  ;;  %3250 = vmatprep.mubr.bf16.mxu0 %v8467_v51  ;;  %v2373_v36 = vrot.slane %v2372_v54, 4  ;;  %v3374_v8 = vshrl.u32 %v11770_v49, 16  ;;  %v3377_v55 = vshll.u32 %v11770_v49, 16  ;;  %v3387_v54 = vshrl.u32 %v11763_v50, 16 }
 0x242   : > { %9402 = vmatpush3.bf16.msra.mxu0 %v10380_v38  ;;  %v2362_v22 = vor.u32 %v2361_v11, %v2358_v60  ;;  %v3359_v38 = vshll.u32 %v11748_v13, 16  ;;  %v8579_v11 = vcombine.low %v11745_v14, %v11748_v13  ;;  %v8580_v14 = vcombine.low %v11770_v49, %v11763_v50 }
 0x243   : > { %9403 = vmatprep.subr.bf16.mxu0 %v10383_v9  ;;  %v2378_v39 = vsel %vm11228_vm14, %v2373_v36, %v2377_v34  ;;  %v3369_v9 = vshll.u32 %v8567_v31, 16  ;;  %v3376_v25 = vrot.slane %v3374_v8, 4  ;;  %v3393_v34 = vshll.u32 %v8568_v46, 16  ;;  %v8573_v31 = vld [vmem:[%s11579_s13 + $0x108] sm:$0xe] }
 0x244   : > { %9886 = vmatpush3.bf16.msra.mxu1 %v10381_v32  ;;  %v2363_v32 = vrot.slane %v2362_v22, 4  ;;  %v3361_v35 = vrot.slane %v3359_v38, 5  ;;  %v3385_v22 = vrot.slane %v3383_v57, 5  ;;  %v3407_v36 = vshll.u32 %v11789_v19, 16 }
 0x245   : > { %9887 = vmatprep.subr.bf16.mxu1 %v10385_v0  ;;  %3251 = vmatmul.mubr.bf16.gmra.mxu0 %v8463_v6  ;;  %v3371_v43 = vrot.slane %v3369_v9, 5  ;;  %v3471_v6 = vsel %vm11222_vm13, %v8576_v48, %v3470_v41  ;;  %v3411_v13 = vshrl.u32 %v11789_v19, 16  ;;  %v3395_v9 = vrot.slane %v3393_v34, 5 }
 0x246   : > { %9404 = vmatpush3.bf16.msra.mxu0 %v10384_v63  ;;  %v2368_v47 = vsel %vm11228_vm14, %v2363_v32, %v2367_v58  ;;  %v3352_v63 = vrot.slane %v3350_v53, 4  ;;  %v3366_v1 = vor.u32 %v3365_v21, %v3361_v35  ;;  %v3379_v58 = vrot.slane %v3377_v55, 5  ;;  %v8565_v21 = vld [vmem:[%s11579_s13 + $0x114] sm:$0xf] }
 0x247   : > { %9405 = vmatprep.subr.bf16.mxu0 %v10386_v4  ;;  %v8468_v18 = vcombine.low %v2368_v47, %v2378_v39  ;;  %v3465_v4 = vrot.slane %v3463_v62, 4  ;;  %v3398_v32 = vshrl.u32 %v11786_v28, 16  ;;  %v3417_v47 = vshll.u32 %v8569_v61, 16 }
 0x248   : > { %9888 = vmatpush3.bf16.msra.mxu1 %v10385_v0  ;;  %v3355_v0 = vrot.slane %v3353_v17, 5  ;;  %v3367_v10 = vrot.slane %v3366_v1, 4  ;;  %v3409_v39 = vrot.slane %v3407_v36, 5  ;;  %v3413_v56 = vrot.slane %v3411_v13, 4 }
 0x249   : > { %9889 = vmatprep.subr.bf16.mxu1 %v10388_v23  ;;  %3258 = vmatprep.mubr.bf16.mxu0 %v8468_v18  ;;  %v3467_v51 = vsel %vm11222_vm13, %v3465_v4, %v3466_v3  ;;  %v3400_v17 = vrot.slane %v3398_v32, 4  ;;  %v3419_v18 = vrot.slane %v3417_v47, 5  ;;  %v3480_v62 = vrot.slane %v8569_v61, 5 }
 0x24a   : > { %9406 = vmatpush3.bf16.msra.mxu0 %v10387_v33  ;;  %v3356_v2 = vor.u32 %v3355_v0, %v3352_v63  ;;  %v8587_v15 = vcombine.low %v3464_v26, %v3467_v51  ;;  %v3372_v60 = vsel %vm11228_vm14, %v3367_v10, %v3371_v43  ;;  %v8577_v0 = vrot.slane %v8573_v31, 9 }
 0x24b   : > { %9407 = vmatprep.subr.bf16.mxu0 %v10390_v16  ;;  %v3414_v5 = vor.u32 %v3413_v56, %v3409_v39  ;;  %v3422_v4 = vshrl.u32 %v8565_v21, 16  ;;  %v8581_v34 = vcombine.low %v11786_v28, %v11789_v19 }
 0x24c   : > { %9890 = vmatpush3.bf16.msra.mxu1 %v10388_v23  ;;  %v3473_v23 = vrot.slane %v8568_v46, 5  ;;  %v3357_v24 = vrot.slane %v3356_v2, 4  ;;  %9895 = vmatprep.mubr.bf16.mxu1 %v8587_v15  ;;  %v8570_v46 = vld [vmem:[%s11579_s13 + $0x11c] sm:$0x1] }
 0x24d   : > { %9891 = vmatprep.subr.bf16.mxu1 %v10392_v52  ;;  %3259 = vmatmul.mubr.bf16.gmra.mxu0 %v8464_v42  ;;  %v8574_v42 = vld [vmem:[%s11579_s13 + $0x114] sm:$0xe]  ;;  %v3415_v1 = vrot.slane %v3414_v5, 4  ;;  %v3487_v26 = vrot.slane %v8570_v46, 5  ;;  %v3424_v55 = vrot.slane %v3422_v4, 4 }
 0x24e   : > { %9408 = vmatpush3.bf16.msra.mxu0 %v10391_v45  ;;  %v3362_v30 = vsel %vm11228_vm14, %v3357_v24, %v3361_v35  ;;  %v3474_v33 = vsel %vm11222_vm13, %v3472_v7, %v3473_v23  ;;  %v3380_v45 = vor.u32 %v3379_v58, %v3376_v25  ;;  %v3477_v35 = vrot.slane %v11789_v19, 5 }
 0x24f   : > { %9409 = vmatprep.subr.bf16.mxu0 %v10393_v12  ;;  %v8588_v16 = vcombine.low %v3471_v6, %v3474_v33  ;;  %v3401_v12 = vshll.u32 %v11786_v28, 16  ;;  %v8578_v27 = vrot.slane %v8574_v42, 9  ;;  %v3420_v8 = vsel %vm11228_vm14, %v3415_v1, %v3419_v18 }
 0x250   : > { %9892 = vmatpush3.bf16.msra.mxu1 %v10392_v52  ;;  %v8583_v52 = vcombine.low %v3362_v30, %v3372_v60  ;;  %v3381_v53 = vrot.slane %v3380_v45, 4  ;;  %v3478_v3 = vsel %vm11222_vm13, %v8577_v0, %v3477_v35  ;;  %v3479_v48 = vrot.slane %v3477_v35, 4 }
 0x251   : > { %9893 = vmatprep.subr.bf16.mxu1 %v10395_v40  ;;  %v3403_v38 = vrot.slane %v3401_v12, 5  ;;  %v3425_v30 = vshll.u32 %v8565_v21, 16  ;;  %v3441_v60 = vshll.u32 %v8570_v46, 16 }
 0x252   : > { %9410 = vmatpush3.bf16.msra.mxu0 %v10394_v20  ;;  %3766 = vmatprep.mubr.bf16.mxu0 %v8583_v52  ;;  %v8566_v20 = vld [vmem:[%s11579_s13 + $0x118] sm:$0xf]  ;;  %v3386_v50 = vsel %vm11228_vm14, %v3381_v53, %v3385_v22  ;;  %v3481_v6 = vsel %vm11222_vm13, %v3479_v48, %v3480_v62 }
 0x253   : > { %v3404_v63 = vor.u32 %v3403_v38, %v3400_v17  ;;  %v3484_v41 = vrot.slane %v8566_v20, 5  ;;  %v8589_v10 = vcombine.low %v3478_v3, %v3481_v6  ;;  %v3431_v15 = vshll.u32 %v8566_v20, 16 }
 0x254   : > { %9894 = vmatpush3.bf16.msra.mxu1 %v10395_v40  ;;  %v3389_v40 = vrot.slane %v3387_v54, 4  ;;  %v3435_v33 = vshrl.u32 %v8566_v20, 16  ;;  %v3443_v54 = vrot.slane %v3441_v60, 5 }
 0x255   : > { %3767 = vmatmul.mubr.bf16.vlgmr.msra.gmra.mxu0 %v8579_v11  ;;  %v3405_v2 = vrot.slane %v3404_v63, 4  ;;  %v3485_v7 = vsel %vm11222_vm13, %v8578_v27, %v3484_v41  ;;  %v3486_v51 = vrot.slane %v3484_v41, 4  ;;  %v3433_v58 = vrot.slane %v3431_v15, 5 }
 0x256   : > { %v3390_v44 = vor.u32 %v3389_v40, %v3385_v22  ;;  %v3437_v61 = vrot.slane %v3435_v33, 4  ;;  %v8582_v40 = vcombine.low %v8565_v21, %v8566_v20 }
 0x257   : > { %9896 = vmatmul.mubr.bf16.vlgmr.msra.gmra.mxu1 %v8588_v16  ;;  %v3410_v24 = vsel %vm11228_vm14, %v3405_v2, %v3409_v39  ;;  %v3488_v25 = vsel %vm11222_vm13, %v3486_v51, %v3487_v26  ;;  %v3427_v16 = vrot.slane %v3425_v30, 5 }
 0x258   : > { %v3391_v43 = vrot.slane %v3390_v44, 4  ;;  %v8585_v57 = vcombine.low %v3410_v24, %v3420_v8  ;;  %9899 = vmatprep.mubr.bf16.mxu1 %v8589_v10  ;;  %v8590_v11 = vcombine.low %v3485_v7, %v3488_v25  ;;  %v3438_v22 = vor.u32 %v3437_v61, %v3433_v58 }
 0x259   : > { %v3428_v52 = vor.u32 %v3427_v16, %v3424_v55 }
 0x25a   : > { %v3396_v49 = vsel %vm11228_vm14, %v3391_v43, %v3395_v9  ;;  %v3439_v32 = vrot.slane %v3438_v22, 4 }
 0x25b   : > { %v8584_v23 = vcombine.low %v3386_v50, %v3396_v49  ;;  %v3429_v45 = vrot.slane %v3428_v52, 4 }
 0x25c   : > { %v3444_v59 = vsel %vm11228_vm14, %v3439_v32, %v3443_v54 }
 0x25d   : > { %3774 = vmatprep.mubr.bf16.mxu0 %v8584_v23  ;;  %v3434_v12 = vsel %vm11228_vm14, %v3429_v45, %v3433_v58 }
 0x25e   : > { %3775 = vmatmul.mubr.bf16.gmra.mxu0 %v8580_v14  ;;  %v8586_v36 = vcombine.low %v3434_v12, %v3444_v59 }
 0x25f   : > { %3782 = vmatprep.mubr.bf16.mxu0 %v8585_v57  ;;  %9900 = vmatmul.mubr.bf16.gmra.mxu1 %v8590_v11 }
 0x266   : > { %3783 = vmatmul.mubr.bf16.gmra.mxu0 %v8581_v34 }
 0x267   : > { %3790 = vmatprep.mubr.bf16.mxu0 %v8586_v36 }
 0x26e   : > { %3791 = vmatmul.mubr.bf16.gmra.mxu0 %v8582_v40 }
 0x2d5   : > { %v9307_v14 = vpop.f32.mrf.mxu0 }
 0x2d7   : > { %v9308_v13 = vpop.f32.mrf.mxu0  ;;  %v11833_v19 = vpop.f32.mrf.mxu1 }
 0x2d8   : > { %v9309_v15 = vadd.f32 %v9308_v13, %v9307_v14 }
 0x2d9   : > { %v9310_v47 = vpop.f32.mrf.mxu0  ;;  %v3027_v29 = vpop.f32.mrf.mxu1 }
 0x2da   : > { %v3028_v58 = vadd.f32 %v9309_v15, %v3027_v29 }
 0x2db   : > { %v9311_v31 = vpop.f32.mrf.mxu0  ;;  %v11843_v9 = vpop.f32.mrf.mxu1 }
 0x2dc   : > { %v9312_v61 = vadd.f32 %v9311_v31, %v9310_v47 }
 0x2dd   : > { %v9313_v53 = vpop.f32.mrf.mxu0  ;;  %v3030_v18 = vpop.f32.mrf.mxu1 }
 0x2de   : > { %v3031_v12 = vadd.f32 %v9312_v61, %v3030_v18 }
 0x2df   : > { %v9314_v17 = vpop.f32.mrf.mxu0 }
 0x2e0   : > { %v9315_v36 = vadd.f32 %v9314_v17, %v9313_v53 }
 0x2e1   : > { %v11831_v28 = vpop.f32.mrf.mxu0  ;;  %v11849_v50 = vpop.f32.mrf.mxu1 }
 0x2e2   : > { %v3036_v47 = vadd.f32 %v11833_v19, %v9315_v36 }
 0x2e3   : > { %v11835_v38 = vpop.f32.mrf.mxu0  ;;  %v11855_v35 = vpop.f32.mrf.mxu1 }
 0x2e4   : > { %v9318_v31 = vadd.f32 %v11835_v38, %v11831_v28 }
 0x2e5   : > { %v11837_v39 = vpop.f32.mrf.mxu0  ;;  %v11859_v43 = vpop.f32.mrf.mxu1 }
 0x2e7   : > { %v11839_v42 = vpop.f32.mrf.mxu0  ;;  %v11861_v27 = vpop.f32.mrf.mxu1 }
 0x2e8   : > { %v9321_v19 = vadd.f32 %v11839_v42, %v11837_v39 }
 0x2e9   : > { %v11841_v44 = vpop.f32.mrf.mxu0 }
 0x2eb   : > { %v11845_v56 = vpop.f32.mrf.mxu0 }
 0x2ed   : > { %v11847_v20 = vpop.f32.mrf.mxu0 }
 0x2ef   : > { %v11851_v63 = vpop.f32.mrf.mxu0 }
 0x2f1   : > { %v11853_v0 = vpop.f32.mrf.mxu0 }
 0x2f3   : > { %v11857_v46 = vpop.f32.mrf.mxu0 }
 0x2f5   : > { %v9359_v21 = vpop.f32.mrf.mxu0 }
 0x2f7   : > { %v9360_v5 = vpop.f32.mrf.mxu0  ;;  %v9873_v3 = vpop.f32.mrf.mxu1 }
 0x2f8   : > { %v9361_v60 = vadd.f32 %v9360_v5, %v9359_v21 }
 0x2f9   : > { %v9362_v62 = vpop.f32.mrf.mxu0  ;;  %v3301_v41 = vpop.f32.mrf.mxu1 }
 0x2fa   : > { %v3237_v34 = vadd.f32 %v9361_v60, %v3028_v58 }
 0x2fb   : > { %v9363_v2 = vpop.f32.mrf.mxu0  ;;  %v11863_v26 = vpop.f32.mrf.mxu1 }
 0x2fc   : > { %v9364_v54 = vadd.f32 %v9363_v2, %v9362_v62  ;;  %v3302_v14 = vadd.f32 %v3301_v41, %v3237_v34 }
 0x2fd   : > { %v9365_v48 = vpop.f32.mrf.mxu0  ;;  %v3304_v23 = vpop.f32.mrf.mxu1 }
 0x2fe   : > { %v3240_v13 = vadd.f32 %v9364_v54, %v3031_v12  ;;  %v9330_v12 = vadd.f32 %v11857_v46, %v11853_v0 }
 0x2ff   : > { %v9366_v49 = vpop.f32.mrf.mxu0  ;;  %v11865_v7 = vpop.f32.mrf.mxu1 }
 0x300   : > { %13099 = vst [vmem:[#allocation21_spill] sm:$0xff] %v11865_v7  ;;  %v9367_v21 = vadd.f32 %v9366_v49, %v9365_v48  ;;  %v3305_v62 = vadd.f32 %v3304_v23, %v3240_v13 }
 0x301   : > { %v9368_v1 = vpop.f32.mrf.mxu0  ;;  %v11867_v51 = vpop.f32.mrf.mxu1 }
 0x302   : > { %v3245_v18 = vadd.f32 %v9367_v21, %v3036_v47 }
 0x303   : > { %v9369_v4 = vpop.f32.mrf.mxu0  ;;  %v11871_v57 = vpop.f32.mrf.mxu1 }
 0x304   : > { %13100 = vst [vmem:[#allocation22_spill] sm:$0xff] %v11871_v57  ;;  %v9370_v2 = vadd.f32 %v9369_v4, %v9368_v1  ;;  %v3310_v23 = vadd.f32 %v9873_v3, %v3245_v18  ;;  %v3044_v4 = vadd.f32 %v9321_v19, %v11855_v35 }
 0x305   : > { %v9371_v24 = vpop.f32.mrf.mxu0  ;;  %v11875_v33 = vpop.f32.mrf.mxu1 }
 0x307   : > { %v9372_v6 = vpop.f32.mrf.mxu0 }
 0x308   : > { %v9373_v60 = vadd.f32 %v9372_v6, %v9371_v24 }
 0x309   : > { %v9374_v8 = vpop.f32.mrf.mxu0 }
 0x30a   : > { %v3253_v54 = vadd.f32 %v9373_v60, %v3044_v4 }
 0x30b   : > { %v9375_v10 = vpop.f32.mrf.mxu0 }
 0x30d   : > { %v11869_v55 = vpop.f32.mrf.mxu0 }
 0x30f   : > { %v11873_v30 = vpop.f32.mrf.mxu0 }
 0x311   : > { %v11877_v25 = vpop.f32.mrf.mxu0 }
 0x313   : > { %v11879_v11 = vpop.f32.mrf.mxu0 }
 0x315   : > { %v9411_v52 = vpop.f32.mrf.mxu0 }
 0x317   : > { %v9897_v16 = vpop.f32.mrf.mxu1  ;;  %v9412_v45 = vpop.f32.mrf.mxu0 }
 0x318   : > { %v9413_v59 = vadd.f32 %v9412_v45, %v9411_v52  ;;  %v9376_v52 = vadd.f32 %v9375_v10, %v9374_v8  ;;  %v3318_v8 = vadd.f32 %v11867_v51, %v3253_v54  ;;  %v9382_v51 = vadd.f32 %v11879_v11, %v11877_v25 }
 0x319   : > { %v3833_v22 = vpop.f32.mrf.mxu1  ;;  %v9414_v40 = vpop.f32.mrf.mxu0 }
 0x31a   : > { %v3834_v37 = vadd.f32 %v9413_v59, %v3833_v22 }
 0x31b   : > { %v9898_v32 = vpop.f32.mrf.mxu1  ;;  %v9415_v5 = vpop.f32.mrf.mxu0 }
 0x31c   : > { %v3864_v7 = vadd.f32 %v3834_v37, %v3302_v14  ;;  %v9416_v29 = vadd.f32 %v9415_v5, %v9414_v40  ;;  %v3039_v37 = vadd.f32 %v11843_v9, %v9318_v31 }
 0x31d   : > { %v3836_v57 = vpop.f32.mrf.mxu1 }
 0x31e   : > { %8616 = vst [vmem:[%s11885_s1 + $0x100] sm:$0xff] %v3864_v7  ;;  %v9417_v53 = vpop.f32.mrf.mxu0  ;;  %v3837_v17 = vadd.f32 %v9416_v29, %v3836_v57  ;;  %v3248_v15 = vadd.f32 %v9370_v2, %v3039_v37  ;;  %v9324_v57 = vadd.f32 %v11845_v56, %v11841_v44  ;;  %v9327_v44 = vadd.f32 %v11851_v63, %v11847_v20  ;;  %v13101_v29 = vld [vmem:[#allocation21_spill] sm:$0xff] }
 0x31f   : > { %v9901_v38 = vpop.f32.mrf.mxu1 }
 0x320   : > { %v3865_v48 = vadd.f32 %v3837_v17, %v3305_v62  ;;  %v9418_v41 = vpop.f32.mrf.mxu0  ;;  %v3313_v42 = vadd.f32 %v11863_v26, %v3248_v15  ;;  %v3047_v24 = vadd.f32 %v9324_v57, %v11861_v27  ;;  %v9379_v26 = vadd.f32 %v11873_v30, %v11869_v55  ;;  %v13102_v17 = vld [vmem:[#allocation22_spill] sm:$0xff] }
 0x321   : > { %v9419_v49 = vadd.f32 %v9418_v41, %v9417_v53  ;;  %v3849_v39 = vpop.f32.mrf.mxu1  ;;  %v3052_v27 = vadd.f32 %v11849_v50, %v9327_v44  ;;  %v3055_v50 = vadd.f32 %v11859_v43, %v9330_v12 }
 0x322   : > { %8617 = vst [vmem:[%s11885_s1 + $0x108] sm:$0xff] %v3865_v48  ;;  %v9420_v28 = vpop.f32.mrf.mxu0  ;;  %v3256_v35 = vadd.f32 %v9376_v52, %v3047_v24  ;;  %v3883_v55 = vadd.f32 %v3865_v48, %v3864_v7 }
 0x323   : > { %v3842_v58 = vadd.f32 %v9897_v16, %v9419_v49  ;;  %v9902_v45 = vpop.f32.mrf.mxu1  ;;  %v3261_v14 = vadd.f32 %v9379_v26, %v3052_v27  ;;  %v3264_v47 = vadd.f32 %v9382_v51, %v3055_v50 }
 0x324   : > { %v9421_v1 = vpop.f32.mrf.mxu0  ;;  %v3321_v59 = vadd.f32 %v11875_v33, %v3256_v35 }
 0x325   : > { %v3866_v61 = vadd.f32 %v3842_v58, %v3310_v23  ;;  %v9422_v9 = vadd.f32 %v9421_v1, %v9420_v28  ;;  %v3852_v36 = vpop.f32.mrf.mxu1  ;;  %v3326_v33 = vadd.f32 %v13101_v29, %v3261_v14  ;;  %v3329_v18 = vadd.f32 %v13102_v17, %v3264_v47 }
 0x326   : > { %v9423_v22 = vpop.f32.mrf.mxu0  ;;  %v10770_v1 = vmov (%p2258_p4), 0.0  }
 0x327   : > { %8618 = vst [vmem:[%s11885_s1 + $0x110] sm:$0xff] %v3866_v61  ;;  %v3845_v3 = vadd.f32 %v9898_v32, %v9422_v9  ;;  %v3884_v21 = vadd.f32 %v3883_v55, %v3866_v61 }
 0x328   : > { %v9424_v6 = vpop.f32.mrf.mxu0 }
 0x329   : > { %v3867_v56 = vadd.f32 %v3845_v3, %v3313_v42  ;;  %v9425_v16 = vadd.f32 %v9424_v6, %v9423_v22 }
 0x32a   : > { %v9426_v34 = vpop.f32.mrf.mxu0 }
 0x32b   : > { %8619 = vst [vmem:[%s11885_s1 + $0x118] sm:$0xff] %v3867_v56  ;;  %v3850_v10 = vadd.f32 %v9425_v16, %v3849_v39  ;;  %v3885_v31 = vadd.f32 %v3884_v21, %v3867_v56 }
 0x32c   : > { %v9427_v32 = vpop.f32.mrf.mxu0 }
 0x32d   : > { %v3868_v20 = vadd.f32 %v3850_v10, %v3318_v8  ;;  %v9428_v63 = vadd.f32 %v9427_v32, %v9426_v34 }
 0x32e   : > { %v9429_v40 = vpop.f32.mrf.mxu0 }
 0x32f   : > { %8620 = vst [vmem:[%s11885_s1 + $0x120] sm:$0xff] %v3868_v20  ;;  %v3853_v30 = vadd.f32 %v9428_v63, %v3852_v36  ;;  %v3886_v25 = vadd.f32 %v3885_v31, %v3868_v20 }
 0x330   : > { %v9430_v13 = vpop.f32.mrf.mxu0 }
 0x331   : > { %v3869_v0 = vadd.f32 %v3853_v30, %v3321_v59  ;;  %v9431_v46 = vadd.f32 %v9430_v13, %v9429_v40 }
 0x332   : > { %v9432_v5 = vpop.f32.mrf.mxu0 }
 0x333   : > { %8621 = vst [vmem:[%s11885_s1 + $0x128] sm:$0xff] %v3869_v0  ;;  %v3858_v62 = vadd.f32 %v9901_v38, %v9431_v46  ;;  %v3887_v2 = vadd.f32 %v3886_v25, %v3869_v0  ;;  %v13103_v38 = vld [vmem:[#allocation20_spill] sm:$0xff] }
 0x334   : > { %v9433_v53 = vpop.f32.mrf.mxu0 }
 0x335   : > { %v3870_v7 = vadd.f32 %v3858_v62, %v3326_v33  ;;  %v9434_v11 = vadd.f32 %v9433_v53, %v9432_v5 }
 0x337   : > { %8622 = vst [vmem:[%s11885_s1 + $0x130] sm:$0xff] %v3870_v7  ;;  %v3861_v43 = vadd.f32 %v9902_v45, %v9434_v11  ;;  %v3888_v48 = vadd.f32 %v3887_v2, %v3870_v7 }
 0x339   : > { %v3871_v41 = vadd.f32 %v3861_v43, %v3329_v18 }
 0x33b   : > { %8623 = vst [vmem:[%s11885_s1 + $0x138] sm:$0xff] %v3871_v41  ;;  %v3889_v37 = vadd.f32 %v3888_v48, %v3871_v41 }
 0x33d   : > { %v3890_v19 = vrot.slane %v3889_v37, 4 }
 0x33f   : > { %v3891_v49 = vadd.f32 %v3890_v19, %v3889_v37 }
 0x341   : > { %v3892_v28 = vrot.slane %v3891_v49, 2 }
 0x343   : > { %v3893_v23 = vadd.f32 %v3892_v28, %v3891_v49 }
 0x345   : > { %v3894_v15 = vrot.slane %v3893_v23, 1 }
 0x347   : > { %v3895_v60 = vadd.f32 %v3894_v15, %v3893_v23  ;;  %2260 = sbr.rel (!%p2258_p4) target bundleno = 500 (0x1f4), region = 232 }
 0x349   : > { %v3896_v58 = vadd.f32 %v13103_v38, %v3895_v60  }
 0x34b   : > { %v13104_v37 = vmov %v3896_v58  ;;  %v11923_v57 = vmul.f32 (%p2258_p4), 0.001953125, %v3896_v58 }
 0x34c LB: > { %s9109_s16 = sshll.u32 %s10776_s15, 6  ;;  %s3903_s15 = sadd.s32 1, %s10776_s15   ;;  %s10776_s15 = sphi %s11925_s15, %s3903_s15   ;;  %v10772_v1 = vphi %v10770_v1, %v10771_v1  }
 0x34d   : > { %s3907_s17 = scalar_lea.vmem [#allocation9], %s9109_s16  ;;  %p3900_p5 = scmp.ge.s32.totalorder %s3903_s15, 4  }
 0x34e   : > { %v3908_v4 = vld [vmem:[%s3907_s17] sm:$0xff]  ;;  %v3909_v61 = vld [vmem:[%s3907_s17 + $0x8] sm:$0xff]  ;;  %v3910_v9 = vld [vmem:[%s3907_s17 + $0x10] sm:$0xff]  ;;  %s11942_s18 = smov (%p3900_p5), 0  }
 0x34f   : > { %v3911_v52 = vld [vmem:[%s3907_s17 + $0x18] sm:$0xff]  ;;  %v3912_v22 = vld [vmem:[%s3907_s17 + $0x20] sm:$0xff]  ;;  %v3916_v39 = vsub.f32 %v3908_v4, %v11923_v57  ;;  %v3917_v42 = vsub.f32 %v3909_v61, %v11923_v57  ;;  %v3918_v54 = vsub.f32 %v3910_v9, %v11923_v57  ;;  %v3913_v3 = vld [vmem:[%s3907_s17 + $0x28] sm:$0xff] }
 0x350   : > { %v3919_v24 = vsub.f32 %v3911_v52, %v11923_v57  ;;  %v3920_v6 = vsub.f32 %v3912_v22, %v11923_v57  ;;  %v3914_v16 = vld [vmem:[%s3907_s17 + $0x30] sm:$0xff]  ;;  %v3921_v34 = vsub.f32 %v3913_v3, %v11923_v57  ;;  %v3915_v26 = vld [vmem:[%s3907_s17 + $0x38] sm:$0xff] }
 0x351   : > { %v3924_v44 = vmul.f32 %v3916_v39, %v3916_v39  ;;  %v3925_v56 = vmul.f32 %v3917_v42, %v3917_v42  ;;  %v3926_v35 = vmul.f32 %v3918_v54, %v3918_v54  ;;  %v3922_v10 = vsub.f32 %v3914_v16, %v11923_v57 }
 0x352   : > { %v3927_v45 = vmul.f32 %v3919_v24, %v3919_v24  ;;  %v3928_v32 = vmul.f32 %v3920_v6, %v3920_v6  ;;  %v3923_v12 = vsub.f32 %v3915_v26, %v11923_v57  ;;  %v3929_v20 = vmul.f32 %v3921_v34, %v3921_v34 }
 0x353   : > { %v3932_v8 = vadd.f32 %v3925_v56, %v3924_v44  ;;  %v3930_v59 = vmul.f32 %v3922_v10, %v3922_v10 }
 0x354   : > { %v3931_v40 = vmul.f32 %v3923_v12, %v3923_v12 }
 0x355   : > { %v3933_v27 = vadd.f32 %v3932_v8, %v3926_v35 }
 0x357   : > { %v3934_v63 = vadd.f32 %v3933_v27, %v3927_v45 }
 0x359   : > { %v3935_v36 = vadd.f32 %v3934_v63, %v3928_v32 }
 0x35b   : > { %v3936_v14 = vadd.f32 %v3935_v36, %v3929_v20 }
 0x35d   : > { %v3937_v51 = vadd.f32 %v3936_v14, %v3930_v59 }
 0x35f   : > { %v3938_v55 = vadd.f32 %v3937_v51, %v3931_v40 }
 0x361   : > { %v3939_v30 = vrot.slane %v3938_v55, 4 }
 0x363   : > { %v3940_v13 = vadd.f32 %v3939_v30, %v3938_v55 }
 0x365   : > { %v3941_v50 = vrot.slane %v3940_v13, 2 }
 0x367   : > { %v3942_v21 = vadd.f32 %v3941_v50, %v3940_v13 }
 0x369   : > { %v3943_v0 = vrot.slane %v3942_v21, 1 }
 0x36b   : > { %v3944_v46 = vadd.f32 %v3943_v0, %v3942_v21  ;;  %3902 = sbr.rel (!%p3900_p5) target bundleno = 844 (0x34c), region = 243 }
 0x36d   : > { %v3945_v5 = vadd.f32 %v10772_v1, %v3944_v46  }
 0x36f   : > { %v10771_v1 = vmov %v3945_v5   ;;  %v10778_v29 = vmov (%p3900_p5), %v3945_v5  }
 0x370 LB: > { %s8626_s0 = sshll.u32 %s10784_s18, 6  ;;  %s3951_s18 = sadd.s32 1, %s10784_s18   ;;  %s10784_s18 = sphi %s11942_s18, %s3951_s18   ;;  %v10780_v29 = vphi %v10778_v29, %v10779_v29  }
 0x371   : > { %s8054_s2 = scalar_lea.vmem [#allocation9], %s8626_s0  ;;  %p3948_p6 = scmp.ge.s32.totalorder %s3951_s18, 4  }
 0x372   : > { %v8627_v33 = vld [vmem:[%s8054_s2 + $0x100] sm:$0xff]  ;;  %v8628_v47 = vld [vmem:[%s8054_s2 + $0x108] sm:$0xff]  ;;  %v8629_v31 = vld [vmem:[%s8054_s2 + $0x110] sm:$0xff]  ;;  %s11971_s23 = smov (%p3948_p6), 0  }
 0x373   : > { %v8630_v62 = vld [vmem:[%s8054_s2 + $0x118] sm:$0xff]  ;;  %v8631_v53 = vld [vmem:[%s8054_s2 + $0x120] sm:$0xff]  ;;  %v3965_v25 = vsub.f32 %v8627_v33, %v11923_v57  ;;  %v3966_v7 = vsub.f32 %v8628_v47, %v11923_v57  ;;  %v3967_v11 = vsub.f32 %v8629_v31, %v11923_v57  ;;  %v8632_v17 = vld [vmem:[%s8054_s2 + $0x128] sm:$0xff] }
 0x374   : > { %v3968_v18 = vsub.f32 %v8630_v62, %v11923_v57  ;;  %v3969_v2 = vsub.f32 %v8631_v53, %v11923_v57  ;;  %v8633_v41 = vld [vmem:[%s8054_s2 + $0x130] sm:$0xff]  ;;  %v3970_v19 = vsub.f32 %v8632_v17, %v11923_v57  ;;  %v8634_v23 = vld [vmem:[%s8054_s2 + $0x138] sm:$0xff]  ;;  %v11962_v34 = vld [vmem:[%s13052_s3] ss:$0 sm:$0xff] (%p3948_p6) }
 0x375   : > { %v3973_v43 = vmul.f32 %v3965_v25, %v3965_v25  ;;  %v3974_v48 = vmul.f32 %v3966_v7, %v3966_v7  ;;  %v3975_v37 = vmul.f32 %v3967_v11, %v3967_v11  ;;  %v3971_v15 = vsub.f32 %v8633_v41, %v11923_v57  ;;  %v11967_v45 = vld [vmem:[%s13053_s4] ss:$0 sm:$0xff] (%p3948_p6) }
 0x376   : > { %v3976_v49 = vmul.f32 %v3968_v18, %v3968_v18  ;;  %v3977_v60 = vmul.f32 %v3969_v2, %v3969_v2  ;;  %v3972_v58 = vsub.f32 %v8634_v23, %v11923_v57  ;;  %v3978_v1 = vmul.f32 %v3970_v19, %v3970_v19 }
 0x377   : > { %v3981_v28 = vadd.f32 %v3974_v48, %v3973_v43  ;;  %v3979_v61 = vmul.f32 %v3971_v15, %v3971_v15 }
 0x378   : > { %v3980_v52 = vmul.f32 %v3972_v58, %v3972_v58 }
 0x379   : > { %v3982_v38 = vadd.f32 %v3981_v28, %v3975_v37 }
 0x37b   : > { %v3983_v4 = vadd.f32 %v3982_v38, %v3976_v49 }
 0x37d   : > { %v3984_v9 = vadd.f32 %v3983_v4, %v3977_v60 }
 0x37f   : > { %v3985_v22 = vadd.f32 %v3984_v9, %v3978_v1 }
 0x381   : > { %v3986_v39 = vadd.f32 %v3985_v22, %v3979_v61 }
 0x383   : > { %v3987_v42 = vadd.f32 %v3986_v39, %v3980_v52 }
 0x385   : > { %v3988_v54 = vrot.slane %v3987_v42, 4 }
 0x387   : > { %v3989_v3 = vadd.f32 %v3988_v54, %v3987_v42 }
 0x389   : > { %v3990_v24 = vrot.slane %v3989_v3, 2 }
 0x38b   : > { %v3991_v6 = vadd.f32 %v3990_v24, %v3989_v3 }
 0x38d   : > { %v3992_v44 = vrot.slane %v3991_v6, 1 }
 0x38f   : > { %v3993_v56 = vadd.f32 %v3992_v44, %v3991_v6  ;;  %3950 = sbr.rel (!%p3948_p6) target bundleno = 880 (0x370), region = 254 }
 0x391   : > { %v3994_v16 = vadd.f32 %v10780_v29, %v3993_v56  }
 0x393   : > { %v10779_v29 = vmov %v3994_v16   ;;  %v3995_v35 = vmul.f32 (%p3948_p6), 0.001953125, %v3994_v16 }
 0x395   :  { %v3996_v8 = vadd.f32 1e-05, %v3995_v35 }
 0x397   :  { %10400 = vrsqrt.f32 %v3996_v8 }
 0x3a4   :  { %v11969_v26 = vpop.eup %10400 }
 0x3a5 LB: > { %s9110_s24 = sshll.u32 %s10788_s23, 6  ;;  %s8646_s4 = smul.u32 48, %s10788_s23  ;;  %s10788_s23 = sphi %s11971_s23, %s4005_s23  }
 0x3a6   : > { %s4008_s3 = scalar_lea.vmem [#allocation9], %s9110_s24  ;;  %s4005_s23 = sadd.s32 1, %s10788_s23  }
 0x3a7   : > { %v4009_v10 = vld [vmem:[%s4008_s3] sm:$0xff]  ;;  %v4010_v32 = vld [vmem:[%s4008_s3 + $0x8] sm:$0xff]  ;;  %v4011_v27 = vld [vmem:[%s4008_s3 + $0x10] sm:$0xff]  ;;  %s12010_s25 = scalar_lea.vmem [#allocation2], %s8646_s4  ;;  %p4002_p7 = scmp.ge.s32.totalorder %s4005_s23, 4  }
 0x3a8   : > { %v4017_v12 = vsub.f32 %v4009_v10, %v11923_v57  ;;  %v4018_v20 = vsub.f32 %v4010_v32, %v11923_v57  ;;  %v4019_v63 = vsub.f32 %v4011_v27, %v11923_v57  ;;  %v4012_v59 = vld [vmem:[%s4008_s3 + $0x18] sm:$0xff]  ;;  %v4013_v36 = vld [vmem:[%s4008_s3 + $0x20] sm:$0xff]  ;;  %v4014_v30 = vld [vmem:[%s4008_s3 + $0x28] sm:$0xff]  ;;  %s12059_s26 = smov (%p4002_p7), 0  }
 0x3a9   : > { %v4020_v55 = vsub.f32 %v4012_v59, %v11923_v57  ;;  %v4021_v13 = vsub.f32 %v4013_v36, %v11923_v57  ;;  %v4022_v50 = vsub.f32 %v4014_v30, %v11923_v57  ;;  %v4015_v21 = vld [vmem:[%s4008_s3 + $0x30] sm:$0xff]  ;;  %v4016_v0 = vld [vmem:[%s4008_s3 + $0x38] sm:$0xff]  ;;  %v8647_v35 = vld [vmem:[%s12010_s25 + $0xc] sm:$0xf] }
 0x3aa   : > { %v4025_v40 = vmul.f32 %v11969_v26, %v4017_v12  ;;  %v4026_v14 = vmul.f32 %v11969_v26, %v4018_v20  ;;  %v4027_v51 = vmul.f32 %v11969_v26, %v4019_v63  ;;  %v4023_v62 = vsub.f32 %v4015_v21, %v11923_v57  ;;  %v8650_v27 = vld [vmem:[%s12010_s25 + $0x14] sm:$0x1] }
 0x3ab   : > { %v4028_v33 = vmul.f32 %v11969_v26, %v4020_v55  ;;  %v4029_v47 = vmul.f32 %v11969_v26, %v4021_v13  ;;  %v4030_v31 = vmul.f32 %v11969_v26, %v4022_v50  ;;  %v4024_v53 = vsub.f32 %v4016_v0, %v11923_v57  ;;  %v8652_v55 = vld [vmem:[%s12010_s25 + $0x18] sm:$0xf] }
 0x3ac   : > { %v4039_v46 = vmul.f32 %v11962_v34, %v4025_v40  ;;  %v4040_v5 = vmul.f32 %v11962_v34, %v4026_v14  ;;  %v4041_v29 = vmul.f32 %v11962_v34, %v4027_v51  ;;  %v4031_v43 = vmul.f32 %v11969_v26, %v4023_v62 }
 0x3ad   : > { %v4042_v17 = vmul.f32 %v11962_v34, %v4028_v33  ;;  %v4043_v18 = vmul.f32 %v11962_v34, %v4029_v47  ;;  %v4044_v2 = vmul.f32 %v11962_v34, %v4030_v31  ;;  %v4032_v48 = vmul.f32 %v11969_v26, %v4024_v53  ;;  %v8655_v31 = vld [vmem:[%s12010_s25 + $0x20] sm:$0x1] }
 0x3ae   : > { %v4053_v25 = vadd.f32 %v11967_v45, %v4039_v46  ;;  %v4054_v7 = vadd.f32 %v11967_v45, %v4040_v5  ;;  %v4055_v11 = vadd.f32 %v11967_v45, %v4041_v29  ;;  %v4045_v15 = vmul.f32 %v11962_v34, %v4031_v43 }
 0x3af   : > { %v4056_v49 = vadd.f32 %v11967_v45, %v4042_v17  ;;  %v4057_v28 = vadd.f32 %v11967_v45, %v4043_v18  ;;  %v4058_v23 = vadd.f32 %v11967_v45, %v4044_v2  ;;  %v4046_v60 = vmul.f32 %v11962_v34, %v4032_v48 }
 0x3b0   : > { %v4061_v41 = vmax.f32 %v4053_v25, 0.0  ;;  %v4062_v37 = vmax.f32 %v4054_v7, 0.0  ;;  %v4063_v19 = vmax.f32 %v4055_v11, 0.0  ;;  %v4059_v52 = vadd.f32 %v11967_v45, %v4045_v15  ;;  %v8657_v11 = vld [vmem:[%s12010_s25 + $0x24] sm:$0xf] }
 0x3b1   : > { %v4064_v4 = vmax.f32 %v4056_v49, 0.0  ;;  %v4065_v61 = vmax.f32 %v4057_v28, 0.0  ;;  %v4066_v9 = vmax.f32 %v4058_v23, 0.0  ;;  %v4060_v22 = vadd.f32 %v11967_v45, %v4046_v60  ;;  %v8660_v60 = vld [vmem:[%s12010_s25 + $0x2c] sm:$0x1] }
 0x3b2   : > { %v9111_v38 = vpack.c.bf16 %v4061_v41, %v4061_v41  ;;  %v9112_v58 = vpack.c.bf16 %v4062_v37, %v4062_v37  ;;  %v9113_v1 = vpack.c.bf16 %v4063_v19, %v4063_v19  ;;  %v4067_v32 = vmax.f32 %v4059_v52, 0.0 }
 0x3b3   : > { %v9114_v44 = vpack.c.bf16 %v4064_v4, %v4064_v4  ;;  %v9115_v56 = vpack.c.bf16 %v4065_v61, %v4065_v61  ;;  %v9116_v10 = vpack.c.bf16 %v4066_v9, %v4066_v9  ;;  %v4068_v19 = vmax.f32 %v4060_v22, 0.0  ;;  %v8662_v61 = vld [vmem:[%s12010_s25 + $0x30] sm:$0xf] }
 0x3b4   : > { %v4097_v39 = vshrl.u32 %v9111_v38, 16  ;;  %v4100_v42 = vshll.u32 %v9111_v38, 16  ;;  %v4105_v54 = vshrl.u32 %v9112_v58, 16  ;;  %v4108_v3 = vshll.u32 %v9112_v58, 16 }
 0x3b5   : > { %v4114_v24 = vshrl.u32 %v9113_v1, 16  ;;  %v4117_v6 = vshll.u32 %v9113_v1, 16  ;;  %v4122_v20 = vshrl.u32 %v9114_v44, 16  ;;  %v4125_v63 = vshll.u32 %v9114_v44, 16 }
 0x3b6   : > { %v4099_v16 = vrot.slane %v4097_v39, 7  ;;  %v4107_v8 = vrot.slane %v4105_v54, 7  ;;  %v4131_v59 = vshrl.u32 %v9115_v56, 16  ;;  %v4134_v62 = vshll.u32 %v9115_v56, 16 }
 0x3b7   : > { %v4116_v12 = vrot.slane %v4114_v24, 7  ;;  %v4124_v50 = vrot.slane %v4122_v20, 7  ;;  %v4139_v18 = vshrl.u32 %v9116_v10, 16  ;;  %v4142_v2 = vshll.u32 %v9116_v10, 16 }
 0x3b8   : > { %v4102_v36 = vor.u32 %v4100_v42, %v4099_v16  ;;  %v4103_v40 = vrot.slane %v4099_v16, 4  ;;  %v4110_v14 = vor.u32 %v4108_v3, %v4107_v8  ;;  %v4112_v51 = vrot.slane %v4107_v8, 4 }
 0x3b9   : > { %v4119_v30 = vor.u32 %v4117_v6, %v4116_v12  ;;  %v4120_v13 = vrot.slane %v4116_v12, 4  ;;  %v4133_v21 = vrot.slane %v4131_v59, 7  ;;  %v4127_v25 = vor.u32 %v4125_v63, %v4124_v50  ;;  %v8665_v6 = vld [vmem:[%s12010_s25 + $0x38] sm:$0x1] }
 0x3ba   : > { %v4182_v46 = vsel %vm11069_vm7, %v4102_v36, %v8647_v35  ;;  %v4111_v29 = vsel %vm11078_vm8, %v4103_v40, %v4110_v14  ;;  %v4186_v47 = vsel %vm10897_vm2, %v4112_v51, %v8650_v27  ;;  %v4129_v7 = vrot.slane %v4124_v50, 4 }
 0x3bb   : > { %8648 = vst [vmem:[%s12010_s25 + $0xc] sm:$0xf] %v4182_v46  ;;  %8649 = vst [vmem:[%s12010_s25 + $0x10] sm:$0xf] %v4111_v29  ;;  %v4189_v53 = vsel %vm11069_vm7, %v4119_v30, %v8652_v55  ;;  %v4136_v17 = vor.u32 %v4134_v62, %v4133_v21  ;;  %v9117_v43 = vpack.c.bf16 %v4067_v32, %v4067_v32  ;;  %v4137_v37 = vrot.slane %v4133_v21, 4 }
 0x3bc   : > { %8651 = vst [vmem:[%s12010_s25 + $0x14] sm:$0x1] %v4186_v47  ;;  %8653 = vst [vmem:[%s12010_s25 + $0x18] sm:$0xf] %v4189_v53  ;;  %v4128_v48 = vsel %vm11078_vm8, %v4120_v13, %v4127_v25  ;;  %v4193_v41 = vsel %vm10897_vm2, %v4129_v7, %v8655_v31  ;;  %v4141_v28 = vrot.slane %v4139_v18, 7  ;;  %v9118_v38 = vpack.c.bf16 %v4068_v19, %v4068_v19 }
 0x3bd   : > { %8654 = vst [vmem:[%s12010_s25 + $0x1c] sm:$0xf] %v4128_v48  ;;  %8656 = vst [vmem:[%s12010_s25 + $0x20] sm:$0x1] %v4193_v41  ;;  %v4196_v49 = vsel %vm11069_vm7, %v4136_v17, %v8657_v11  ;;  %v4148_v23 = vshrl.u32 %v9117_v43, 16  ;;  %v4151_v15 = vshll.u32 %v9117_v43, 16 }
 0x3be   : > { %8658 = vst [vmem:[%s12010_s25 + $0x24] sm:$0xf] %v4196_v49  ;;  %v4144_v58 = vor.u32 %v4142_v2, %v4141_v28  ;;  %v4146_v1 = vrot.slane %v4141_v28, 4  ;;  %v4156_v9 = vshrl.u32 %v9118_v38, 16  ;;  %v4159_v52 = vshll.u32 %v9118_v38, 16 }
 0x3bf   : > { %v4150_v4 = vrot.slane %v4148_v23, 7 }
 0x3c0   : > { %v4145_v22 = vsel %vm11078_vm8, %v4137_v37, %v4144_v58  ;;  %v4200_v39 = vsel %vm10897_vm2, %v4146_v1, %v8660_v60  ;;  %v4158_v3 = vrot.slane %v4156_v9, 7 }
 0x3c1   : > { %v4153_v42 = vor.u32 %v4151_v15, %v4150_v4  ;;  %8659 = vst [vmem:[%s12010_s25 + $0x28] sm:$0xf] %v4145_v22  ;;  %8661 = vst [vmem:[%s12010_s25 + $0x2c] sm:$0x1] %v4200_v39  ;;  %v4154_v54 = vrot.slane %v4150_v4, 4  ;;  %4004 = sbr.rel (!%p4002_p7) target bundleno = 933 (0x3a5), region = 265 }
 0x3c2   : > { %v4161_v44 = vor.u32 %v4159_v52, %v4158_v3  ;;  %v4163_v56 = vrot.slane %v4158_v3, 4 }
 0x3c3   : > { %v4203_v24 = vsel %vm11069_vm7, %v4153_v42, %v8662_v61 }
 0x3c4   : > { %8663 = vst [vmem:[%s12010_s25 + $0x30] sm:$0xf] %v4203_v24  ;;  %v4162_v16 = vsel %vm11078_vm8, %v4154_v54, %v4161_v44  ;;  %v4207_v35 = vsel %vm10897_vm2, %v4163_v56, %v8665_v6 }
 0x3c5   : > { %8664 = vst [vmem:[%s12010_s25 + $0x34] sm:$0xf] %v4162_v16  ;;  %8666 = vst [vmem:[%s12010_s25 + $0x38] sm:$0x1] %v4207_v35 }
 0x3c6 LB: > { %s8667_s27 = sshll.u32 %s10792_s26, 6  ;;  %s8686_s29 = smul.u32 48, %s10792_s26  ;;  %s10792_s26 = sphi %s12059_s26, %s4214_s26  }
 0x3c7   : > { %s8063_s28 = scalar_lea.vmem [#allocation9], %s8667_s27  ;;  %s4214_s26 = sadd.s32 1, %s10792_s26  }
 0x3c8   : > { %v8668_v8 = vld [vmem:[%s8063_s28 + $0x100] sm:$0xff]  ;;  %v8669_v10 = vld [vmem:[%s8063_s28 + $0x108] sm:$0xff]  ;;  %v8670_v32 = vld [vmem:[%s8063_s28 + $0x110] sm:$0xff]  ;;  %s12098_s30 = scalar_lea.vmem [#allocation2], %s8686_s29  ;;  %p4211_p8 = scmp.ge.s32.totalorder %s4214_s26, 4  }
 0x3c9   : > { %v4227_v27 = vsub.f32 %v8668_v8, %v11923_v57  ;;  %v4228_v12 = vsub.f32 %v8669_v10, %v11923_v57  ;;  %v4229_v20 = vsub.f32 %v8670_v32, %v11923_v57  ;;  %v8671_v63 = vld [vmem:[%s8063_s28 + $0x118] sm:$0xff]  ;;  %v8672_v59 = vld [vmem:[%s8063_s28 + $0x120] sm:$0xff]  ;;  %v8673_v55 = vld [vmem:[%s8063_s28 + $0x128] sm:$0xff]  ;;  %s12149_s8 = smov (%p4211_p8), 0  }
 0x3ca   : > { %v4230_v51 = vsub.f32 %v8671_v63, %v11923_v57  ;;  %v4231_v30 = vsub.f32 %v8672_v59, %v11923_v57  ;;  %v4232_v13 = vsub.f32 %v8673_v55, %v11923_v57  ;;  %v8674_v50 = vld [vmem:[%s8063_s28 + $0x130] sm:$0xff]  ;;  %v8675_v21 = vld [vmem:[%s8063_s28 + $0x138] sm:$0xff] }
 0x3cb   : > { %v4235_v36 = vmul.f32 %v11969_v26, %v4227_v27  ;;  %v4236_v40 = vmul.f32 %v11969_v26, %v4228_v12  ;;  %v4237_v14 = vmul.f32 %v11969_v26, %v4229_v20  ;;  %v4233_v31 = vsub.f32 %v8674_v50, %v11923_v57 }
 0x3cc   : > { %v4238_v29 = vmul.f32 %v11969_v26, %v4230_v51  ;;  %v4239_v33 = vmul.f32 %v11969_v26, %v4231_v30  ;;  %v4240_v47 = vmul.f32 %v11969_v26, %v4232_v13  ;;  %v4234_v62 = vsub.f32 %v8675_v21, %v11923_v57  ;;  %v8687_v16 = vld [vmem:[%s12098_s30 + $0xe4] sm:$0xf]  ;;  %v8690_v32 = vld [vmem:[%s12098_s30 + $0xec] sm:$0x1]  ;;  %v8692_v51 = vld [vmem:[%s12098_s30 + $0xf0] sm:$0xf] }
 0x3cd   : > { %v4249_v0 = vmul.f32 %v11962_v34, %v4235_v36  ;;  %v4250_v46 = vmul.f32 %v11962_v34, %v4236_v40  ;;  %v4251_v5 = vmul.f32 %v11962_v34, %v4237_v14  ;;  %v4241_v2 = vmul.f32 %v11969_v26, %v4233_v31 }
 0x3ce   : > { %v4252_v11 = vmul.f32 %v11962_v34, %v4238_v29  ;;  %v4253_v17 = vmul.f32 %v11962_v34, %v4239_v33  ;;  %v4254_v18 = vmul.f32 %v11962_v34, %v4240_v47  ;;  %v4242_v43 = vmul.f32 %v11969_v26, %v4234_v62  ;;  %v8695_v47 = vld [vmem:[%s12098_s30 + $0xf8] sm:$0x1] }
 0x3cf   : > { %v4263_v53 = vadd.f32 %v11967_v45, %v4249_v0  ;;  %v4264_v25 = vadd.f32 %v11967_v45, %v4250_v46  ;;  %v4265_v7 = vadd.f32 %v11967_v45, %v4251_v5  ;;  %v4255_v23 = vmul.f32 %v11962_v34, %v4241_v2 }
 0x3d0   : > { %v4266_v19 = vadd.f32 %v11967_v45, %v4252_v11  ;;  %v4267_v49 = vadd.f32 %v11967_v45, %v4253_v17  ;;  %v4268_v28 = vadd.f32 %v11967_v45, %v4254_v18  ;;  %v4256_v15 = vmul.f32 %v11962_v34, %v4242_v43 }
 0x3d1   : > { %v4271_v48 = vmax.f32 %v4263_v53, 0.0  ;;  %v4272_v41 = vmax.f32 %v4264_v25, 0.0  ;;  %v4273_v37 = vmax.f32 %v4265_v7, 0.0  ;;  %v4269_v9 = vadd.f32 %v11967_v45, %v4255_v23  ;;  %v8697_v7 = vld [vmem:[%s12098_s30 + $0xfc] sm:$0xf] }
 0x3d2   : > { %v4274_v1 = vmax.f32 %v4266_v19, 0.0  ;;  %v4275_v4 = vmax.f32 %v4267_v49, 0.0  ;;  %v4276_v61 = vmax.f32 %v4268_v28, 0.0  ;;  %v4270_v52 = vadd.f32 %v11967_v45, %v4256_v15  ;;  %v8700_v15 = vld [vmem:[%s12098_s30 + $0x104] sm:$0x1] }
 0x3d3   : > { %v9119_v60 = vpack.c.bf16 %v4271_v48, %v4271_v48  ;;  %v9120_v38 = vpack.c.bf16 %v4272_v41, %v4272_v41  ;;  %v9121_v58 = vpack.c.bf16 %v4273_v37, %v4273_v37  ;;  %v4277_v10 = vmax.f32 %v4269_v9, 0.0 }
 0x3d4   : > { %v9122_v6 = vpack.c.bf16 %v4274_v1, %v4274_v1  ;;  %v9123_v44 = vpack.c.bf16 %v4275_v4, %v4275_v4  ;;  %v9124_v8 = vpack.c.bf16 %v4276_v61, %v4276_v61  ;;  %v4278_v37 = vmax.f32 %v4270_v52, 0.0  ;;  %v8702_v4 = vld [vmem:[%s12098_s30 + $0x108] sm:$0xf] }
 0x3d5   : > { %v4307_v22 = vshrl.u32 %v9119_v60, 16  ;;  %v4310_v39 = vshll.u32 %v9119_v60, 16  ;;  %v4315_v42 = vshrl.u32 %v9120_v38, 16  ;;  %v4318_v54 = vshll.u32 %v9120_v38, 16 }
 0x3d6   : > { %v4324_v3 = vshrl.u32 %v9121_v58, 16  ;;  %v4327_v24 = vshll.u32 %v9121_v58, 16  ;;  %v4332_v12 = vshrl.u32 %v9122_v6, 16  ;;  %v4335_v20 = vshll.u32 %v9122_v6, 16 }
 0x3d7   : > { %v4309_v56 = vrot.slane %v4307_v22, 7  ;;  %v4317_v35 = vrot.slane %v4315_v42, 7  ;;  %v4341_v63 = vshrl.u32 %v9123_v44, 16  ;;  %v4344_v31 = vshll.u32 %v9123_v44, 16 }
 0x3d8   : > { %v4326_v27 = vrot.slane %v4324_v3, 7  ;;  %v4334_v13 = vrot.slane %v4332_v12, 7  ;;  %v4349_v17 = vshrl.u32 %v9124_v8, 16  ;;  %v4352_v18 = vshll.u32 %v9124_v8, 16 }
 0x3d9   : > { %v4312_v59 = vor.u32 %v4310_v39, %v4309_v56  ;;  %v4313_v36 = vrot.slane %v4309_v56, 4  ;;  %v4320_v40 = vor.u32 %v4318_v54, %v4317_v35  ;;  %v4322_v14 = vrot.slane %v4317_v35, 4 }
 0x3da   : > { %v4329_v55 = vor.u32 %v4327_v24, %v4326_v27  ;;  %v4330_v30 = vrot.slane %v4326_v27, 4  ;;  %v4343_v50 = vrot.slane %v4341_v63, 7  ;;  %v4337_v53 = vor.u32 %v4335_v20, %v4334_v13  ;;  %v8705_v24 = vld [vmem:[%s12098_s30 + $0x110] sm:$0x1] }
 0x3db   : > { %v4393_v0 = vsel %vm11069_vm7, %v4312_v59, %v8687_v16  ;;  %v4321_v5 = vsel %vm11078_vm8, %v4313_v36, %v4320_v40  ;;  %v4397_v33 = vsel %vm10897_vm2, %v4322_v14, %v8690_v32  ;;  %v4339_v25 = vrot.slane %v4334_v13, 4 }
 0x3dc   : > { %8688 = vst [vmem:[%s12098_s30 + $0xe4] sm:$0xf] %v4393_v0  ;;  %8689 = vst [vmem:[%s12098_s30 + $0xe8] sm:$0xf] %v4321_v5  ;;  %v4400_v62 = vsel %vm11069_vm7, %v4329_v55, %v8692_v51  ;;  %v4346_v11 = vor.u32 %v4344_v31, %v4343_v50  ;;  %v9125_v2 = vpack.c.bf16 %v4277_v10, %v4277_v10  ;;  %v4347_v41 = vrot.slane %v4343_v50, 4 }
 0x3dd   : > { %8691 = vst [vmem:[%s12098_s30 + $0xec] sm:$0x1] %v4397_v33  ;;  %8693 = vst [vmem:[%s12098_s30 + $0xf0] sm:$0xf] %v4400_v62  ;;  %v4338_v43 = vsel %vm11078_vm8, %v4330_v30, %v4337_v53  ;;  %v4404_v48 = vsel %vm10897_vm2, %v4339_v25, %v8695_v47  ;;  %v4351_v49 = vrot.slane %v4349_v17, 7  ;;  %v9126_v60 = vpack.c.bf16 %v4278_v37, %v4278_v37 }
 0x3de   : > { %8694 = vst [vmem:[%s12098_s30 + $0xf4] sm:$0xf] %v4338_v43  ;;  %8696 = vst [vmem:[%s12098_s30 + $0xf8] sm:$0x1] %v4404_v48  ;;  %v4407_v19 = vsel %vm11069_vm7, %v4346_v11, %v8697_v7  ;;  %v4358_v28 = vshrl.u32 %v9125_v2, 16  ;;  %v4361_v23 = vshll.u32 %v9125_v2, 16 }
 0x3df   : > { %8698 = vst [vmem:[%s12098_s30 + $0xfc] sm:$0xf] %v4407_v19  ;;  %v4354_v38 = vor.u32 %v4352_v18, %v4351_v49  ;;  %v4356_v58 = vrot.slane %v4351_v49, 4  ;;  %v4366_v61 = vshrl.u32 %v9126_v60, 16  ;;  %v4369_v9 = vshll.u32 %v9126_v60, 16 }
 0x3e0   : > { %v4360_v1 = vrot.slane %v4358_v28, 7  ;;  %v12147_v35 = vmov (%p4211_p8), 0.0  }
 0x3e1   : > { %v4355_v52 = vsel %vm11078_vm8, %v4347_v41, %v4354_v38  ;;  %v4411_v22 = vsel %vm10897_vm2, %v4356_v58, %v8700_v15  ;;  %v4368_v54 = vrot.slane %v4366_v61, 7 }
 0x3e2   : > { %v4363_v39 = vor.u32 %v4361_v23, %v4360_v1  ;;  %8699 = vst [vmem:[%s12098_s30 + $0x100] sm:$0xf] %v4355_v52  ;;  %8701 = vst [vmem:[%s12098_s30 + $0x104] sm:$0x1] %v4411_v22  ;;  %v4364_v42 = vrot.slane %v4360_v1, 4  ;;  %4213 = sbr.rel (!%p4211_p8) target bundleno = 966 (0x3c6), region = 276 }
 0x3e3   : > { %v4371_v6 = vor.u32 %v4369_v9, %v4368_v54  ;;  %v4373_v44 = vrot.slane %v4368_v54, 4 }
 0x3e4   : > { %v4414_v3 = vsel %vm11069_vm7, %v4363_v39, %v8702_v4 }
 0x3e5   : > { %8703 = vst [vmem:[%s12098_s30 + $0x108] sm:$0xf] %v4414_v3  ;;  %v4372_v56 = vsel %vm11078_vm8, %v4364_v42, %v4371_v6  ;;  %v4418_v16 = vsel %vm10897_vm2, %v4373_v44, %v8705_v24 }
 0x3e6   : > { %8704 = vst [vmem:[%s12098_s30 + $0x10c] sm:$0xf] %v4372_v56  ;;  %8706 = vst [vmem:[%s12098_s30 + $0x110] sm:$0x1] %v4418_v16 }
 0x3e7 LB: > { %13111 = vst [vmem:[#allocation23_spill] sm:$0xff] %v10796_v35  ;;  %v10402_v8 = vld [vmem:[#allocation8 + $0x138] sm:$0xff]   ;;  %v10405_v27 = vld [vmem:[#allocation8 + $0x130] sm:$0xff]   ;;  %v10408_v34 = vld [vmem:[#allocation8 + $0x128] sm:$0xff]   ;;  %s9127_s9 = smul.u32 48, %s10800_s8  ;;  %s9128_s13 = sshll.u32 %s10800_s8, 6  ;;  %s10800_s8 = sphi %s12149_s8, %s4425_s8   ;;  %v10796_v35 = vphi %v12147_v35, %v13119_v35  }
 0x3e8   : > { %v10403_v10 = vld [vmem:[#allocation8 + $0xf8] sm:$0xff]   ;;  %9447 = vmatprep.subr.bf16.mxu0 %v10402_v8  ;;  %v10406_v12 = vld [vmem:[#allocation8 + $0xf0] sm:$0xff]   ;;  %v10409_v45 = vld [vmem:[#allocation8 + $0xe8] sm:$0xff]   ;;  %s12464_s14 = scalar_lea.vmem [#allocation9], %s9128_s13  ;;  %s4425_s8 = sadd.s32 1, %s10800_s8  }
 0x3e9   : > { %v10404_v32 = vld [vmem:[#allocation8 + $0x178] sm:$0xff]   ;;  %9448 = vmatpush3.bf16.msra.mxu0 %v10403_v10  ;;  %v10407_v57 = vld [vmem:[#allocation8 + $0x170] sm:$0xff]   ;;  %v10410_v26 = vld [vmem:[#allocation8 + $0x168] sm:$0xff]   ;;  %s12158_s10 = scalar_lea.vmem [#allocation2], %s9127_s9  ;;  %p4422_p9 = scmp.ge.s32.totalorder %s4425_s8, 4  }
 0x3ea   : > { %9903 = vmatprep.subr.bf16.mxu1 %v10404_v32  ;;  %9449 = vmatprep.subr.bf16.mxu0 %v10405_v27  ;;  %v10411_v20 = vld [vmem:[#allocation8 + $0x120] sm:$0xff]   ;;  %v10414_v36 = vld [vmem:[#allocation8 + $0x118] sm:$0xff]   ;;  %v10417_v51 = vld [vmem:[#allocation8 + $0x110] sm:$0xff]   ;;  %s12504_s1 = smov (%p4422_p9), 0  }
 0x3eb   : > { %9904 = vmatpush3.bf16.msra.mxu1 %v10404_v32  ;;  %v10412_v63 = vld [vmem:[#allocation8 + $0xe0] sm:$0xff]   ;;  %v10416_v40 = vld [vmem:[#allocation8 + $0x158] sm:$0xff]   ;;  %v10419_v55 = vld [vmem:[#allocation8 + $0x150] sm:$0xff]  }
 0x3ec   : > { %9905 = vmatprep.subr.bf16.mxu1 %v10407_v57  ;;  %v10413_v59 = vld [vmem:[#allocation8 + $0x160] sm:$0xff]   ;;  %v10415_v14 = vld [vmem:[#allocation8 + $0xd8] sm:$0xff]   ;;  %v10418_v30 = vld [vmem:[#allocation8 + $0xd0] sm:$0xff]  }
 0x3ed   : > { %9450 = vmatpush3.bf16.msra.mxu0 %v10406_v12  ;;  %v10420_v13 = vld [vmem:[#allocation8 + $0x108] sm:$0xff]   ;;  %v10423_v0 = vld [vmem:[#allocation8 + $0x100] sm:$0xff]   ;;  %v12161_v46 = vld [vmem:[%s12158_s10 + $0xc] sm:$0xf] }
 0x3ee   : > { %9451 = vmatprep.subr.bf16.mxu0 %v10408_v34  ;;  %v10421_v50 = vld [vmem:[#allocation8 + $0xc8] sm:$0xff]   ;;  %v12164_v5 = vld [vmem:[%s12158_s10 + $0x10] sm:$0xf]  ;;  %v8736_v29 = vld [vmem:[%s12158_s10 + $0x14] sm:$0x1]  ;;  %v4706_v47 = vshrl.u32 %v12161_v46, 16 }
 0x3ef   : > { %9906 = vmatpush3.bf16.msra.mxu1 %v10407_v57  ;;  %v10422_v21 = vld [vmem:[#allocation8 + $0x148] sm:$0xff]   ;;  %v10424_v33 = vld [vmem:[#allocation8 + $0xc0] sm:$0xff]   ;;  %v4709_v31 = vshll.u32 %v12161_v46, 16  ;;  %v4715_v62 = vshll.u32 %v12164_v5, 16  ;;  %v4719_v53 = vshrl.u32 %v12164_v5, 16  ;;  %v4725_v7 = vshll.u32 %v8736_v29, 16 }
 0x3f0   : > { %9907 = vmatprep.subr.bf16.mxu1 %v10410_v26  ;;  %v10425_v25 = vld [vmem:[#allocation8 + $0x140] sm:$0xff]   ;;  %v8740_v11 = vld [vmem:[%s12158_s10 + $0xc] sm:$0xe]  ;;  %v4708_v17 = vrot.slane %v4706_v47, 4  ;;  %v4819_v37 = vrot.slane %v12164_v5, 5  ;;  %v4822_v19 = vrot.slane %v8736_v29, 5  ;;  %v8748_v54 = vcombine.low %v12161_v46, %v12164_v5 }
 0x3f1   : > { %9452 = vmatpush3.bf16.msra.mxu0 %v10409_v45  ;;  %v4711_v18 = vrot.slane %v4709_v31, 5  ;;  %v4717_v2 = vrot.slane %v4715_v62, 5  ;;  %v4721_v43 = vrot.slane %v4719_v53, 4  ;;  %v10427_v48 = vld [vmem:[#allocation8 + $0x78] sm:$0xff]   ;;  %v8744_v41 = vrot.slane %v8740_v11, 9  ;;  %v10430_v32 = vld [vmem:[#allocation8 + $0x70] sm:$0xff]  }
 0x3f2   : > { %9453 = vmatprep.subr.bf16.mxu0 %v10411_v20  ;;  %v4727_v23 = vrot.slane %v4725_v7, 5  ;;  %v12174_v15 = vld [vmem:[%s12158_s10 + $0x1c] sm:$0xf]  ;;  %v8737_v60 = vld [vmem:[%s12158_s10 + $0x20] sm:$0x1]  ;;  %v4821_v1 = vrot.slane %v4819_v37, 4 }
 0x3f3   : > { %9908 = vmatpush3.bf16.msra.mxu1 %v10410_v26  ;;  %v4712_v49 = vor.u32 %v4711_v18, %v4708_v17  ;;  %v4722_v28 = vor.u32 %v4721_v43, %v4717_v2  ;;  %v4820_v58 = vsel %vm11222_vm13, %v8744_v41, %v4819_v37  ;;  %v8741_v4 = vld [vmem:[%s12158_s10 + $0x18] sm:$0xe]  ;;  %v4826_v61 = vrot.slane %v12174_v15, 5  ;;  %v10429_v52 = vld [vmem:[#allocation8 + $0xb8] sm:$0xff]   ;;  %v10432_v57 = vld [vmem:[#allocation8 + $0xb0] sm:$0xff]  }
 0x3f4   : > { %9909 = vmatprep.subr.bf16.mxu1 %v10413_v59  ;;  %v4829_v9 = vrot.slane %v8737_v60, 5  ;;  %v8745_v42 = vrot.slane %v8741_v4, 9  ;;  %v4823_v3 = vsel %vm11222_vm13, %v4821_v1, %v4822_v19  ;;  %v10428_v24 = vld [vmem:[#allocation8 + $0x38] sm:$0xff]   ;;  %v4739_v34 = vshll.u32 %v12174_v15, 16  ;;  %v8730_v26 = vld [vmem:[%s12158_s10 + $0x18] sm:$0xf] }
 0x3f5   : > { %9454 = vmatpush3.bf16.msra.mxu0 %v10412_v63  ;;  %v4713_v22 = vrot.slane %v4712_v49, 4  ;;  %v4723_v39 = vrot.slane %v4722_v28, 4  ;;  %v4828_v6 = vrot.slane %v4826_v61, 4  ;;  %v8756_v8 = vcombine.low %v4820_v58, %v4823_v3  ;;  %v10435_v29 = vld [vmem:[#allocation8 + $0x28] sm:$0xff]   ;;  %v10437_v47 = vld [vmem:[#allocation8 + $0x60] sm:$0xff]  }
 0x3f6   : > { %9455 = vmatprep.subr.bf16.mxu0 %v10414_v36  ;;  %v4827_v10 = vsel %vm11222_vm13, %v8745_v42, %v4826_v61  ;;  %v4743_v20 = vshrl.u32 %v12174_v15, 16  ;;  %v4749_v63 = vshll.u32 %v8737_v60, 16  ;;  %v4730_v36 = vshrl.u32 %v8730_v26, 16  ;;  %v12197_v31 = vld [vmem:[%s12158_s10 + $0x24] sm:$0xf]  ;;  %v10441_v60 = vld [vmem:[#allocation8 + $0x58] sm:$0xff]  }
 0x3f7   : > { %9910 = vmatpush3.bf16.msra.mxu1 %v10413_v59  ;;  %v4718_v56 = vsel %vm11228_vm14, %v4713_v22, %v4717_v2  ;;  %v4728_v16 = vsel %vm11228_vm14, %v4723_v39, %v4727_v23  ;;  %v4830_v12 = vsel %vm11222_vm13, %v4828_v6, %v4829_v9  ;;  %9919 = vmatprep.mubr.bf16.mxu1 %v8756_v8  ;;  %v10431_v59 = vld [vmem:[#allocation8 + $0x30] sm:$0xff]   ;;  %v12200_v62 = vld [vmem:[%s12158_s10 + $0x28] sm:$0xf]  ;;  %v8738_v7 = vld [vmem:[%s12158_s10 + $0x2c] sm:$0x1]  ;;  %v4754_v11 = vshrl.u32 %v12197_v31, 16 }
 0x3f8   : > { %9911 = vmatprep.subr.bf16.mxu1 %v10416_v40  ;;  %v8752_v27 = vcombine.low %v4718_v56, %v4728_v16  ;;  %v8757_v45 = vcombine.low %v4827_v10, %v4830_v12  ;;  %v4757_v17 = vshll.u32 %v12197_v31, 16  ;;  %v4763_v18 = vshll.u32 %v12200_v62, 16  ;;  %v8742_v58 = vld [vmem:[%s12158_s10 + $0x24] sm:$0xe]  ;;  %v12215_v22 = vld [vmem:[%s12158_s10 + $0x34] sm:$0xf] }
 0x3f9   : > { %9456 = vmatpush3.bf16.msra.mxu0 %v10415_v14  ;;  %v4741_v14 = vrot.slane %v4739_v34, 5  ;;  %v8749_v43 = vcombine.low %v8730_v26, %v12174_v15  ;;  %v4767_v41 = vshrl.u32 %v12200_v62, 16  ;;  %v4773_v37 = vshll.u32 %v8738_v7, 16  ;;  %v10443_v39 = vld [vmem:[#allocation8 + $0x98] sm:$0xff]   ;;  %v8743_v6 = vld [vmem:[%s12158_s10 + $0x30] sm:$0xe] }
 0x3fa   : > { %9457 = vmatprep.subr.bf16.mxu0 %v10417_v51  ;;  %5122 = vmatprep.mubr.bf16.mxu0 %v8752_v27  ;;  %v4745_v51 = vrot.slane %v4743_v20, 4  ;;  %v4756_v49 = vrot.slane %v4754_v11, 4  ;;  %v4759_v28 = vrot.slane %v4757_v17, 5  ;;  %v4765_v23 = vrot.slane %v4763_v18, 5  ;;  %v10442_v8 = vld [vmem:[#allocation8 + $0x18] sm:$0xff]   ;;  %v10449_v11 = vld [vmem:[#allocation8 + $0x8] sm:$0xff]  }
 0x3fb   : > { %9912 = vmatpush3.bf16.msra.mxu1 %v10416_v40  ;;  %v4733_v40 = vshll.u32 %v8730_v26, 16  ;;  %v4769_v1 = vrot.slane %v4767_v41, 4  ;;  %v4775_v4 = vrot.slane %v4773_v37, 5  ;;  %v8746_v61 = vrot.slane %v8742_v58, 9  ;;  %v10451_v18 = vld [vmem:[#allocation8 + $0x40] sm:$0xff]  }
 0x3fc   : > { %9913 = vmatprep.subr.bf16.mxu1 %v10419_v55  ;;  %v4833_v15 = vrot.slane %v12200_v62, 5  ;;  %v4760_v9 = vor.u32 %v4759_v28, %v4756_v49  ;;  %v4840_v56 = vrot.slane %v12215_v22, 5  ;;  %v8747_v10 = vrot.slane %v8743_v6, 9  ;;  %v4439_v49 = vld [vmem:[%s12158_s10 + $0x8] sm:$0x1]  ;;  %v10452_v58 = vld [vmem:[#allocation8] sm:$0xff]  }
 0x3fd   : > { %9458 = vmatpush3.bf16.msra.mxu0 %v10418_v30  ;;  %v4732_v30 = vrot.slane %v4730_v36, 4  ;;  %v4770_v42 = vor.u32 %v4769_v1, %v4765_v23  ;;  %v10444_v36 = vld [vmem:[#allocation8 + $0x50] sm:$0xff]  }
 0x3fe   : > { %9459 = vmatprep.subr.bf16.mxu0 %v10420_v13  ;;  %v4735_v13 = vrot.slane %v4733_v40, 5  ;;  %v4835_v3 = vrot.slane %v4833_v15, 4  ;;  %v4761_v16 = vrot.slane %v4760_v9, 4  ;;  %v4841_v26 = vsel %vm11222_vm13, %v8747_v10, %v4840_v56  ;;  %v10457_v10 = vld [vmem:[#allocation8 + $0x238] sm:$0xff]  }
 0x3ff   : > { %9914 = vmatpush3.bf16.msra.mxu1 %v10419_v55  ;;  %v10434_v55 = vld [vmem:[#allocation8 + $0x68] sm:$0xff]   ;;  %v4771_v27 = vrot.slane %v4770_v42, 4  ;;  %v4787_v40 = vshll.u32 %v12215_v22, 16 }
 0x400   : > { %9915 = vmatprep.subr.bf16.mxu1 %v10422_v21  ;;  %v4736_v46 = vor.u32 %v4735_v13, %v4732_v30  ;;  %v4766_v34 = vsel %vm11228_vm14, %v4761_v16, %v4765_v23  ;;  %v8734_v30 = vld [vmem:[%s12158_s10 + $0x30] sm:$0xf]  ;;  %v4791_v13 = vshrl.u32 %v12215_v22, 16 }
 0x401   : > { %9460 = vmatpush3.bf16.msra.mxu0 %v10421_v50  ;;  %v4751_v50 = vrot.slane %v4749_v63, 5  ;;  %v4776_v20 = vsel %vm11228_vm14, %v4771_v27, %v4775_v4  ;;  %v8750_v63 = vcombine.low %v12197_v31, %v12200_v62  ;;  %v8751_v37 = vcombine.low %v8734_v30, %v12215_v22 }
 0x402   : > { %9461 = vmatprep.subr.bf16.mxu0 %v10423_v0  ;;  %v4746_v0 = vor.u32 %v4745_v51, %v4741_v14 }
 0x403   : > { %9916 = vmatpush3.bf16.msra.mxu1 %v10422_v21  ;;  %v10436_v21 = vld [vmem:[#allocation8 + $0xa8] sm:$0xff]  }
 0x404   : > { %9917 = vmatprep.subr.bf16.mxu1 %v10425_v25  ;;  %v4747_v5 = vrot.slane %v4746_v0, 4  ;;  %v4778_v0 = vshrl.u32 %v8734_v30, 16 }
 0x405   : > { %9462 = vmatpush3.bf16.msra.mxu0 %v10424_v33  ;;  %v4737_v33 = vrot.slane %v4736_v46, 4  ;;  %v4781_v46 = vshll.u32 %v8734_v30, 16 }
 0x406   : > { %9499 = vmatprep.subr.bf16.mxu0 %v10427_v48  ;;  %v4752_v53 = vsel %vm11228_vm14, %v4747_v5, %v4751_v50  ;;  %v10438_v48 = vld [vmem:[#allocation8 + $0x20] sm:$0xff]   ;;  %v4789_v5 = vrot.slane %v4787_v40, 5  ;;  %v10456_v40 = vld [vmem:[#allocation8 + $0x1b8] sm:$0xff]  }
 0x407   : > { %9918 = vmatpush3.bf16.msra.mxu1 %v10425_v25  ;;  %v10439_v25 = vld [vmem:[#allocation8 + $0xa0] sm:$0xff]   ;;  %v4742_v2 = vsel %vm11228_vm14, %v4737_v33, %v4741_v14  ;;  %v8754_v14 = vcombine.low %v4766_v34, %v4776_v20  ;;  %v10448_v33 = vld [vmem:[#allocation8 + $0x48] sm:$0xff]   ;;  %v4783_v31 = vrot.slane %v4781_v46, 5  ;;  %v4543_v34 = vld [vmem:[%s12158_s10 + $0xc] sm:$0xe] }
 0x408   : > { %9927 = vmatprep.subr.bf16.mxu1 %v10429_v52  ;;  %5123 = vmatmul.mubr.bf16.vlgmr.msra.gmra.mxu0 %v8748_v54  ;;  %v8753_v19 = vcombine.low %v4742_v2, %v4752_v53  ;;  %v4834_v54 = vsel %vm11222_vm13, %v8746_v61, %v4833_v15  ;;  %v4466_v61 = vshll.u32 %v4439_v49, 16  ;;  %v8711_v20 = vrot.slane %v4543_v34, 9  ;;  %v4433_v46 = vld [vmem:[%s12158_s10 + $0xc] sm:$0xf] }
 0x409   : > { %9500 = vmatpush3.bf16.msra.mxu0 %v10428_v24  ;;  %v8739_v24 = vld [vmem:[%s12158_s10 + $0x38] sm:$0x1] }
 0x40a   : > { %9920 = vmatmul.mubr.bf16.vlgmr.msra.gmra.mxu1 %v8757_v45  ;;  %9501 = vmatprep.subr.bf16.mxu0 %v10430_v32  ;;  %v4843_v32 = vrot.slane %v8739_v24, 5  ;;  %v4797_v50 = vshll.u32 %v8739_v24, 16  ;;  %v4468_v42 = vrot.slane %v4466_v61, 5  ;;  %v4542_v24 = vld [vmem:[%s12158_s10] sm:$0xe] }
 0x40b   : > { %9928 = vmatpush3.bf16.msra.mxu1 %v10429_v52  ;;  %5130 = vmatprep.mubr.bf16.mxu0 %v8753_v19  ;;  %v4836_v52 = vrot.slane %v8738_v7, 5  ;;  %v12244_v19 = vld [vmem:[%s12158_s10 + $0x4] sm:$0xf]  ;;  %v12285_v61 = vld [vmem:[%s12158_s10 + $0x1c] sm:$0xf] }
 0x40c   : > { %9929 = vmatprep.subr.bf16.mxu1 %v10432_v57  ;;  %v4799_v53 = vrot.slane %v4797_v50, 5  ;;  %v4456_v1 = vshll.u32 %v12244_v19, 16  ;;  %v4460_v4 = vshrl.u32 %v12244_v19, 16  ;;  %v4563_v6 = vrot.slane %v12244_v19, 5 }
 0x40d   : > { %9502 = vmatpush3.bf16.msra.mxu0 %v10431_v59  ;;  %v4837_v12 = vsel %vm11222_vm13, %v4835_v3, %v4836_v52  ;;  %v4577_v34 = vrot.slane %v12285_v61, 5 }
 0x40e   : > { %9503 = vmatprep.subr.bf16.mxu0 %v10434_v55  ;;  %v8758_v45 = vcombine.low %v4834_v54, %v4837_v12  ;;  %v10446_v55 = vld [vmem:[#allocation8 + $0x90] sm:$0xff]   ;;  %v4458_v22 = vrot.slane %v4456_v1, 5  ;;  %v10455_v54 = vld [vmem:[#allocation8 + $0x1f8] sm:$0xff]   ;;  %v4565_v12 = vrot.slane %v4563_v6, 4  ;;  %v10465_v1 = vld [vmem:[#allocation8 + $0x1e0] sm:$0xff]  }
 0x40f   : > { %9930 = vmatpush3.bf16.msra.mxu1 %v10432_v57  ;;  %v4842_v57 = vrot.slane %v4840_v56, 4  ;;  %v4566_v56 = vrot.slane %v4439_v49, 5  ;;  %v10464_v49 = vld [vmem:[#allocation8 + $0x228] sm:$0xff]  }
 0x410   : > { %9931 = vmatprep.subr.bf16.mxu1 %v10436_v21  ;;  %5131 = vmatmul.mubr.bf16.gmra.mxu0 %v8749_v43  ;;  %v10453_v43 = vld [vmem:[#allocation8 + $0x80] sm:$0xff]  }
 0x411   : > { %9504 = vmatpush3.bf16.msra.mxu0 %v10435_v29  ;;  %v4844_v59 = vsel %vm11222_vm13, %v4842_v57, %v4843_v32  ;;  %9923 = vmatprep.mubr.bf16.mxu1 %v8758_v45  ;;  %v4793_v29 = vrot.slane %v4791_v13, 4  ;;  %v12256_v32 = vld [vmem:[%s12158_s10 + $0x10] sm:$0xf]  ;;  %v4440_v57 = vld [vmem:[%s12158_s10 + $0x14] sm:$0x1] }
 0x412   : > { %9505 = vmatprep.subr.bf16.mxu0 %v10437_v47  ;;  %v8759_v51 = vcombine.low %v4841_v26, %v4844_v59  ;;  %5138 = vmatprep.mubr.bf16.mxu0 %v8754_v14  ;;  %v4780_v47 = vrot.slane %v4778_v0, 4  ;;  %v4567_v14 = vsel %vm11222_vm13, %v4565_v12, %v4566_v56  ;;  %v10469_v12 = vld [vmem:[#allocation8 + $0x1d8] sm:$0xff]  }
 0x413   : > { %9932 = vmatpush3.bf16.msra.mxu1 %v10436_v21  ;;  %v10445_v21 = vld [vmem:[#allocation8 + $0x10] sm:$0xff]   ;;  %v4794_v62 = vor.u32 %v4793_v29, %v4789_v5  ;;  %v4484_v29 = vshrl.u32 %v12256_v32, 16 }
 0x414   : > { %9933 = vmatprep.subr.bf16.mxu1 %v10439_v25  ;;  %9924 = vmatmul.mubr.bf16.gmra.mxu1 %v8759_v51  ;;  %v4784_v7 = vor.u32 %v4783_v31, %v4780_v47  ;;  %v4573_v51 = vrot.slane %v4440_v57, 5  ;;  %v10460_v47 = vld [vmem:[#allocation8 + $0x230] sm:$0xff]   ;;  %v4471_v31 = vshrl.u32 %v4433_v46, 16 }
 0x415   : > { %9506 = vmatpush3.bf16.msra.mxu0 %v10438_v48  ;;  %v4795_v17 = vrot.slane %v4794_v62, 4  ;;  %v12238_v48 = vld [vmem:[%s12158_s10] sm:$0xf]  ;;  %v4474_v62 = vshll.u32 %v4433_v46, 16 }
 0x416   : > { %9507 = vmatprep.subr.bf16.mxu0 %v10441_v60  ;;  %v4785_v2 = vrot.slane %v4784_v7, 4  ;;  %v4447_v28 = vshrl.u32 %v12238_v48, 16  ;;  %v4450_v23 = vshll.u32 %v12238_v48, 16 }
 0x417   : > { %9934 = vmatpush3.bf16.msra.mxu1 %v10439_v25  ;;  %v10450_v25 = vld [vmem:[#allocation8 + $0x88] sm:$0xff]   ;;  %v4800_v41 = vsel %vm11228_vm14, %v4795_v17, %v4799_v53  ;;  %v4490_v53 = vshll.u32 %v4440_v57, 16  ;;  %v4473_v17 = vrot.slane %v4471_v31, 4 }
 0x418   : > { %9935 = vmatprep.subr.bf16.mxu1 %v10443_v39  ;;  %5139 = vmatmul.mubr.bf16.gmra.mxu0 %v8750_v63  ;;  %v4790_v60 = vsel %vm11228_vm14, %v4785_v2, %v4789_v5  ;;  %v4449_v9 = vrot.slane %v4447_v28, 4  ;;  %v4452_v52 = vrot.slane %v4450_v23, 5  ;;  %v4570_v63 = vrot.slane %v12256_v32, 5  ;;  %v10459_v2 = vld [vmem:[#allocation8 + $0x1b0] sm:$0xff]   ;;  %v10463_v23 = vld [vmem:[#allocation8 + $0x1a8] sm:$0xff]  }
 0x419   : > { %9508 = vmatpush3.bf16.msra.mxu0 %v10442_v8  ;;  %v8755_v15 = vcombine.low %v4790_v60, %v4800_v41  ;;  %v8710_v8 = vrot.slane %v4542_v24, 9  ;;  %v4480_v5 = vshll.u32 %v12256_v32, 16  ;;  %v4544_v57 = vld [vmem:[%s12158_s10 + $0x18] sm:$0xe] }
 0x41a   : > { %9509 = vmatprep.subr.bf16.mxu0 %v10444_v36  ;;  %v4453_v3 = vor.u32 %v4452_v52, %v4449_v9  ;;  %v8714_v36 = vcombine.low %v12238_v48, %v12244_v19  ;;  %v4571_v13 = vsel %vm11222_vm13, %v8711_v20, %v4570_v63  ;;  %v4572_v50 = vrot.slane %v4570_v63, 4  ;;  %v10467_v52 = vld [vmem:[#allocation8 + $0x220] sm:$0xff]   ;;  %v10470_v20 = vld [vmem:[#allocation8 + $0x198] sm:$0xff]  }
 0x41b   : > { %9936 = vmatpush3.bf16.msra.mxu1 %v10443_v39  ;;  %v4462_v39 = vrot.slane %v4460_v4, 4  ;;  %5146 = vmatprep.mubr.bf16.mxu0 %v8755_v15  ;;  %v4564_v26 = vsel %vm11222_vm13, %v8710_v8, %v4563_v6  ;;  %v4482_v7 = vrot.slane %v4480_v5, 5  ;;  %v4492_v48 = vrot.slane %v4490_v53, 5  ;;  %v12282_v4 = vld [vmem:[%s12158_s10 + $0x18] sm:$0xf]  ;;  %v10466_v8 = vld [vmem:[#allocation8 + $0x1a0] sm:$0xff]  }
 0x41c   : > { %9937 = vmatprep.subr.bf16.mxu1 %v10446_v55  ;;  %v4454_v27 = vrot.slane %v4453_v3, 4  ;;  %v8722_v30 = vcombine.low %v4564_v26, %v4567_v14  ;;  %v4441_v15 = vld [vmem:[%s12158_s10 + $0x20] sm:$0x1]  ;;  %v4508_v3 = vshrl.u32 %v12285_v61, 16  ;;  %v10471_v63 = vld [vmem:[#allocation8 + $0x218] sm:$0xff]  }
 0x41d   : > { %9510 = vmatpush3.bf16.msra.mxu0 %v10445_v21  ;;  %v4463_v16 = vor.u32 %v4462_v39, %v4458_v22  ;;  %v10458_v21 = vld [vmem:[#allocation8 + $0x1f0] sm:$0xff]   ;;  %v4498_v39 = vshll.u32 %v12282_v4, 16  ;;  %v4514_v24 = vshll.u32 %v4441_v15, 16 }
 0x41e   : > { %9511 = vmatprep.subr.bf16.mxu0 %v10448_v33  ;;  %v4459_v59 = vsel %vm11228_vm14, %v4454_v27, %v4458_v22  ;;  %9943 = vmatprep.mubr.bf16.mxu1 %v8722_v30  ;;  %v4574_v33 = vsel %vm11222_vm13, %v4572_v50, %v4573_v51  ;;  %v4495_v22 = vshrl.u32 %v12282_v4, 16  ;;  %v4579_v51 = vrot.slane %v4577_v34, 4 }
 0x41f   : > { %9938 = vmatpush3.bf16.msra.mxu1 %v10446_v55  ;;  %v4464_v45 = vrot.slane %v4463_v16, 4  ;;  %v4500_v56 = vrot.slane %v4498_v39, 5  ;;  %v4516_v27 = vrot.slane %v4514_v24, 5 }
 0x420   : > { %9939 = vmatprep.subr.bf16.mxu1 %v10450_v25  ;;  %5147 = vmatmul.mubr.bf16.gmra.mxu0 %v8751_v37  ;;  %v10462_v37 = vld [vmem:[#allocation8 + $0x1e8] sm:$0xff]   ;;  %v4497_v6 = vrot.slane %v4495_v22, 4  ;;  %v10479_v22 = vld [vmem:[#allocation8 + $0x1c0] sm:$0xff]  }
 0x421   : > { %9512 = vmatpush3.bf16.msra.mxu0 %v10449_v11  ;;  %v4469_v55 = vsel %vm11228_vm14, %v4464_v45, %v4468_v42  ;;  %v4486_v11 = vrot.slane %v4484_v29, 4  ;;  %v4504_v42 = vshll.u32 %v12285_v61, 16  ;;  %v4580_v45 = vrot.slane %v4441_v15, 5 }
 0x422   : > { %9513 = vmatprep.subr.bf16.mxu0 %v10451_v18  ;;  %v8718_v0 = vcombine.low %v4459_v59, %v4469_v55  ;;  %v4476_v18 = vrot.slane %v4474_v62, 5  ;;  %v8712_v59 = vrot.slane %v4544_v57, 9  ;;  %v4545_v55 = vld [vmem:[%s12158_s10 + $0x24] sm:$0xe]  ;;  %v8716_v62 = vcombine.low %v12282_v4, %v12285_v61  ;;  %v8822_v57 = vld [vmem:[%s12158_s10 + $0x18] sm:$0xe] }
 0x423   : > { %9940 = vmatpush3.bf16.msra.mxu1 %v10450_v25  ;;  %v8723_v25 = vcombine.low %v4571_v13, %v4574_v33  ;;  %v4506_v16 = vrot.slane %v4504_v42, 5  ;;  %v4581_v5 = vsel %vm11222_vm13, %v4579_v51, %v4580_v45  ;;  %v10472_v33 = vld [vmem:[#allocation8 + $0x1d0] sm:$0xff]   ;;  %v10481_v42 = vld [vmem:[#allocation8 + $0x200] sm:$0xff]   ;;  %v8826_v51 = vrot.slane %v8822_v57, 9 }
 0x424   : > { %9941 = vmatprep.subr.bf16.mxu1 %v10453_v43  ;;  %5396 = vmatprep.mubr.bf16.mxu0 %v8718_v0  ;;  %v4477_v41 = vor.u32 %v4476_v18, %v4473_v17  ;;  %v8713_v0 = vrot.slane %v4545_v55, 9 }
 0x425   : > { %9514 = vmatpush3.bf16.msra.mxu0 %v10452_v58  ;;  %v8715_v58 = vcombine.low %v4433_v46, %v12256_v32  ;;  %v4501_v32 = vor.u32 %v4500_v56, %v4497_v6  ;;  %v8818_v6 = vld [vmem:[%s12158_s10 + $0x20] sm:$0x1] }
 0x426   : > { %9551 = vmatprep.subr.bf16.mxu0 %v10455_v54  ;;  %v4478_v28 = vrot.slane %v4477_v41, 4 }
 0x427   : > { %9942 = vmatpush3.bf16.msra.mxu1 %v10453_v43  ;;  %v4487_v43 = vor.u32 %v4486_v11, %v4482_v7  ;;  %v4502_v14 = vrot.slane %v4501_v32, 4 }
 0x428   : > { %9951 = vmatprep.subr.bf16.mxu1 %v10457_v10  ;;  %5397 = vmatmul.mubr.bf16.vlgmr.msra.gmra.mxu0 %v8714_v36  ;;  %v4483_v9 = vsel %vm11228_vm14, %v4478_v28, %v4482_v7  ;;  %v12297_v36 = vld [vmem:[%s12158_s10 + $0x28] sm:$0xf]  ;;  %v12315_v7 = vld [vmem:[%s12158_s10 + $0x24] sm:$0xf] }
 0x429   : > { %9552 = vmatpush3.bf16.msra.mxu0 %v10456_v40  ;;  %v4488_v19 = vrot.slane %v4487_v43, 4  ;;  %v4442_v40 = vld [vmem:[%s12158_s10 + $0x2c] sm:$0x1]  ;;  %v4584_v30 = vrot.slane %v12297_v36, 5  ;;  %v4507_v46 = vsel %vm11228_vm14, %v4502_v14, %v4506_v16  ;;  %v4519_v18 = vshrl.u32 %v12315_v7, 16 }
 0x42a   : > { %9944 = vmatmul.mubr.bf16.vlgmr.msra.gmra.mxu1 %v8723_v25  ;;  %9553 = vmatprep.subr.bf16.mxu0 %v10458_v21  ;;  %v4587_v13 = vrot.slane %v4442_v40, 5  ;;  %v4578_v21 = vsel %vm11222_vm13, %v8712_v59, %v4577_v34  ;;  %v4528_v41 = vshll.u32 %v12297_v36, 16  ;;  %v8717_v32 = vcombine.low %v12315_v7, %v12297_v36  ;;  %v12342_v34 = vld [vmem:[%s12158_s10 + $0x28] sm:$0xf] }
 0x42b   : > { %9952 = vmatpush3.bf16.msra.mxu1 %v10457_v10  ;;  %v4493_v60 = vsel %vm11228_vm14, %v4488_v19, %v4492_v48  ;;  %v4510_v10 = vrot.slane %v4508_v3, 4  ;;  %v4586_v29 = vrot.slane %v4584_v30, 4  ;;  %v8724_v53 = vcombine.low %v4578_v21, %v4581_v5  ;;  %v10473_v48 = vld [vmem:[#allocation8 + $0x190] sm:$0xff]   ;;  %v12327_v3 = vld [vmem:[%s12158_s10 + $0x1c] sm:$0xf] }
 0x42c   : > { %9953 = vmatprep.subr.bf16.mxu1 %v10460_v47  ;;  %v8719_v54 = vcombine.low %v4483_v9, %v4493_v60  ;;  %v4585_v25 = vsel %vm11222_vm13, %v8713_v0, %v4584_v30  ;;  %v4538_v19 = vshll.u32 %v4442_v40, 16  ;;  %v4530_v60 = vrot.slane %v4528_v41, 5  ;;  %v10477_v9 = vld [vmem:[#allocation8 + $0x188] sm:$0xff]   ;;  %v8819_v40 = vld [vmem:[%s12158_s10 + $0x2c] sm:$0x1] }
 0x42d   : > { %9554 = vmatpush3.bf16.msra.mxu0 %v10459_v2  ;;  %v4511_v26 = vor.u32 %v4510_v10, %v4506_v16  ;;  %v4588_v17 = vsel %vm11222_vm13, %v4586_v29, %v4587_v13  ;;  %v4522_v2 = vshll.u32 %v12315_v7, 16  ;;  %9947 = vmatprep.mubr.bf16.mxu1 %v8724_v53  ;;  %v5624_v55 = vrot.slane %v12327_v3, 5  ;;  %v8823_v30 = vld [vmem:[%s12158_s10 + $0x24] sm:$0xe] }
 0x42e   : > { %9555 = vmatprep.subr.bf16.mxu0 %v10462_v37  ;;  %5404 = vmatprep.mubr.bf16.mxu0 %v8719_v54  ;;  %v8725_v43 = vcombine.low %v4585_v25, %v4588_v17  ;;  %v4532_v37 = vshrl.u32 %v12297_v36, 16  ;;  %v4540_v15 = vrot.slane %v4538_v19, 5  ;;  %v12324_v54 = vld [vmem:[%s12158_s10 + $0x18] sm:$0xf]  ;;  %v8827_v21 = vrot.slane %v8823_v30, 9 }
 0x42f   : > { %9954 = vmatpush3.bf16.msra.mxu1 %v10460_v47  ;;  %v4512_v50 = vrot.slane %v4511_v26, 4  ;;  %v10474_v47 = vld [vmem:[#allocation8 + $0x210] sm:$0xff]   ;;  %v4524_v28 = vrot.slane %v4522_v2, 5  ;;  %v5511_v56 = vshrl.u32 %v12324_v54, 16  ;;  %v5514_v16 = vshll.u32 %v12324_v54, 16  ;;  %v10480_v26 = vld [vmem:[#allocation8 + $0x180] sm:$0xff]  }
 0x430   : > { %9955 = vmatprep.subr.bf16.mxu1 %v10464_v49  ;;  %5405 = vmatmul.mubr.bf16.gmra.mxu0 %v8715_v58  ;;  %v4534_v58 = vrot.slane %v4532_v37, 4  ;;  %v5631_v0 = vrot.slane %v12342_v34, 5  ;;  %v5625_v29 = vsel %vm11222_vm13, %v8826_v51, %v5624_v55  ;;  %v12365_v37 = vld [vmem:[%s12158_s10 + $0x30] sm:$0xf]  ;;  %v12368_v19 = vld [vmem:[%s12158_s10 + $0x34] sm:$0xf] }
 0x431   : > { %9556 = vmatpush3.bf16.msra.mxu0 %v10463_v23  ;;  %v4517_v31 = vsel %vm11228_vm14, %v4512_v50, %v4516_v27  ;;  %v10476_v23 = vld [vmem:[#allocation8 + $0x1c8] sm:$0xff]   ;;  %v5524_v27 = vshrl.u32 %v12327_v3, 16  ;;  %v5627_v50 = vrot.slane %v8818_v6, 5 }
 0x432   : > { %9557 = vmatprep.subr.bf16.mxu0 %v10465_v1  ;;  %v8720_v11 = vcombine.low %v4507_v46, %v4517_v31  ;;  %9948 = vmatmul.mubr.bf16.gmra.mxu1 %v8725_v43  ;;  %v10478_v1 = vld [vmem:[#allocation8 + $0x208] sm:$0xff]   ;;  %v4535_v61 = vor.u32 %v4534_v58, %v4530_v60  ;;  %v12349_v46 = vld [vmem:[%s12158_s10 + $0x24] sm:$0xf]  ;;  %v5633_v53 = vrot.slane %v5631_v0, 4 }
 0x433   : > { %9956 = vmatpush3.bf16.msra.mxu1 %v10464_v49  ;;  %v4521_v49 = vrot.slane %v4519_v18, 4  ;;  %v5526_v14 = vrot.slane %v5524_v27, 4  ;;  %v5535_v25 = vshrl.u32 %v12349_v46, 16  ;;  %v5538_v17 = vshll.u32 %v12349_v46, 16  ;;  %v8820_v58 = vld [vmem:[%s12158_s10 + $0x38] sm:$0x1] }
 0x434   : > { %9957 = vmatprep.subr.bf16.mxu1 %v10467_v52  ;;  %5412 = vmatprep.mubr.bf16.mxu0 %v8720_v11  ;;  %v4536_v39 = vrot.slane %v4535_v61, 4  ;;  %v5544_v18 = vshll.u32 %v12342_v34, 16  ;;  %v5548_v61 = vshrl.u32 %v12342_v34, 16 }
 0x435   : > { %9558 = vmatpush3.bf16.msra.mxu0 %v10466_v8  ;;  %v4525_v4 = vor.u32 %v4524_v28, %v4521_v49  ;;  %v5520_v8 = vshll.u32 %v12327_v3, 16  ;;  %v5537_v41 = vrot.slane %v5535_v25, 4  ;;  %v8830_v28 = vcombine.low %v12324_v54, %v12327_v3 }
 0x436   : > { %9559 = vmatprep.subr.bf16.mxu0 %v10469_v12  ;;  %v4541_v10 = vsel %vm11228_vm14, %v4536_v39, %v4540_v15  ;;  %v5530_v12 = vshll.u32 %v8818_v6, 16  ;;  %v5554_v15 = vshll.u32 %v8819_v40, 16  ;;  %v5568_v39 = vshll.u32 %v12368_v19, 16  ;;  %v8824_v6 = vld [vmem:[%s12158_s10 + $0x30] sm:$0xe] }
 0x437   : > { %9958 = vmatpush3.bf16.msra.mxu1 %v10467_v52  ;;  %v4526_v52 = vrot.slane %v4525_v4, 4  ;;  %v5522_v59 = vrot.slane %v5520_v8, 5  ;;  %v5546_v4 = vrot.slane %v5544_v18, 5  ;;  %v8831_v54 = vcombine.low %v12349_v46, %v12342_v34 }
 0x438   : > { %9959 = vmatprep.subr.bf16.mxu1 %v10471_v63  ;;  %5413 = vmatmul.mubr.bf16.gmra.mxu0 %v8716_v62  ;;  %v5532_v36 = vrot.slane %v5530_v12, 5  ;;  %v5632_v62 = vsel %vm11222_vm13, %v8827_v21, %v5631_v0  ;;  %v5572_v3 = vshrl.u32 %v12368_v19, 16  ;;  %v5556_v12 = vrot.slane %v5554_v15, 5 }
 0x439   : > { %9560 = vmatpush3.bf16.msra.mxu0 %v10470_v20  ;;  %v4531_v24 = vsel %vm11228_vm14, %v4526_v52, %v4530_v60  ;;  %v5513_v20 = vrot.slane %v5511_v56, 4  ;;  %v5527_v5 = vor.u32 %v5526_v14, %v5522_v59  ;;  %v5540_v60 = vrot.slane %v5538_v17, 5  ;;  %v8816_v14 = vld [vmem:[%s12158_s10 + $0x3c] sm:$0xf] }
 0x43a   : > { %9561 = vmatprep.subr.bf16.mxu0 %v10472_v33  ;;  %v8721_v45 = vcombine.low %v4531_v24, %v4541_v10  ;;  %v5626_v33 = vrot.slane %v5624_v55, 4  ;;  %v5559_v52 = vshrl.u32 %v12365_v37, 16  ;;  %v5578_v24 = vshll.u32 %v8820_v58, 16 }
 0x43b   : > { %9960 = vmatpush3.bf16.msra.mxu1 %v10471_v63  ;;  %v5516_v63 = vrot.slane %v5514_v16, 5  ;;  %v5528_v7 = vrot.slane %v5527_v5, 4  ;;  %v5570_v10 = vrot.slane %v5568_v39, 5  ;;  %v5574_v57 = vrot.slane %v5572_v3, 4 }
 0x43c   : > { %9961 = vmatprep.subr.bf16.mxu1 %v10474_v47  ;;  %5420 = vmatprep.mubr.bf16.mxu0 %v8721_v45  ;;  %v5628_v11 = vsel %vm11222_vm13, %v5626_v33, %v5627_v50  ;;  %v5561_v16 = vrot.slane %v5559_v52, 4  ;;  %v5580_v45 = vrot.slane %v5578_v24, 5  ;;  %v5641_v55 = vrot.slane %v8820_v58, 5 }
 0x43d   : > { %9562 = vmatpush3.bf16.msra.mxu0 %v10473_v48  ;;  %v5517_v13 = vor.u32 %v5516_v63, %v5513_v20  ;;  %v8838_v43 = vcombine.low %v5625_v29, %v5628_v11  ;;  %v5533_v49 = vsel %vm11228_vm14, %v5528_v7, %v5532_v36  ;;  %v8828_v63 = vrot.slane %v8824_v6, 9 }
 0x43e   : > { %9563 = vmatprep.subr.bf16.mxu0 %v10476_v23  ;;  %v5575_v51 = vor.u32 %v5574_v57, %v5570_v10  ;;  %v5583_v33 = vshrl.u32 %v8816_v14, 16  ;;  %v8832_v15 = vcombine.low %v12365_v37, %v12368_v19 }
 0x43f   : > { %9962 = vmatpush3.bf16.msra.mxu1 %v10474_v47  ;;  %v5634_v47 = vrot.slane %v8819_v40, 5  ;;  %v5518_v31 = vrot.slane %v5517_v13, 4  ;;  %9967 = vmatprep.mubr.bf16.mxu1 %v8838_v43  ;;  %v8821_v40 = vld [vmem:[%s12158_s10 + $0x44] sm:$0x1] }
 0x440   : > { %9963 = vmatprep.subr.bf16.mxu1 %v10478_v1  ;;  %5421 = vmatmul.mubr.bf16.gmra.mxu0 %v8717_v32  ;;  %v8825_v32 = vld [vmem:[%s12158_s10 + $0x3c] sm:$0xe]  ;;  %v5576_v5 = vrot.slane %v5575_v51, 4  ;;  %v5648_v29 = vrot.slane %v8821_v40, 5  ;;  %v5585_v17 = vrot.slane %v5583_v33, 4 }
 0x441   : > { %9564 = vmatpush3.bf16.msra.mxu0 %v10477_v9  ;;  %v5523_v2 = vsel %vm11228_vm14, %v5518_v31, %v5522_v59  ;;  %v5635_v48 = vsel %vm11222_vm13, %v5633_v53, %v5634_v47  ;;  %v5541_v9 = vor.u32 %v5540_v60, %v5537_v41  ;;  %v5638_v59 = vrot.slane %v12368_v19, 5 }
 0x442   : > { %9565 = vmatprep.subr.bf16.mxu0 %v10479_v22  ;;  %v8839_v23 = vcombine.low %v5632_v62, %v5635_v48  ;;  %v5562_v22 = vshll.u32 %v12365_v37, 16  ;;  %v8829_v30 = vrot.slane %v8825_v32, 9  ;;  %v5581_v25 = vsel %vm11228_vm14, %v5576_v5, %v5580_v45 }
 0x443   : > { %9964 = vmatpush3.bf16.msra.mxu1 %v10478_v1  ;;  %v8834_v1 = vcombine.low %v5523_v2, %v5533_v49  ;;  %v5542_v56 = vrot.slane %v5541_v9, 4  ;;  %v5639_v50 = vsel %vm11222_vm13, %v8828_v63, %v5638_v59  ;;  %v5640_v21 = vrot.slane %v5638_v59, 4 }
 0x444   : > { %9965 = vmatprep.subr.bf16.mxu1 %v10481_v42  ;;  %v5564_v8 = vrot.slane %v5562_v22, 5  ;;  %v5586_v2 = vshll.u32 %v8816_v14, 16  ;;  %v5602_v49 = vshll.u32 %v8821_v40, 16 }
 0x445   : > { %9566 = vmatpush3.bf16.msra.mxu0 %v10480_v26  ;;  %5927 = vmatprep.mubr.bf16.mxu0 %v8834_v1  ;;  %v8817_v26 = vld [vmem:[%s12158_s10 + $0x40] sm:$0xf]  ;;  %v5547_v34 = vsel %vm11228_vm14, %v5542_v56, %v5546_v4  ;;  %v5642_v62 = vsel %vm11222_vm13, %v5640_v21, %v5641_v55 }
 0x446   : > { %v5565_v20 = vor.u32 %v5564_v8, %v5561_v16  ;;  %v5645_v0 = vrot.slane %v8817_v26, 5  ;;  %v8840_v7 = vcombine.low %v5639_v50, %v5642_v62  ;;  %v5592_v43 = vshll.u32 %v8817_v26, 16 }
 0x447   : > { %9966 = vmatpush3.bf16.msra.mxu1 %v10481_v42  ;;  %v5550_v42 = vrot.slane %v5548_v61, 4  ;;  %v5596_v48 = vshrl.u32 %v8817_v26, 16  ;;  %v5604_v61 = vrot.slane %v5602_v49, 5 }
 0x448   : > { %5928 = vmatmul.mubr.bf16.vlgmr.msra.gmra.mxu0 %v8830_v28  ;;  %v5566_v13 = vrot.slane %v5565_v20, 4  ;;  %v5646_v53 = vsel %vm11222_vm13, %v8829_v30, %v5645_v0  ;;  %v5647_v11 = vrot.slane %v5645_v0, 4  ;;  %v5594_v60 = vrot.slane %v5592_v43, 5 }
 0x449   : > { %v5551_v27 = vor.u32 %v5550_v42, %v5546_v4  ;;  %v5598_v58 = vrot.slane %v5596_v48, 4  ;;  %v8833_v42 = vcombine.low %v8816_v14, %v8817_v26 }
 0x44a   : > { %9968 = vmatmul.mubr.bf16.vlgmr.msra.gmra.mxu1 %v8839_v23  ;;  %v5571_v31 = vsel %vm11228_vm14, %v5566_v13, %v5570_v10  ;;  %v5649_v41 = vsel %vm11222_vm13, %v5647_v11, %v5648_v29  ;;  %v5588_v23 = vrot.slane %v5586_v2, 5 }
 0x44b   : > { %v5552_v36 = vrot.slane %v5551_v27, 4  ;;  %v8836_v18 = vcombine.low %v5571_v31, %v5581_v25  ;;  %9971 = vmatprep.mubr.bf16.mxu1 %v8840_v7  ;;  %v8841_v28 = vcombine.low %v5646_v53, %v5649_v41  ;;  %v5599_v4 = vor.u32 %v5598_v58, %v5594_v60 }
 0x44c   : > { %v5589_v1 = vor.u32 %v5588_v23, %v5585_v17 }
 0x44d   : > { %v5557_v46 = vsel %vm11228_vm14, %v5552_v36, %v5556_v12  ;;  %v5600_v52 = vrot.slane %v5599_v4, 4 }
 0x44e   : > { %v8835_v47 = vcombine.low %v5547_v34, %v5557_v46  ;;  %v5590_v9 = vrot.slane %v5589_v1, 4 }
 0x44f   : > { %v5605_v38 = vsel %vm11228_vm14, %v5600_v52, %v5604_v61 }
 0x450   : > { %5935 = vmatprep.mubr.bf16.mxu0 %v8835_v47  ;;  %v5595_v22 = vsel %vm11228_vm14, %v5590_v9, %v5594_v60 }
 0x451   : > { %5936 = vmatmul.mubr.bf16.gmra.mxu0 %v8831_v54  ;;  %v8837_v39 = vcombine.low %v5595_v22, %v5605_v38 }
 0x452   : > { %5943 = vmatprep.mubr.bf16.mxu0 %v8836_v18  ;;  %9972 = vmatmul.mubr.bf16.gmra.mxu1 %v8841_v28 }
 0x459   : > { %5944 = vmatmul.mubr.bf16.gmra.mxu0 %v8832_v15 }
 0x45a   : > { %5951 = vmatprep.mubr.bf16.mxu0 %v8837_v39 }
 0x461   : > { %5952 = vmatmul.mubr.bf16.gmra.mxu0 %v8833_v42 }
 0x4c8   : > { %v9463_v54 = vpop.f32.mrf.mxu0 }
 0x4ca   : > { %v9464_v3 = vpop.f32.mrf.mxu0  ;;  %v12412_v19 = vpop.f32.mrf.mxu1 }
 0x4cb   : > { %v9465_v43 = vadd.f32 %v9464_v3, %v9463_v54 }
 0x4cc   : > { %v9466_v24 = vpop.f32.mrf.mxu0  ;;  %v5189_v44 = vpop.f32.mrf.mxu1 }
 0x4cd   : > { %v5190_v60 = vadd.f32 %v9465_v43, %v5189_v44 }
 0x4ce   : > { %v9467_v6 = vpop.f32.mrf.mxu0  ;;  %v12422_v12 = vpop.f32.mrf.mxu1 }
 0x4cf   : > { %v9468_v58 = vadd.f32 %v9467_v6, %v9466_v24 }
 0x4d0   : > { %v9469_v56 = vpop.f32.mrf.mxu0  ;;  %v5192_v45 = vpop.f32.mrf.mxu1 }
 0x4d1   : > { %v5193_v22 = vadd.f32 %v9468_v58, %v5192_v45 }
 0x4d2   : > { %v9470_v16 = vpop.f32.mrf.mxu0 }
 0x4d3   : > { %v9471_v39 = vadd.f32 %v9470_v16, %v9469_v56 }
 0x4d4   : > { %v12410_v37 = vpop.f32.mrf.mxu0  ;;  %v12428_v34 = vpop.f32.mrf.mxu1 }
 0x4d5   : > { %v5198_v24 = vadd.f32 %v12412_v19, %v9471_v39 }
 0x4d6   : > { %v12414_v8 = vpop.f32.mrf.mxu0  ;;  %v12434_v59 = vpop.f32.mrf.mxu1 }
 0x4d7   : > { %v9474_v6 = vadd.f32 %v12414_v8, %v12410_v37 }
 0x4d8   : > { %v12416_v10 = vpop.f32.mrf.mxu0  ;;  %v12438_v36 = vpop.f32.mrf.mxu1 }
 0x4da   : > { %v12418_v32 = vpop.f32.mrf.mxu0  ;;  %v12440_v30 = vpop.f32.mrf.mxu1 }
 0x4db   : > { %v9477_v19 = vadd.f32 %v12418_v32, %v12416_v10 }
 0x4dc   : > { %v12420_v27 = vpop.f32.mrf.mxu0 }
 0x4de   : > { %v12424_v57 = vpop.f32.mrf.mxu0 }
 0x4e0   : > { %v12426_v26 = vpop.f32.mrf.mxu0 }
 0x4e2   : > { %v12430_v20 = vpop.f32.mrf.mxu0 }
 0x4e4   : > { %v12432_v63 = vpop.f32.mrf.mxu0 }
 0x4e6   : > { %v12436_v40 = vpop.f32.mrf.mxu0 }
 0x4e8   : > { %v9515_v14 = vpop.f32.mrf.mxu0 }
 0x4ea   : > { %v9516_v51 = vpop.f32.mrf.mxu0  ;;  %v9945_v50 = vpop.f32.mrf.mxu1 }
 0x4eb   : > { %v9517_v49 = vadd.f32 %v9516_v51, %v9515_v14 }
 0x4ec   : > { %v9518_v55 = vpop.f32.mrf.mxu0  ;;  %v5463_v0 = vpop.f32.mrf.mxu1 }
 0x4ed   : > { %v5399_v15 = vadd.f32 %v9517_v49, %v5190_v60 }
 0x4ee   : > { %v9519_v13 = vpop.f32.mrf.mxu0  ;;  %v12442_v29 = vpop.f32.mrf.mxu1 }
 0x4ef   : > { %v9520_v61 = vadd.f32 %v9519_v13, %v9518_v55  ;;  %v5464_v54 = vadd.f32 %v5463_v0, %v5399_v15 }
 0x4f0   : > { %v9521_v21 = vpop.f32.mrf.mxu0  ;;  %v5466_v47 = vpop.f32.mrf.mxu1 }
 0x4f1   : > { %v5402_v3 = vadd.f32 %v9520_v61, %v5193_v22  ;;  %v9486_v22 = vadd.f32 %v12436_v40, %v12432_v63 }
 0x4f2   : > { %v9522_v46 = vpop.f32.mrf.mxu0  ;;  %v12444_v53 = vpop.f32.mrf.mxu1 }
 0x4f3   : > { %13114 = vst [vmem:[#allocation24_spill] sm:$0xff] %v12444_v53  ;;  %v9523_v14 = vadd.f32 %v9522_v46, %v9521_v21  ;;  %v5467_v55 = vadd.f32 %v5466_v47, %v5402_v3 }
 0x4f4   : > { %v9524_v5 = vpop.f32.mrf.mxu0  ;;  %v12446_v11 = vpop.f32.mrf.mxu1 }
 0x4f5   : > { %v5407_v45 = vadd.f32 %v9523_v14, %v5198_v24 }
 0x4f6   : > { %v9525_v33 = vpop.f32.mrf.mxu0  ;;  %v12450_v18 = vpop.f32.mrf.mxu1 }
 0x4f7   : > { %13115 = vst [vmem:[#allocation25_spill] sm:$0xff] %v12450_v18  ;;  %v9526_v13 = vadd.f32 %v9525_v33, %v9524_v5  ;;  %v5472_v47 = vadd.f32 %v9945_v50, %v5407_v45  ;;  %v5206_v33 = vadd.f32 %v9477_v19, %v12434_v59 }
 0x4f8   : > { %v9527_v31 = vpop.f32.mrf.mxu0  ;;  %v12454_v48 = vpop.f32.mrf.mxu1 }
 0x4fa   : > { %v9528_v62 = vpop.f32.mrf.mxu0 }
 0x4fb   : > { %v9529_v49 = vadd.f32 %v9528_v62, %v9527_v31 }
 0x4fc   : > { %v9530_v25 = vpop.f32.mrf.mxu0 }
 0x4fd   : > { %v5415_v61 = vadd.f32 %v9529_v49, %v5206_v33 }
 0x4fe   : > { %v9531_v7 = vpop.f32.mrf.mxu0 }
 0x500   : > { %v12448_v17 = vpop.f32.mrf.mxu0 }
 0x502   : > { %v12452_v2 = vpop.f32.mrf.mxu0 }
 0x504   : > { %v12456_v41 = vpop.f32.mrf.mxu0 }
 0x506   : > { %v12458_v28 = vpop.f32.mrf.mxu0 }
 0x508   : > { %v9567_v1 = vpop.f32.mrf.mxu0 }
 0x50a   : > { %v9969_v23 = vpop.f32.mrf.mxu1  ;;  %v9568_v9 = vpop.f32.mrf.mxu0 }
 0x50b   : > { %v9569_v38 = vadd.f32 %v9568_v9, %v9567_v1  ;;  %v9532_v1 = vadd.f32 %v9531_v7, %v9530_v25  ;;  %v5480_v25 = vadd.f32 %v12446_v11, %v5415_v61  ;;  %v9538_v11 = vadd.f32 %v12458_v28, %v12456_v41 }
 0x50c   : > { %v5994_v4 = vpop.f32.mrf.mxu1  ;;  %v9570_v42 = vpop.f32.mrf.mxu0 }
 0x50d   : > { %v5995_v35 = vadd.f32 %v9569_v38, %v5994_v4 }
 0x50e   : > { %v9970_v52 = vpop.f32.mrf.mxu1  ;;  %v9571_v51 = vpop.f32.mrf.mxu0 }
 0x50f   : > { %v6025_v53 = vadd.f32 %v5995_v35, %v5464_v54  ;;  %v9572_v44 = vadd.f32 %v9571_v51, %v9570_v42  ;;  %v5201_v35 = vadd.f32 %v12422_v12, %v9474_v6 }
 0x510   : > { %v5997_v18 = vpop.f32.mrf.mxu1 }
 0x511   : > { %6035 = vst [vmem:[%s12464_s14] sm:$0xff] %v6025_v53  ;;  %v9573_v56 = vpop.f32.mrf.mxu0  ;;  %v5998_v16 = vadd.f32 %v9572_v44, %v5997_v18  ;;  %v5410_v43 = vadd.f32 %v9526_v13, %v5201_v35  ;;  %v9480_v18 = vadd.f32 %v12424_v57, %v12420_v27  ;;  %v9483_v27 = vadd.f32 %v12430_v20, %v12426_v26  ;;  %v13116_v44 = vld [vmem:[#allocation24_spill] sm:$0xff] }
 0x512   : > { %v9973_v8 = vpop.f32.mrf.mxu1 }
 0x513   : > { %v6026_v21 = vadd.f32 %v5998_v16, %v5467_v55  ;;  %v9574_v0 = vpop.f32.mrf.mxu0  ;;  %v5475_v32 = vadd.f32 %v12442_v29, %v5410_v43  ;;  %v5209_v31 = vadd.f32 %v9480_v18, %v12440_v30  ;;  %v9535_v29 = vadd.f32 %v12452_v2, %v12448_v17  ;;  %v13117_v16 = vld [vmem:[#allocation25_spill] sm:$0xff] }
 0x514   : > { %v9575_v46 = vadd.f32 %v9574_v0, %v9573_v56  ;;  %v6010_v10 = vpop.f32.mrf.mxu1  ;;  %v5214_v30 = vadd.f32 %v12428_v34, %v9483_v27  ;;  %v5217_v34 = vadd.f32 %v12438_v36, %v9486_v22 }
 0x515   : > { %6036 = vst [vmem:[%s12464_s14 + $0x8] sm:$0xff] %v6026_v21  ;;  %v9576_v37 = vpop.f32.mrf.mxu0  ;;  %v5418_v59 = vadd.f32 %v9532_v1, %v5209_v31  ;;  %v6043_v17 = vadd.f32 %v6026_v21, %v6025_v53 }
 0x516   : > { %v6003_v60 = vadd.f32 %v9969_v23, %v9575_v46  ;;  %v9974_v9 = vpop.f32.mrf.mxu1  ;;  %v5423_v54 = vadd.f32 %v9535_v29, %v5214_v30  ;;  %v5426_v24 = vadd.f32 %v9538_v11, %v5217_v34 }
 0x517   : > { %v9577_v5 = vpop.f32.mrf.mxu0  ;;  %v5483_v38 = vadd.f32 %v12454_v48, %v5418_v59 }
 0x518   : > { %v6027_v58 = vadd.f32 %v6003_v60, %v5472_v47  ;;  %v9578_v12 = vadd.f32 %v9577_v5, %v9576_v37  ;;  %v6013_v39 = vpop.f32.mrf.mxu1  ;;  %v5488_v48 = vadd.f32 %v13116_v44, %v5423_v54  ;;  %v5491_v45 = vadd.f32 %v13117_v16, %v5426_v24 }
 0x519   : > { %v9579_v4 = vpop.f32.mrf.mxu0 }
 0x51a   : > { %6037 = vst [vmem:[%s12464_s14 + $0x10] sm:$0xff] %v6027_v58  ;;  %v6006_v50 = vadd.f32 %v9970_v52, %v9578_v12  ;;  %v6044_v14 = vadd.f32 %v6043_v17, %v6027_v58 }
 0x51b   : > { %v9580_v62 = vpop.f32.mrf.mxu0 }
 0x51c   : > { %v6028_v57 = vadd.f32 %v6006_v50, %v5475_v32  ;;  %v9581_v23 = vadd.f32 %v9580_v62, %v9579_v4 }
 0x51d   : > { %v9582_v15 = vpop.f32.mrf.mxu0 }
 0x51e   : > { %6038 = vst [vmem:[%s12464_s14 + $0x18] sm:$0xff] %v6028_v57  ;;  %v6011_v7 = vadd.f32 %v9581_v23, %v6010_v10  ;;  %v6045_v6 = vadd.f32 %v6044_v14, %v6028_v57 }
 0x51f   : > { %v9583_v52 = vpop.f32.mrf.mxu0 }
 0x520   : > { %v6029_v26 = vadd.f32 %v6011_v7, %v5480_v25  ;;  %v9584_v20 = vadd.f32 %v9583_v52, %v9582_v15 }
 0x521   : > { %v9585_v42 = vpop.f32.mrf.mxu0 }
 0x522   : > { %6039 = vst [vmem:[%s12464_s14 + $0x20] sm:$0xff] %v6029_v26  ;;  %v6014_v2 = vadd.f32 %v9584_v20, %v6013_v39  ;;  %v6046_v41 = vadd.f32 %v6045_v6, %v6029_v26 }
 0x523   : > { %v9586_v3 = vpop.f32.mrf.mxu0 }
 0x524   : > { %v6030_v63 = vadd.f32 %v6014_v2, %v5483_v38  ;;  %v9587_v40 = vadd.f32 %v9586_v3, %v9585_v42 }
 0x525   : > { %v9588_v51 = vpop.f32.mrf.mxu0 }
 0x526   : > { %6040 = vst [vmem:[%s12464_s14 + $0x28] sm:$0xff] %v6030_v63  ;;  %v6019_v55 = vadd.f32 %v9973_v8, %v9587_v40  ;;  %v6047_v13 = vadd.f32 %v6046_v41, %v6030_v63  ;;  %v13118_v8 = vld [vmem:[#allocation23_spill] sm:$0xff] }
 0x527   : > { %v9589_v56 = vpop.f32.mrf.mxu0 }
 0x528   : > { %v6031_v53 = vadd.f32 %v6019_v55, %v5488_v48  ;;  %v9590_v28 = vadd.f32 %v9589_v56, %v9588_v51 }
 0x52a   : > { %6041 = vst [vmem:[%s12464_s14 + $0x30] sm:$0xff] %v6031_v53  ;;  %v6022_v36 = vadd.f32 %v9974_v9, %v9590_v28  ;;  %v6048_v21 = vadd.f32 %v6047_v13, %v6031_v53 }
 0x52c   : > { %v6032_v0 = vadd.f32 %v6022_v36, %v5491_v45 }
 0x52e   : > { %6042 = vst [vmem:[%s12464_s14 + $0x38] sm:$0xff] %v6032_v0  ;;  %v6049_v35 = vadd.f32 %v6048_v21, %v6032_v0 }
 0x530   : > { %v6050_v19 = vrot.slane %v6049_v35, 4 }
 0x532   : > { %v6051_v46 = vadd.f32 %v6050_v19, %v6049_v35 }
 0x534   : > { %v6052_v37 = vrot.slane %v6051_v46, 2 }
 0x536   : > { %v6053_v47 = vadd.f32 %v6052_v37, %v6051_v46 }
 0x538   : > { %v6054_v43 = vrot.slane %v6053_v47, 1 }
 0x53a   : > { %v6055_v49 = vadd.f32 %v6054_v43, %v6053_v47  ;;  %4424 = sbr.rel (!%p4422_p9) target bundleno = 999 (0x3e7), region = 287 }
 0x53c   : > { %v6056_v60 = vadd.f32 %v13118_v8, %v6055_v49  }
 0x53e   : > { %v13119_v35 = vmov %v6056_v60 }
 0x53f LB: > { %13120 = vst [vmem:[#allocation26_spill] sm:$0xff] %v10804_v60  ;;  %v10486_v18 = vld [vmem:[#allocation8 + $0x138] sm:$0xff]   ;;  %v10489_v58 = vld [vmem:[#allocation8 + $0x130] sm:$0xff]   ;;  %v10492_v4 = vld [vmem:[#allocation8 + $0x128] sm:$0xff]   ;;  %s8867_s15 = smul.u32 48, %s10808_s1  ;;  %s9042_s17 = sshll.u32 %s10808_s1, 6  ;;  %s10808_s1 = sphi %s12504_s1, %s6062_s1   ;;  %v10804_v60 = vphi %v6056_v60, %v13128_v60  }
 0x540   : > { %v10487_v5 = vld [vmem:[#allocation8 + $0xf8] sm:$0xff]   ;;  %9603 = vmatprep.subr.bf16.mxu0 %v10486_v18  ;;  %v10490_v12 = vld [vmem:[#allocation8 + $0xf0] sm:$0xff]   ;;  %v10493_v10 = vld [vmem:[#allocation8 + $0xe8] sm:$0xff]   ;;  %s12819_s18 = scalar_lea.vmem [#allocation9], %s9042_s17  ;;  %s6062_s1 = sadd.s32 1, %s10808_s1  }
 0x541   : > { %v10488_v33 = vld [vmem:[#allocation8 + $0x178] sm:$0xff]   ;;  %9604 = vmatpush3.bf16.msra.mxu0 %v10487_v5  ;;  %v10491_v1 = vld [vmem:[#allocation8 + $0x170] sm:$0xff]   ;;  %v10494_v32 = vld [vmem:[#allocation8 + $0x168] sm:$0xff]   ;;  %s12513_s16 = scalar_lea.vmem [#allocation2], %s8867_s15  ;;  %p6059_p10 = scmp.ge.s32.totalorder %s6062_s1, 4  }
 0x542   : > { %9975 = vmatprep.subr.bf16.mxu1 %v10488_v33  ;;  %9605 = vmatprep.subr.bf16.mxu0 %v10489_v58  ;;  %v10495_v61 = vld [vmem:[#allocation8 + $0x120] sm:$0xff]   ;;  %v10498_v62 = vld [vmem:[#allocation8 + $0x118] sm:$0xff]   ;;  %v10501_v23 = vld [vmem:[#allocation8 + $0x110] sm:$0xff]   ;;  %s12859_s0 = smov (%p6059_p10), 0  }
 0x543   : > { %9976 = vmatpush3.bf16.msra.mxu1 %v10488_v33  ;;  %v10496_v50 = vld [vmem:[#allocation8 + $0xe0] sm:$0xff]   ;;  %v10500_v27 = vld [vmem:[#allocation8 + $0x158] sm:$0xff]   ;;  %v10503_v59 = vld [vmem:[#allocation8 + $0x150] sm:$0xff]  }
 0x544   : > { %9977 = vmatprep.subr.bf16.mxu1 %v10491_v1  ;;  %v10497_v31 = vld [vmem:[#allocation8 + $0x160] sm:$0xff]   ;;  %v10499_v57 = vld [vmem:[#allocation8 + $0xd8] sm:$0xff]   ;;  %v10502_v15 = vld [vmem:[#allocation8 + $0xd0] sm:$0xff]  }
 0x545   : > { %9606 = vmatpush3.bf16.msra.mxu0 %v10490_v12  ;;  %v10504_v9 = vld [vmem:[#allocation8 + $0x108] sm:$0xff]   ;;  %v10507_v7 = vld [vmem:[#allocation8 + $0x100] sm:$0xff]   ;;  %v12516_v52 = vld [vmem:[%s12513_s16 + $0xe4] sm:$0xf] }
 0x546   : > { %9607 = vmatprep.subr.bf16.mxu0 %v10492_v4  ;;  %v10505_v25 = vld [vmem:[#allocation8 + $0xc8] sm:$0xff]   ;;  %v12519_v30 = vld [vmem:[%s12513_s16 + $0xe8] sm:$0xf]  ;;  %v8911_v22 = vld [vmem:[%s12513_s16 + $0xec] sm:$0x1]  ;;  %v6345_v20 = vshrl.u32 %v12516_v52, 16 }
 0x547   : > { %9978 = vmatpush3.bf16.msra.mxu1 %v10491_v1  ;;  %v10506_v29 = vld [vmem:[#allocation8 + $0x148] sm:$0xff]   ;;  %v10508_v26 = vld [vmem:[#allocation8 + $0xc0] sm:$0xff]   ;;  %v6348_v38 = vshll.u32 %v12516_v52, 16  ;;  %v6354_v39 = vshll.u32 %v12519_v30, 16  ;;  %v6358_v42 = vshrl.u32 %v12519_v30, 16  ;;  %v6364_v11 = vshll.u32 %v8911_v22, 16 }
 0x548   : > { %9979 = vmatprep.subr.bf16.mxu1 %v10494_v32  ;;  %v10509_v54 = vld [vmem:[#allocation8 + $0x140] sm:$0xff]   ;;  %v8915_v17 = vld [vmem:[%s12513_s16 + $0xe4] sm:$0xe]  ;;  %v6347_v2 = vrot.slane %v6345_v20, 4  ;;  %v10511_v63 = vld [vmem:[#allocation8 + $0x78] sm:$0xff]   ;;  %v6458_v51 = vrot.slane %v12519_v30, 5  ;;  %v8923_v19 = vcombine.low %v12516_v52, %v12519_v30 }
 0x549   : > { %9608 = vmatpush3.bf16.msra.mxu0 %v10493_v10  ;;  %v6350_v3 = vrot.slane %v6348_v38, 5  ;;  %v6356_v34 = vrot.slane %v6354_v39, 5  ;;  %v6360_v14 = vrot.slane %v6358_v42, 4  ;;  %v8919_v40 = vrot.slane %v8915_v17, 9  ;;  %v12529_v55 = vld [vmem:[%s12513_s16 + $0xf4] sm:$0xf] }
 0x54a   : > { %9609 = vmatprep.subr.bf16.mxu0 %v10495_v61  ;;  %v6461_v44 = vrot.slane %v8911_v22, 5  ;;  %v6366_v6 = vrot.slane %v6364_v11, 5  ;;  %v8912_v56 = vld [vmem:[%s12513_s16 + $0xf8] sm:$0x1]  ;;  %v6460_v28 = vrot.slane %v6458_v51, 4  ;;  %v6465_v45 = vrot.slane %v12529_v55, 5 }
 0x54b   : > { %9980 = vmatpush3.bf16.msra.mxu1 %v10494_v32  ;;  %v6351_v48 = vor.u32 %v6350_v3, %v6347_v2  ;;  %v6361_v24 = vor.u32 %v6360_v14, %v6356_v34  ;;  %v6459_v53 = vsel %vm11222_vm13, %v8919_v40, %v6458_v51  ;;  %v8916_v16 = vld [vmem:[%s12513_s16 + $0xf0] sm:$0xe]  ;;  %v6468_v13 = vrot.slane %v8912_v56, 5  ;;  %v10513_v36 = vld [vmem:[#allocation8 + $0xb8] sm:$0xff]   ;;  %v10514_v33 = vld [vmem:[#allocation8 + $0x70] sm:$0xff]  }
 0x54c   : > { %9981 = vmatprep.subr.bf16.mxu1 %v10497_v31  ;;  %v8920_v35 = vrot.slane %v8916_v16, 9  ;;  %v6462_v46 = vsel %vm11222_vm13, %v6460_v28, %v6461_v44  ;;  %v10512_v37 = vld [vmem:[#allocation8 + $0x38] sm:$0xff]   ;;  %v6467_v47 = vrot.slane %v6465_v45, 4  ;;  %v10516_v1 = vld [vmem:[#allocation8 + $0xb0] sm:$0xff]   ;;  %v6378_v4 = vshll.u32 %v12529_v55, 16  ;;  %v10519_v22 = vld [vmem:[#allocation8 + $0x28] sm:$0xff]  }
 0x54d   : > { %9610 = vmatpush3.bf16.msra.mxu0 %v10496_v50  ;;  %v6352_v21 = vrot.slane %v6351_v48, 4  ;;  %v6362_v0 = vrot.slane %v6361_v24, 4  ;;  %v8931_v18 = vcombine.low %v6459_v53, %v6462_v46  ;;  %v8905_v32 = vld [vmem:[%s12513_s16 + $0xf0] sm:$0xf]  ;;  %v6382_v61 = vshrl.u32 %v12529_v55, 16 }
 0x54e   : > { %9611 = vmatprep.subr.bf16.mxu0 %v10498_v62  ;;  %v6466_v5 = vsel %vm11222_vm13, %v8920_v35, %v6465_v45  ;;  %v6469_v12 = vsel %vm11222_vm13, %v6467_v47, %v6468_v13  ;;  %v6388_v50 = vshll.u32 %v8912_v56, 16  ;;  %v6369_v62 = vshrl.u32 %v8905_v32, 16  ;;  %v10521_v20 = vld [vmem:[#allocation8 + $0x60] sm:$0xff]   ;;  %v12552_v38 = vld [vmem:[%s12513_s16 + $0xfc] sm:$0xf]  ;;  %v10525_v56 = vld [vmem:[#allocation8 + $0x58] sm:$0xff]  }
 0x54f   : > { %9982 = vmatpush3.bf16.msra.mxu1 %v10497_v31  ;;  %v6357_v49 = vsel %vm11228_vm14, %v6352_v21, %v6356_v34  ;;  %v6367_v8 = vsel %vm11228_vm14, %v6362_v0, %v6366_v6  ;;  %9991 = vmatprep.mubr.bf16.mxu1 %v8931_v18  ;;  %v8932_v10 = vcombine.low %v6466_v5, %v6469_v12  ;;  %v10515_v31 = vld [vmem:[#allocation8 + $0x30] sm:$0xff]   ;;  %v6393_v17 = vshrl.u32 %v12552_v38, 16  ;;  %v8917_v53 = vld [vmem:[%s12513_s16 + $0xfc] sm:$0xe]  ;;  %v12570_v21 = vld [vmem:[%s12513_s16 + $0x10c] sm:$0xf] }
 0x550   : > { %9983 = vmatprep.subr.bf16.mxu1 %v10500_v27  ;;  %v8927_v58 = vcombine.low %v6357_v49, %v6367_v8  ;;  %v12555_v39 = vld [vmem:[%s12513_s16 + $0x100] sm:$0xf]  ;;  %v8913_v11 = vld [vmem:[%s12513_s16 + $0x104] sm:$0x1]  ;;  %v6396_v2 = vshll.u32 %v12552_v38, 16  ;;  %v8924_v14 = vcombine.low %v8905_v32, %v12529_v55  ;;  %v8921_v45 = vrot.slane %v8917_v53, 9 }
 0x551   : > { %9612 = vmatpush3.bf16.msra.mxu0 %v10499_v57  ;;  %v6380_v57 = vrot.slane %v6378_v4, 5  ;;  %v6402_v3 = vshll.u32 %v12555_v39, 16  ;;  %v6406_v40 = vshrl.u32 %v12555_v39, 16  ;;  %v6412_v51 = vshll.u32 %v8913_v11, 16  ;;  %v10527_v0 = vld [vmem:[#allocation8 + $0x98] sm:$0xff]   ;;  %v10536_v53 = vld [vmem:[#allocation8] sm:$0xff]  }
 0x552   : > { %9613 = vmatprep.subr.bf16.mxu0 %v10501_v23  ;;  %6761 = vmatprep.mubr.bf16.mxu0 %v8927_v58  ;;  %v6384_v23 = vrot.slane %v6382_v61, 4  ;;  %v6395_v48 = vrot.slane %v6393_v17, 4  ;;  %v6398_v24 = vrot.slane %v6396_v2, 5  ;;  %v6472_v55 = vrot.slane %v12555_v39, 5  ;;  %v8918_v47 = vld [vmem:[%s12513_s16 + $0x108] sm:$0xe] }
 0x553   : > { %9984 = vmatpush3.bf16.msra.mxu1 %v10500_v27  ;;  %v6372_v27 = vshll.u32 %v8905_v32, 16  ;;  %v6404_v6 = vrot.slane %v6402_v3, 5  ;;  %v6408_v28 = vrot.slane %v6406_v40, 4  ;;  %v6414_v16 = vrot.slane %v6412_v51, 5  ;;  %v10526_v18 = vld [vmem:[#allocation8 + $0x18] sm:$0xff]   ;;  %v10533_v17 = vld [vmem:[#allocation8 + $0x8] sm:$0xff]  }
 0x554   : > { %9985 = vmatprep.subr.bf16.mxu1 %v10503_v59  ;;  %v6399_v13 = vor.u32 %v6398_v24, %v6395_v48  ;;  %v6474_v46 = vrot.slane %v6472_v55, 4  ;;  %v6479_v49 = vrot.slane %v12570_v21, 5  ;;  %v8922_v5 = vrot.slane %v8918_v47, 9  ;;  %v10535_v3 = vld [vmem:[#allocation8 + $0x40] sm:$0xff]   ;;  %v8876_v48 = vld [vmem:[%s12513_s16 + $0xe0] sm:$0x1] }
 0x555   : > { %9614 = vmatpush3.bf16.msra.mxu0 %v10502_v15  ;;  %v6371_v15 = vrot.slane %v6369_v62, 4  ;;  %v6409_v35 = vor.u32 %v6408_v28, %v6404_v6  ;;  %v10528_v62 = vld [vmem:[#allocation8 + $0x50] sm:$0xff]  }
 0x556   : > { %9615 = vmatprep.subr.bf16.mxu0 %v10504_v9  ;;  %v6374_v9 = vrot.slane %v6372_v27, 5  ;;  %v6400_v8 = vrot.slane %v6399_v13, 4  ;;  %v6480_v32 = vsel %vm11222_vm13, %v8922_v5, %v6479_v49  ;;  %v6426_v27 = vshll.u32 %v12570_v21, 16  ;;  %v10541_v5 = vld [vmem:[#allocation8 + $0x238] sm:$0xff]  }
 0x557   : > { %9986 = vmatpush3.bf16.msra.mxu1 %v10503_v59  ;;  %v10518_v59 = vld [vmem:[#allocation8 + $0x68] sm:$0xff]   ;;  %v6410_v58 = vrot.slane %v6409_v35, 4 }
 0x558   : > { %9987 = vmatprep.subr.bf16.mxu1 %v10506_v29  ;;  %v6375_v52 = vor.u32 %v6374_v9, %v6371_v15  ;;  %v6405_v4 = vsel %vm11228_vm14, %v6400_v8, %v6404_v6  ;;  %v8909_v15 = vld [vmem:[%s12513_s16 + $0x108] sm:$0xf]  ;;  %v6430_v9 = vshrl.u32 %v12570_v21, 16 }
 0x559   : > { %9616 = vmatpush3.bf16.msra.mxu0 %v10505_v25  ;;  %v6390_v25 = vrot.slane %v6388_v50, 5  ;;  %v6415_v61 = vsel %vm11228_vm14, %v6410_v58, %v6414_v16  ;;  %v8925_v50 = vcombine.low %v12552_v38, %v12555_v39  ;;  %v8926_v51 = vcombine.low %v8909_v15, %v12570_v21 }
 0x55a   : > { %9617 = vmatprep.subr.bf16.mxu0 %v10507_v7  ;;  %v6385_v7 = vor.u32 %v6384_v23, %v6380_v57 }
 0x55b   : > { %9988 = vmatpush3.bf16.msra.mxu1 %v10506_v29  ;;  %v10520_v29 = vld [vmem:[#allocation8 + $0xa8] sm:$0xff]  }
 0x55c   : > { %9989 = vmatprep.subr.bf16.mxu1 %v10509_v54  ;;  %v6386_v30 = vrot.slane %v6385_v7, 4  ;;  %v6417_v7 = vshrl.u32 %v8909_v15, 16 }
 0x55d   : > { %9618 = vmatpush3.bf16.msra.mxu0 %v10508_v26  ;;  %v6376_v26 = vrot.slane %v6375_v52, 4  ;;  %v6420_v52 = vshll.u32 %v8909_v15, 16 }
 0x55e   : > { %9655 = vmatprep.subr.bf16.mxu0 %v10511_v63  ;;  %v6391_v42 = vsel %vm11228_vm14, %v6386_v30, %v6390_v25  ;;  %v10522_v63 = vld [vmem:[#allocation8 + $0x20] sm:$0xff]   ;;  %v6428_v30 = vrot.slane %v6426_v27, 5  ;;  %v10540_v27 = vld [vmem:[#allocation8 + $0x1b8] sm:$0xff]  }
 0x55f   : > { %9990 = vmatpush3.bf16.msra.mxu1 %v10509_v54  ;;  %v10523_v54 = vld [vmem:[#allocation8 + $0xa0] sm:$0xff]   ;;  %v6381_v34 = vsel %vm11228_vm14, %v6376_v26, %v6380_v57  ;;  %v8929_v57 = vcombine.low %v6405_v4, %v6415_v61  ;;  %v10532_v26 = vld [vmem:[#allocation8 + $0x48] sm:$0xff]   ;;  %v6422_v38 = vrot.slane %v6420_v52, 5  ;;  %v8881_v4 = vld [vmem:[%s12513_s16 + $0xe4] sm:$0xe] }
 0x560   : > { %9999 = vmatprep.subr.bf16.mxu1 %v10513_v36  ;;  %6762 = vmatmul.mubr.bf16.vlgmr.msra.gmra.mxu0 %v8923_v19  ;;  %v8928_v44 = vcombine.low %v6381_v34, %v6391_v42  ;;  %v6473_v19 = vsel %vm11222_vm13, %v8921_v45, %v6472_v55  ;;  %v6104_v45 = vshll.u32 %v8876_v48, 16  ;;  %v8885_v61 = vrot.slane %v8881_v4, 9  ;;  %v8870_v52 = vld [vmem:[%s12513_s16 + $0xe4] sm:$0xf] }
 0x561   : > { %9656 = vmatpush3.bf16.msra.mxu0 %v10512_v37  ;;  %v8914_v37 = vld [vmem:[%s12513_s16 + $0x110] sm:$0x1] }
 0x562   : > { %9992 = vmatmul.mubr.bf16.vlgmr.msra.gmra.mxu1 %v8932_v10  ;;  %9657 = vmatprep.subr.bf16.mxu0 %v10514_v33  ;;  %v6482_v33 = vrot.slane %v8914_v37, 5  ;;  %v6436_v25 = vshll.u32 %v8914_v37, 16  ;;  %v6106_v35 = vrot.slane %v6104_v45, 5  ;;  %v8880_v37 = vld [vmem:[%s12513_s16 + $0xd8] sm:$0xe] }
 0x563   : > { %10000 = vmatpush3.bf16.msra.mxu1 %v10513_v36  ;;  %6769 = vmatprep.mubr.bf16.mxu0 %v8928_v44  ;;  %v6475_v36 = vrot.slane %v8913_v11, 5  ;;  %v12599_v44 = vld [vmem:[%s12513_s16 + $0xdc] sm:$0xf]  ;;  %v12640_v45 = vld [vmem:[%s12513_s16 + $0xf4] sm:$0xf] }
 0x564   : > { %10001 = vmatprep.subr.bf16.mxu1 %v10516_v1  ;;  %v6438_v42 = vrot.slane %v6436_v25, 5  ;;  %v6094_v28 = vshll.u32 %v12599_v44, 16  ;;  %v6098_v16 = vshrl.u32 %v12599_v44, 16  ;;  %v6201_v47 = vrot.slane %v12599_v44, 5 }
 0x565   : > { %9658 = vmatpush3.bf16.msra.mxu0 %v10515_v31  ;;  %v6476_v12 = vsel %vm11222_vm13, %v6474_v46, %v6475_v36  ;;  %v6215_v4 = vrot.slane %v12640_v45, 5 }
 0x566   : > { %9659 = vmatprep.subr.bf16.mxu0 %v10518_v59  ;;  %v8933_v10 = vcombine.low %v6473_v19, %v6476_v12  ;;  %v10530_v59 = vld [vmem:[#allocation8 + $0x90] sm:$0xff]   ;;  %v6096_v21 = vrot.slane %v6094_v28, 5  ;;  %v10539_v19 = vld [vmem:[#allocation8 + $0x1f8] sm:$0xff]   ;;  %v6203_v12 = vrot.slane %v6201_v47, 4  ;;  %v10549_v28 = vld [vmem:[#allocation8 + $0x1e0] sm:$0xff]  }
 0x567   : > { %10002 = vmatpush3.bf16.msra.mxu1 %v10516_v1  ;;  %v6481_v1 = vrot.slane %v6479_v49, 4  ;;  %v6204_v49 = vrot.slane %v8876_v48, 5  ;;  %v10548_v48 = vld [vmem:[#allocation8 + $0x228] sm:$0xff]  }
 0x568   : > { %10003 = vmatprep.subr.bf16.mxu1 %v10520_v29  ;;  %6770 = vmatmul.mubr.bf16.gmra.mxu0 %v8924_v14  ;;  %v10537_v14 = vld [vmem:[#allocation8 + $0x80] sm:$0xff]  }
 0x569   : > { %9660 = vmatpush3.bf16.msra.mxu0 %v10519_v22  ;;  %v6483_v31 = vsel %vm11222_vm13, %v6481_v1, %v6482_v33  ;;  %9995 = vmatprep.mubr.bf16.mxu1 %v8933_v10  ;;  %v6432_v22 = vrot.slane %v6430_v9, 4  ;;  %v12611_v33 = vld [vmem:[%s12513_s16 + $0xe8] sm:$0xf]  ;;  %v8877_v1 = vld [vmem:[%s12513_s16 + $0xec] sm:$0x1] }
 0x56a   : > { %9661 = vmatprep.subr.bf16.mxu0 %v10521_v20  ;;  %v8934_v23 = vcombine.low %v6480_v32, %v6483_v31  ;;  %6777 = vmatprep.mubr.bf16.mxu0 %v8929_v57  ;;  %v6419_v20 = vrot.slane %v6417_v7, 4  ;;  %v6205_v57 = vsel %vm11222_vm13, %v6203_v12, %v6204_v49  ;;  %v10553_v12 = vld [vmem:[#allocation8 + $0x1d8] sm:$0xff]  }
 0x56b   : > { %10004 = vmatpush3.bf16.msra.mxu1 %v10520_v29  ;;  %v10529_v29 = vld [vmem:[#allocation8 + $0x10] sm:$0xff]   ;;  %v6433_v39 = vor.u32 %v6432_v22, %v6428_v30  ;;  %v6122_v22 = vshrl.u32 %v12611_v33, 16 }
 0x56c   : > { %10005 = vmatprep.subr.bf16.mxu1 %v10523_v54  ;;  %9996 = vmatmul.mubr.bf16.gmra.mxu1 %v8934_v23  ;;  %v6423_v11 = vor.u32 %v6422_v38, %v6419_v20  ;;  %v6211_v23 = vrot.slane %v8877_v1, 5  ;;  %v10544_v20 = vld [vmem:[#allocation8 + $0x230] sm:$0xff]   ;;  %v6109_v38 = vshrl.u32 %v8870_v52, 16 }
 0x56d   : > { %9662 = vmatpush3.bf16.msra.mxu0 %v10522_v63  ;;  %v6434_v2 = vrot.slane %v6433_v39, 4  ;;  %v12593_v63 = vld [vmem:[%s12513_s16 + $0xd8] sm:$0xf]  ;;  %v6112_v39 = vshll.u32 %v8870_v52, 16 }
 0x56e   : > { %9663 = vmatprep.subr.bf16.mxu0 %v10525_v56  ;;  %v6424_v34 = vrot.slane %v6423_v11, 4  ;;  %v6085_v24 = vshrl.u32 %v12593_v63, 16  ;;  %v6088_v6 = vshll.u32 %v12593_v63, 16 }
 0x56f   : > { %10006 = vmatpush3.bf16.msra.mxu1 %v10523_v54  ;;  %v10534_v54 = vld [vmem:[#allocation8 + $0x88] sm:$0xff]   ;;  %v6439_v40 = vsel %vm11228_vm14, %v6434_v2, %v6438_v42  ;;  %v6128_v42 = vshll.u32 %v8877_v1, 16  ;;  %v6111_v2 = vrot.slane %v6109_v38, 4  ;;  %v8882_v1 = vld [vmem:[%s12513_s16 + $0xf0] sm:$0xe] }
 0x570   : > { %10007 = vmatprep.subr.bf16.mxu1 %v10527_v0  ;;  %6778 = vmatmul.mubr.bf16.gmra.mxu0 %v8925_v50  ;;  %v6429_v56 = vsel %vm11228_vm14, %v6424_v34, %v6428_v30  ;;  %v6087_v13 = vrot.slane %v6085_v24, 4  ;;  %v6090_v36 = vrot.slane %v6088_v6, 5  ;;  %v6208_v50 = vrot.slane %v12611_v33, 5  ;;  %v10543_v34 = vld [vmem:[#allocation8 + $0x1b0] sm:$0xff]   ;;  %v10547_v6 = vld [vmem:[#allocation8 + $0x1a8] sm:$0xff]  }
 0x571   : > { %9664 = vmatpush3.bf16.msra.mxu0 %v10526_v18  ;;  %v8930_v55 = vcombine.low %v6429_v56, %v6439_v40  ;;  %v8884_v18 = vrot.slane %v8880_v37, 9  ;;  %v6118_v30 = vshll.u32 %v12611_v33, 16 }
 0x572   : > { %9665 = vmatprep.subr.bf16.mxu0 %v10528_v62  ;;  %v6091_v46 = vor.u32 %v6090_v36, %v6087_v13  ;;  %v8888_v62 = vcombine.low %v12593_v63, %v12599_v44  ;;  %v6209_v9 = vsel %vm11222_vm13, %v8885_v61, %v6208_v50  ;;  %v6210_v25 = vrot.slane %v6208_v50, 4  ;;  %v10551_v36 = vld [vmem:[#allocation8 + $0x220] sm:$0xff]   ;;  %v10554_v61 = vld [vmem:[#allocation8 + $0x198] sm:$0xff]  }
 0x573   : > { %10008 = vmatpush3.bf16.msra.mxu1 %v10527_v0  ;;  %v6100_v0 = vrot.slane %v6098_v16, 4  ;;  %6785 = vmatprep.mubr.bf16.mxu0 %v8930_v55  ;;  %v6202_v32 = vsel %vm11222_vm13, %v8884_v18, %v6201_v47  ;;  %v6120_v11 = vrot.slane %v6118_v30, 5  ;;  %v6130_v63 = vrot.slane %v6128_v42, 5  ;;  %v12637_v16 = vld [vmem:[%s12513_s16 + $0xf0] sm:$0xf]  ;;  %v10555_v50 = vld [vmem:[#allocation8 + $0x218] sm:$0xff]  }
 0x574   : > { %10009 = vmatprep.subr.bf16.mxu1 %v10530_v59  ;;  %v6092_v58 = vrot.slane %v6091_v46, 4  ;;  %v8896_v15 = vcombine.low %v6202_v32, %v6205_v57  ;;  %v8878_v55 = vld [vmem:[%s12513_s16 + $0xf8] sm:$0x1]  ;;  %v6146_v46 = vshrl.u32 %v12640_v45, 16  ;;  %v10550_v18 = vld [vmem:[#allocation8 + $0x1a0] sm:$0xff]  }
 0x575   : > { %9666 = vmatpush3.bf16.msra.mxu0 %v10529_v29  ;;  %v6101_v8 = vor.u32 %v6100_v0, %v6096_v21  ;;  %v10542_v29 = vld [vmem:[#allocation8 + $0x1f0] sm:$0xff]   ;;  %v6136_v0 = vshll.u32 %v12637_v16, 16  ;;  %v6152_v37 = vshll.u32 %v8878_v55, 16 }
 0x576   : > { %9667 = vmatprep.subr.bf16.mxu0 %v10532_v26  ;;  %v6097_v31 = vsel %vm11228_vm14, %v6092_v58, %v6096_v21  ;;  %10015 = vmatprep.mubr.bf16.mxu1 %v8896_v15  ;;  %v6212_v26 = vsel %vm11222_vm13, %v6210_v25, %v6211_v23  ;;  %v6133_v21 = vshrl.u32 %v12637_v16, 16  ;;  %v6217_v23 = vrot.slane %v6215_v4, 4 }
 0x577   : > { %10010 = vmatpush3.bf16.msra.mxu1 %v10530_v59  ;;  %v6102_v10 = vrot.slane %v6101_v8, 4  ;;  %v6138_v49 = vrot.slane %v6136_v0, 5  ;;  %v6154_v58 = vrot.slane %v6152_v37, 5 }
 0x578   : > { %10011 = vmatprep.subr.bf16.mxu1 %v10534_v54  ;;  %6786 = vmatmul.mubr.bf16.gmra.mxu0 %v8926_v51  ;;  %v10546_v51 = vld [vmem:[#allocation8 + $0x1e8] sm:$0xff]   ;;  %v6135_v47 = vrot.slane %v6133_v21, 4  ;;  %v10563_v21 = vld [vmem:[#allocation8 + $0x1c0] sm:$0xff]  }
 0x579   : > { %9668 = vmatpush3.bf16.msra.mxu0 %v10533_v17  ;;  %v6107_v59 = vsel %vm11228_vm14, %v6102_v10, %v6106_v35  ;;  %v6124_v17 = vrot.slane %v6122_v22, 4  ;;  %v6142_v35 = vshll.u32 %v12640_v45, 16  ;;  %v6218_v10 = vrot.slane %v8878_v55, 5 }
 0x57a   : > { %9669 = vmatprep.subr.bf16.mxu0 %v10535_v3  ;;  %v8892_v7 = vcombine.low %v6097_v31, %v6107_v59  ;;  %v6114_v3 = vrot.slane %v6112_v39, 5  ;;  %v8886_v31 = vrot.slane %v8882_v1, 9  ;;  %v8883_v59 = vld [vmem:[%s12513_s16 + $0xfc] sm:$0xe]  ;;  %v8890_v39 = vcombine.low %v12637_v16, %v12640_v45  ;;  %v8998_v1 = vld [vmem:[%s12513_s16 + $0xf0] sm:$0xe] }
 0x57b   : > { %10012 = vmatpush3.bf16.msra.mxu1 %v10534_v54  ;;  %v8897_v54 = vcombine.low %v6209_v9, %v6212_v26  ;;  %v6144_v8 = vrot.slane %v6142_v35, 5  ;;  %v6219_v30 = vsel %vm11222_vm13, %v6217_v23, %v6218_v10  ;;  %v10556_v26 = vld [vmem:[#allocation8 + $0x1d0] sm:$0xff]   ;;  %v10565_v35 = vld [vmem:[#allocation8 + $0x200] sm:$0xff]   ;;  %v9002_v23 = vrot.slane %v8998_v1, 9 }
 0x57c   : > { %10013 = vmatprep.subr.bf16.mxu1 %v10537_v14  ;;  %7035 = vmatprep.mubr.bf16.mxu0 %v8892_v7  ;;  %v6115_v40 = vor.u32 %v6114_v3, %v6111_v2  ;;  %v8887_v7 = vrot.slane %v8883_v59, 9 }
 0x57d   : > { %9670 = vmatpush3.bf16.msra.mxu0 %v10536_v53  ;;  %v8889_v53 = vcombine.low %v8870_v52, %v12611_v33  ;;  %v6139_v33 = vor.u32 %v6138_v49, %v6135_v47  ;;  %v8994_v47 = vld [vmem:[%s12513_s16 + $0xf8] sm:$0x1] }
 0x57e   : > { %9707 = vmatprep.subr.bf16.mxu0 %v10539_v19  ;;  %v6116_v24 = vrot.slane %v6115_v40, 4 }
 0x57f   : > { %10014 = vmatpush3.bf16.msra.mxu1 %v10537_v14  ;;  %v6125_v14 = vor.u32 %v6124_v17, %v6120_v11  ;;  %v6140_v57 = vrot.slane %v6139_v33, 4 }
 0x580   : > { %10023 = vmatprep.subr.bf16.mxu1 %v10541_v5  ;;  %7036 = vmatmul.mubr.bf16.vlgmr.msra.gmra.mxu0 %v8888_v62  ;;  %v6121_v13 = vsel %vm11228_vm14, %v6116_v24, %v6120_v11  ;;  %v12652_v62 = vld [vmem:[%s12513_s16 + $0x100] sm:$0xf]  ;;  %v12670_v11 = vld [vmem:[%s12513_s16 + $0xfc] sm:$0xf] }
 0x581   : > { %9708 = vmatpush3.bf16.msra.mxu0 %v10540_v27  ;;  %v6126_v44 = vrot.slane %v6125_v14, 4  ;;  %v8879_v27 = vld [vmem:[%s12513_s16 + $0x104] sm:$0x1]  ;;  %v6222_v15 = vrot.slane %v12652_v62, 5  ;;  %v6145_v52 = vsel %vm11228_vm14, %v6140_v57, %v6144_v8  ;;  %v6157_v3 = vshrl.u32 %v12670_v11, 16 }
 0x582   : > { %10016 = vmatmul.mubr.bf16.vlgmr.msra.gmra.mxu1 %v8897_v54  ;;  %9709 = vmatprep.subr.bf16.mxu0 %v10542_v29  ;;  %v6225_v9 = vrot.slane %v8879_v27, 5  ;;  %v6216_v29 = vsel %vm11222_vm13, %v8886_v31, %v6215_v4  ;;  %v6166_v40 = vshll.u32 %v12652_v62, 16  ;;  %v8891_v33 = vcombine.low %v12670_v11, %v12652_v62  ;;  %v12697_v4 = vld [vmem:[%s12513_s16 + $0x100] sm:$0xf] }
 0x583   : > { %10024 = vmatpush3.bf16.msra.mxu1 %v10541_v5  ;;  %v6131_v56 = vsel %vm11228_vm14, %v6126_v44, %v6130_v63  ;;  %v6148_v5 = vrot.slane %v6146_v46, 4  ;;  %v6224_v22 = vrot.slane %v6222_v15, 4  ;;  %v8898_v42 = vcombine.low %v6216_v29, %v6219_v30  ;;  %v10557_v63 = vld [vmem:[#allocation8 + $0x190] sm:$0xff]   ;;  %v12682_v46 = vld [vmem:[%s12513_s16 + $0xf4] sm:$0xf] }
 0x584   : > { %10025 = vmatprep.subr.bf16.mxu1 %v10544_v20  ;;  %v8893_v19 = vcombine.low %v6121_v13, %v6131_v56  ;;  %v6223_v54 = vsel %vm11222_vm13, %v8887_v7, %v6222_v15  ;;  %v6176_v44 = vshll.u32 %v8879_v27, 16  ;;  %v6168_v56 = vrot.slane %v6166_v40, 5  ;;  %v10561_v13 = vld [vmem:[#allocation8 + $0x188] sm:$0xff]   ;;  %v8995_v27 = vld [vmem:[%s12513_s16 + $0x104] sm:$0x1] }
 0x585   : > { %9710 = vmatpush3.bf16.msra.mxu0 %v10543_v34  ;;  %v6149_v32 = vor.u32 %v6148_v5, %v6144_v8  ;;  %v6226_v2 = vsel %vm11222_vm13, %v6224_v22, %v6225_v9  ;;  %v6160_v34 = vshll.u32 %v12670_v11, 16  ;;  %10019 = vmatprep.mubr.bf16.mxu1 %v8898_v42  ;;  %v7264_v59 = vrot.slane %v12682_v46, 5  ;;  %v8999_v15 = vld [vmem:[%s12513_s16 + $0xfc] sm:$0xe] }
 0x586   : > { %9711 = vmatprep.subr.bf16.mxu0 %v10546_v51  ;;  %7043 = vmatprep.mubr.bf16.mxu0 %v8893_v19  ;;  %v8899_v14 = vcombine.low %v6223_v54, %v6226_v2  ;;  %v6170_v51 = vshrl.u32 %v12652_v62, 16  ;;  %v6178_v55 = vrot.slane %v6176_v44, 5  ;;  %v12679_v19 = vld [vmem:[%s12513_s16 + $0xf0] sm:$0xf]  ;;  %v9003_v29 = vrot.slane %v8999_v15, 9 }
 0x587   : > { %10026 = vmatpush3.bf16.msra.mxu1 %v10544_v20  ;;  %v6150_v25 = vrot.slane %v6149_v32, 4  ;;  %v10558_v20 = vld [vmem:[#allocation8 + $0x210] sm:$0xff]   ;;  %v6162_v24 = vrot.slane %v6160_v34, 5  ;;  %v7151_v49 = vshrl.u32 %v12679_v19, 16  ;;  %v7154_v8 = vshll.u32 %v12679_v19, 16  ;;  %v10564_v32 = vld [vmem:[#allocation8 + $0x180] sm:$0xff]  }
 0x588   : > { %10027 = vmatprep.subr.bf16.mxu1 %v10548_v48  ;;  %7044 = vmatmul.mubr.bf16.gmra.mxu0 %v8889_v53  ;;  %v6172_v53 = vrot.slane %v6170_v51, 4  ;;  %v7271_v7 = vrot.slane %v12697_v4, 5  ;;  %v7265_v22 = vsel %vm11222_vm13, %v9002_v23, %v7264_v59  ;;  %v12720_v51 = vld [vmem:[%s12513_s16 + $0x108] sm:$0xf]  ;;  %v12723_v44 = vld [vmem:[%s12513_s16 + $0x10c] sm:$0xf] }
 0x589   : > { %9712 = vmatpush3.bf16.msra.mxu0 %v10547_v6  ;;  %v6155_v38 = vsel %vm11228_vm14, %v6150_v25, %v6154_v58  ;;  %v10560_v6 = vld [vmem:[#allocation8 + $0x1c8] sm:$0xff]   ;;  %v7164_v58 = vshrl.u32 %v12682_v46, 16  ;;  %v7267_v25 = vrot.slane %v8994_v47, 5 }
 0x58a   : > { %9713 = vmatprep.subr.bf16.mxu0 %v10549_v28  ;;  %v8894_v17 = vcombine.low %v6145_v52, %v6155_v38  ;;  %10020 = vmatmul.mubr.bf16.gmra.mxu1 %v8899_v14  ;;  %v10562_v28 = vld [vmem:[#allocation8 + $0x208] sm:$0xff]   ;;  %v6173_v45 = vor.u32 %v6172_v53, %v6168_v56  ;;  %v7273_v42 = vrot.slane %v7271_v7, 4  ;;  %v8996_v53 = vld [vmem:[%s12513_s16 + $0x110] sm:$0x1] }
 0x58b   : > { %10028 = vmatpush3.bf16.msra.mxu1 %v10548_v48  ;;  %v6159_v48 = vrot.slane %v6157_v3, 4  ;;  %v7166_v57 = vrot.slane %v7164_v58, 4  ;;  %v12704_v52 = vld [vmem:[%s12513_s16 + $0xfc] sm:$0xf]  ;;  %v7184_v3 = vshll.u32 %v12697_v4, 16 }
 0x58c   : > { %10029 = vmatprep.subr.bf16.mxu1 %v10551_v36  ;;  %7051 = vmatprep.mubr.bf16.mxu0 %v8894_v17  ;;  %v6174_v0 = vrot.slane %v6173_v45, 4  ;;  %v7175_v54 = vshrl.u32 %v12704_v52, 16  ;;  %v7178_v2 = vshll.u32 %v12704_v52, 16  ;;  %v7188_v45 = vshrl.u32 %v12697_v4, 16 }
 0x58d   : > { %9714 = vmatpush3.bf16.msra.mxu0 %v10550_v18  ;;  %v6163_v16 = vor.u32 %v6162_v24, %v6159_v48  ;;  %v7160_v18 = vshll.u32 %v12682_v46, 16  ;;  %v9006_v24 = vcombine.low %v12679_v19, %v12682_v46  ;;  %v9007_v19 = vcombine.low %v12704_v52, %v12697_v4 }
 0x58e   : > { %9715 = vmatprep.subr.bf16.mxu0 %v10553_v12  ;;  %v6179_v5 = vsel %vm11228_vm14, %v6174_v0, %v6178_v55  ;;  %v7170_v12 = vshll.u32 %v8994_v47, 16  ;;  %v7177_v40 = vrot.slane %v7175_v54, 4  ;;  %v7194_v55 = vshll.u32 %v8995_v27, 16  ;;  %v9000_v47 = vld [vmem:[%s12513_s16 + $0x108] sm:$0xe] }
 0x58f   : > { %10030 = vmatpush3.bf16.msra.mxu1 %v10551_v36  ;;  %v6164_v36 = vrot.slane %v6163_v16, 4  ;;  %v7162_v31 = vrot.slane %v7160_v18, 5  ;;  %v7186_v16 = vrot.slane %v7184_v3, 5  ;;  %v7208_v0 = vshll.u32 %v12723_v44, 16 }
 0x590   : > { %10031 = vmatprep.subr.bf16.mxu1 %v10555_v50  ;;  %7052 = vmatmul.mubr.bf16.gmra.mxu0 %v8890_v39  ;;  %v7172_v62 = vrot.slane %v7170_v12, 5  ;;  %v7272_v39 = vsel %vm11222_vm13, %v9003_v29, %v7271_v7  ;;  %v7212_v46 = vshrl.u32 %v12723_v44, 16  ;;  %v7196_v12 = vrot.slane %v7194_v55, 5 }
 0x591   : > { %9716 = vmatpush3.bf16.msra.mxu0 %v10554_v61  ;;  %v6169_v37 = vsel %vm11228_vm14, %v6164_v36, %v6168_v56  ;;  %v7153_v61 = vrot.slane %v7151_v49, 4  ;;  %v7167_v30 = vor.u32 %v7166_v57, %v7162_v31  ;;  %v7180_v56 = vrot.slane %v7178_v2, 5  ;;  %v8992_v57 = vld [vmem:[%s12513_s16 + $0x114] sm:$0xf] }
 0x592   : > { %9717 = vmatprep.subr.bf16.mxu0 %v10556_v26  ;;  %v8895_v10 = vcombine.low %v6169_v37, %v6179_v5  ;;  %v7266_v26 = vrot.slane %v7264_v59, 4  ;;  %v7199_v36 = vshrl.u32 %v12720_v51, 16  ;;  %v7218_v37 = vshll.u32 %v8996_v53, 16 }
 0x593   : > { %10032 = vmatpush3.bf16.msra.mxu1 %v10555_v50  ;;  %v7156_v50 = vrot.slane %v7154_v8, 5  ;;  %v7168_v11 = vrot.slane %v7167_v30, 4  ;;  %v7210_v5 = vrot.slane %v7208_v0, 5  ;;  %v7214_v1 = vrot.slane %v7212_v46, 4 }
 0x594   : > { %10033 = vmatprep.subr.bf16.mxu1 %v10558_v20  ;;  %7059 = vmatprep.mubr.bf16.mxu0 %v8895_v10  ;;  %v7268_v17 = vsel %vm11222_vm13, %v7266_v26, %v7267_v25  ;;  %v7201_v8 = vrot.slane %v7199_v36, 4  ;;  %v7220_v10 = vrot.slane %v7218_v37, 5  ;;  %v7281_v59 = vrot.slane %v8996_v53, 5 }
 0x595   : > { %9718 = vmatpush3.bf16.msra.mxu0 %v10557_v63  ;;  %v7157_v9 = vor.u32 %v7156_v50, %v7153_v61  ;;  %v9014_v14 = vcombine.low %v7265_v22, %v7268_v17  ;;  %v7173_v48 = vsel %vm11228_vm14, %v7168_v11, %v7172_v62  ;;  %v9004_v50 = vrot.slane %v9000_v47, 9 }
 0x596   : > { %9719 = vmatprep.subr.bf16.mxu0 %v10560_v6  ;;  %v7215_v23 = vor.u32 %v7214_v1, %v7210_v5  ;;  %v7223_v26 = vshrl.u32 %v8992_v57, 16  ;;  %v9008_v55 = vcombine.low %v12720_v51, %v12723_v44 }
 0x597   : > { %10034 = vmatpush3.bf16.msra.mxu1 %v10558_v20  ;;  %v7274_v20 = vrot.slane %v8995_v27, 5  ;;  %v7158_v38 = vrot.slane %v7157_v9, 4  ;;  %10039 = vmatprep.mubr.bf16.mxu1 %v9014_v14  ;;  %v8997_v27 = vld [vmem:[%s12513_s16 + $0x11c] sm:$0x1] }
 0x598   : > { %10035 = vmatprep.subr.bf16.mxu1 %v10562_v28  ;;  %7060 = vmatmul.mubr.bf16.gmra.mxu0 %v8891_v33  ;;  %v9001_v33 = vld [vmem:[%s12513_s16 + $0x114] sm:$0xe]  ;;  %v7216_v30 = vrot.slane %v7215_v23, 4  ;;  %v7288_v22 = vrot.slane %v8997_v27, 5  ;;  %v7225_v2 = vrot.slane %v7223_v26, 4 }
 0x599   : > { %9720 = vmatpush3.bf16.msra.mxu0 %v10561_v13  ;;  %v7163_v34 = vsel %vm11228_vm14, %v7158_v38, %v7162_v31  ;;  %v7275_v63 = vsel %vm11222_vm13, %v7273_v42, %v7274_v20  ;;  %v7181_v13 = vor.u32 %v7180_v56, %v7177_v40  ;;  %v7278_v31 = vrot.slane %v12723_v44, 5 }
 0x59a   : > { %9721 = vmatprep.subr.bf16.mxu0 %v10563_v21  ;;  %v9015_v6 = vcombine.low %v7272_v39, %v7275_v63  ;;  %v7202_v21 = vshll.u32 %v12720_v51, 16  ;;  %v9005_v15 = vrot.slane %v9001_v33, 9  ;;  %v7221_v54 = vsel %vm11228_vm14, %v7216_v30, %v7220_v10 }
 0x59b   : > { %10036 = vmatpush3.bf16.msra.mxu1 %v10562_v28  ;;  %v9010_v28 = vcombine.low %v7163_v34, %v7173_v48  ;;  %v7182_v49 = vrot.slane %v7181_v13, 4  ;;  %v7279_v25 = vsel %vm11222_vm13, %v9004_v50, %v7278_v31  ;;  %v7280_v29 = vrot.slane %v7278_v31, 4 }
 0x59c   : > { %10037 = vmatprep.subr.bf16.mxu1 %v10565_v35  ;;  %v7204_v18 = vrot.slane %v7202_v21, 5  ;;  %v7226_v34 = vshll.u32 %v8992_v57, 16  ;;  %v7242_v48 = vshll.u32 %v8997_v27, 16 }
 0x59d   : > { %9722 = vmatpush3.bf16.msra.mxu0 %v10564_v32  ;;  %7567 = vmatprep.mubr.bf16.mxu0 %v9010_v28  ;;  %v8993_v32 = vld [vmem:[%s12513_s16 + $0x118] sm:$0xf]  ;;  %v7187_v4 = vsel %vm11228_vm14, %v7182_v49, %v7186_v16  ;;  %v7282_v39 = vsel %vm11222_vm13, %v7280_v29, %v7281_v59 }
 0x59e   : > { %v7205_v61 = vor.u32 %v7204_v18, %v7201_v8  ;;  %v7285_v7 = vrot.slane %v8993_v32, 5  ;;  %v9016_v11 = vcombine.low %v7279_v25, %v7282_v39  ;;  %v7232_v14 = vshll.u32 %v8993_v32, 16 }
 0x59f   : > { %10038 = vmatpush3.bf16.msra.mxu1 %v10565_v35  ;;  %v7190_v35 = vrot.slane %v7188_v45, 4  ;;  %v7236_v63 = vshrl.u32 %v8993_v32, 16  ;;  %v7244_v45 = vrot.slane %v7242_v48, 5 }
 0x5a0   : > { %7568 = vmatmul.mubr.bf16.vlgmr.msra.gmra.mxu0 %v9006_v24  ;;  %v7206_v9 = vrot.slane %v7205_v61, 4  ;;  %v7286_v42 = vsel %vm11222_vm13, %v9005_v15, %v7285_v7  ;;  %v7287_v17 = vrot.slane %v7285_v7, 4  ;;  %v7234_v56 = vrot.slane %v7232_v14, 5 }
 0x5a1   : > { %v7191_v58 = vor.u32 %v7190_v35, %v7186_v16  ;;  %v7238_v53 = vrot.slane %v7236_v63, 4  ;;  %v9009_v35 = vcombine.low %v8992_v57, %v8993_v32 }
 0x5a2   : > { %10040 = vmatmul.mubr.bf16.vlgmr.msra.gmra.mxu1 %v9015_v6  ;;  %v7211_v38 = vsel %vm11228_vm14, %v7206_v9, %v7210_v5  ;;  %v7289_v40 = vsel %vm11222_vm13, %v7287_v17, %v7288_v22  ;;  %v7228_v6 = vrot.slane %v7226_v34, 5 }
 0x5a3   : > { %v7192_v62 = vrot.slane %v7191_v58, 4  ;;  %v9012_v3 = vcombine.low %v7211_v38, %v7221_v54  ;;  %10043 = vmatprep.mubr.bf16.mxu1 %v9016_v11  ;;  %v9017_v24 = vcombine.low %v7286_v42, %v7289_v40  ;;  %v7239_v16 = vor.u32 %v7238_v53, %v7234_v56 }
 0x5a4   : > { %v7229_v28 = vor.u32 %v7228_v6, %v7225_v2 }
 0x5a5   : > { %v7197_v52 = vsel %vm11228_vm14, %v7192_v62, %v7196_v12  ;;  %v7240_v36 = vrot.slane %v7239_v16, 4 }
 0x5a6   : > { %v9011_v20 = vcombine.low %v7187_v4, %v7197_v52  ;;  %v7230_v13 = vrot.slane %v7229_v28, 4 }
 0x5a7   : > { %v7245_v41 = vsel %vm11228_vm14, %v7240_v36, %v7244_v45 }
 0x5a8   : > { %7575 = vmatprep.mubr.bf16.mxu0 %v9011_v20  ;;  %v7235_v21 = vsel %vm11228_vm14, %v7230_v13, %v7234_v56 }
 0x5a9   : > { %7576 = vmatmul.mubr.bf16.gmra.mxu0 %v9007_v19  ;;  %v9013_v0 = vcombine.low %v7235_v21, %v7245_v41 }
 0x5aa   : > { %7583 = vmatprep.mubr.bf16.mxu0 %v9012_v3  ;;  %10044 = vmatmul.mubr.bf16.gmra.mxu1 %v9017_v24 }
 0x5b1   : > { %7584 = vmatmul.mubr.bf16.gmra.mxu0 %v9008_v55 }
 0x5b2   : > { %7591 = vmatprep.mubr.bf16.mxu0 %v9013_v0 }
 0x5b9   : > { %7592 = vmatmul.mubr.bf16.gmra.mxu0 %v9009_v35 }
 0x620   : > { %v9619_v19 = vpop.f32.mrf.mxu0 }
 0x622   : > { %v9620_v46 = vpop.f32.mrf.mxu0  ;;  %v12767_v44 = vpop.f32.mrf.mxu1 }
 0x623   : > { %v9621_v14 = vadd.f32 %v9620_v46, %v9619_v19 }
 0x624   : > { %v9622_v37 = vpop.f32.mrf.mxu0  ;;  %v6828_v43 = vpop.f32.mrf.mxu1 }
 0x625   : > { %v6829_v56 = vadd.f32 %v9621_v14, %v6828_v43 }
 0x626   : > { %v9623_v47 = vpop.f32.mrf.mxu0  ;;  %v12777_v12 = vpop.f32.mrf.mxu1 }
 0x627   : > { %v9624_v53 = vadd.f32 %v9623_v47, %v9622_v37 }
 0x628   : > { %v9625_v49 = vpop.f32.mrf.mxu0  ;;  %v6831_v10 = vpop.f32.mrf.mxu1 }
 0x629   : > { %v6832_v21 = vadd.f32 %v9624_v53, %v6831_v10 }
 0x62a   : > { %v9626_v8 = vpop.f32.mrf.mxu0 }
 0x62b   : > { %v9627_v0 = vadd.f32 %v9626_v8, %v9625_v49 }
 0x62c   : > { %v12765_v51 = vpop.f32.mrf.mxu0  ;;  %v12783_v4 = vpop.f32.mrf.mxu1 }
 0x62d   : > { %v6837_v37 = vadd.f32 %v12767_v44, %v9627_v0 }
 0x62e   : > { %v12769_v18 = vpop.f32.mrf.mxu0  ;;  %v12789_v31 = vpop.f32.mrf.mxu1 }
 0x62f   : > { %v9630_v47 = vadd.f32 %v12769_v18, %v12765_v51 }
 0x630   : > { %v12771_v5 = vpop.f32.mrf.mxu0  ;;  %v12793_v62 = vpop.f32.mrf.mxu1 }
 0x632   : > { %v12773_v33 = vpop.f32.mrf.mxu0  ;;  %v12795_v15 = vpop.f32.mrf.mxu1 }
 0x633   : > { %v9633_v44 = vadd.f32 %v12773_v33, %v12771_v5 }
 0x634   : > { %v12775_v58 = vpop.f32.mrf.mxu0 }
 0x636   : > { %v12779_v1 = vpop.f32.mrf.mxu0 }
 0x638   : > { %v12781_v32 = vpop.f32.mrf.mxu0 }
 0x63a   : > { %v12785_v61 = vpop.f32.mrf.mxu0 }
 0x63c   : > { %v12787_v50 = vpop.f32.mrf.mxu0 }
 0x63e   : > { %v12791_v27 = vpop.f32.mrf.mxu0 }
 0x640   : > { %v9671_v57 = vpop.f32.mrf.mxu0 }
 0x642   : > { %v9672_v23 = vpop.f32.mrf.mxu0  ;;  %v10017_v25 = vpop.f32.mrf.mxu1 }
 0x643   : > { %v9673_v48 = vadd.f32 %v9672_v23, %v9671_v57 }
 0x644   : > { %v9674_v59 = vpop.f32.mrf.mxu0  ;;  %v7102_v7 = vpop.f32.mrf.mxu1 }
 0x645   : > { %v7038_v55 = vadd.f32 %v9673_v48, %v6829_v56 }
 0x646   : > { %v9675_v9 = vpop.f32.mrf.mxu0  ;;  %v12797_v22 = vpop.f32.mrf.mxu1 }
 0x647   : > { %v9676_v45 = vadd.f32 %v9675_v9, %v9674_v59  ;;  %v7103_v19 = vadd.f32 %v7102_v7, %v7038_v55 }
 0x648   : > { %v9677_v29 = vpop.f32.mrf.mxu0  ;;  %v7105_v20 = vpop.f32.mrf.mxu1 }
 0x649   : > { %v7041_v46 = vadd.f32 %v9676_v45, %v6832_v21  ;;  %v9642_v21 = vadd.f32 %v12791_v27, %v12787_v50 }
 0x64a   : > { %v9678_v52 = vpop.f32.mrf.mxu0  ;;  %v12799_v42 = vpop.f32.mrf.mxu1 }
 0x64b   : > { %13123 = vst [vmem:[#allocation27_spill] sm:$0xff] %v12799_v42  ;;  %v9679_v57 = vadd.f32 %v9678_v52, %v9677_v29  ;;  %v7106_v59 = vadd.f32 %v7105_v20, %v7041_v46 }
 0x64c   : > { %v9680_v30 = vpop.f32.mrf.mxu0  ;;  %v12801_v17 = vpop.f32.mrf.mxu1 }
 0x64d   : > { %v7046_v10 = vadd.f32 %v9679_v57, %v6837_v37 }
 0x64e   : > { %v9681_v26 = vpop.f32.mrf.mxu0  ;;  %v12805_v3 = vpop.f32.mrf.mxu1 }
 0x64f   : > { %13124 = vst [vmem:[#allocation28_spill] sm:$0xff] %v12805_v3  ;;  %v9682_v9 = vadd.f32 %v9681_v26, %v9680_v30  ;;  %v7111_v20 = vadd.f32 %v10017_v25, %v7046_v10  ;;  %v6845_v26 = vadd.f32 %v9633_v44, %v12789_v31 }
 0x650   : > { %v9683_v38 = vpop.f32.mrf.mxu0  ;;  %v12809_v63 = vpop.f32.mrf.mxu1 }
 0x652   : > { %v9684_v39 = vpop.f32.mrf.mxu0 }
 0x653   : > { %v9685_v48 = vadd.f32 %v9684_v39, %v9683_v38 }
 0x654   : > { %v9686_v54 = vpop.f32.mrf.mxu0 }
 0x655   : > { %v7054_v45 = vadd.f32 %v9685_v48, %v6845_v26 }
 0x656   : > { %v9687_v11 = vpop.f32.mrf.mxu0 }
 0x658   : > { %v12803_v2 = vpop.f32.mrf.mxu0 }
 0x65a   : > { %v12807_v34 = vpop.f32.mrf.mxu0 }
 0x65c   : > { %v12811_v40 = vpop.f32.mrf.mxu0 }
 0x65e   : > { %v12813_v24 = vpop.f32.mrf.mxu0 }
 0x660   : > { %v9723_v28 = vpop.f32.mrf.mxu0 }
 0x662   : > { %v10041_v6 = vpop.f32.mrf.mxu1  ;;  %v9724_v13 = vpop.f32.mrf.mxu0 }
 0x663   : > { %v9725_v41 = vadd.f32 %v9724_v13, %v9723_v28  ;;  %v9688_v28 = vadd.f32 %v9687_v11, %v9686_v54  ;;  %v7119_v54 = vadd.f32 %v12801_v17, %v7054_v45  ;;  %v9694_v17 = vadd.f32 %v12813_v24, %v12811_v40 }
 0x664   : > { %v7634_v16 = vpop.f32.mrf.mxu1  ;;  %v9726_v35 = vpop.f32.mrf.mxu0 }
 0x665   : > { %v7635_v60 = vadd.f32 %v9725_v41, %v7634_v16 }
 0x666   : > { %v10042_v36 = vpop.f32.mrf.mxu1  ;;  %v9727_v23 = vpop.f32.mrf.mxu0 }
 0x667   : > { %v7665_v42 = vadd.f32 %v7635_v60, %v7103_v19  ;;  %v9728_v43 = vadd.f32 %v9727_v23, %v9726_v35  ;;  %v6840_v60 = vadd.f32 %v12777_v12, %v9630_v47 }
 0x668   : > { %v7637_v3 = vpop.f32.mrf.mxu1 }
 0x669   : > { %9043 = vst [vmem:[%s12819_s18 + $0x100] sm:$0xff] %v7665_v42  ;;  %v9729_v49 = vpop.f32.mrf.mxu0  ;;  %v7638_v8 = vadd.f32 %v9728_v43, %v7637_v3  ;;  %v7049_v14 = vadd.f32 %v9682_v9, %v6840_v60  ;;  %v9636_v3 = vadd.f32 %v12779_v1, %v12775_v58  ;;  %v9639_v58 = vadd.f32 %v12785_v61, %v12781_v32  ;;  %v13125_v43 = vld [vmem:[#allocation27_spill] sm:$0xff] }
 0x66a   : > { %v10045_v18 = vpop.f32.mrf.mxu1 }
 0x66b   : > { %v7666_v29 = vadd.f32 %v7638_v8, %v7106_v59  ;;  %v9730_v7 = vpop.f32.mrf.mxu0  ;;  %v7114_v33 = vadd.f32 %v12797_v22, %v7049_v14  ;;  %v6848_v38 = vadd.f32 %v9636_v3, %v12795_v15  ;;  %v9691_v22 = vadd.f32 %v12807_v34, %v12803_v2  ;;  %v13126_v8 = vld [vmem:[#allocation28_spill] sm:$0xff] }
 0x66c   : > { %v9731_v52 = vadd.f32 %v9730_v7, %v9729_v49  ;;  %v7650_v5 = vpop.f32.mrf.mxu1  ;;  %v6853_v15 = vadd.f32 %v12783_v4, %v9639_v58  ;;  %v6856_v4 = vadd.f32 %v12793_v62, %v9642_v21 }
 0x66d   : > { %9044 = vst [vmem:[%s12819_s18 + $0x108] sm:$0xff] %v7666_v29  ;;  %v9732_v51 = vpop.f32.mrf.mxu0  ;;  %v7057_v31 = vadd.f32 %v9688_v28, %v6848_v38  ;;  %v7684_v2 = vadd.f32 %v7666_v29, %v7665_v42 }
 0x66e   : > { %v7643_v56 = vadd.f32 %v10041_v6, %v9731_v52  ;;  %v10046_v13 = vpop.f32.mrf.mxu1  ;;  %v7062_v19 = vadd.f32 %v9691_v22, %v6853_v15  ;;  %v7065_v37 = vadd.f32 %v9694_v17, %v6856_v4 }
 0x66f   : > { %v9733_v30 = vpop.f32.mrf.mxu0  ;;  %v7122_v41 = vadd.f32 %v12809_v63, %v7057_v31 }
 0x670   : > { %v7667_v53 = vadd.f32 %v7643_v56, %v7111_v20  ;;  %v9734_v12 = vadd.f32 %v9733_v30, %v9732_v51  ;;  %v7653_v0 = vpop.f32.mrf.mxu1  ;;  %v7127_v63 = vadd.f32 %v13125_v43, %v7062_v19  ;;  %v7130_v10 = vadd.f32 %v13126_v8, %v7065_v37 }
 0x671   : > { %v9735_v16 = vpop.f32.mrf.mxu0  ;;  %v10810_v30 = vmov (%p6059_p10), 0.0  }
 0x672   : > { %9045 = vst [vmem:[%s12819_s18 + $0x110] sm:$0xff] %v7667_v53  ;;  %v7646_v25 = vadd.f32 %v10042_v36, %v9734_v12  ;;  %v7685_v57 = vadd.f32 %v7684_v2, %v7667_v53 }
 0x673   : > { %v9736_v39 = vpop.f32.mrf.mxu0 }
 0x674   : > { %v7668_v1 = vadd.f32 %v7646_v25, %v7114_v33  ;;  %v9737_v6 = vadd.f32 %v9736_v39, %v9735_v16 }
 0x675   : > { %v9738_v55 = vpop.f32.mrf.mxu0 }
 0x676   : > { %9046 = vst [vmem:[%s12819_s18 + $0x118] sm:$0xff] %v7668_v1  ;;  %v7651_v11 = vadd.f32 %v9737_v6, %v7650_v5  ;;  %v7686_v47 = vadd.f32 %v7685_v57, %v7668_v1 }
 0x677   : > { %v9739_v36 = vpop.f32.mrf.mxu0 }
 0x678   : > { %v7669_v32 = vadd.f32 %v7651_v11, %v7119_v54  ;;  %v9740_v61 = vadd.f32 %v9739_v36, %v9738_v55 }
 0x679   : > { %v9741_v35 = vpop.f32.mrf.mxu0 }
 0x67a   : > { %9047 = vst [vmem:[%s12819_s18 + $0x120] sm:$0xff] %v7669_v32  ;;  %v7654_v34 = vadd.f32 %v9740_v61, %v7653_v0  ;;  %v7687_v40 = vadd.f32 %v7686_v47, %v7669_v32 }
 0x67b   : > { %v9742_v46 = vpop.f32.mrf.mxu0 }
 0x67c   : > { %v7670_v50 = vadd.f32 %v7654_v34, %v7122_v41  ;;  %v9743_v27 = vadd.f32 %v9742_v46, %v9741_v35 }
 0x67d   : > { %v9744_v23 = vpop.f32.mrf.mxu0 }
 0x67e   : > { %9048 = vst [vmem:[%s12819_s18 + $0x128] sm:$0xff] %v7670_v50  ;;  %v7659_v59 = vadd.f32 %v10045_v18, %v9743_v27  ;;  %v7688_v9 = vadd.f32 %v7687_v40, %v7670_v50  ;;  %v13127_v18 = vld [vmem:[#allocation26_spill] sm:$0xff] }
 0x67f   : > { %v9745_v49 = vpop.f32.mrf.mxu0 }
 0x680   : > { %v7671_v42 = vadd.f32 %v7659_v59, %v7127_v63  ;;  %v9746_v24 = vadd.f32 %v9745_v49, %v9744_v23 }
 0x682   : > { %9049 = vst [vmem:[%s12819_s18 + $0x130] sm:$0xff] %v7671_v42  ;;  %v7662_v62 = vadd.f32 %v10046_v13, %v9746_v24  ;;  %v7689_v29 = vadd.f32 %v7688_v9, %v7671_v42 }
 0x684   : > { %v7672_v7 = vadd.f32 %v7662_v62, %v7130_v10 }
 0x686   : > { %9050 = vst [vmem:[%s12819_s18 + $0x138] sm:$0xff] %v7672_v7  ;;  %v7690_v60 = vadd.f32 %v7689_v29, %v7672_v7 }
 0x688   : > { %v7691_v44 = vrot.slane %v7690_v60, 4 }
 0x68a   : > { %v7692_v52 = vadd.f32 %v7691_v44, %v7690_v60 }
 0x68c   : > { %v7693_v51 = vrot.slane %v7692_v52, 2 }
 0x68e   : > { %v7694_v20 = vadd.f32 %v7693_v51, %v7692_v52 }
 0x690   : > { %v7695_v14 = vrot.slane %v7694_v20, 1 }
 0x692   : > { %v7696_v48 = vadd.f32 %v7695_v14, %v7694_v20  ;;  %6061 = sbr.rel (!%p6059_p10) target bundleno = 1343 (0x53f), region = 298 }
 0x694   : > { %v7697_v56 = vadd.f32 %v13127_v18, %v7696_v48  }
 0x696   : > { %v13128_v60 = vmov %v7697_v56  ;;  %v12857_v3 = vmul.f32 (%p6059_p10), 0.001953125, %v7697_v56 }
 0x697 LB: > { %s9129_s2 = sshll.u32 %s10816_s0, 6  ;;  %s7704_s0 = sadd.s32 1, %s10816_s0   ;;  %s10816_s0 = sphi %s12859_s0, %s7704_s0   ;;  %v10812_v30 = vphi %v10810_v30, %v10811_v30  }
 0x698   : > { %s7708_s19 = scalar_lea.vmem [#allocation9], %s9129_s2  ;;  %p7701_p11 = scmp.ge.s32.totalorder %s7704_s0, 4  }
 0x699   : > { %v7709_v26 = vld [vmem:[%s7708_s19] sm:$0xff]  ;;  %v7710_v53 = vld [vmem:[%s7708_s19 + $0x8] sm:$0xff]  ;;  %v7711_v12 = vld [vmem:[%s7708_s19 + $0x10] sm:$0xff]  ;;  %s12876_s20 = smov (%p7701_p11), 0  }
 0x69a   : > { %v7712_v28 = vld [vmem:[%s7708_s19 + $0x18] sm:$0xff]  ;;  %v7713_v16 = vld [vmem:[%s7708_s19 + $0x20] sm:$0xff]  ;;  %v7717_v5 = vsub.f32 %v7709_v26, %v12857_v3  ;;  %v7718_v33 = vsub.f32 %v7710_v53, %v12857_v3  ;;  %v7719_v45 = vsub.f32 %v7711_v12, %v12857_v3  ;;  %v7714_v25 = vld [vmem:[%s7708_s19 + $0x28] sm:$0xff] }
 0x69b   : > { %v7720_v38 = vsub.f32 %v7712_v28, %v12857_v3  ;;  %v7721_v39 = vsub.f32 %v7713_v16, %v12857_v3  ;;  %v7715_v6 = vld [vmem:[%s7708_s19 + $0x30] sm:$0xff]  ;;  %v7722_v55 = vsub.f32 %v7714_v25, %v12857_v3  ;;  %v7716_v22 = vld [vmem:[%s7708_s19 + $0x38] sm:$0xff] }
 0x69c   : > { %v7725_v58 = vmul.f32 %v7717_v5, %v7717_v5  ;;  %v7726_v1 = vmul.f32 %v7718_v33, %v7718_v33  ;;  %v7727_v31 = vmul.f32 %v7719_v45, %v7719_v45  ;;  %v7723_v11 = vsub.f32 %v7715_v6, %v12857_v3 }
 0x69d   : > { %v7728_v13 = vmul.f32 %v7720_v38, %v7720_v38  ;;  %v7729_v36 = vmul.f32 %v7721_v39, %v7721_v39  ;;  %v7724_v21 = vsub.f32 %v7716_v22, %v12857_v3  ;;  %v7730_v32 = vmul.f32 %v7722_v55, %v7722_v55 }
 0x69e   : > { %v7733_v54 = vadd.f32 %v7726_v1, %v7725_v58  ;;  %v7731_v41 = vmul.f32 %v7723_v11, %v7723_v11 }
 0x69f   : > { %v7732_v35 = vmul.f32 %v7724_v21, %v7724_v21 }
 0x6a0   : > { %v7734_v15 = vadd.f32 %v7733_v54, %v7727_v31 }
 0x6a2   : > { %v7735_v61 = vadd.f32 %v7734_v15, %v7728_v13 }
 0x6a4   : > { %v7736_v0 = vadd.f32 %v7735_v61, %v7729_v36 }
 0x6a6   : > { %v7737_v19 = vadd.f32 %v7736_v0, %v7730_v32 }
 0x6a8   : > { %v7738_v17 = vadd.f32 %v7737_v19, %v7731_v41 }
 0x6aa   : > { %v7739_v2 = vadd.f32 %v7738_v17, %v7732_v35 }
 0x6ac   : > { %v7740_v34 = vrot.slane %v7739_v2, 4 }
 0x6ae   : > { %v7741_v46 = vadd.f32 %v7740_v34, %v7739_v2 }
 0x6b0   : > { %v7742_v4 = vrot.slane %v7741_v46, 2 }
 0x6b2   : > { %v7743_v57 = vadd.f32 %v7742_v4, %v7741_v46 }
 0x6b4   : > { %v7744_v50 = vrot.slane %v7743_v57, 1 }
 0x6b6   : > { %v7745_v27 = vadd.f32 %v7744_v50, %v7743_v57  ;;  %7703 = sbr.rel (!%p7701_p11) target bundleno = 1687 (0x697), region = 309 }
 0x6b8   : > { %v7746_v23 = vadd.f32 %v10812_v30, %v7745_v27  }
 0x6ba   : > { %v10811_v30 = vmov %v7746_v23   ;;  %v10818_v43 = vmov (%p7701_p11), %v7746_v23  }
 0x6bb LB: > { %s9053_s21 = sshll.u32 %s10824_s20, 6  ;;  %s7752_s20 = sadd.s32 1, %s10824_s20   ;;  %s10824_s20 = sphi %s12876_s20, %s7752_s20   ;;  %v10820_v43 = vphi %v10818_v43, %v10819_v43  }
 0x6bc   : > { %s8102_s22 = scalar_lea.vmem [#allocation9], %s9053_s21  ;;  %p7749_p12 = scmp.ge.s32.totalorder %s7752_s20, 4  }
 0x6bd   : > { %v9054_v63 = vld [vmem:[%s8102_s22 + $0x100] sm:$0xff]  ;;  %v9055_v37 = vld [vmem:[%s8102_s22 + $0x108] sm:$0xff]  ;;  %v9056_v47 = vld [vmem:[%s8102_s22 + $0x110] sm:$0xff]  ;;  %s12905_s25 = smov (%p7749_p12), 0  }
 0x6be   : > { %v9057_v59 = vld [vmem:[%s8102_s22 + $0x118] sm:$0xff]  ;;  %v9058_v49 = vld [vmem:[%s8102_s22 + $0x120] sm:$0xff]  ;;  %v7766_v40 = vsub.f32 %v9054_v63, %v12857_v3  ;;  %v7767_v42 = vsub.f32 %v9055_v37, %v12857_v3  ;;  %v7768_v24 = vsub.f32 %v9056_v47, %v12857_v3  ;;  %v9059_v8 = vld [vmem:[%s8102_s22 + $0x128] sm:$0xff] }
 0x6bf   : > { %v7769_v10 = vsub.f32 %v9057_v59, %v12857_v3  ;;  %v7770_v9 = vsub.f32 %v9058_v49, %v12857_v3  ;;  %v9060_v7 = vld [vmem:[%s8102_s22 + $0x130] sm:$0xff]  ;;  %v7771_v44 = vsub.f32 %v9059_v8, %v12857_v3  ;;  %v9061_v20 = vld [vmem:[%s8102_s22 + $0x138] sm:$0xff]  ;;  %v12896_v55 = vld [vmem:[%s13054_s5] ss:$0 sm:$0xff] (%p7749_p12) }
 0x6c0   : > { %v7774_v62 = vmul.f32 %v7766_v40, %v7766_v40  ;;  %v7775_v29 = vmul.f32 %v7767_v42, %v7767_v42  ;;  %v7776_v60 = vmul.f32 %v7768_v24, %v7768_v24  ;;  %v7772_v14 = vsub.f32 %v9060_v7, %v12857_v3  ;;  %v12901_v13 = vld [vmem:[%s13055_s6] ss:$0 sm:$0xff] (%p7749_p12) }
 0x6c1   : > { %v7777_v52 = vmul.f32 %v7769_v10, %v7769_v10  ;;  %v7778_v48 = vmul.f32 %v7770_v9, %v7770_v9  ;;  %v7773_v56 = vsub.f32 %v9061_v20, %v12857_v3  ;;  %v7779_v30 = vmul.f32 %v7771_v44, %v7771_v44 }
 0x6c2   : > { %v7782_v51 = vadd.f32 %v7775_v29, %v7774_v62  ;;  %v7780_v53 = vmul.f32 %v7772_v14, %v7772_v14 }
 0x6c3   : > { %v7781_v28 = vmul.f32 %v7773_v56, %v7773_v56 }
 0x6c4   : > { %v7783_v18 = vadd.f32 %v7782_v51, %v7776_v60 }
 0x6c6   : > { %v7784_v26 = vadd.f32 %v7783_v18, %v7777_v52 }
 0x6c8   : > { %v7785_v12 = vadd.f32 %v7784_v26, %v7778_v48 }
 0x6ca   : > { %v7786_v16 = vadd.f32 %v7785_v12, %v7779_v30 }
 0x6cc   : > { %v7787_v5 = vadd.f32 %v7786_v16, %v7780_v53 }
 0x6ce   : > { %v7788_v33 = vadd.f32 %v7787_v5, %v7781_v28 }
 0x6d0   : > { %v7789_v45 = vrot.slane %v7788_v33, 4 }
 0x6d2   : > { %v7790_v25 = vadd.f32 %v7789_v45, %v7788_v33 }
 0x6d4   : > { %v7791_v38 = vrot.slane %v7790_v25, 2 }
 0x6d6   : > { %v7792_v39 = vadd.f32 %v7791_v38, %v7790_v25 }
 0x6d8   : > { %v7793_v58 = vrot.slane %v7792_v39, 1 }
 0x6da   : > { %v7794_v1 = vadd.f32 %v7793_v58, %v7792_v39  ;;  %7751 = sbr.rel (!%p7749_p12) target bundleno = 1723 (0x6bb), region = 320 }
 0x6dc   : > { %v7795_v6 = vadd.f32 %v10820_v43, %v7794_v1  }
 0x6de   : > { %v10819_v43 = vmov %v7795_v6   ;;  %v7796_v31 = vmul.f32 (%p7749_p12), 0.001953125, %v7795_v6 }
 0x6e0   :  { %v7797_v54 = vadd.f32 1e-05, %v7796_v31 }
 0x6e2   :  { %10570 = vrsqrt.f32 %v7797_v54 }
 0x6ef   :  { %v12903_v22 = vpop.eup %10570 }
 0x6f0 LB: > { %s9130_s26 = sshll.u32 %s10828_s25, 6  ;;  %s7806_s25 = sadd.s32 1, %s10828_s25   ;;  %s10828_s25 = sphi %s12905_s25, %s7806_s25  }
 0x6f1   : > { %s12911_s5 = scalar_lea.vmem [#allocation9], %s9130_s26  ;;  %s12934_s6 = scalar_lea.vmem [#allocation3], %s9130_s26 }
 0x6f2   : > { %v7810_v11 = vld [vmem:[%s12911_s5] sm:$0xff]  ;;  %v7811_v36 = vld [vmem:[%s12911_s5 + $0x8] sm:$0xff]  ;;  %v7812_v32 = vld [vmem:[%s12911_s5 + $0x10] sm:$0xff]  ;;  %p7803_p13 = scmp.ge.s32.totalorder %s7806_s25, 4  }
 0x6f3   : > { %v7827_v15 = vsub.f32 %v7810_v11, %v12857_v3  ;;  %v7828_v21 = vsub.f32 %v7811_v36, %v12857_v3  ;;  %v7829_v61 = vsub.f32 %v7812_v32, %v12857_v3  ;;  %v7813_v41 = vld [vmem:[%s12911_s5 + $0x18] sm:$0xff]  ;;  %v7814_v0 = vld [vmem:[%s12911_s5 + $0x20] sm:$0xff]  ;;  %v7815_v34 = vld [vmem:[%s12911_s5 + $0x28] sm:$0xff]  ;;  %s12974_s27 = smov (%p7803_p13), 0  }
 0x6f4   : > { %v7830_v17 = vsub.f32 %v7813_v41, %v12857_v3  ;;  %v7831_v2 = vsub.f32 %v7814_v0, %v12857_v3  ;;  %v7832_v4 = vsub.f32 %v7815_v34, %v12857_v3  ;;  %v7816_v57 = vld [vmem:[%s12911_s5 + $0x30] sm:$0xff]  ;;  %v7817_v50 = vld [vmem:[%s12911_s5 + $0x38] sm:$0xff]  ;;  %v7819_v37 = vld [vmem:[%s12934_s6] sm:$0xff] }
 0x6f5   : > { %v7835_v35 = vmul.f32 %v12903_v22, %v7827_v15  ;;  %v7836_v19 = vmul.f32 %v12903_v22, %v7828_v21  ;;  %v7837_v46 = vmul.f32 %v12903_v22, %v7829_v61  ;;  %v7820_v47 = vld [vmem:[%s12934_s6 + $0x8] sm:$0xff]  ;;  %v7833_v40 = vsub.f32 %v7816_v57, %v12857_v3  ;;  %v7821_v10 = vld [vmem:[%s12934_s6 + $0x10] sm:$0xff]  ;;  %v7822_v7 = vld [vmem:[%s12934_s6 + $0x18] sm:$0xff] }
 0x6f6   : > { %v7838_v43 = vmul.f32 %v12903_v22, %v7830_v17  ;;  %v7839_v63 = vmul.f32 %v12903_v22, %v7831_v2  ;;  %v7840_v49 = vmul.f32 %v12903_v22, %v7832_v4  ;;  %v7834_v42 = vsub.f32 %v7817_v50, %v12857_v3  ;;  %v7823_v60 = vld [vmem:[%s12934_s6 + $0x20] sm:$0xff]  ;;  %v7824_v56 = vld [vmem:[%s12934_s6 + $0x28] sm:$0xff]  ;;  %v7825_v45 = vld [vmem:[%s12934_s6 + $0x30] sm:$0xff] }
 0x6f7   : > { %v7849_v27 = vmul.f32 %v12896_v55, %v7835_v35  ;;  %v7850_v23 = vmul.f32 %v12896_v55, %v7836_v19  ;;  %v7851_v59 = vmul.f32 %v12896_v55, %v7837_v46  ;;  %v7841_v52 = vmul.f32 %v12903_v22, %v7833_v40  ;;  %v7826_v25 = vld [vmem:[%s12934_s6 + $0x38] sm:$0xff] }
 0x6f8   : > { %v7852_v9 = vmul.f32 %v12896_v55, %v7838_v43  ;;  %v7853_v62 = vmul.f32 %v12896_v55, %v7839_v63  ;;  %v7854_v44 = vmul.f32 %v12896_v55, %v7840_v49  ;;  %v7842_v51 = vmul.f32 %v12903_v22, %v7834_v42 }
 0x6f9   : > { %v7863_v24 = vadd.f32 %v12901_v13, %v7849_v27  ;;  %v7864_v8 = vadd.f32 %v12901_v13, %v7850_v23  ;;  %v7865_v29 = vadd.f32 %v12901_v13, %v7851_v59  ;;  %v7855_v53 = vmul.f32 %v12896_v55, %v7841_v52 }
 0x6fa   : > { %v7866_v48 = vadd.f32 %v12901_v13, %v7852_v9  ;;  %v7867_v18 = vadd.f32 %v12901_v13, %v7853_v62  ;;  %v7868_v26 = vadd.f32 %v12901_v13, %v7854_v44  ;;  %v7856_v12 = vmul.f32 %v12896_v55, %v7842_v51 }
 0x6fb   : > { %v7871_v20 = vadd.f32 %v7863_v24, %v7819_v37  ;;  %v7872_v14 = vadd.f32 %v7864_v8, %v7820_v47  ;;  %v7873_v30 = vadd.f32 %v7865_v29, %v7821_v10  ;;  %v7869_v58 = vadd.f32 %v12901_v13, %v7855_v53 }
 0x6fc   : > { %v7874_v5 = vadd.f32 %v7866_v48, %v7822_v7  ;;  %v7875_v33 = vadd.f32 %v7867_v18, %v7823_v60  ;;  %v7876_v39 = vadd.f32 %v7868_v26, %v7824_v56  ;;  %v7870_v1 = vadd.f32 %v12901_v13, %v7856_v12 }
 0x6fd   : > { %v7879_v28 = vmax.f32 %v7871_v20, 0.0  ;;  %v7880_v16 = vmax.f32 %v7872_v14, 0.0  ;;  %v7881_v38 = vmax.f32 %v7873_v30, 0.0  ;;  %v7877_v11 = vadd.f32 %v7869_v58, %v7825_v45 }
 0x6fe   : > { %v7882_v6 = vmax.f32 %v7874_v5, 0.0  ;;  %v7883_v31 = vmax.f32 %v7875_v33, 0.0  ;;  %v7884_v54 = vmax.f32 %v7876_v39, 0.0  ;;  %v7878_v36 = vadd.f32 %v7870_v1, %v7826_v25 }
 0x6ff   : > { %7887 = vst [vmem:[%s12911_s5] sm:$0xff] %v7879_v28  ;;  %7888 = vst [vmem:[%s12911_s5 + $0x8] sm:$0xff] %v7880_v16  ;;  %v7885_v15 = vmax.f32 %v7877_v11, 0.0 }
 0x700   : > { %7889 = vst [vmem:[%s12911_s5 + $0x10] sm:$0xff] %v7881_v38  ;;  %7890 = vst [vmem:[%s12911_s5 + $0x18] sm:$0xff] %v7882_v6  ;;  %v7886_v21 = vmax.f32 %v7878_v36, 0.0 }
 0x701   : > { %7891 = vst [vmem:[%s12911_s5 + $0x20] sm:$0xff] %v7883_v31  ;;  %7892 = vst [vmem:[%s12911_s5 + $0x28] sm:$0xff] %v7884_v54 }
 0x702   : > { %7893 = vst [vmem:[%s12911_s5 + $0x30] sm:$0xff] %v7885_v15  ;;  %7894 = vst [vmem:[%s12911_s5 + $0x38] sm:$0xff] %v7886_v21  ;;  %7805 = sbr.rel (!%p7803_p13) target bundleno = 1776 (0x6f0), region = 331 }
 0x707 LB: > { %s9064_s28 = sshll.u32 %s10832_s27, 6  ;;  %s7900_s27 = sadd.s32 1, %s10832_s27   ;;  %s10832_s27 = sphi %s12974_s27, %s7900_s27  }
 0x708   : > { %s12980_s29 = scalar_lea.vmem [#allocation9], %s9064_s28  ;;  %s13003_s30 = scalar_lea.vmem [#allocation3], %s9064_s28 }
 0x709   : > { %v9065_v32 = vld [vmem:[%s12980_s29 + $0x100] sm:$0xff]  ;;  %v9066_v61 = vld [vmem:[%s12980_s29 + $0x108] sm:$0xff]  ;;  %v9067_v35 = vld [vmem:[%s12980_s29 + $0x110] sm:$0xff]  ;;  %p7897_p0 = scmp.ge.s32.totalorder %s7900_s27, 4  }
 0x70a   : > { %v7922_v41 = vsub.f32 %v9065_v32, %v12857_v3  ;;  %v7923_v0 = vsub.f32 %v9066_v61, %v12857_v3  ;;  %v7924_v19 = vsub.f32 %v9067_v35, %v12857_v3  ;;  %v9068_v17 = vld [vmem:[%s12980_s29 + $0x118] sm:$0xff]  ;;  %v9069_v2 = vld [vmem:[%s12980_s29 + $0x120] sm:$0xff]  ;;  %v9070_v50 = vld [vmem:[%s12980_s29 + $0x128] sm:$0xff]  ;;  %s10842_s8 = smov (%p7897_p0), [#allocation9]  }
 0x70b   : > { %v7925_v4 = vsub.f32 %v9068_v17, %v12857_v3  ;;  %v7926_v57 = vsub.f32 %v9069_v2, %v12857_v3  ;;  %v7927_v23 = vsub.f32 %v9070_v50, %v12857_v3  ;;  %v9071_v43 = vld [vmem:[%s12980_s29 + $0x130] sm:$0xff]  ;;  %v9072_v63 = vld [vmem:[%s12980_s29 + $0x138] sm:$0xff]  ;;  %v9074_v40 = vld [vmem:[%s13003_s30 + $0x100] sm:$0xff]  ;;  %s7995_s9 = sshll.u32 (%p7897_p0), %s10842_s8, 4  ;;  %s7996_s9 = int_to_ptr.vmem [resolvable:$true] %s7995_s9 }
 0x70c   : > { %v7930_v34 = vmul.f32 %v12903_v22, %v7922_v41  ;;  %v7931_v46 = vmul.f32 %v12903_v22, %v7923_v0  ;;  %v7932_v27 = vmul.f32 %v12903_v22, %v7924_v19  ;;  %v9075_v42 = vld [vmem:[%s13003_s30 + $0x108] sm:$0xff]  ;;  %v7928_v10 = vsub.f32 %v9071_v43, %v12857_v3  ;;  %v9076_v7 = vld [vmem:[%s13003_s30 + $0x110] sm:$0xff]  ;;  %v9077_v51 = vld [vmem:[%s13003_s30 + $0x118] sm:$0xff]  ;;  %s10632_s10 = scalar_lea.vmem (%p7897_p0), %s7996_s9, 8192  ;;  %p10637_p2 = scmp.lt.s32.totalorder (%p7897_p0), %s7996_s9, %s7996_s9 }
 0x70d   : > { %v7933_v59 = vmul.f32 %v12903_v22, %v7925_v4  ;;  %v7934_v49 = vmul.f32 %v12903_v22, %v7926_v57  ;;  %v7935_v8 = vmul.f32 %v12903_v22, %v7927_v23  ;;  %v7929_v9 = vsub.f32 %v9072_v63, %v12857_v3  ;;  %v9078_v20 = vld [vmem:[%s13003_s30 + $0x120] sm:$0xff]  ;;  %v9079_v12 = vld [vmem:[%s13003_s30 + $0x128] sm:$0xff]  ;;  %v9080_v58 = vld [vmem:[%s13003_s30 + $0x130] sm:$0xff]  ;;  %p10633_p1 = scmp.ne.s32.totalorder (%p7897_p0), %s7996_s9, %s10632_s10  ;;  %p10638_p3 = scmp.lt.s32.totalorder (%p7897_p0), %s10632_s10, %s10632_s10 }
 0x70e   : > { %v7944_v37 = vmul.f32 %v12896_v55, %v7930_v34  ;;  %v7945_v47 = vmul.f32 %v12896_v55, %v7931_v46  ;;  %v7946_v24 = vmul.f32 %v12896_v55, %v7932_v27  ;;  %v7936_v48 = vmul.f32 %v12903_v22, %v7928_v10  ;;  %v9081_v1 = vld [vmem:[%s13003_s30 + $0x138] sm:$0xff] }
 0x70f   : > { %v7947_v60 = vmul.f32 %v12896_v55, %v7933_v59  ;;  %v7948_v44 = vmul.f32 %v12896_v55, %v7934_v49  ;;  %v7949_v14 = vmul.f32 %v12896_v55, %v7935_v8  ;;  %v7937_v18 = vmul.f32 %v12903_v22, %v7929_v9  ;;  %p10639_p4 = por (%p7897_p0), %p10638_p3, %p10637_p2 }
 0x710   : > { %v7958_v62 = vadd.f32 %v12901_v13, %v7944_v37  ;;  %v7959_v29 = vadd.f32 %v12901_v13, %v7945_v47  ;;  %v7960_v52 = vadd.f32 %v12901_v13, %v7946_v24  ;;  %v7950_v5 = vmul.f32 %v12896_v55, %v7936_v48 }
 0x711   : > { %v7961_v26 = vadd.f32 %v12901_v13, %v7947_v60  ;;  %v7962_v53 = vadd.f32 %v12901_v13, %v7948_v44  ;;  %v7963_v16 = vadd.f32 %v12901_v13, %v7949_v14  ;;  %v7951_v33 = vmul.f32 %v12896_v55, %v7937_v18  ;;  %p10640_p5 = pnand (%p7897_p0), %p10639_p4, %p10633_p1 }
 0x712   : > { %v7966_v56 = vadd.f32 %v9074_v40, %v7958_v62  ;;  %v7967_v30 = vadd.f32 %v9075_v42, %v7959_v29  ;;  %v7968_v28 = vadd.f32 %v9076_v7, %v7960_v52  ;;  %v7964_v54 = vadd.f32 %v12901_v13, %v7950_v5 }
 0x713   : > { %v7969_v38 = vadd.f32 %v9077_v51, %v7961_v26  ;;  %v7970_v39 = vadd.f32 %v9078_v20, %v7962_v53  ;;  %v7971_v31 = vadd.f32 %v9079_v12, %v7963_v16  ;;  %v7965_v11 = vadd.f32 %v12901_v13, %v7951_v33 }
 0x714   : > { %v7974_v45 = vmax.f32 %v7966_v56, 0.0  ;;  %v7975_v25 = vmax.f32 %v7967_v30, 0.0  ;;  %v7976_v6 = vmax.f32 %v7968_v28, 0.0  ;;  %v7972_v32 = vadd.f32 %v9080_v58, %v7964_v54 }
 0x715   : > { %v7977_v36 = vmax.f32 %v7969_v38, 0.0  ;;  %v7978_v15 = vmax.f32 %v7970_v39, 0.0  ;;  %v7979_v21 = vmax.f32 %v7971_v31, 0.0  ;;  %v7973_v61 = vadd.f32 %v9081_v1, %v7965_v11 }
 0x716   : > { %9082 = vst [vmem:[%s12980_s29 + $0x100] sm:$0xff] %v7974_v45  ;;  %9083 = vst [vmem:[%s12980_s29 + $0x108] sm:$0xff] %v7975_v25  ;;  %v7980_v41 = vmax.f32 %v7972_v32, 0.0 }
 0x717   : > { %9084 = vst [vmem:[%s12980_s29 + $0x110] sm:$0xff] %v7976_v6  ;;  %9085 = vst [vmem:[%s12980_s29 + $0x118] sm:$0xff] %v7977_v36  ;;  %v7981_v0 = vmax.f32 %v7973_v61, 0.0 }
 0x718   : > { %9086 = vst [vmem:[%s12980_s29 + $0x120] sm:$0xff] %v7978_v15  ;;  %9087 = vst [vmem:[%s12980_s29 + $0x128] sm:$0xff] %v7979_v21 }
 0x719   : > { %9088 = vst [vmem:[%s12980_s29 + $0x130] sm:$0xff] %v7980_v41  ;;  %9089 = vst [vmem:[%s12980_s29 + $0x138] sm:$0xff] %v7981_v0  ;;  %7899 = sbr.rel (!%p7897_p0) target bundleno = 1799 (0x707), region = 342 }
 0x71e   :  { %10643 = shalt.err (!%p10640_p5)
}
 0x71f   :  { %8001 = dma.vmem_to_hbm [thread:$0]  %s7996_s9, 8192, %s13056_s7, [#allocation5], %s10838_s11, %s10838_s11, %s10839_s12  }
 0x720   :  { %10744 = dma.done.wait [#allocation5], 8192  }
 0x721   :  { %10745 = vsyncadd [#allocation5], 4294959104 }
 0x722   :  { %8005 = vsyncpa [#allocation4], 1 }
 0x723   :  { %8006 = vsyncpa [#allocation7], 1 }
 0x724   :  { %8007 = vsyncpa [#allocation5], 1 }

</bundles_post_ra>
